<compile_context>
chip_gen: v5e
topology: v5e:2x2
jax: 0.10.0
libtpu: 0.0.40
codegen_flags: <defaults>
</compile_context>

<pallas_src>
import functools
import math

import jax
import jax.numpy as jnp
from jax import lax
from jax.experimental import pallas as pl
from jax.experimental.pallas import tpu as pltpu

# ------------------------- scaled-down CLIP config -------------------------
IMG = 224                     # F.interpolate target size from the module
PATCH = 32
GRIDP = IMG // PATCH          # 7
TOKENS = GRIDP * GRIDP + 1    # 50 (cls + patches)
PATCH_DIM = 3 * PATCH * PATCH # 3072
WIDTH = 64
HEADS = 4
HEAD_DIM = WIDTH // HEADS
LAYERS = 2
EMBED = 32
LN_EPS = 1e-5
COS_EPS = 1e-8

CLIP_MEAN = (0.48145466, 0.4578275, 0.40821073)
CLIP_STD = (0.26862954, 0.26130258, 0.27577711)


# ------------------------------ Pallas kernels ------------------------------
def _resize_norm_kernel(x_ref, wh_ref, wwt_ref, o_ref, *, inv_std, shift):
    # One image (all 3 channels) per grid step:
    #   y_c = Wh @ x_c @ Ww^T ;  out_c = y_c * inv_std_c + shift_c  (single FMA)
    wh = wh_ref[...]
    wwt = wwt_ref[...]
    for c in range(len(inv_std)):                          # static unroll (3)
        t = jnp.dot(wh, x_ref[c], preferred_element_type=jnp.float32)
        y = jnp.dot(t, wwt, preferred_element_type=jnp.float32)
        o_ref[c] = (y * inv_std[c] + shift[c]).astype(o_ref.dtype)


def _ln(x, g, b):
    # f32 LayerNorm over the lane (feature) axis; g/b are (1, D) rows.
    mu = jnp.mean(x, axis=-1, keepdims=True)
    var = jnp.mean(jnp.square(x - mu), axis=-1, keepdims=True)
    return (x - mu) * lax.rsqrt(var + LN_EPS) * g + b


def _encoder_kernel(patches_ref, patch_w_ref, add_tok_ref,
                    ln_pre_g_ref, ln_pre_b_ref,
                    ln1_g_ref, ln1_b_ref, qkv_w_ref, qkv_b_ref,
                    out_w_ref, out_b_ref, ln2_g_ref, ln2_b_ref,
                    fc_w_ref, fc_b_ref, cproj_w_ref, cproj_b_ref,
                    ln_post_g_ref, ln_post_b_ref, proj_ref,
                    feat_ref):
    """Whole ViT encoder for ONE image (one grid step). Everything stays in
    VMEM; the only store is the final (1, EMBED) feature row."""
    scale = 1.0 / math.sqrt(HEAD_DIM)

    # patch embedding (bf16 operands, f32 MXU accumulate).  Row 0 of the patch
    # block is a zero pad for the cls slot; add_tok row 0 = class_emb +
    # pos_emb[0], rows 1.. = pos_emb[1:].
    x = jnp.dot(patches_ref[...], patch_w_ref[...],
                preferred_element_type=jnp.float32) + add_tok_ref[...]
    x = _ln(x, ln_pre_g_ref[...], ln_pre_b_ref[...])          # (T, W) f32

    for l in range(LAYERS):                                    # static unroll
        # ---------------- attention branch ----------------
        h = _ln(x, ln1_g_ref[l], ln1_b_ref[l])
        qkv = jnp.dot(h, qkv_w_ref[l],
                      preferred_element_type=jnp.float32) + qkv_b_ref[l]
        out_w = out_w_ref[l]                                   # (W, W)
        attn = None
        for hd in range(HEADS):                                # static unroll
            lo = hd * HEAD_DIM
            q = qkv[:, lo:lo + HEAD_DIM] * scale               # (T, dh)
            k = qkv[:, WIDTH + lo:WIDTH + lo + HEAD_DIM]
            v = qkv[:, 2 * WIDTH + lo:2 * WIDTH + lo + HEAD_DIM]
            # q @ k^T without materializing the transpose.
            s = lax.dot_general(q, k, (((1,), (1,)), ((), ())),
                                preferred_element_type=jnp.float32)  # (T, T)
            m = jnp.max(s, axis=-1, keepdims=True)
            p = jnp.exp(s - m)
            p = p * pl.reciprocal(jnp.sum(p, axis=-1, keepdims=True),
                                  approx=True)
            o = jnp.dot(p, v, preferred_element_type=jnp.float32)    # (T, dh)
            # fold the per-head lane concat into the output projection:
            #   concat_h(o_h) @ W == sum_h o_h @ W[h*dh:(h+1)*dh, :]
            contrib = jnp.dot(o, out_w[lo:lo + HEAD_DIM, :],
                              preferred_element_type=jnp.float32)    # (T, W)
            attn = contrib if attn is None else attn + contrib
        x = x + attn + out_b_ref[l]                            # fused residual

        # ---------------- MLP branch (QuickGELU) ----------------
        h = _ln(x, ln2_g_ref[l], ln2_b_ref[l])
        g = jnp.dot(h, fc_w_ref[l],
                    preferred_element_type=jnp.float32) + fc_b_ref[l]
        g = g * jax.nn.sigmoid(1.702 * g)                      # QuickGELU, f32
        x = x + jnp.dot(g, cproj_w_ref[l],
                        preferred_element_type=jnp.float32) + cproj_b_ref[l]

    cls = x[0:1, :]                                            # (1, W)
    cls = _ln(cls, ln_post_g_ref[...], ln_post_b_ref[...])
    feat_ref[...] = jnp.dot(cls, proj_ref[...],
                            preferred_element_type=jnp.float32)  # (1, E)


def _cos_loss_kernel(f_ref, o_ref, *, n_pairs):
    f = f_ref[...]                                             # (2n, E)
    a = f[0:n_pairs, :]
    b = f[n_pairs:2 * n_pairs, :]
    dot = jnp.sum(a * b, axis=1, keepdims=True)
    an = jnp.sqrt(jnp.sum(a * a, axis=1, keepdims=True))
    bn = jnp.sqrt(jnp.sum(b * b, axis=1, keepdims=True))
    # match torch CosineSimilarity: clamp each norm separately.
    cos = dot / (jnp.maximum(an, COS_EPS) * jnp.maximum(bn, COS_EPS))
    o_ref[...] = jnp.reshape(1.0 - jnp.mean(cos), (1, 1))


# ------------------------------ kernel wrappers ------------------------------
def resize_normalize(x, wh, ww_t):
    """x: (n_img, 3, Hin, Win) -> (n_img, 3, 224, 224) bf16, CLIP-normalized."""
    n, c, hin, win = x.shape
    hout, wout = wh.shape[0], ww_t.shape[1]
    inv_std = tuple(1.0 / s for s in CLIP_STD)
    shift = tuple(-m / s for m, s in zip(CLIP_MEAN, CLIP_STD))
    return pl.pallas_call(
        functools.partial(_resize_norm_kernel, inv_std=inv_std, shift=shift),
        out_shape=jax.ShapeDtypeStruct((n, c, hout, wout), jnp.bfloat16),
        grid=(n,),
        in_specs=[
            pl.BlockSpec((None, c, hin, win), lambda i: (i, 0, 0, 0)),
            pl.BlockSpec((hout, hin), lambda i: (0, 0)),
            pl.BlockSpec((win, wout), lambda i: (0, 0)),
        ],
        out_specs=pl.BlockSpec((None, c, hout, wout),
                               lambda i: (i, 0, 0, 0)),
        compiler_params=pltpu.CompilerParams(
            dimension_semantics=("parallel",)),   # independent per-image work
    )(x, wh, ww_t)


def encode_images(patches, pw):
    """patches: (n_img, TOKENS, PATCH_DIM) bf16 with row 0 per image zero-padded
    (cls slot).  Returns (n_img, EMBED) f32 features."""
    n_img = patches.shape[0]

    def full(shape):  # whole array resident in VMEM, fetched once
        return pl.BlockSpec(shape, lambda i, _s=shape: (0,) * len(_s))

    feats = pl.pallas_call(
        _encoder_kernel,
        out_shape=jax.ShapeDtypeStruct((n_img, 1, EMBED), jnp.float32),
        grid=(n_img,),
        in_specs=[
            pl.BlockSpec((None, TOKENS, PATCH_DIM), lambda i: (i, 0, 0)),
            full((PATCH_DIM, WIDTH)),
            full((TOKENS, WIDTH)),
            full((1, WIDTH)), full((1, WIDTH)),                 # ln_pre
            full((LAYERS, 1, WIDTH)), full((LAYERS, 1, WIDTH)), # ln1
            full((LAYERS, WIDTH, 3 * WIDTH)), full((LAYERS, 1, 3 * WIDTH)),
            full((LAYERS, WIDTH, WIDTH)), full((LAYERS, 1, WIDTH)),
            full((LAYERS, 1, WIDTH)), full((LAYERS, 1, WIDTH)), # ln2
            full((LAYERS, WIDTH, 4 * WIDTH)), full((LAYERS, 1, 4 * WIDTH)),
            full((LAYERS, 4 * WIDTH, WIDTH)), full((LAYERS, 1, WIDTH)),
            full((1, WIDTH)), full((1, WIDTH)),                 # ln_post
            full((WIDTH, EMBED)),
        ],
        out_specs=pl.BlockSpec((None, 1, EMBED), lambda i: (i, 0, 0)),
        compiler_params=pltpu.CompilerParams(
            # independent per-image work -> megacore-shardable on v7x
            dimension_semantics=("parallel",),
            # actual budget: ~1.1 MB weights (bf16 patch_w) + 2x0.3 MB bf16
            # patch blocks + <0.2 MB activations; 32 MiB is safe everywhere.
            vmem_limit_bytes=32 * 1024 * 1024),
    )(patches, pw["patch_w"], pw["add_tok"],
      pw["ln_pre_g"], pw["ln_pre_b"],
      pw["ln1_g"], pw["ln1_b"], pw["qkv_w"], pw["qkv_b"],
      pw["out_w"], pw["out_b"], pw["ln2_g"], pw["ln2_b"],
      pw["fc_w"], pw["fc_b"], pw["cproj_w"], pw["cproj_b"],
      pw["ln_post_g"], pw["ln_post_b"], pw["proj"])
    return feats.reshape(n_img, EMBED)


def cosine_loss(feats, n_pairs):
    out = pl.pallas_call(
        functools.partial(_cos_loss_kernel, n_pairs=n_pairs),
        out_shape=jax.ShapeDtypeStruct((1, 1), jnp.float32),
        grid=(1,),
        in_specs=[pl.BlockSpec((2 * n_pairs, EMBED), lambda i: (0, 0))],
        out_specs=pl.BlockSpec((1, 1), lambda i: (0, 0)),
    )(feats)
    return out[0, 0]


# ------------------------------- model pieces -------------------------------
def bilinear_matrix(in_size, out_size):
    """Dense (out, in) interpolation matrix matching F.interpolate(bilinear,
    align_corners=False) separably along one axis."""
    scale = in_size / out_size
    i = jnp.arange(out_size, dtype=jnp.float32)
    src = jnp.maximum((i + 0.5) * scale - 0.5, 0.0)
    i0 = jnp.clip(jnp.floor(src), 0, in_size - 1)
    i1 = jnp.minimum(i0 + 1, in_size - 1)
    w1 = src - i0
    w0 = 1.0 - w1
    oh0 = jax.nn.one_hot(i0.astype(jnp.int32), in_size, dtype=jnp.float32)
    oh1 = jax.nn.one_hot(i1.astype(jnp.int32), in_size, dtype=jnp.float32)
    return w0[:, None] * oh0 + w1[:, None] * oh1


def init_params(key):
    def nrm(k, shape, scale=0.02):
        return scale * jax.random.normal(k, shape, dtype=jnp.float32)

    keys = jax.random.split(key, 4 + LAYERS)
    p = {
        "patch_w": nrm(keys[0], (PATCH_DIM, WIDTH)),
        "class_emb": nrm(keys[1], (WIDTH,)),
        "pos_emb": nrm(keys[2], (TOKENS, WIDTH)),
        "ln_pre_g": jnp.ones((WIDTH,), jnp.float32),
        "ln_pre_b": jnp.zeros((WIDTH,), jnp.float32),
        "ln_post_g": jnp.ones((WIDTH,), jnp.float32),
        "ln_post_b": jnp.zeros((WIDTH,), jnp.float32),
        "proj": nrm(keys[3], (WIDTH, EMBED)),
        "layers": [],
    }
    for l in range(LAYERS):
        lk = jax.random.split(keys[4 + l], 4)
        p["layers"].append({
            "ln1_g": jnp.ones((WIDTH,), jnp.float32),
            "ln1_b": jnp.zeros((WIDTH,), jnp.float32),
            "qkv_w": nrm(lk[0], (WIDTH, 3 * WIDTH)),
            "qkv_b": jnp.zeros((3 * WIDTH,), jnp.float32),
            "out_w": nrm(lk[1], (WIDTH, WIDTH)),
            "out_b": jnp.zeros((WIDTH,), jnp.float32),
            "ln2_g": jnp.ones((WIDTH,), jnp.float32),
            "ln2_b": jnp.zeros((WIDTH,), jnp.float32),
            "fc_w": nrm(lk[2], (WIDTH, 4 * WIDTH)),
            "fc_b": jnp.zeros((4 * WIDTH,), jnp.float32),
            "cproj_w": nrm(lk[3], (4 * WIDTH, WIDTH)),
            "cproj_b": jnp.zeros((WIDTH,), jnp.float32),
        })
    return p


def pack_params(p):
    """Stack per-layer weights along a leading layer axis and reshape vectors
    to (1, D) rows so the fused encoder takes a flat list of arrays."""
    def row(v):
        return v.reshape(1, -1)

    def stack_w(name):
        return jnp.stack([lp[name] for lp in p["layers"]])

    def stack_b(name):
        return jnp.stack([lp[name].reshape(1, -1) for lp in p["layers"]])

    # additive token term: row 0 = class_emb + pos[0], rows 1.. = pos[1:]
    add_tok = jnp.concatenate(
        [(p["class_emb"] + p["pos_emb"][0])[None, :], p["pos_emb"][1:]], axis=0)
    return {
        # patch-embed weight carried in bf16 (f32 MXU accumulate in-kernel)
        "patch_w": p["patch_w"].astype(jnp.bfloat16),
        "add_tok": add_tok,
        "ln_pre_g": row(p["ln_pre_g"]), "ln_pre_b": row(p["ln_pre_b"]),
        "ln_post_g": row(p["ln_post_g"]), "ln_post_b": row(p["ln_post_b"]),
        "proj": p["proj"],
        "ln1_g": stack_b("ln1_g"), "ln1_b": stack_b("ln1_b"),
        "qkv_w": stack_w("qkv_w"), "qkv_b": stack_b("qkv_b"),
        "out_w": stack_w("out_w"), "out_b": stack_b("out_b"),
        "ln2_g": stack_b("ln2_g"), "ln2_b": stack_b("ln2_b"),
        "fc_w": stack_w("fc_w"), "fc_b": stack_b("fc_b"),
        "cproj_w": stack_w("cproj_w"), "cproj_b": stack_b("cproj_b"),
    }


def clip_loss(pred, target, params):
    n = pred.shape[0]
    hin, win = pred.shape[2], pred.shape[3]
    wh = bilinear_matrix(hin, IMG)              # (224, Hin)
    ww_t = bilinear_matrix(win, IMG).T          # (Win, 224)

    # stack pred & target -> one batch of 2n images; one resize call, one
    # encoder call for the whole loss.
    x = jnp.concatenate([pred, target], axis=0)                 # (2n,3,H,W)
    xn = resize_normalize(x, wh, ww_t)                          # (2n,3,224,224) bf16

    # patchify glue (XLA): NCHW -> (2n, 49, 3*32*32) in (c, ph, pw) order,
    # matching a stride-32 conv patch embedding; pad one leading zero row per
    # image as the cls slot so the kernel needs no concatenation.  Carried in
    # bf16 to halve the transpose / HBM traffic.
    n_img = 2 * n
    x6 = xn.reshape(n_img, 3, GRIDP, PATCH, GRIDP, PATCH)
    patches = x6.transpose(0, 2, 4, 1, 3, 5).reshape(
        n_img, GRIDP * GRIDP, PATCH_DIM)
    patches = jnp.pad(patches, ((0, 0), (1, 0), (0, 0)))        # (2n,50,3072)

    feats = encode_images(patches, pack_params(params))         # (2n, E) f32
    return cosine_loss(feats, n)


# ----------------------------------- main ------------------------------------
if __name__ == "__main__":
    key = jax.random.PRNGKey(0)
    k_pred, k_targ = jax.random.split(key)
    pred = jax.random.uniform(k_pred, (2, 3, 16, 16), dtype=jnp.float32)
    target = jax.random.uniform(k_targ, (2, 3, 16, 16), dtype=jnp.float32)

    params = init_params(jax.random.PRNGKey(1))

    loss_fn = jax.jit(clip_loss)
    loss = loss_fn(pred, target, params)
    jax.block_until_ready(loss)

    assert loss.shape == () and loss.dtype == jnp.float32
    assert bool(jnp.isfinite(loss))
    print("KERNEL_OK")
</pallas_src>

<mosaic_0001>
module attributes {stable_mosaic.version = 11 : i64} {
  func.func @_resize_norm_kernel(%arg0: i32, %arg1: memref<1x3x16x16xf32, #tpu.memory_space<vmem>>, %arg2: memref<224x16xf32, #tpu.memory_space<vmem>>, %arg3: memref<16x224xf32, #tpu.memory_space<vmem>>, %arg4: memref<1x3x224x224xbf16, #tpu.memory_space<vmem>>) attributes {dimension_semantics = [#tpu.dimension_semantics<parallel>], iteration_bounds = array<i64: 4>, scalar_prefetch = 0 : i64, scratch_operands = 0 : i64, tpu.core_type = #tpu.core_type<tc>, window_params = [{transform_indices = @transform_0, window_bounds = array<i64: 1, 3, 16, 16>}, {pipeline_mode = #tpu.pipeline_mode<synchronous>, transform_indices = @transform_1, window_bounds = array<i64: 224, 16>}, {pipeline_mode = #tpu.pipeline_mode<synchronous>, transform_indices = @transform_2, window_bounds = array<i64: 16, 224>}, {transform_indices = @transform_3, window_bounds = array<i64: 1, 3, 224, 224>}]} {
    %c0 = arith.constant 0 : index
    %c0_0 = arith.constant 0 : index
    %0 = vector.load %arg2[%c0, %c0_0] : memref<224x16xf32, #tpu.memory_space<vmem>>, vector<224x16xf32>
    %c0_1 = arith.constant 0 : index
    %c0_2 = arith.constant 0 : index
    %1 = vector.load %arg3[%c0_1, %c0_2] : memref<16x224xf32, #tpu.memory_space<vmem>>, vector<16x224xf32>
    %c0_3 = arith.constant 0 : index
    %c0_4 = arith.constant 0 : index
    %c0_5 = arith.constant 0 : index
    %c0_6 = arith.constant 0 : index
    %2 = vector.load %arg1[%c0_3, %c0_4, %c0_5, %c0_6] : memref<1x3x16x16xf32, #tpu.memory_space<vmem>>, vector<1x1x16x16xf32>
    %3 = vector.shape_cast %2 : vector<1x1x16x16xf32> to vector<16x16xf32>
    %cst = arith.constant dense<0.000000e+00> : vector<224x16xf32>
    %4 = tpu.matmul %0, %3, %cst {dimension_numbers = #tpu.dot_dimension_numbers<[1], [0], [0], [1], [0, 0, 1, 1], [], []>} : vector<224x16xf32>, vector<16x16xf32>, vector<224x16xf32> -> vector<224x16xf32>
    %cst_7 = arith.constant dense<0.000000e+00> : vector<224x224xf32>
    %5 = tpu.matmul %4, %1, %cst_7 {dimension_numbers = #tpu.dot_dimension_numbers<[1], [0], [0], [1], [0, 0, 1, 1], [], []>} : vector<224x16xf32>, vector<16x224xf32>, vector<224x224xf32> -> vector<224x224xf32>
    %cst_8 = arith.constant 3.72259879 : f32
    %6 = vector.broadcast %cst_8 : f32 to vector<224x224xf32>
    %7 = arith.mulf %5, %6 : vector<224x224xf32>
    %cst_9 = arith.constant -1.79226255 : f32
    %8 = vector.broadcast %cst_9 : f32 to vector<224x224xf32>
    %9 = arith.addf %7, %8 : vector<224x224xf32>
    %10 = arith.truncf %9 : vector<224x224xf32> to vector<224x224xbf16>
    %c0_10 = arith.constant 0 : index
    %c0_11 = arith.constant 0 : index
    %c0_12 = arith.constant 0 : index
    %c0_13 = arith.constant 0 : index
    %11 = vector.load %arg4[%c0_10, %c0_11, %c0_12, %c0_13] : memref<1x3x224x224xbf16, #tpu.memory_space<vmem>>, vector<1x1x224x224xbf16>
    %12 = vector.shape_cast %11 : vector<1x1x224x224xbf16> to vector<224x224xbf16>
    %13 = vector.shape_cast %10 : vector<224x224xbf16> to vector<1x1x224x224xbf16>
    tpu.vector_store %arg4[%c0_10, %c0_11, %c0_12, %c0_13], %13 {strides = array<i32>} : memref<1x3x224x224xbf16, #tpu.memory_space<vmem>>, vector<1x1x224x224xbf16>,
    %c0_14 = arith.constant 0 : index
    %c1 = arith.constant 1 : index
    %c0_15 = arith.constant 0 : index
    %c0_16 = arith.constant 0 : index
    %14 = vector.load %arg1[%c0_14, %c1, %c0_15, %c0_16] : memref<1x3x16x16xf32, #tpu.memory_space<vmem>>, vector<1x1x16x16xf32>
    %15 = vector.shape_cast %14 : vector<1x1x16x16xf32> to vector<16x16xf32>
    %cst_17 = arith.constant dense<0.000000e+00> : vector<224x16xf32>
    %16 = tpu.matmul %0, %15, %cst_17 {dimension_numbers = #tpu.dot_dimension_numbers<[1], [0], [0], [1], [0, 0, 1, 1], [], []>} : vector<224x16xf32>, vector<16x16xf32>, vector<224x16xf32> -> vector<224x16xf32>
    %cst_18 = arith.constant dense<0.000000e+00> : vector<224x224xf32>
    %17 = tpu.matmul %16, %1, %cst_18 {dimension_numbers = #tpu.dot_dimension_numbers<[1], [0], [0], [1], [0, 0, 1, 1], [], []>} : vector<224x16xf32>, vector<16x224xf32>, vector<224x224xf32> -> vector<224x224xf32>
    %cst_19 = arith.constant 3.82698107 : f32
    %18 = vector.broadcast %cst_19 : f32 to vector<224x224xf32>
    %19 = arith.mulf %17, %18 : vector<224x224xf32>
    %cst_20 = arith.constant -1.75209713 : f32
    %20 = vector.broadcast %cst_20 : f32 to vector<224x224xf32>
    %21 = arith.addf %19, %20 : vector<224x224xf32>
    %22 = arith.truncf %21 : vector<224x224xf32> to vector<224x224xbf16>
    %c0_21 = arith.constant 0 : index
    %c1_22 = arith.constant 1 : index
    %c0_23 = arith.constant 0 : index
    %c0_24 = arith.constant 0 : index
    %23 = vector.load %arg4[%c0_21, %c1_22, %c0_23, %c0_24] : memref<1x3x224x224xbf16, #tpu.memory_space<vmem>>, vector<1x1x224x224xbf16>
    %24 = vector.shape_cast %23 : vector<1x1x224x224xbf16> to vector<224x224xbf16>
    %25 = vector.shape_cast %22 : vector<224x224xbf16> to vector<1x1x224x224xbf16>
    tpu.vector_store %arg4[%c0_21, %c1_22, %c0_23, %c0_24], %25 {strides = array<i32>} : memref<1x3x224x224xbf16, #tpu.memory_space<vmem>>, vector<1x1x224x224xbf16>,
    %c0_25 = arith.constant 0 : index
    %c2 = arith.constant 2 : index
    %c0_26 = arith.constant 0 : index
    %c0_27 = arith.constant 0 : index
    %26 = vector.load %arg1[%c0_25, %c2, %c0_26, %c0_27] : memref<1x3x16x16xf32, #tpu.memory_space<vmem>>, vector<1x1x16x16xf32>
    %27 = vector.shape_cast %26 : vector<1x1x16x16xf32> to vector<16x16xf32>
    %cst_28 = arith.constant dense<0.000000e+00> : vector<224x16xf32>
    %28 = tpu.matmul %0, %27, %cst_28 {dimension_numbers = #tpu.dot_dimension_numbers<[1], [0], [0], [1], [0, 0, 1, 1], [], []>} : vector<224x16xf32>, vector<16x16xf32>, vector<224x16xf32> -> vector<224x16xf32>
    %cst_29 = arith.constant dense<0.000000e+00> : vector<224x224xf32>
    %29 = tpu.matmul %28, %1, %cst_29 {dimension_numbers = #tpu.dot_dimension_numbers<[1], [0], [0], [1], [0, 0, 1, 1], [], []>} : vector<224x16xf32>, vector<16x224xf32>, vector<224x224xf32> -> vector<224x224xf32>
    %cst_30 = arith.constant 3.62611675 : f32
    %30 = vector.broadcast %cst_30 : f32 to vector<224x224xf32>
    %31 = arith.mulf %29, %30 : vector<224x224xf32>
    %cst_31 = arith.constant -1.48021972 : f32
    %32 = vector.broadcast %cst_31 : f32 to vector<224x224xf32>
    %33 = arith.addf %31, %32 : vector<224x224xf32>
    %34 = arith.truncf %33 : vector<224x224xf32> to vector<224x224xbf16>
    %c0_32 = arith.constant 0 : index
    %c2_33 = arith.constant 2 : index
    %c0_34 = arith.constant 0 : index
    %c0_35 = arith.constant 0 : index
    %35 = vector.load %arg4[%c0_32, %c2_33, %c0_34, %c0_35] : memref<1x3x224x224xbf16, #tpu.memory_space<vmem>>, vector<1x1x224x224xbf16>
    %36 = vector.shape_cast %35 : vector<1x1x224x224xbf16> to vector<224x224xbf16>
    %37 = vector.shape_cast %34 : vector<224x224xbf16> to vector<1x1x224x224xbf16>
    tpu.vector_store %arg4[%c0_32, %c2_33, %c0_34, %c0_35], %37 {strides = array<i32>} : memref<1x3x224x224xbf16, #tpu.memory_space<vmem>>, vector<1x1x224x224xbf16>,
    return
  }
  func.func @transform_0(%arg0: i32) -> (i32, i32, i32, i32) {
    %c0_i32 = arith.constant 0 : i32
    %c0_i32_0 = arith.constant 0 : i32
    %c0_i32_1 = arith.constant 0 : i32
    %c0_i32_2 = arith.constant 0 : i32
    return %arg0, %c0_i32, %c0_i32_0, %c0_i32_1 : i32, i32, i32, i32
  }
  func.func @transform_1(%arg0: i32) -> (i32, i32) {
    %c0_i32 = arith.constant 0 : i32
    %c0_i32_0 = arith.constant 0 : i32
    %c0_i32_1 = arith.constant 0 : i32
    return %c0_i32, %c0_i32_0 : i32, i32
  }
  func.func @transform_2(%arg0: i32) -> (i32, i32) {
    %c0_i32 = arith.constant 0 : i32
    %c0_i32_0 = arith.constant 0 : i32
    %c0_i32_1 = arith.constant 0 : i32
    return %c0_i32, %c0_i32_0 : i32, i32
  }
  func.func @transform_3(%arg0: i32) -> (i32, i32, i32, i32) {
    %c0_i32 = arith.constant 0 : i32
    %c0_i32_0 = arith.constant 0 : i32
    %c0_i32_1 = arith.constant 0 : i32
    %c0_i32_2 = arith.constant 0 : i32
    return %arg0, %c0_i32, %c0_i32_0, %c0_i32_1 : i32, i32, i32, i32
  }
}

module attributes {stable_mosaic.version = 11 : i64} {
  func.func @_encoder_kernel(%arg0: i32, %arg1: memref<1x50x3072xbf16, #tpu.memory_space<vmem>>, %arg2: memref<3072x64xbf16, #tpu.memory_space<vmem>>, %arg3: memref<50x64xf32, #tpu.memory_space<vmem>>, %arg4: memref<1x64xf32, #tpu.memory_space<vmem>>, %arg5: memref<1x64xf32, #tpu.memory_space<vmem>>, %arg6: memref<2x1x64xf32, #tpu.memory_space<vmem>>, %arg7: memref<2x1x64xf32, #tpu.memory_space<vmem>>, %arg8: memref<2x64x192xf32, #tpu.memory_space<vmem>>, %arg9: memref<2x1x192xf32, #tpu.memory_space<vmem>>, %arg10: memref<2x64x64xf32, #tpu.memory_space<vmem>>, %arg11: memref<2x1x64xf32, #tpu.memory_space<vmem>>, %arg12: memref<2x1x64xf32, #tpu.memory_space<vmem>>, %arg13: memref<2x1x64xf32, #tpu.memory_space<vmem>>, %arg14: memref<2x64x256xf32, #tpu.memory_space<vmem>>, %arg15: memref<2x1x256xf32, #tpu.memory_space<vmem>>, %arg16: memref<2x256x64xf32, #tpu.memory_space<vmem>>, %arg17: memref<2x1x64xf32, #tpu.memory_space<vmem>>, %arg18: memref<1x64xf32, #tpu.memory_space<vmem>>, %arg19: memref<1x64xf32, #tpu.memory_space<vmem>>, %arg20: memref<64x32xf32, #tpu.memory_space<vmem>>, %arg21: memref<1x1x32xf32, #tpu.memory_space<vmem>>) attributes {dimension_semantics = [#tpu.dimension_semantics<parallel>], iteration_bounds = array<i64: 4>, scalar_prefetch = 0 : i64, scratch_operands = 0 : i64, tpu.core_type = #tpu.core_type<tc>, window_params = [{transform_indices = @transform_0, window_bounds = array<i64: 1, 50, 3072>}, {pipeline_mode = #tpu.pipeline_mode<synchronous>, transform_indices = @transform_1, window_bounds = array<i64: 3072, 64>}, {pipeline_mode = #tpu.pipeline_mode<synchronous>, transform_indices = @transform_2, window_bounds = array<i64: 50, 64>}, {pipeline_mode = #tpu.pipeline_mode<synchronous>, transform_indices = @transform_3, window_bounds = array<i64: 1, 64>}, {pipeline_mode = #tpu.pipeline_mode<synchronous>, transform_indices = @transform_4, window_bounds = array<i64: 1, 64>}, {pipeline_mode = #tpu.pipeline_mode<synchronous>, transform_indices = @transform_5, window_bounds = array<i64: 2, 1, 64>}, {pipeline_mode = #tpu.pipeline_mode<synchronous>, transform_indices = @transform_6, window_bounds = array<i64: 2, 1, 64>}, {pipeline_mode = #tpu.pipeline_mode<synchronous>, transform_indices = @transform_7, window_bounds = array<i64: 2, 64, 192>}, {pipeline_mode = #tpu.pipeline_mode<synchronous>, transform_indices = @transform_8, window_bounds = array<i64: 2, 1, 192>}, {pipeline_mode = #tpu.pipeline_mode<synchronous>, transform_indices = @transform_9, window_bounds = array<i64: 2, 64, 64>}, {pipeline_mode = #tpu.pipeline_mode<synchronous>, transform_indices = @transform_10, window_bounds = array<i64: 2, 1, 64>}, {pipeline_mode = #tpu.pipeline_mode<synchronous>, transform_indices = @transform_11, window_bounds = array<i64: 2, 1, 64>}, {pipeline_mode = #tpu.pipeline_mode<synchronous>, transform_indices = @transform_12, window_bounds = array<i64: 2, 1, 64>}, {pipeline_mode = #tpu.pipeline_mode<synchronous>, transform_indices = @transform_13, window_bounds = array<i64: 2, 64, 256>}, {pipeline_mode = #tpu.pipeline_mode<synchronous>, transform_indices = @transform_14, window_bounds = array<i64: 2, 1, 256>}, {pipeline_mode = #tpu.pipeline_mode<synchronous>, transform_indices = @transform_15, window_bounds = array<i64: 2, 256, 64>}, {pipeline_mode = #tpu.pipeline_mode<synchronous>, transform_indices = @transform_16, window_bounds = array<i64: 2, 1, 64>}, {pipeline_mode = #tpu.pipeline_mode<synchronous>, transform_indices = @transform_17, window_bounds = array<i64: 1, 64>}, {pipeline_mode = #tpu.pipeline_mode<synchronous>, transform_indices = @transform_18, window_bounds = array<i64: 1, 64>}, {pipeline_mode = #tpu.pipeline_mode<synchronous>, transform_indices = @transform_19, window_bounds = array<i64: 64, 32>}, {transform_indices = @transform_20, window_bounds = array<i64: 1, 1, 32>}]} {
    %c0 = arith.constant 0 : index
    %c0_0 = arith.constant 0 : index
    %c0_1 = arith.constant 0 : index
    %0 = vector.load %arg1[%c0, %c0_0, %c0_1] : memref<1x50x3072xbf16, #tpu.memory_space<vmem>>, vector<1x50x3072xbf16>
    %1 = vector.shape_cast %0 : vector<1x50x3072xbf16> to vector<50x3072xbf16>
    %c0_2 = arith.constant 0 : index
    %c0_3 = arith.constant 0 : index
    %2 = vector.load %arg2[%c0_2, %c0_3] : memref<3072x64xbf16, #tpu.memory_space<vmem>>, vector<3072x64xbf16>
    %cst = arith.constant dense<0.000000e+00> : vector<50x64xf32>
    %3 = tpu.matmul %1, %2, %cst {dimension_numbers = #tpu.dot_dimension_numbers<[1], [0], [0], [1], [0, 0, 1, 1], [], []>} : vector<50x3072xbf16>, vector<3072x64xbf16>, vector<50x64xf32> -> vector<50x64xf32>
    %c0_4 = arith.constant 0 : index
    %c0_5 = arith.constant 0 : index
    %4 = vector.load %arg3[%c0_4, %c0_5] : memref<50x64xf32, #tpu.memory_space<vmem>>, vector<50x64xf32>
    %5 = arith.addf %3, %4 : vector<50x64xf32>
    %c0_6 = arith.constant 0 : index
    %c0_7 = arith.constant 0 : index
    %6 = vector.load %arg4[%c0_6, %c0_7] : memref<1x64xf32, #tpu.memory_space<vmem>>, vector<1x64xf32>
    %c0_8 = arith.constant 0 : index
    %c0_9 = arith.constant 0 : index
    %7 = vector.load %arg5[%c0_8, %c0_9] : memref<1x64xf32, #tpu.memory_space<vmem>>, vector<1x64xf32>
    %cst_10 = arith.constant dense<0.000000e+00> : vector<50xf32>
    %8 = vector.multi_reduction <add>, %5, %cst_10 [1] : vector<50x64xf32> to vector<50xf32>
    %9 = vector.shape_cast %8 : vector<50xf32> to vector<50x1xf32>
    %cst_11 = arith.constant 6.400000e+01 : f32
    %10 = vector.broadcast %cst_11 : f32 to vector<50x1xf32>
    %11 = arith.divf %9, %10 : vector<50x1xf32>
    %12 = vector.broadcast %11 : vector<50x1xf32> to vector<50x64xf32>
    %13 = arith.subf %5, %12 : vector<50x64xf32>
    %14 = arith.mulf %13, %13 : vector<50x64xf32>
    %cst_12 = arith.constant dense<0.000000e+00> : vector<50xf32>
    %15 = vector.multi_reduction <add>, %14, %cst_12 [1] : vector<50x64xf32> to vector<50xf32>
    %16 = vector.shape_cast %15 : vector<50xf32> to vector<50x1xf32>
    %cst_13 = arith.constant 6.400000e+01 : f32
    %17 = vector.broadcast %cst_13 : f32 to vector<50x1xf32>
    %18 = arith.divf %16, %17 : vector<50x1xf32>
    %19 = vector.broadcast %11 : vector<50x1xf32> to vector<50x64xf32>
    %20 = arith.subf %5, %19 : vector<50x64xf32>
    %cst_14 = arith.constant 9.99999974E-6 : f32
    %21 = vector.broadcast %cst_14 : f32 to vector<50x1xf32>
    %22 = arith.addf %18, %21 : vector<50x1xf32>
    %23 = math.rsqrt %22 : vector<50x1xf32>
    %24 = vector.broadcast %23 : vector<50x1xf32> to vector<50x64xf32>
    %25 = arith.mulf %20, %24 : vector<50x64xf32>
    %26 = vector.broadcast %6 : vector<1x64xf32> to vector<50x64xf32>
    %27 = arith.mulf %25, %26 : vector<50x64xf32>
    %28 = vector.broadcast %7 : vector<1x64xf32> to vector<50x64xf32>
    %29 = arith.addf %27, %28 : vector<50x64xf32>
    %c0_15 = arith.constant 0 : index
    %c0_16 = arith.constant 0 : index
    %c0_17 = arith.constant 0 : index
    %30 = vector.load %arg6[%c0_15, %c0_16, %c0_17] : memref<2x1x64xf32, #tpu.memory_space<vmem>>, vector<1x1x64xf32>
    %31 = vector.shape_cast %30 : vector<1x1x64xf32> to vector<1x64xf32>
    %c0_18 = arith.constant 0 : index
    %c0_19 = arith.constant 0 : index
    %c0_20 = arith.constant 0 : index
    %32 = vector.load %arg7[%c0_18, %c0_19, %c0_20] : memref<2x1x64xf32, #tpu.memory_space<vmem>>, vector<1x1x64xf32>
    %33 = vector.shape_cast %32 : vector<1x1x64xf32> to vector<1x64xf32>
    %cst_21 = arith.constant dense<0.000000e+00> : vector<50xf32>
    %34 = vector.multi_reduction <add>, %29, %cst_21 [1] : vector<50x64xf32> to vector<50xf32>
    %35 = vector.shape_cast %34 : vector<50xf32> to vector<50x1xf32>
    %cst_22 = arith.constant 6.400000e+01 : f32
    %36 = vector.broadcast %cst_22 : f32 to vector<50x1xf32>
    %37 = arith.divf %35, %36 : vector<50x1xf32>
    %38 = vector.broadcast %37 : vector<50x1xf32> to vector<50x64xf32>
    %39 = arith.subf %29, %38 : vector<50x64xf32>
    %40 = arith.mulf %39, %39 : vector<50x64xf32>
    %cst_23 = arith.constant dense<0.000000e+00> : vector<50xf32>
    %41 = vector.multi_reduction <add>, %40, %cst_23 [1] : vector<50x64xf32> to vector<50xf32>
    %42 = vector.shape_cast %41 : vector<50xf32> to vector<50x1xf32>
    %cst_24 = arith.constant 6.400000e+01 : f32
    %43 = vector.broadcast %cst_24 : f32 to vector<50x1xf32>
    %44 = arith.divf %42, %43 : vector<50x1xf32>
    %45 = vector.broadcast %37 : vector<50x1xf32> to vector<50x64xf32>
    %46 = arith.subf %29, %45 : vector<50x64xf32>
    %cst_25 = arith.constant 9.99999974E-6 : f32
    %47 = vector.broadcast %cst_25 : f32 to vector<50x1xf32>
    %48 = arith.addf %44, %47 : vector<50x1xf32>
    %49 = math.rsqrt %48 : vector<50x1xf32>
    %50 = vector.broadcast %49 : vector<50x1xf32> to vector<50x64xf32>
    %51 = arith.mulf %46, %50 : vector<50x64xf32>
    %52 = vector.broadcast %31 : vector<1x64xf32> to vector<50x64xf32>
    %53 = arith.mulf %51, %52 : vector<50x64xf32>
    %54 = vector.broadcast %33 : vector<1x64xf32> to vector<50x64xf32>
    %55 = arith.addf %53, %54 : vector<50x64xf32>
    %c0_26 = arith.constant 0 : index
    %c0_27 = arith.constant 0 : index
    %c0_28 = arith.constant 0 : index
    %56 = vector.load %arg8[%c0_26, %c0_27, %c0_28] : memref<2x64x192xf32, #tpu.memory_space<vmem>>, vector<1x64x192xf32>
    %57 = vector.shape_cast %56 : vector<1x64x192xf32> to vector<64x192xf32>
    %cst_29 = arith.constant dense<0.000000e+00> : vector<50x192xf32>
    %58 = tpu.matmul %55, %57, %cst_29 {dimension_numbers = #tpu.dot_dimension_numbers<[1], [0], [0], [1], [0, 0, 1, 1], [], []>} : vector<50x64xf32>, vector<64x192xf32>, vector<50x192xf32> -> vector<50x192xf32>
    %c0_30 = arith.constant 0 : index
    %c0_31 = arith.constant 0 : index
    %c0_32 = arith.constant 0 : index
    %59 = vector.load %arg9[%c0_30, %c0_31, %c0_32] : memref<2x1x192xf32, #tpu.memory_space<vmem>>, vector<1x1x192xf32>
    %60 = vector.shape_cast %59 : vector<1x1x192xf32> to vector<1x192xf32>
    %61 = vector.broadcast %60 : vector<1x192xf32> to vector<50x192xf32>
    %62 = arith.addf %58, %61 : vector<50x192xf32>
    %c0_33 = arith.constant 0 : index
    %c0_34 = arith.constant 0 : index
    %c0_35 = arith.constant 0 : index
    %63 = vector.load %arg10[%c0_33, %c0_34, %c0_35] : memref<2x64x64xf32, #tpu.memory_space<vmem>>, vector<1x64x64xf32>
    %64 = vector.shape_cast %63 : vector<1x64x64xf32> to vector<64x64xf32>
    %65 = vector.extract_strided_slice %62 {offsets = [0, 0], sizes = [50, 16], strides = [1, 1]} : vector<50x192xf32> to vector<50x16xf32>
    %cst_36 = arith.constant 2.500000e-01 : f32
    %66 = vector.broadcast %cst_36 : f32 to vector<50x16xf32>
    %67 = arith.mulf %65, %66 : vector<50x16xf32>
    %68 = vector.extract_strided_slice %62 {offsets = [0, 64], sizes = [50, 16], strides = [1, 1]} : vector<50x192xf32> to vector<50x16xf32>
    %69 = vector.extract_strided_slice %62 {offsets = [0, 128], sizes = [50, 16], strides = [1, 1]} : vector<50x192xf32> to vector<50x16xf32>
    %cst_37 = arith.constant dense<0.000000e+00> : vector<50x50xf32>
    %70 = tpu.matmul %67, %68, %cst_37 {dimension_numbers = #tpu.dot_dimension_numbers<[1], [1], [0], [0], [0, 0, 1, 0], [], []>} : vector<50x16xf32>, vector<50x16xf32>, vector<50x50xf32> -> vector<50x50xf32>
    %cst_38 = arith.constant dense<0xFF800000> : vector<50xf32>
    %71 = vector.multi_reduction <maximumf>, %70, %cst_38 [1] : vector<50x50xf32> to vector<50xf32>
    %72 = vector.shape_cast %71 : vector<50xf32> to vector<50x1xf32>
    %73 = vector.broadcast %72 : vector<50x1xf32> to vector<50x50xf32>
    %74 = arith.subf %70, %73 : vector<50x50xf32>
    %75 = math.exp %74 : vector<50x50xf32>
    %cst_39 = arith.constant dense<0.000000e+00> : vector<50xf32>
    %76 = vector.multi_reduction <add>, %75, %cst_39 [1] : vector<50x50xf32> to vector<50xf32>
    %77 = vector.shape_cast %76 : vector<50xf32> to vector<50x1xf32>
    %78 = tpu.reciprocal %77 {approx = true} : vector<50x1xf32> -> vector<50x1xf32>
    %79 = vector.broadcast %78 : vector<50x1xf32> to vector<50x50xf32>
    %80 = arith.mulf %75, %79 : vector<50x50xf32>
    %cst_40 = arith.constant dense<0.000000e+00> : vector<50x16xf32>
    %81 = tpu.matmul %80, %69, %cst_40 {dimension_numbers = #tpu.dot_dimension_numbers<[1], [0], [0], [1], [0, 0, 1, 1], [], []>} : vector<50x50xf32>, vector<50x16xf32>, vector<50x16xf32> -> vector<50x16xf32>
    %82 = vector.extract_strided_slice %64 {offsets = [0, 0], sizes = [16, 64], strides = [1, 1]} : vector<64x64xf32> to vector<16x64xf32>
    %cst_41 = arith.constant dense<0.000000e+00> : vector<50x64xf32>
    %83 = tpu.matmul %81, %82, %cst_41 {dimension_numbers = #tpu.dot_dimension_numbers<[1], [0], [0], [1], [0, 0, 1, 1], [], []>} : vector<50x16xf32>, vector<16x64xf32>, vector<50x64xf32> -> vector<50x64xf32>
    %84 = vector.extract_strided_slice %62 {offsets = [0, 16], sizes = [50, 16], strides = [1, 1]} : vector<50x192xf32> to vector<50x16xf32>
    %cst_42 = arith.constant 2.500000e-01 : f32
    %85 = vector.broadcast %cst_42 : f32 to vector<50x16xf32>
    %86 = arith.mulf %84, %85 : vector<50x16xf32>
    %87 = vector.extract_strided_slice %62 {offsets = [0, 80], sizes = [50, 16], strides = [1, 1]} : vector<50x192xf32> to vector<50x16xf32>
    %88 = vector.extract_strided_slice %62 {offsets = [0, 144], sizes = [50, 16], strides = [1, 1]} : vector<50x192xf32> to vector<50x16xf32>
    %cst_43 = arith.constant dense<0.000000e+00> : vector<50x50xf32>
    %89 = tpu.matmul %86, %87, %cst_43 {dimension_numbers = #tpu.dot_dimension_numbers<[1], [1], [0], [0], [0, 0, 1, 0], [], []>} : vector<50x16xf32>, vector<50x16xf32>, vector<50x50xf32> -> vector<50x50xf32>
    %cst_44 = arith.constant dense<0xFF800000> : vector<50xf32>
    %90 = vector.multi_reduction <maximumf>, %89, %cst_44 [1] : vector<50x50xf32> to vector<50xf32>
    %91 = vector.shape_cast %90 : vector<50xf32> to vector<50x1xf32>
    %92 = vector.broadcast %91 : vector<50x1xf32> to vector<50x50xf32>
    %93 = arith.subf %89, %92 : vector<50x50xf32>
    %94 = math.exp %93 : vector<50x50xf32>
    %cst_45 = arith.constant dense<0.000000e+00> : vector<50xf32>
    %95 = vector.multi_reduction <add>, %94, %cst_45 [1] : vector<50x50xf32> to vector<50xf32>
    %96 = vector.shape_cast %95 : vector<50xf32> to vector<50x1xf32>
    %97 = tpu.reciprocal %96 {approx = true} : vector<50x1xf32> -> vector<50x1xf32>
    %98 = vector.broadcast %97 : vector<50x1xf32> to vector<50x50xf32>
    %99 = arith.mulf %94, %98 : vector<50x50xf32>
    %cst_46 = arith.constant dense<0.000000e+00> : vector<50x16xf32>
    %100 = tpu.matmul %99, %88, %cst_46 {dimension_numbers = #tpu.dot_dimension_numbers<[1], [0], [0], [1], [0, 0, 1, 1], [], []>} : vector<50x50xf32>, vector<50x16xf32>, vector<50x16xf32> -> vector<50x16xf32>
    %101 = vector.extract_strided_slice %64 {offsets = [16, 0], sizes = [16, 64], strides = [1, 1]} : vector<64x64xf32> to vector<16x64xf32>
    %cst_47 = arith.constant dense<0.000000e+00> : vector<50x64xf32>
    %102 = tpu.matmul %100, %101, %cst_47 {dimension_numbers = #tpu.dot_dimension_numbers<[1], [0], [0], [1], [0, 0, 1, 1], [], []>} : vector<50x16xf32>, vector<16x64xf32>, vector<50x64xf32> -> vector<50x64xf32>
    %103 = arith.addf %83, %102 : vector<50x64xf32>
    %104 = vector.extract_strided_slice %62 {offsets = [0, 32], sizes = [50, 16], strides = [1, 1]} : vector<50x192xf32> to vector<50x16xf32>
    %cst_48 = arith.constant 2.500000e-01 : f32
    %105 = vector.broadcast %cst_48 : f32 to vector<50x16xf32>
    %106 = arith.mulf %104, %105 : vector<50x16xf32>
    %107 = vector.extract_strided_slice %62 {offsets = [0, 96], sizes = [50, 16], strides = [1, 1]} : vector<50x192xf32> to vector<50x16xf32>
    %108 = vector.extract_strided_slice %62 {offsets = [0, 160], sizes = [50, 16], strides = [1, 1]} : vector<50x192xf32> to vector<50x16xf32>
    %cst_49 = arith.constant dense<0.000000e+00> : vector<50x50xf32>
    %109 = tpu.matmul %106, %107, %cst_49 {dimension_numbers = #tpu.dot_dimension_numbers<[1], [1], [0], [0], [0, 0, 1, 0], [], []>} : vector<50x16xf32>, vector<50x16xf32>, vector<50x50xf32> -> vector<50x50xf32>
    %cst_50 = arith.constant dense<0xFF800000> : vector<50xf32>
    %110 = vector.multi_reduction <maximumf>, %109, %cst_50 [1] : vector<50x50xf32> to vector<50xf32>
    %111 = vector.shape_cast %110 : vector<50xf32> to vector<50x1xf32>
    %112 = vector.broadcast %111 : vector<50x1xf32> to vector<50x50xf32>
    %113 = arith.subf %109, %112 : vector<50x50xf32>
    %114 = math.exp %113 : vector<50x50xf32>
    %cst_51 = arith.constant dense<0.000000e+00> : vector<50xf32>
    %115 = vector.multi_reduction <add>, %114, %cst_51 [1] : vector<50x50xf32> to vector<50xf32>
    %116 = vector.shape_cast %115 : vector<50xf32> to vector<50x1xf32>
    %117 = tpu.reciprocal %116 {approx = true} : vector<50x1xf32> -> vector<50x1xf32>
    %118 = vector.broadcast %117 : vector<50x1xf32> to vector<50x50xf32>
    %119 = arith.mulf %114, %118 : vector<50x50xf32>
    %cst_52 = arith.constant dense<0.000000e+00> : vector<50x16xf32>
    %120 = tpu.matmul %119, %108, %cst_52 {dimension_numbers = #tpu.dot_dimension_numbers<[1], [0], [0], [1], [0, 0, 1, 1], [], []>} : vector<50x50xf32>, vector<50x16xf32>, vector<50x16xf32> -> vector<50x16xf32>
    %121 = vector.extract_strided_slice %64 {offsets = [32, 0], sizes = [16, 64], strides = [1, 1]} : vector<64x64xf32> to vector<16x64xf32>
    %cst_53 = arith.constant dense<0.000000e+00> : vector<50x64xf32>
    %122 = tpu.matmul %120, %121, %cst_53 {dimension_numbers = #tpu.dot_dimension_numbers<[1], [0], [0], [1], [0, 0, 1, 1], [], []>} : vector<50x16xf32>, vector<16x64xf32>, vector<50x64xf32> -> vector<50x64xf32>
    %123 = arith.addf %103, %122 : vector<50x64xf32>
    %124 = vector.extract_strided_slice %62 {offsets = [0, 48], sizes = [50, 16], strides = [1, 1]} : vector<50x192xf32> to vector<50x16xf32>
    %cst_54 = arith.constant 2.500000e-01 : f32
    %125 = vector.broadcast %cst_54 : f32 to vector<50x16xf32>
    %126 = arith.mulf %124, %125 : vector<50x16xf32>
    %127 = vector.extract_strided_slice %62 {offsets = [0, 112], sizes = [50, 16], strides = [1, 1]} : vector<50x192xf32> to vector<50x16xf32>
    %128 = vector.extract_strided_slice %62 {offsets = [0, 176], sizes = [50, 16], strides = [1, 1]} : vector<50x192xf32> to vector<50x16xf32>
    %cst_55 = arith.constant dense<0.000000e+00> : vector<50x50xf32>
    %129 = tpu.matmul %126, %127, %cst_55 {dimension_numbers = #tpu.dot_dimension_numbers<[1], [1], [0], [0], [0, 0, 1, 0], [], []>} : vector<50x16xf32>, vector<50x16xf32>, vector<50x50xf32> -> vector<50x50xf32>
    %cst_56 = arith.constant dense<0xFF800000> : vector<50xf32>
    %130 = vector.multi_reduction <maximumf>, %129, %cst_56 [1] : vector<50x50xf32> to vector<50xf32>
    %131 = vector.shape_cast %130 : vector<50xf32> to vector<50x1xf32>
    %132 = vector.broadcast %131 : vector<50x1xf32> to vector<50x50xf32>
    %133 = arith.subf %129, %132 : vector<50x50xf32>
    %134 = math.exp %133 : vector<50x50xf32>
    %cst_57 = arith.constant dense<0.000000e+00> : vector<50xf32>
    %135 = vector.multi_reduction <add>, %134, %cst_57 [1] : vector<50x50xf32> to vector<50xf32>
    %136 = vector.shape_cast %135 : vector<50xf32> to vector<50x1xf32>
    %137 = tpu.reciprocal %136 {approx = true} : vector<50x1xf32> -> vector<50x1xf32>
    %138 = vector.broadcast %137 : vector<50x1xf32> to vector<50x50xf32>
    %139 = arith.mulf %134, %138 : vector<50x50xf32>
    %cst_58 = arith.constant dense<0.000000e+00> : vector<50x16xf32>
    %140 = tpu.matmul %139, %128, %cst_58 {dimension_numbers = #tpu.dot_dimension_numbers<[1], [0], [0], [1], [0, 0, 1, 1], [], []>} : vector<50x50xf32>, vector<50x16xf32>, vector<50x16xf32> -> vector<50x16xf32>
    %141 = vector.extract_strided_slice %64 {offsets = [48, 0], sizes = [16, 64], strides = [1, 1]} : vector<64x64xf32> to vector<16x64xf32>
    %cst_59 = arith.constant dense<0.000000e+00> : vector<50x64xf32>
    %142 = tpu.matmul %140, %141, %cst_59 {dimension_numbers = #tpu.dot_dimension_numbers<[1], [0], [0], [1], [0, 0, 1, 1], [], []>} : vector<50x16xf32>, vector<16x64xf32>, vector<50x64xf32> -> vector<50x64xf32>
    %143 = arith.addf %123, %142 : vector<50x64xf32>
    %144 = arith.addf %29, %143 : vector<50x64xf32>
    %c0_60 = arith.constant 0 : index
    %c0_61 = arith.constant 0 : index
    %c0_62 = arith.constant 0 : index
    %145 = vector.load %arg11[%c0_60, %c0_61, %c0_62] : memref<2x1x64xf32, #tpu.memory_space<vmem>>, vector<1x1x64xf32>
    %146 = vector.shape_cast %145 : vector<1x1x64xf32> to vector<1x64xf32>
    %147 = vector.broadcast %146 : vector<1x64xf32> to vector<50x64xf32>
    %148 = arith.addf %144, %147 : vector<50x64xf32>
    %c0_63 = arith.constant 0 : index
    %c0_64 = arith.constant 0 : index
    %c0_65 = arith.constant 0 : index
    %149 = vector.load %arg12[%c0_63, %c0_64, %c0_65] : memref<2x1x64xf32, #tpu.memory_space<vmem>>, vector<1x1x64xf32>
    %150 = vector.shape_cast %149 : vector<1x1x64xf32> to vector<1x64xf32>
    %c0_66 = arith.constant 0 : index
    %c0_67 = arith.constant 0 : index
    %c0_68 = arith.constant 0 : index
    %151 = vector.load %arg13[%c0_66, %c0_67, %c0_68] : memref<2x1x64xf32, #tpu.memory_space<vmem>>, vector<1x1x64xf32>
    %152 = vector.shape_cast %151 : vector<1x1x64xf32> to vector<1x64xf32>
    %cst_69 = arith.constant dense<0.000000e+00> : vector<50xf32>
    %153 = vector.multi_reduction <add>, %148, %cst_69 [1] : vector<50x64xf32> to vector<50xf32>
    %154 = vector.shape_cast %153 : vector<50xf32> to vector<50x1xf32>
    %cst_70 = arith.constant 6.400000e+01 : f32
    %155 = vector.broadcast %cst_70 : f32 to vector<50x1xf32>
    %156 = arith.divf %154, %155 : vector<50x1xf32>
    %157 = vector.broadcast %156 : vector<50x1xf32> to vector<50x64xf32>
    %158 = arith.subf %148, %157 : vector<50x64xf32>
    %159 = arith.mulf %158, %158 : vector<50x64xf32>
    %cst_71 = arith.constant dense<0.000000e+00> : vector<50xf32>
    %160 = vector.multi_reduction <add>, %159, %cst_71 [1] : vector<50x64xf32> to vector<50xf32>
    %161 = vector.shape_cast %160 : vector<50xf32> to vector<50x1xf32>
    %cst_72 = arith.constant 6.400000e+01 : f32
    %162 = vector.broadcast %cst_72 : f32 to vector<50x1xf32>
    %163 = arith.divf %161, %162 : vector<50x1xf32>
    %164 = vector.broadcast %156 : vector<50x1xf32> to vector<50x64xf32>
    %165 = arith.subf %148, %164 : vector<50x64xf32>
    %cst_73 = arith.constant 9.99999974E-6 : f32
    %166 = vector.broadcast %cst_73 : f32 to vector<50x1xf32>
    %167 = arith.addf %163, %166 : vector<50x1xf32>
    %168 = math.rsqrt %167 : vector<50x1xf32>
    %169 = vector.broadcast %168 : vector<50x1xf32> to vector<50x64xf32>
    %170 = arith.mulf %165, %169 : vector<50x64xf32>
    %171 = vector.broadcast %150 : vector<1x64xf32> to vector<50x64xf32>
    %172 = arith.mulf %170, %171 : vector<50x64xf32>
    %173 = vector.broadcast %152 : vector<1x64xf32> to vector<50x64xf32>
    %174 = arith.addf %172, %173 : vector<50x64xf32>
    %c0_74 = arith.constant 0 : index
    %c0_75 = arith.constant 0 : index
    %c0_76 = arith.constant 0 : index
    %175 = vector.load %arg14[%c0_74, %c0_75, %c0_76] : memref<2x64x256xf32, #tpu.memory_space<vmem>>, vector<1x64x256xf32>
    %176 = vector.shape_cast %175 : vector<1x64x256xf32> to vector<64x256xf32>
    %cst_77 = arith.constant dense<0.000000e+00> : vector<50x256xf32>
    %177 = tpu.matmul %174, %176, %cst_77 {dimension_numbers = #tpu.dot_dimension_numbers<[1], [0], [0], [1], [0, 0, 1, 1], [], []>} : vector<50x64xf32>, vector<64x256xf32>, vector<50x256xf32> -> vector<50x256xf32>
    %c0_78 = arith.constant 0 : index
    %c0_79 = arith.constant 0 : index
    %c0_80 = arith.constant 0 : index
    %178 = vector.load %arg15[%c0_78, %c0_79, %c0_80] : memref<2x1x256xf32, #tpu.memory_space<vmem>>, vector<1x1x256xf32>
    %179 = vector.shape_cast %178 : vector<1x1x256xf32> to vector<1x256xf32>
    %180 = vector.broadcast %179 : vector<1x256xf32> to vector<50x256xf32>
    %181 = arith.addf %177, %180 : vector<50x256xf32>
    %cst_81 = arith.constant 1.702000e+00 : f32
    %182 = vector.broadcast %cst_81 : f32 to vector<50x256xf32>
    %183 = arith.mulf %182, %181 : vector<50x256xf32>
    %184 = arith.negf %183 : vector<50x256xf32>
    %185 = math.exp %184 : vector<50x256xf32>
    %cst_82 = arith.constant 1.000000e+00 : f32
    %186 = vector.broadcast %cst_82 : f32 to vector<50x256xf32>
    %187 = arith.addf %186, %185 : vector<50x256xf32>
    %188 = arith.divf %186, %187 : vector<50x256xf32>
    %189 = arith.mulf %181, %188 : vector<50x256xf32>
    %c0_83 = arith.constant 0 : index
    %c0_84 = arith.constant 0 : index
    %c0_85 = arith.constant 0 : index
    %190 = vector.load %arg16[%c0_83, %c0_84, %c0_85] : memref<2x256x64xf32, #tpu.memory_space<vmem>>, vector<1x256x64xf32>
    %191 = vector.shape_cast %190 : vector<1x256x64xf32> to vector<256x64xf32>
    %cst_86 = arith.constant dense<0.000000e+00> : vector<50x64xf32>
    %192 = tpu.matmul %189, %191, %cst_86 {dimension_numbers = #tpu.dot_dimension_numbers<[1], [0], [0], [1], [0, 0, 1, 1], [], []>} : vector<50x256xf32>, vector<256x64xf32>, vector<50x64xf32> -> vector<50x64xf32>
    %193 = arith.addf %148, %192 : vector<50x64xf32>
    %c0_87 = arith.constant 0 : index
    %c0_88 = arith.constant 0 : index
    %c0_89 = arith.constant 0 : index
    %194 = vector.load %arg17[%c0_87, %c0_88, %c0_89] : memref<2x1x64xf32, #tpu.memory_space<vmem>>, vector<1x1x64xf32>
    %195 = vector.shape_cast %194 : vector<1x1x64xf32> to vector<1x64xf32>
    %196 = vector.broadcast %195 : vector<1x64xf32> to vector<50x64xf32>
    %197 = arith.addf %193, %196 : vector<50x64xf32>
    %c1 = arith.constant 1 : index
    %c0_90 = arith.constant 0 : index
    %c0_91 = arith.constant 0 : index
    %198 = vector.load %arg6[%c1, %c0_90, %c0_91] : memref<2x1x64xf32, #tpu.memory_space<vmem>>, vector<1x1x64xf32>
    %199 = vector.shape_cast %198 : vector<1x1x64xf32> to vector<1x64xf32>
    %c1_92 = arith.constant 1 : index
    %c0_93 = arith.constant 0 : index
    %c0_94 = arith.constant 0 : index
    %200 = vector.load %arg7[%c1_92, %c0_93, %c0_94] : memref<2x1x64xf32, #tpu.memory_space<vmem>>, vector<1x1x64xf32>
    %201 = vector.shape_cast %200 : vector<1x1x64xf32> to vector<1x64xf32>
    %cst_95 = arith.constant dense<0.000000e+00> : vector<50xf32>
    %202 = vector.multi_reduction <add>, %197, %cst_95 [1] : vector<50x64xf32> to vector<50xf32>
    %203 = vector.shape_cast %202 : vector<50xf32> to vector<50x1xf32>
    %cst_96 = arith.constant 6.400000e+01 : f32
    %204 = vector.broadcast %cst_96 : f32 to vector<50x1xf32>
    %205 = arith.divf %203, %204 : vector<50x1xf32>
    %206 = vector.broadcast %205 : vector<50x1xf32> to vector<50x64xf32>
    %207 = arith.subf %197, %206 : vector<50x64xf32>
    %208 = arith.mulf %207, %207 : vector<50x64xf32>
    %cst_97 = arith.constant dense<0.000000e+00> : vector<50xf32>
    %209 = vector.multi_reduction <add>, %208, %cst_97 [1] : vector<50x64xf32> to vector<50xf32>
    %210 = vector.shape_cast %209 : vector<50xf32> to vector<50x1xf32>
    %cst_98 = arith.constant 6.400000e+01 : f32
    %211 = vector.broadcast %cst_98 : f32 to vector<50x1xf32>
    %212 = arith.divf %210, %211 : vector<50x1xf32>
    %213 = vector.broadcast %205 : vector<50x1xf32> to vector<50x64xf32>
    %214 = arith.subf %197, %213 : vector<50x64xf32>
    %cst_99 = arith.constant 9.99999974E-6 : f32
    %215 = vector.broadcast %cst_99 : f32 to vector<50x1xf32>
    %216 = arith.addf %212, %215 : vector<50x1xf32>
    %217 = math.rsqrt %216 : vector<50x1xf32>
    %218 = vector.broadcast %217 : vector<50x1xf32> to vector<50x64xf32>
    %219 = arith.mulf %214, %218 : vector<50x64xf32>
    %220 = vector.broadcast %199 : vector<1x64xf32> to vector<50x64xf32>
    %221 = arith.mulf %219, %220 : vector<50x64xf32>
    %222 = vector.broadcast %201 : vector<1x64xf32> to vector<50x64xf32>
    %223 = arith.addf %221, %222 : vector<50x64xf32>
    %c1_100 = arith.constant 1 : index
    %c0_101 = arith.constant 0 : index
    %c0_102 = arith.constant 0 : index
    %224 = vector.load %arg8[%c1_100, %c0_101, %c0_102] : memref<2x64x192xf32, #tpu.memory_space<vmem>>, vector<1x64x192xf32>
    %225 = vector.shape_cast %224 : vector<1x64x192xf32> to vector<64x192xf32>
    %cst_103 = arith.constant dense<0.000000e+00> : vector<50x192xf32>
    %226 = tpu.matmul %223, %225, %cst_103 {dimension_numbers = #tpu.dot_dimension_numbers<[1], [0], [0], [1], [0, 0, 1, 1], [], []>} : vector<50x64xf32>, vector<64x192xf32>, vector<50x192xf32> -> vector<50x192xf32>
    %c1_104 = arith.constant 1 : index
    %c0_105 = arith.constant 0 : index
    %c0_106 = arith.constant 0 : index
    %227 = vector.load %arg9[%c1_104, %c0_105, %c0_106] : memref<2x1x192xf32, #tpu.memory_space<vmem>>, vector<1x1x192xf32>
    %228 = vector.shape_cast %227 : vector<1x1x192xf32> to vector<1x192xf32>
    %229 = vector.broadcast %228 : vector<1x192xf32> to vector<50x192xf32>
    %230 = arith.addf %226, %229 : vector<50x192xf32>
    %c1_107 = arith.constant 1 : index
    %c0_108 = arith.constant 0 : index
    %c0_109 = arith.constant 0 : index
    %231 = vector.load %arg10[%c1_107, %c0_108, %c0_109] : memref<2x64x64xf32, #tpu.memory_space<vmem>>, vector<1x64x64xf32>
    %232 = vector.shape_cast %231 : vector<1x64x64xf32> to vector<64x64xf32>
    %233 = vector.extract_strided_slice %230 {offsets = [0, 0], sizes = [50, 16], strides = [1, 1]} : vector<50x192xf32> to vector<50x16xf32>
    %cst_110 = arith.constant 2.500000e-01 : f32
    %234 = vector.broadcast %cst_110 : f32 to vector<50x16xf32>
    %235 = arith.mulf %233, %234 : vector<50x16xf32>
    %236 = vector.extract_strided_slice %230 {offsets = [0, 64], sizes = [50, 16], strides = [1, 1]} : vector<50x192xf32> to vector<50x16xf32>
    %237 = vector.extract_strided_slice %230 {offsets = [0, 128], sizes = [50, 16], strides = [1, 1]} : vector<50x192xf32> to vector<50x16xf32>
    %cst_111 = arith.constant dense<0.000000e+00> : vector<50x50xf32>
    %238 = tpu.matmul %235, %236, %cst_111 {dimension_numbers = #tpu.dot_dimension_numbers<[1], [1], [0], [0], [0, 0, 1, 0], [], []>} : vector<50x16xf32>, vector<50x16xf32>, vector<50x50xf32> -> vector<50x50xf32>
    %cst_112 = arith.constant dense<0xFF800000> : vector<50xf32>
    %239 = vector.multi_reduction <maximumf>, %238, %cst_112 [1] : vector<50x50xf32> to vector<50xf32>
    %240 = vector.shape_cast %239 : vector<50xf32> to vector<50x1xf32>
    %241 = vector.broadcast %240 : vector<50x1xf32> to vector<50x50xf32>
    %242 = arith.subf %238, %241 : vector<50x50xf32>
    %243 = math.exp %242 : vector<50x50xf32>
    %cst_113 = arith.constant dense<0.000000e+00> : vector<50xf32>
    %244 = vector.multi_reduction <add>, %243, %cst_113 [1] : vector<50x50xf32> to vector<50xf32>
    %245 = vector.shape_cast %244 : vector<50xf32> to vector<50x1xf32>
    %246 = tpu.reciprocal %245 {approx = true} : vector<50x1xf32> -> vector<50x1xf32>
    %247 = vector.broadcast %246 : vector<50x1xf32> to vector<50x50xf32>
    %248 = arith.mulf %243, %247 : vector<50x50xf32>
    %cst_114 = arith.constant dense<0.000000e+00> : vector<50x16xf32>
    %249 = tpu.matmul %248, %237, %cst_114 {dimension_numbers = #tpu.dot_dimension_numbers<[1], [0], [0], [1], [0, 0, 1, 1], [], []>} : vector<50x50xf32>, vector<50x16xf32>, vector<50x16xf32> -> vector<50x16xf32>
    %250 = vector.extract_strided_slice %232 {offsets = [0, 0], sizes = [16, 64], strides = [1, 1]} : vector<64x64xf32> to vector<16x64xf32>
    %cst_115 = arith.constant dense<0.000000e+00> : vector<50x64xf32>
    %251 = tpu.matmul %249, %250, %cst_115 {dimension_numbers = #tpu.dot_dimension_numbers<[1], [0], [0], [1], [0, 0, 1, 1], [], []>} : vector<50x16xf32>, vector<16x64xf32>, vector<50x64xf32> -> vector<50x64xf32>
    %252 = vector.extract_strided_slice %230 {offsets = [0, 16], sizes = [50, 16], strides = [1, 1]} : vector<50x192xf32> to vector<50x16xf32>
    %cst_116 = arith.constant 2.500000e-01 : f32
    %253 = vector.broadcast %cst_116 : f32 to vector<50x16xf32>
    %254 = arith.mulf %252, %253 : vector<50x16xf32>
    %255 = vector.extract_strided_slice %230 {offsets = [0, 80], sizes = [50, 16], strides = [1, 1]} : vector<50x192xf32> to vector<50x16xf32>
    %256 = vector.extract_strided_slice %230 {offsets = [0, 144], sizes = [50, 16], strides = [1, 1]} : vector<50x192xf32> to vector<50x16xf32>
    %cst_117 = arith.constant dense<0.000000e+00> : vector<50x50xf32>
    %257 = tpu.matmul %254, %255, %cst_117 {dimension_numbers = #tpu.dot_dimension_numbers<[1], [1], [0], [0], [0, 0, 1, 0], [], []>} : vector<50x16xf32>, vector<50x16xf32>, vector<50x50xf32> -> vector<50x50xf32>
    %cst_118 = arith.constant dense<0xFF800000> : vector<50xf32>
    %258 = vector.multi_reduction <maximumf>, %257, %cst_118 [1] : vector<50x50xf32> to vector<50xf32>
    %259 = vector.shape_cast %258 : vector<50xf32> to vector<50x1xf32>
    %260 = vector.broadcast %259 : vector<50x1xf32> to vector<50x50xf32>
    %261 = arith.subf %257, %260 : vector<50x50xf32>
    %262 = math.exp %261 : vector<50x50xf32>
    %cst_119 = arith.constant dense<0.000000e+00> : vector<50xf32>
    %263 = vector.multi_reduction <add>, %262, %cst_119 [1] : vector<50x50xf32> to vector<50xf32>
    %264 = vector.shape_cast %263 : vector<50xf32> to vector<50x1xf32>
    %265 = tpu.reciprocal %264 {approx = true} : vector<50x1xf32> -> vector<50x1xf32>
    %266 = vector.broadcast %265 : vector<50x1xf32> to vector<50x50xf32>
    %267 = arith.mulf %262, %266 : vector<50x50xf32>
    %cst_120 = arith.constant dense<0.000000e+00> : vector<50x16xf32>
    %268 = tpu.matmul %267, %256, %cst_120 {dimension_numbers = #tpu.dot_dimension_numbers<[1], [0], [0], [1], [0, 0, 1, 1], [], []>} : vector<50x50xf32>, vector<50x16xf32>, vector<50x16xf32> -> vector<50x16xf32>
    %269 = vector.extract_strided_slice %232 {offsets = [16, 0], sizes = [16, 64], strides = [1, 1]} : vector<64x64xf32> to vector<16x64xf32>
    %cst_121 = arith.constant dense<0.000000e+00> : vector<50x64xf32>
    %270 = tpu.matmul %268, %269, %cst_121 {dimension_numbers = #tpu.dot_dimension_numbers<[1], [0], [0], [1], [0, 0, 1, 1], [], []>} : vector<50x16xf32>, vector<16x64xf32>, vector<50x64xf32> -> vector<50x64xf32>
    %271 = arith.addf %251, %270 : vector<50x64xf32>
    %272 = vector.extract_strided_slice %230 {offsets = [0, 32], sizes = [50, 16], strides = [1, 1]} : vector<50x192xf32> to vector<50x16xf32>
    %cst_122 = arith.constant 2.500000e-01 : f32
    %273 = vector.broadcast %cst_122 : f32 to vector<50x16xf32>
    %274 = arith.mulf %272, %273 : vector<50x16xf32>
    %275 = vector.extract_strided_slice %230 {offsets = [0, 96], sizes = [50, 16], strides = [1, 1]} : vector<50x192xf32> to vector<50x16xf32>
    %276 = vector.extract_strided_slice %230 {offsets = [0, 160], sizes = [50, 16], strides = [1, 1]} : vector<50x192xf32> to vector<50x16xf32>
    %cst_123 = arith.constant dense<0.000000e+00> : vector<50x50xf32>
    %277 = tpu.matmul %274, %275, %cst_123 {dimension_numbers = #tpu.dot_dimension_numbers<[1], [1], [0], [0], [0, 0, 1, 0], [], []>} : vector<50x16xf32>, vector<50x16xf32>, vector<50x50xf32> -> vector<50x50xf32>
    %cst_124 = arith.constant dense<0xFF800000> : vector<50xf32>
    %278 = vector.multi_reduction <maximumf>, %277, %cst_124 [1] : vector<50x50xf32> to vector<50xf32>
    %279 = vector.shape_cast %278 : vector<50xf32> to vector<50x1xf32>
    %280 = vector.broadcast %279 : vector<50x1xf32> to vector<50x50xf32>
    %281 = arith.subf %277, %280 : vector<50x50xf32>
    %282 = math.exp %281 : vector<50x50xf32>
    %cst_125 = arith.constant dense<0.000000e+00> : vector<50xf32>
    %283 = vector.multi_reduction <add>, %282, %cst_125 [1] : vector<50x50xf32> to vector<50xf32>
    %284 = vector.shape_cast %283 : vector<50xf32> to vector<50x1xf32>
    %285 = tpu.reciprocal %284 {approx = true} : vector<50x1xf32> -> vector<50x1xf32>
    %286 = vector.broadcast %285 : vector<50x1xf32> to vector<50x50xf32>
    %287 = arith.mulf %282, %286 : vector<50x50xf32>
    %cst_126 = arith.constant dense<0.000000e+00> : vector<50x16xf32>
    %288 = tpu.matmul %287, %276, %cst_126 {dimension_numbers = #tpu.dot_dimension_numbers<[1], [0], [0], [1], [0, 0, 1, 1], [], []>} : vector<50x50xf32>, vector<50x16xf32>, vector<50x16xf32> -> vector<50x16xf32>
    %289 = vector.extract_strided_slice %232 {offsets = [32, 0], sizes = [16, 64], strides = [1, 1]} : vector<64x64xf32> to vector<16x64xf32>
    %cst_127 = arith.constant dense<0.000000e+00> : vector<50x64xf32>
    %290 = tpu.matmul %288, %289, %cst_127 {dimension_numbers = #tpu.dot_dimension_numbers<[1], [0], [0], [1], [0, 0, 1, 1], [], []>} : vector<50x16xf32>, vector<16x64xf32>, vector<50x64xf32> -> vector<50x64xf32>
    %291 = arith.addf %271, %290 : vector<50x64xf32>
    %292 = vector.extract_strided_slice %230 {offsets = [0, 48], sizes = [50, 16], strides = [1, 1]} : vector<50x192xf32> to vector<50x16xf32>
    %cst_128 = arith.constant 2.500000e-01 : f32
    %293 = vector.broadcast %cst_128 : f32 to vector<50x16xf32>
    %294 = arith.mulf %292, %293 : vector<50x16xf32>
    %295 = vector.extract_strided_slice %230 {offsets = [0, 112], sizes = [50, 16], strides = [1, 1]} : vector<50x192xf32> to vector<50x16xf32>
    %296 = vector.extract_strided_slice %230 {offsets = [0, 176], sizes = [50, 16], strides = [1, 1]} : vector<50x192xf32> to vector<50x16xf32>
    %cst_129 = arith.constant dense<0.000000e+00> : vector<50x50xf32>
    %297 = tpu.matmul %294, %295, %cst_129 {dimension_numbers = #tpu.dot_dimension_numbers<[1], [1], [0], [0], [0, 0, 1, 0], [], []>} : vector<50x16xf32>, vector<50x16xf32>, vector<50x50xf32> -> vector<50x50xf32>
    %cst_130 = arith.constant dense<0xFF800000> : vector<50xf32>
    %298 = vector.multi_reduction <maximumf>, %297, %cst_130 [1] : vector<50x50xf32> to vector<50xf32>
    %299 = vector.shape_cast %298 : vector<50xf32> to vector<50x1xf32>
    %300 = vector.broadcast %299 : vector<50x1xf32> to vector<50x50xf32>
    %301 = arith.subf %297, %300 : vector<50x50xf32>
    %302 = math.exp %301 : vector<50x50xf32>
    %cst_131 = arith.constant dense<0.000000e+00> : vector<50xf32>
    %303 = vector.multi_reduction <add>, %302, %cst_131 [1] : vector<50x50xf32> to vector<50xf32>
    %304 = vector.shape_cast %303 : vector<50xf32> to vector<50x1xf32>
    %305 = tpu.reciprocal %304 {approx = true} : vector<50x1xf32> -> vector<50x1xf32>
    %306 = vector.broadcast %305 : vector<50x1xf32> to vector<50x50xf32>
    %307 = arith.mulf %302, %306 : vector<50x50xf32>
    %cst_132 = arith.constant dense<0.000000e+00> : vector<50x16xf32>
    %308 = tpu.matmul %307, %296, %cst_132 {dimension_numbers = #tpu.dot_dimension_numbers<[1], [0], [0], [1], [0, 0, 1, 1], [], []>} : vector<50x50xf32>, vector<50x16xf32>, vector<50x16xf32> -> vector<50x16xf32>
    %309 = vector.extract_strided_slice %232 {offsets = [48, 0], sizes = [16, 64], strides = [1, 1]} : vector<64x64xf32> to vector<16x64xf32>
    %cst_133 = arith.constant dense<0.000000e+00> : vector<50x64xf32>
    %310 = tpu.matmul %308, %309, %cst_133 {dimension_numbers = #tpu.dot_dimension_numbers<[1], [0], [0], [1], [0, 0, 1, 1], [], []>} : vector<50x16xf32>, vector<16x64xf32>, vector<50x64xf32> -> vector<50x64xf32>
    %311 = arith.addf %291, %310 : vector<50x64xf32>
    %312 = arith.addf %197, %311 : vector<50x64xf32>
    %c1_134 = arith.constant 1 : index
    %c0_135 = arith.constant 0 : index
    %c0_136 = arith.constant 0 : index
    %313 = vector.load %arg11[%c1_134, %c0_135, %c0_136] : memref<2x1x64xf32, #tpu.memory_space<vmem>>, vector<1x1x64xf32>
    %314 = vector.shape_cast %313 : vector<1x1x64xf32> to vector<1x64xf32>
    %315 = vector.broadcast %314 : vector<1x64xf32> to vector<50x64xf32>
    %316 = arith.addf %312, %315 : vector<50x64xf32>
    %c1_137 = arith.constant 1 : index
    %c0_138 = arith.constant 0 : index
    %c0_139 = arith.constant 0 : index
    %317 = vector.load %arg12[%c1_137, %c0_138, %c0_139] : memref<2x1x64xf32, #tpu.memory_space<vmem>>, vector<1x1x64xf32>
    %318 = vector.shape_cast %317 : vector<1x1x64xf32> to vector<1x64xf32>
    %c1_140 = arith.constant 1 : index
    %c0_141 = arith.constant 0 : index
    %c0_142 = arith.constant 0 : index
    %319 = vector.load %arg13[%c1_140, %c0_141, %c0_142] : memref<2x1x64xf32, #tpu.memory_space<vmem>>, vector<1x1x64xf32>
    %320 = vector.shape_cast %319 : vector<1x1x64xf32> to vector<1x64xf32>
    %cst_143 = arith.constant dense<0.000000e+00> : vector<50xf32>
    %321 = vector.multi_reduction <add>, %316, %cst_143 [1] : vector<50x64xf32> to vector<50xf32>
    %322 = vector.shape_cast %321 : vector<50xf32> to vector<50x1xf32>
    %cst_144 = arith.constant 6.400000e+01 : f32
    %323 = vector.broadcast %cst_144 : f32 to vector<50x1xf32>
    %324 = arith.divf %322, %323 : vector<50x1xf32>
    %325 = vector.broadcast %324 : vector<50x1xf32> to vector<50x64xf32>
    %326 = arith.subf %316, %325 : vector<50x64xf32>
    %327 = arith.mulf %326, %326 : vector<50x64xf32>
    %cst_145 = arith.constant dense<0.000000e+00> : vector<50xf32>
    %328 = vector.multi_reduction <add>, %327, %cst_145 [1] : vector<50x64xf32> to vector<50xf32>
    %329 = vector.shape_cast %328 : vector<50xf32> to vector<50x1xf32>
    %cst_146 = arith.constant 6.400000e+01 : f32
    %330 = vector.broadcast %cst_146 : f32 to vector<50x1xf32>
    %331 = arith.divf %329, %330 : vector<50x1xf32>
    %332 = vector.broadcast %324 : vector<50x1xf32> to vector<50x64xf32>
    %333 = arith.subf %316, %332 : vector<50x64xf32>
    %cst_147 = arith.constant 9.99999974E-6 : f32
    %334 = vector.broadcast %cst_147 : f32 to vector<50x1xf32>
    %335 = arith.addf %331, %334 : vector<50x1xf32>
    %336 = math.rsqrt %335 : vector<50x1xf32>
    %337 = vector.broadcast %336 : vector<50x1xf32> to vector<50x64xf32>
    %338 = arith.mulf %333, %337 : vector<50x64xf32>
    %339 = vector.broadcast %318 : vector<1x64xf32> to vector<50x64xf32>
    %340 = arith.mulf %338, %339 : vector<50x64xf32>
    %341 = vector.broadcast %320 : vector<1x64xf32> to vector<50x64xf32>
    %342 = arith.addf %340, %341 : vector<50x64xf32>
    %c1_148 = arith.constant 1 : index
    %c0_149 = arith.constant 0 : index
    %c0_150 = arith.constant 0 : index
    %343 = vector.load %arg14[%c1_148, %c0_149, %c0_150] : memref<2x64x256xf32, #tpu.memory_space<vmem>>, vector<1x64x256xf32>
    %344 = vector.shape_cast %343 : vector<1x64x256xf32> to vector<64x256xf32>
    %cst_151 = arith.constant dense<0.000000e+00> : vector<50x256xf32>
    %345 = tpu.matmul %342, %344, %cst_151 {dimension_numbers = #tpu.dot_dimension_numbers<[1], [0], [0], [1], [0, 0, 1, 1], [], []>} : vector<50x64xf32>, vector<64x256xf32>, vector<50x256xf32> -> vector<50x256xf32>
    %c1_152 = arith.constant 1 : index
    %c0_153 = arith.constant 0 : index
    %c0_154 = arith.constant 0 : index
    %346 = vector.load %arg15[%c1_152, %c0_153, %c0_154] : memref<2x1x256xf32, #tpu.memory_space<vmem>>, vector<1x1x256xf32>
    %347 = vector.shape_cast %346 : vector<1x1x256xf32> to vector<1x256xf32>
    %348 = vector.broadcast %347 : vector<1x256xf32> to vector<50x256xf32>
    %349 = arith.addf %345, %348 : vector<50x256xf32>
    %cst_155 = arith.constant 1.702000e+00 : f32
    %350 = vector.broadcast %cst_155 : f32 to vector<50x256xf32>
    %351 = arith.mulf %350, %349 : vector<50x256xf32>
    %352 = arith.negf %351 : vector<50x256xf32>
    %353 = math.exp %352 : vector<50x256xf32>
    %cst_156 = arith.constant 1.000000e+00 : f32
    %354 = vector.broadcast %cst_156 : f32 to vector<50x256xf32>
    %355 = arith.addf %354, %353 : vector<50x256xf32>
    %356 = arith.divf %354, %355 : vector<50x256xf32>
    %357 = arith.mulf %349, %356 : vector<50x256xf32>
    %c1_157 = arith.constant 1 : index
    %c0_158 = arith.constant 0 : index
    %c0_159 = arith.constant 0 : index
    %358 = vector.load %arg16[%c1_157, %c0_158, %c0_159] : memref<2x256x64xf32, #tpu.memory_space<vmem>>, vector<1x256x64xf32>
    %359 = vector.shape_cast %358 : vector<1x256x64xf32> to vector<256x64xf32>
    %cst_160 = arith.constant dense<0.000000e+00> : vector<50x64xf32>
    %360 = tpu.matmul %357, %359, %cst_160 {dimension_numbers = #tpu.dot_dimension_numbers<[1], [0], [0], [1], [0, 0, 1, 1], [], []>} : vector<50x256xf32>, vector<256x64xf32>, vector<50x64xf32> -> vector<50x64xf32>
    %361 = arith.addf %316, %360 : vector<50x64xf32>
    %c1_161 = arith.constant 1 : index
    %c0_162 = arith.constant 0 : index
    %c0_163 = arith.constant 0 : index
    %362 = vector.load %arg17[%c1_161, %c0_162, %c0_163] : memref<2x1x64xf32, #tpu.memory_space<vmem>>, vector<1x1x64xf32>
    %363 = vector.shape_cast %362 : vector<1x1x64xf32> to vector<1x64xf32>
    %364 = vector.broadcast %363 : vector<1x64xf32> to vector<50x64xf32>
    %365 = arith.addf %361, %364 : vector<50x64xf32>
    %366 = vector.extract_strided_slice %365 {offsets = [0, 0], sizes = [1, 64], strides = [1, 1]} : vector<50x64xf32> to vector<1x64xf32>
    %c0_164 = arith.constant 0 : index
    %c0_165 = arith.constant 0 : index
    %367 = vector.load %arg18[%c0_164, %c0_165] : memref<1x64xf32, #tpu.memory_space<vmem>>, vector<1x64xf32>
    %c0_166 = arith.constant 0 : index
    %c0_167 = arith.constant 0 : index
    %368 = vector.load %arg19[%c0_166, %c0_167] : memref<1x64xf32, #tpu.memory_space<vmem>>, vector<1x64xf32>
    %cst_168 = arith.constant dense<0.000000e+00> : vector<1xf32>
    %369 = vector.multi_reduction <add>, %366, %cst_168 [1] : vector<1x64xf32> to vector<1xf32>
    %370 = vector.shape_cast %369 : vector<1xf32> to vector<1x1xf32>
    %cst_169 = arith.constant 6.400000e+01 : f32
    %371 = vector.broadcast %cst_169 : f32 to vector<1x1xf32>
    %372 = arith.divf %370, %371 : vector<1x1xf32>
    %373 = vector.broadcast %372 : vector<1x1xf32> to vector<1x64xf32>
    %374 = arith.subf %366, %373 : vector<1x64xf32>
    %375 = arith.mulf %374, %374 : vector<1x64xf32>
    %cst_170 = arith.constant dense<0.000000e+00> : vector<1xf32>
    %376 = vector.multi_reduction <add>, %375, %cst_170 [1] : vector<1x64xf32> to vector<1xf32>
    %377 = vector.shape_cast %376 : vector<1xf32> to vector<1x1xf32>
    %cst_171 = arith.constant 6.400000e+01 : f32
    %378 = vector.broadcast %cst_171 : f32 to vector<1x1xf32>
    %379 = arith.divf %377, %378 : vector<1x1xf32>
    %380 = vector.broadcast %372 : vector<1x1xf32> to vector<1x64xf32>
    %381 = arith.subf %366, %380 : vector<1x64xf32>
    %cst_172 = arith.constant 9.99999974E-6 : f32
    %382 = vector.broadcast %cst_172 : f32 to vector<1x1xf32>
    %383 = arith.addf %379, %382 : vector<1x1xf32>
    %384 = math.rsqrt %383 : vector<1x1xf32>
    %385 = vector.broadcast %384 : vector<1x1xf32> to vector<1x64xf32>
    %386 = arith.mulf %381, %385 : vector<1x64xf32>
    %387 = arith.mulf %386, %367 : vector<1x64xf32>
    %388 = arith.addf %387, %368 : vector<1x64xf32>
    %c0_173 = arith.constant 0 : index
    %c0_174 = arith.constant 0 : index
    %389 = vector.load %arg20[%c0_173, %c0_174] : memref<64x32xf32, #tpu.memory_space<vmem>>, vector<64x32xf32>
    %cst_175 = arith.constant dense<0.000000e+00> : vector<1x32xf32>
    %390 = tpu.matmul %388, %389, %cst_175 {dimension_numbers = #tpu.dot_dimension_numbers<[1], [0], [0], [1], [0, 0, 1, 1], [], []>} : vector<1x64xf32>, vector<64x32xf32>, vector<1x32xf32> -> vector<1x32xf32>
    %c0_176 = arith.constant 0 : index
    %c0_177 = arith.constant 0 : index
    %c0_178 = arith.constant 0 : index
    %391 = vector.load %arg21[%c0_176, %c0_177, %c0_178] : memref<1x1x32xf32, #tpu.memory_space<vmem>>, vector<1x1x32xf32>
    %392 = vector.shape_cast %391 : vector<1x1x32xf32> to vector<1x32xf32>
    %393 = vector.shape_cast %390 : vector<1x32xf32> to vector<1x1x32xf32>
    tpu.vector_store %arg21[%c0_176, %c0_177, %c0_178], %393 {strides = array<i32>} : memref<1x1x32xf32, #tpu.memory_space<vmem>>, vector<1x1x32xf32>,
    return
  }
  func.func @transform_0(%arg0: i32) -> (i32, i32, i32) {
    %c0_i32 = arith.constant 0 : i32
    %c0_i32_0 = arith.constant 0 : i32
    %c0_i32_1 = arith.constant 0 : i32
    return %arg0, %c0_i32, %c0_i32_0 : i32, i32, i32
  }
  func.func @transform_1(%arg0: i32) -> (i32, i32) {
    %c0_i32 = arith.constant 0 : i32
    %c0_i32_0 = arith.constant 0 : i32
    %c0_i32_1 = arith.constant 0 : i32
    return %c0_i32, %c0_i32_0 : i32, i32
  }
  func.func @transform_2(%arg0: i32) -> (i32, i32) {
    %c0_i32 = arith.constant 0 : i32
    %c0_i32_0 = arith.constant 0 : i32
    %c0_i32_1 = arith.constant 0 : i32
    return %c0_i32, %c0_i32_0 : i32, i32
  }
  func.func @transform_3(%arg0: i32) -> (i32, i32) {
    %c0_i32 = arith.constant 0 : i32
    %c0_i32_0 = arith.constant 0 : i32
    %c0_i32_1 = arith.constant 0 : i32
    return %c0_i32, %c0_i32_0 : i32, i32
  }
  func.func @transform_4(%arg0: i32) -> (i32, i32) {
    %c0_i32 = arith.constant 0 : i32
    %c0_i32_0 = arith.constant 0 : i32
    %c0_i32_1 = arith.constant 0 : i32
    return %c0_i32, %c0_i32_0 : i32, i32
  }
  func.func @transform_5(%arg0: i32) -> (i32, i32, i32) {
    %c0_i32 = arith.constant 0 : i32
    %c0_i32_0 = arith.constant 0 : i32
    %c0_i32_1 = arith.constant 0 : i32
    %c0_i32_2 = arith.constant 0 : i32
    return %c0_i32, %c0_i32_0, %c0_i32_1 : i32, i32, i32
  }
  func.func @transform_6(%arg0: i32) -> (i32, i32, i32) {
    %c0_i32 = arith.constant 0 : i32
    %c0_i32_0 = arith.constant 0 : i32
    %c0_i32_1 = arith.constant 0 : i32
    %c0_i32_2 = arith.constant 0 : i32
    return %c0_i32, %c0_i32_0, %c0_i32_1 : i32, i32, i32
  }
  func.func @transform_7(%arg0: i32) -> (i32, i32, i32) {
    %c0_i32 = arith.constant 0 : i32
    %c0_i32_0 = arith.constant 0 : i32
    %c0_i32_1 = arith.constant 0 : i32
    %c0_i32_2 = arith.constant 0 : i32
    return %c0_i32, %c0_i32_0, %c0_i32_1 : i32, i32, i32
  }
  func.func @transform_8(%arg0: i32) -> (i32, i32, i32) {
    %c0_i32 = arith.constant 0 : i32
    %c0_i32_0 = arith.constant 0 : i32
    %c0_i32_1 = arith.constant 0 : i32
    %c0_i32_2 = arith.constant 0 : i32
    return %c0_i32, %c0_i32_0, %c0_i32_1 : i32, i32, i32
  }
  func.func @transform_9(%arg0: i32) -> (i32, i32, i32) {
    %c0_i32 = arith.constant 0 : i32
    %c0_i32_0 = arith.constant 0 : i32
    %c0_i32_1 = arith.constant 0 : i32
    %c0_i32_2 = arith.constant 0 : i32
    return %c0_i32, %c0_i32_0, %c0_i32_1 : i32, i32, i32
  }
  func.func @transform_10(%arg0: i32) -> (i32, i32, i32) {
    %c0_i32 = arith.constant 0 : i32
    %c0_i32_0 = arith.constant 0 : i32
    %c0_i32_1 = arith.constant 0 : i32
    %c0_i32_2 = arith.constant 0 : i32
    return %c0_i32, %c0_i32_0, %c0_i32_1 : i32, i32, i32
  }
  func.func @transform_11(%arg0: i32) -> (i32, i32, i32) {
    %c0_i32 = arith.constant 0 : i32
    %c0_i32_0 = arith.constant 0 : i32
    %c0_i32_1 = arith.constant 0 : i32
    %c0_i32_2 = arith.constant 0 : i32
    return %c0_i32, %c0_i32_0, %c0_i32_1 : i32, i32, i32
  }
  func.func @transform_12(%arg0: i32) -> (i32, i32, i32) {
    %c0_i32 = arith.constant 0 : i32
    %c0_i32_0 = arith.constant 0 : i32
    %c0_i32_1 = arith.constant 0 : i32
    %c0_i32_2 = arith.constant 0 : i32
    return %c0_i32, %c0_i32_0, %c0_i32_1 : i32, i32, i32
  }
  func.func @transform_13(%arg0: i32) -> (i32, i32, i32) {
    %c0_i32 = arith.constant 0 : i32
    %c0_i32_0 = arith.constant 0 : i32
    %c0_i32_1 = arith.constant 0 : i32
    %c0_i32_2 = arith.constant 0 : i32
    return %c0_i32, %c0_i32_0, %c0_i32_1 : i32, i32, i32
  }
  func.func @transform_14(%arg0: i32) -> (i32, i32, i32) {
    %c0_i32 = arith.constant 0 : i32
    %c0_i32_0 = arith.constant 0 : i32
    %c0_i32_1 = arith.constant 0 : i32
    %c0_i32_2 = arith.constant 0 : i32
    return %c0_i32, %c0_i32_0, %c0_i32_1 : i32, i32, i32
  }
  func.func @transform_15(%arg0: i32) -> (i32, i32, i32) {
    %c0_i32 = arith.constant 0 : i32
    %c0_i32_0 = arith.constant 0 : i32
    %c0_i32_1 = arith.constant 0 : i32
    %c0_i32_2 = arith.constant 0 : i32
    return %c0_i32, %c0_i32_0, %c0_i32_1 : i32, i32, i32
  }
  func.func @transform_16(%arg0: i32) -> (i32, i32, i32) {
    %c0_i32 = arith.constant 0 : i32
    %c0_i32_0 = arith.constant 0 : i32
    %c0_i32_1 = arith.constant 0 : i32
    %c0_i32_2 = arith.constant 0 : i32
    return %c0_i32, %c0_i32_0, %c0_i32_1 : i32, i32, i32
  }
  func.func @transform_17(%arg0: i32) -> (i32, i32) {
    %c0_i32 = arith.constant 0 : i32
    %c0_i32_0 = arith.constant 0 : i32
    %c0_i32_1 = arith.constant 0 : i32
    return %c0_i32, %c0_i32_0 : i32, i32
  }
  func.func @transform_18(%arg0: i32) -> (i32, i32) {
    %c0_i32 = arith.constant 0 : i32
    %c0_i32_0 = arith.constant 0 : i32
    %c0_i32_1 = arith.constant 0 : i32
    return %c0_i32, %c0_i32_0 : i32, i32
  }
  func.func @transform_19(%arg0: i32) -> (i32, i32) {
    %c0_i32 = arith.constant 0 : i32
    %c0_i32_0 = arith.constant 0 : i32
    %c0_i32_1 = arith.constant 0 : i32
    return %c0_i32, %c0_i32_0 : i32, i32
  }
  func.func @transform_20(%arg0: i32) -> (i32, i32, i32) {
    %c0_i32 = arith.constant 0 : i32
    %c0_i32_0 = arith.constant 0 : i32
    %c0_i32_1 = arith.constant 0 : i32
    return %arg0, %c0_i32, %c0_i32_0 : i32, i32, i32
  }
}

module attributes {stable_mosaic.version = 11 : i64} {
  func.func @_cos_loss_kernel(%arg0: i32, %arg1: memref<4x32xf32, #tpu.memory_space<vmem>>, %arg2: memref<1x1xf32, #tpu.memory_space<vmem>>) attributes {dimension_semantics = [#tpu.dimension_semantics<arbitrary>], iteration_bounds = array<i64: 1>, scalar_prefetch = 0 : i64, scratch_operands = 0 : i64, tpu.core_type = #tpu.core_type<tc>, window_params = [{pipeline_mode = #tpu.pipeline_mode<synchronous>, transform_indices = @transform_0, window_bounds = array<i64: 4, 32>}, {pipeline_mode = #tpu.pipeline_mode<synchronous>, transform_indices = @transform_1, window_bounds = array<i64: 1, 1>}]} {
    %c0 = arith.constant 0 : index
    %c0_0 = arith.constant 0 : index
    %0 = vector.load %arg1[%c0, %c0_0] : memref<4x32xf32, #tpu.memory_space<vmem>>, vector<4x32xf32>
    %1 = vector.extract_strided_slice %0 {offsets = [0, 0], sizes = [2, 32], strides = [1, 1]} : vector<4x32xf32> to vector<2x32xf32>
    %2 = vector.extract_strided_slice %0 {offsets = [2, 0], sizes = [2, 32], strides = [1, 1]} : vector<4x32xf32> to vector<2x32xf32>
    %3 = arith.mulf %1, %2 : vector<2x32xf32>
    %cst = arith.constant dense<0.000000e+00> : vector<2xf32>
    %4 = vector.multi_reduction <add>, %3, %cst [1] : vector<2x32xf32> to vector<2xf32>
    %5 = vector.shape_cast %4 : vector<2xf32> to vector<2x1xf32>
    %6 = arith.mulf %1, %1 : vector<2x32xf32>
    %cst_1 = arith.constant dense<0.000000e+00> : vector<2xf32>
    %7 = vector.multi_reduction <add>, %6, %cst_1 [1] : vector<2x32xf32> to vector<2xf32>
    %8 = vector.shape_cast %7 : vector<2xf32> to vector<2x1xf32>
    %9 = math.sqrt %8 : vector<2x1xf32>
    %10 = arith.mulf %2, %2 : vector<2x32xf32>
    %cst_2 = arith.constant dense<0.000000e+00> : vector<2xf32>
    %11 = vector.multi_reduction <add>, %10, %cst_2 [1] : vector<2x32xf32> to vector<2xf32>
    %12 = vector.shape_cast %11 : vector<2xf32> to vector<2x1xf32>
    %13 = math.sqrt %12 : vector<2x1xf32>
    %cst_3 = arith.constant 9.99999993E-9 : f32
    %14 = vector.broadcast %cst_3 : f32 to vector<2x1xf32>
    %15 = arith.maximumf %9, %14 : vector<2x1xf32>
    %cst_4 = arith.constant 9.99999993E-9 : f32
    %16 = vector.broadcast %cst_4 : f32 to vector<2x1xf32>
    %17 = arith.maximumf %13, %16 : vector<2x1xf32>
    %18 = arith.mulf %15, %17 : vector<2x1xf32>
    %19 = arith.divf %5, %18 : vector<2x1xf32>
    %20 = vector.shape_cast %19 : vector<2x1xf32> to vector<1x2x1xf32>
    %cst_5 = arith.constant dense<0.000000e+00> : vector<1xf32>
    %21 = vector.multi_reduction <add>, %20, %cst_5 [1, 2] : vector<1x2x1xf32> to vector<1xf32>
    %22 = vector.shape_cast %21 : vector<1xf32> to vector<1x1x1xf32>
    %23 = vector.extract %22[0, 0, 0] : f32 from vector<1x1x1xf32>
    %cst_6 = arith.constant 2.000000e+00 : f32
    %24 = arith.divf %23, %cst_6 : f32
    %cst_7 = arith.constant 1.000000e+00 : f32
    %25 = arith.subf %cst_7, %24 : f32
    %26 = vector.broadcast %25 : f32 to vector<1x1xf32>
    %c0_8 = arith.constant 0 : index
    %c0_9 = arith.constant 0 : index
    %27 = vector.load %arg2[%c0_8, %c0_9] : memref<1x1xf32, #tpu.memory_space<vmem>>, vector<1x1xf32>
    tpu.vector_store %arg2[%c0_8, %c0_9], %26 {strides = array<i32>} : memref<1x1xf32, #tpu.memory_space<vmem>>, vector<1x1xf32>,
    return
  }
  func.func @transform_0(%arg0: i32) -> (i32, i32) {
    %c0_i32 = arith.constant 0 : i32
    %c0_i32_0 = arith.constant 0 : i32
    %c0_i32_1 = arith.constant 0 : i32
    return %c0_i32, %c0_i32_0 : i32, i32
  }
  func.func @transform_1(%arg0: i32) -> (i32, i32) {
    %c0_i32 = arith.constant 0 : i32
    %c0_i32_0 = arith.constant 0 : i32
    %c0_i32_1 = arith.constant 0 : i32
    return %c0_i32, %c0_i32_0 : i32, i32
  }
}

</mosaic_0001>

<bundles_post_ra>
// kernel: clip_loss.3
= control target key start
LH: loop header
LB: loop body
LE: loop exit
PB: predicated region body
PF: predicated region fallthrough
CT: control target
= control target key end

     0   :  { %s2395_s12 = smov 0   ;;  %s3417_s0 = inlined_call_operand.vmem [shape: f32[4,3,16,16], index: 0, kind: input, shape index: {}]   ;;  %s3418_s1 = inlined_call_operand.vmem [shape: f32[224,16], index: 1, kind: input, shape index: {}]   ;;  %s3419_s2 = inlined_call_operand.vmem [shape: f32[16,224], index: 2, kind: input, shape index: {}]   ;;  %s3420_s3 = inlined_call_operand.vmem [shape: bf16[4,3,224,224], index: 3, kind: output, shape index: {}]  }
   0x1 LB: > { %s2021_s13 = sadd.s32 4294967295, %s2373_s12   ;;  %p2025_p0 = scmp.ge.s32.totalorder %s2373_s12, 1  ;;  %s2373_s12 = sphi %s2395_s12, %s13_s12  }
   0x2   : > { %p137_p1 = scmp.lt.s32.totalorder %s2373_s12, 5 }
   0x4   : > { %p138_p2 = pnand %p2025_p0, %p137_p1 }
   0x5   : > { %p161_p3 = scmp.lt.s32.totalorder (!%p138_p2), %s2021_s13, 3 }
   0x6   : > { %141 = sbr.rel (%p138_p2) target bundleno = 856 (0x358), region = 32 }
   0xb   : > { %s3424_s13 = smov (!%p161_p3, %s2021_s13), 3  ;;  %v2416_v2 = vld [vmem:[%s3418_s1] sm:$0xff]  ;;  %vm205_vm0 = vcmask 130048   ;;  %v2423_v3 = vld [vmem:[%s3418_s1 + $0x8] sm:$0xff]  ;;  %v2430_v4 = vld [vmem:[%s3418_s1 + $0x10] sm:$0xff]  ;;  %vm817_vm1 = vcmask 1043456  }
   0xc   : > { %s2348_s14 = smul.u32 48, %s3424_s13  ;;  %v2437_v5 = vld [vmem:[%s3418_s1 + $0x38] sm:$0xff]  ;;  %v2442_v6 = vld [vmem:[%s3418_s1 + $0x70] sm:$0xff]  ;;  %v2451_v7 = vld [vmem:[%s3418_s1 + $0xa8] sm:$0xff]  ;;  %vm818_vm2 = vcmask 785412  }
   0xd   : > { %v2456_v8 = vld [vmem:[%s3419_s2 + $0x18] sm:$0xff]  ;;  %v2470_v11 = vld [vmem:[%s3418_s1 + $0x40] sm:$0xff]  ;;  %v2480_v13 = vld [vmem:[%s3418_s1 + $0xb0] sm:$0xff] }
   0xe   : > { %s2409_s17 = scalar_lea.vmem %s3417_s0, %s2348_s14  ;;  %v2465_v10 = vld [vmem:[%s3418_s1 + $0x18] sm:$0xff]  ;;  %v200_v14 = vld [vmem:[%s3419_s2 + $0x8] sm:$0xff]  ;;  %v2496_v15 = vld [vmem:[%s3418_s1 + $0x20] sm:$0xff] }
   0xf   : > { %v204_v0 = vld [vmem:[%s2409_s17 + $0x8] sm:$0xff]  ;;  %v203_v1 = vld [vmem:[%s2409_s17] sm:$0xff]  ;;  %v2113_v9 = vld [vmem:[%s2409_s17 + $0x18] sm:$0xff] }
  0x10   : > { %304 = vmatpush.msra.mxu0 %v204_v0  ;;  %2342 = vmatpush.msra.mxu1 %v204_v0  ;;  %v2475_v12 = vld [vmem:[%s3418_s1 + $0x78] sm:$0xff]  ;;  %v2501_v16 = vld [vmem:[%s3418_s1 + $0x48] sm:$0xff]  ;;  %v2506_v17 = vld [vmem:[%s3418_s1 + $0x80] sm:$0xff] }
  0x11   : > { %2343 = vmatpush.msra.mxu2 %v204_v0  ;;  %2344 = vmatpush.msra.mxu3 %v204_v0  ;;  %v2511_v18 = vld [vmem:[%s3418_s1 + $0xb8] sm:$0xff]  ;;  %v2112_v19 = vld [vmem:[%s2409_s17 + $0x10] sm:$0xff]  ;;  %v2528_v21 = vld [vmem:[%s3418_s1 + $0x28] sm:$0xff] }
  0x12   : > { %305 = vmatpush.msra.mxu0 %v203_v1  ;;  %2345 = vmatpush.msra.mxu1 %v203_v1  ;;  %v201_v20 = vld [vmem:[%s3419_s2 + $0x10] sm:$0xff]  ;;  %v2538_v23 = vld [vmem:[%s3418_s1 + $0x88] sm:$0xff]  ;;  %v2543_v24 = vld [vmem:[%s3418_s1 + $0xc0] sm:$0xff] }
  0x13   : > { %2028 = vmatmul.msk.f32.vlgmr.msra.gmra.mxu0 %vm205_vm0, %v2416_v2  ;;  %2346 = vmatpush.msra.mxu2 %v203_v1  ;;  %v2533_v22 = vld [vmem:[%s3418_s1 + $0x50] sm:$0xff]  ;;  %v2561_v26 = vld [vmem:[%s3418_s1 + $0x58] sm:$0xff]  ;;  %v2571_v28 = vld [vmem:[%s3418_s1 + $0xc8] sm:$0xff] }
  0x14   : > { %2347 = vmatpush.msra.mxu3 %v203_v1  ;;  %2035 = vmatmul.msk.f32.vlgmr.msra.gmra.mxu1 %vm205_vm0, %v2437_v5  ;;  %v2556_v25 = vld [vmem:[%s3418_s1 + $0x30] sm:$0xff]  ;;  %v2584_v29 = vld [vmem:[%s3418_s1 + $0x60] sm:$0xff]  ;;  %v2589_v30 = vld [vmem:[%s3418_s1 + $0x98] sm:$0xff] }
  0x15   : > { %2042 = vmatmul.msk.f32.vlgmr.msra.gmra.mxu2 %vm205_vm0, %v2442_v6  ;;  %2049 = vmatmul.msk.f32.vlgmr.msra.gmra.mxu3 %vm205_vm0, %v2451_v7  ;;  %v2566_v27 = vld [vmem:[%s3418_s1 + $0x90] sm:$0xff]  ;;  %v2605_v32 = vld [vmem:[%s3418_s1 + $0x68] sm:$0xff]  ;;  %v2610_v33 = vld [vmem:[%s3418_s1 + $0xa0] sm:$0xff] }
  0x16   : > { %590 = vmatpush.msrb.mxu2 %v2456_v8  ;;  %865 = vmatpush.msrb.mxu3 %v2113_v9  ;;  %v2594_v31 = vld [vmem:[%s3418_s1 + $0xd0] sm:$0xff]  ;;  %v2615_v34 = vld [vmem:[%s3418_s1 + $0xd8] sm:$0xff]  ;;  %v199_v35 = vld [vmem:[%s3419_s2] sm:$0xff] }
  0x17   : > { %489 = vmatpush.msrb.mxu1 %v201_v20  ;;  %1050 = vmatpush.msrb.mxu0 %v201_v20  ;;  %v2227_v36 = vld [vmem:[%s2409_s17 + $0x28] sm:$0xff]  ;;  %v2226_v55 = vld [vmem:[%s2409_s17 + $0x20] sm:$0xff]  ;;  %s2349_s17 = smul.u32 672, %s3424_s13  ;;  %vm2752_vm3 = vmor %vm818_vm2, %vm817_vm1 }
  0x18   : > { %591 = vmatpush.msrb.mxu2 %v200_v14  ;;  %866 = vmatpush.msrb.mxu3 %v2112_v19 }
  0x19   : > { %490 = vmatpush.msrb.mxu1 %v199_v35  ;;  %1051 = vmatpush.msrb.mxu0 %v199_v35  ;;  %s2750_s9 = scalar_lea.vmem %s3420_s3, %s2349_s17 }
  0x1a   : > { %1609 = vmatpush.msra.mxu3 %v201_v20  ;;  %1424 = vmatpush.msra.mxu2 %v2227_v36 }
  0x1b   : > { %2029 = vmatmul.msk.f32.gmra.mxu0 %vm205_vm0, %v2423_v3  ;;  %1151 = vmatpush.msra.mxu1 %v2456_v8 }
  0x1c   : > { %2036 = vmatmul.msk.f32.gmra.mxu1 %vm205_vm0, %v2470_v11  ;;  %1710 = vmatpush.msra.mxu0 %v2456_v8 }
  0x1d   : > { %2043 = vmatmul.msk.f32.gmra.mxu2 %vm205_vm0, %v2475_v12  ;;  %2050 = vmatmul.msk.f32.gmra.mxu3 %vm205_vm0, %v2480_v13 }
  0x1e   : > { %1610 = vmatpush.msra.mxu3 %v199_v35  ;;  %1152 = vmatpush.msra.mxu1 %v200_v14 }
  0x1f   : > { %1711 = vmatpush.msra.mxu0 %v200_v14  ;;  %1425 = vmatpush.msra.mxu2 %v2226_v55 }
  0x23   : > { %2030 = vmatmul.msk.f32.gmra.mxu0 %vm205_vm0, %v2430_v4 }
  0x24   : > { %2037 = vmatmul.msk.f32.gmra.mxu1 %vm205_vm0, %v2501_v16 }
  0x25   : > { %2044 = vmatmul.msk.f32.gmra.mxu2 %vm205_vm0, %v2506_v17  ;;  %2051 = vmatmul.msk.f32.gmra.mxu3 %vm205_vm0, %v2511_v18 }
  0x2b   : > { %2031 = vmatmul.msk.f32.gmra.mxu0 %vm205_vm0, %v2465_v10 }
  0x2c   : > { %2038 = vmatmul.msk.f32.gmra.mxu1 %vm205_vm0, %v2533_v22 }
  0x2d   : > { %2045 = vmatmul.msk.f32.gmra.mxu2 %vm205_vm0, %v2538_v23  ;;  %2052 = vmatmul.msk.f32.gmra.mxu3 %vm205_vm0, %v2543_v24 }
  0x33   : > { %2032 = vmatmul.msk.f32.gmra.mxu0 %vm205_vm0, %v2496_v15 }
  0x34   : > { %2039 = vmatmul.msk.f32.gmra.mxu1 %vm205_vm0, %v2561_v26 }
  0x35   : > { %2046 = vmatmul.msk.f32.gmra.mxu2 %vm205_vm0, %v2566_v27  ;;  %2053 = vmatmul.msk.f32.gmra.mxu3 %vm205_vm0, %v2571_v28 }
  0x3b   : > { %2033 = vmatmul.msk.f32.gmra.mxu0 %vm205_vm0, %v2528_v21 }
  0x3c   : > { %2040 = vmatmul.msk.f32.gmra.mxu1 %vm205_vm0, %v2584_v29 }
  0x3d   : > { %2047 = vmatmul.msk.f32.gmra.mxu2 %vm205_vm0, %v2589_v30  ;;  %2054 = vmatmul.msk.f32.gmra.mxu3 %vm205_vm0, %v2594_v31 }
  0x43   : > { %2034 = vmatmul.msk.f32.gmra.mxu0 %vm205_vm0, %v2556_v25 }
  0x44   : > { %2041 = vmatmul.msk.f32.gmra.mxu1 %vm205_vm0, %v2605_v32 }
  0x45   : > { %2048 = vmatmul.msk.f32.gmra.mxu2 %vm205_vm0, %v2610_v33  ;;  %2055 = vmatmul.msk.f32.gmra.mxu3 %vm205_vm0, %v2615_v34 }
  0x4d   : > { %2114 = vmatmul.msk.f32.vlgmr.msrb.gmra.mxu3 %vm205_vm0, %v2416_v2 }
  0x55   : > { %2115 = vmatmul.msk.f32.gmra.mxu3 %vm205_vm0, %v2423_v3 }
  0x5d   : > { %2116 = vmatmul.msk.f32.gmra.mxu3 %vm205_vm0, %v2430_v4 }
  0x65   : > { %2117 = vmatmul.msk.f32.gmra.mxu3 %vm205_vm0, %v2465_v10 }
  0x6d   : > { %2118 = vmatmul.msk.f32.gmra.mxu3 %vm205_vm0, %v2496_v15 }
  0x75   : > { %2119 = vmatmul.msk.f32.gmra.mxu3 %vm205_vm0, %v2528_v21 }
  0x7d   : > { %2120 = vmatmul.msk.f32.gmra.mxu3 %vm205_vm0, %v2556_v25 }
  0x85   : > { %2121 = vmatmul.msk.f32.gmra.mxu3 %vm205_vm0, %v2437_v5 }
  0x8d   : > { %2122 = vmatmul.msk.f32.gmra.mxu3 %vm205_vm0, %v2470_v11 }
  0x90   : > { %v307_v37 = vpop.f32.mrf.mxu0 }
  0x91   : > { %2056 = vmatmul.msk.f32.vlgmr.msrb.gmra.mxu1 %vm205_vm0, %v307_v37  ;;  %2084 = vmatmul.msk.f32.vlgmr.msrb.gmra.mxu2 %vm205_vm0, %v307_v37  ;;  %v328_v44 = vpop.f32.mrf.mxu1 }
  0x95   : > { %2123 = vmatmul.msk.f32.gmra.mxu3 %vm205_vm0, %v2501_v16 }
  0x98   : > { %v310_v38 = vpop.f32.mrf.mxu0  ;;  %v2665_v43 = vpop.f32.mrf.mxu3 }
  0x99   : > { %2057 = vmatmul.msk.f32.gmra.mxu1 %vm205_vm0, %v310_v38  ;;  %2085 = vmatmul.msk.f32.gmra.mxu2 %vm205_vm0, %v310_v38  ;;  %v331_v47 = vpop.f32.mrf.mxu1  ;;  %v349_v50 = vpop.f32.mrf.mxu2 }
  0x9d   : > { %2124 = vmatmul.msk.f32.gmra.mxu3 %vm205_vm0, %v2533_v22 }
  0xa0   : > { %v313_v39 = vpop.f32.mrf.mxu0  ;;  %v2671_v46 = vpop.f32.mrf.mxu3 }
  0xa1   : > { %2058 = vmatmul.msk.f32.gmra.mxu1 %vm205_vm0, %v313_v39  ;;  %2086 = vmatmul.msk.f32.gmra.mxu2 %vm205_vm0, %v313_v39  ;;  %v334_v49 = vpop.f32.mrf.mxu1  ;;  %v352_v53 = vpop.f32.mrf.mxu2 }
  0xa5   : > { %2125 = vmatmul.msk.f32.gmra.mxu3 %vm205_vm0, %v2561_v26 }
  0xa8   : > { %v316_v40 = vpop.f32.mrf.mxu0  ;;  %v2677_v48 = vpop.f32.mrf.mxu3 }
  0xa9   : > { %2059 = vmatmul.msk.f32.gmra.mxu1 %vm205_vm0, %v316_v40  ;;  %2087 = vmatmul.msk.f32.gmra.mxu2 %vm205_vm0, %v316_v40  ;;  %v337_v52 = vpop.f32.mrf.mxu1  ;;  %v355_v58 = vpop.f32.mrf.mxu2 }
  0xad   : > { %2126 = vmatmul.msk.f32.gmra.mxu3 %vm205_vm0, %v2584_v29 }
  0xb0   : > { %v319_v41 = vpop.f32.mrf.mxu0  ;;  %v2683_v51 = vpop.f32.mrf.mxu3 }
  0xb1   : > { %2060 = vmatmul.msk.f32.gmra.mxu1 %vm205_vm0, %v319_v41  ;;  %2088 = vmatmul.msk.f32.gmra.mxu2 %vm205_vm0, %v319_v41  ;;  %v340_v57 = vpop.f32.mrf.mxu1  ;;  %v358_v61 = vpop.f32.mrf.mxu2 }
  0xb5   : > { %2127 = vmatmul.msk.f32.gmra.mxu3 %vm205_vm0, %v2605_v32 }
  0xb8   : > { %v322_v42 = vpop.f32.mrf.mxu0  ;;  %v2689_v54 = vpop.f32.mrf.mxu3 }
  0xb9   : > { %2061 = vmatmul.msk.f32.gmra.mxu1 %vm205_vm0, %v322_v42  ;;  %2089 = vmatmul.msk.f32.gmra.mxu2 %vm205_vm0, %v322_v42  ;;  %v343_v60 = vpop.f32.mrf.mxu1  ;;  %v361_v0 = vpop.f32.mrf.mxu2 }
  0xbd   : > { %2128 = vmatmul.msk.f32.gmra.mxu3 %vm205_vm0, %v2442_v6 }
  0xc0   : > { %v325_v45 = vpop.f32.mrf.mxu0  ;;  %v2696_v56 = vpop.f32.mrf.mxu3 }
  0xc1   : > { %2062 = vmatmul.msk.f32.gmra.mxu1 %vm205_vm0, %v325_v45  ;;  %2090 = vmatmul.msk.f32.gmra.mxu2 %vm205_vm0, %v325_v45  ;;  %v346_v63 = vpop.f32.mrf.mxu1  ;;  %v364_v8 = vpop.f32.mrf.mxu2 }
  0xc5   : > { %2129 = vmatmul.msk.f32.gmra.mxu3 %vm205_vm0, %v2475_v12 }
  0xc8   : > { %v2702_v59 = vpop.f32.mrf.mxu3 }
  0xc9   : > { %2063 = vmatmul.msk.f32.gmra.mxu1 %vm205_vm0, %v328_v44  ;;  %2091 = vmatmul.msk.f32.gmra.mxu2 %vm205_vm0, %v328_v44  ;;  %v367_v14 = vpop.f32.mrf.mxu2 }
  0xcd   : > { %2130 = vmatmul.msk.f32.gmra.mxu3 %vm205_vm0, %v2506_v17 }
  0xd0   : > { %v2708_v62 = vpop.f32.mrf.mxu3 }
  0xd1   : > { %2064 = vmatmul.msk.f32.gmra.mxu1 %vm205_vm0, %v331_v47  ;;  %2092 = vmatmul.msk.f32.gmra.mxu2 %vm205_vm0, %v331_v47 }
  0xd2   : > { %2142 = vmatmul.msk.f32.vlgmr.msrb.gmra.mxu0 %vm205_vm0, %v2708_v62 }
  0xd5   : > { %2131 = vmatmul.msk.f32.gmra.mxu3 %vm205_vm0, %v2538_v23 }
  0xd8   : > { %v2716_v1 = vpop.f32.mrf.mxu3 }
  0xd9   : > { %2065 = vmatmul.msk.f32.gmra.mxu1 %vm205_vm0, %v334_v49  ;;  %2093 = vmatmul.msk.f32.gmra.mxu2 %vm205_vm0, %v334_v49 }
  0xda   : > { %2143 = vmatmul.msk.f32.gmra.mxu0 %vm205_vm0, %v2716_v1 }
  0xdd   : > { %2132 = vmatmul.msk.f32.gmra.mxu3 %vm205_vm0, %v2566_v27 }
  0xe0   : > { %v2724_v9 = vpop.f32.mrf.mxu3 }
  0xe1   : > { %2066 = vmatmul.msk.f32.gmra.mxu1 %vm205_vm0, %v337_v52  ;;  %2094 = vmatmul.msk.f32.gmra.mxu2 %vm205_vm0, %v337_v52 }
  0xe2   : > { %2144 = vmatmul.msk.f32.gmra.mxu0 %vm205_vm0, %v2724_v9 }
  0xe5   : > { %2133 = vmatmul.msk.f32.gmra.mxu3 %vm205_vm0, %v2589_v30 }
  0xe8   : > { %v2732_v19 = vpop.f32.mrf.mxu3 }
  0xe9   : > { %2067 = vmatmul.msk.f32.gmra.mxu1 %vm205_vm0, %v340_v57  ;;  %2095 = vmatmul.msk.f32.gmra.mxu2 %vm205_vm0, %v340_v57 }
  0xea   : > { %2145 = vmatmul.msk.f32.gmra.mxu0 %vm205_vm0, %v2732_v19 }
  0xed   : > { %2134 = vmatmul.msk.f32.gmra.mxu3 %vm205_vm0, %v2610_v33 }
  0xf0   : > { %v2741_v33 = vpop.f32.mrf.mxu3 }
  0xf1   : > { %2068 = vmatmul.msk.f32.gmra.mxu1 %vm205_vm0, %v343_v60  ;;  %2096 = vmatmul.msk.f32.gmra.mxu2 %vm205_vm0, %v343_v60 }
  0xf2   : > { %2146 = vmatmul.msk.f32.gmra.mxu0 %vm205_vm0, %v2741_v33 }
  0xf5   : > { %2135 = vmatmul.msk.f32.gmra.mxu3 %vm205_vm0, %v2451_v7 }
  0xf8   : > { %v2761_v41 = vpop.f32.mrf.mxu3 }
  0xf9   : > { %2069 = vmatmul.msk.f32.gmra.mxu1 %vm205_vm0, %v346_v63  ;;  %2097 = vmatmul.msk.f32.gmra.mxu2 %vm205_vm0, %v346_v63 }
  0xfa   : > { %2147 = vmatmul.msk.f32.gmra.mxu0 %vm205_vm0, %v2761_v41 }
  0xfd   : > { %2136 = vmatmul.msk.f32.gmra.mxu3 %vm205_vm0, %v2480_v13 }
 0x101   : > { %2070 = vmatmul.msk.f32.gmra.mxu1 %vm205_vm0, %v349_v50  ;;  %2098 = vmatmul.msk.f32.gmra.mxu2 %vm205_vm0, %v349_v50 }
 0x105   : > { %2137 = vmatmul.msk.f32.gmra.mxu3 %vm205_vm0, %v2511_v18 }
 0x109   : > { %2071 = vmatmul.msk.f32.gmra.mxu1 %vm205_vm0, %v352_v53  ;;  %2099 = vmatmul.msk.f32.gmra.mxu2 %vm205_vm0, %v352_v53  ;;  %v2772_v53 = vpop.f32.mrf.mxu3 }
 0x10a   : > { %2148 = vmatmul.msk.f32.gmra.mxu0 %vm205_vm0, %v2772_v53 }
 0x10d   : > { %2138 = vmatmul.msk.f32.gmra.mxu3 %vm205_vm0, %v2543_v24 }
 0x10e   : > { %v492_v20 = vpop.f32.mrf.mxu1 }
 0x10f   : > { %v677_v30 = vmul.f32 3.7225988, %v492_v20 }
 0x111   : > { %2072 = vmatmul.msk.f32.gmra.mxu1 %vm205_vm0, %v355_v58  ;;  %2100 = vmatmul.msk.f32.gmra.mxu2 %vm205_vm0, %v355_v58  ;;  %v733_v36 = vadd.f32 -1.7922626, %v677_v30 }
 0x114   : > { %v593_v7 = vpop.f32.mrf.mxu2 }
 0x115   : > { %v678_v35 = vmul.f32 3.7225988, %v593_v7  ;;  %2139 = vmatmul.msk.f32.gmra.mxu3 %vm205_vm0, %v2571_v28 }
 0x116   : > { %v495_v13 = vpop.f32.mrf.mxu1 }
 0x117   : > { %v734_v37 = vadd.f32 -1.7922626, %v678_v35  ;;  %v679_v18 = vmul.f32 3.7225988, %v495_v13 }
 0x119   : > { %v789_v39 = vpack.c.bf16 %v734_v37, %v733_v36  ;;  %2073 = vmatmul.msk.f32.gmra.mxu1 %vm205_vm0, %v358_v61  ;;  %2101 = vmatmul.msk.f32.gmra.mxu2 %vm205_vm0, %v358_v61  ;;  %v735_v45 = vadd.f32 -1.7922626, %v679_v18 }
 0x11b   : > { %820 = vst.msk [vmem:[%s2750_s9] sm:$0xff] %vm2752_vm3, %v789_v39 }
 0x11c   : > { %v596_v40 = vpop.f32.mrf.mxu2 }
 0x11d   : > { %v680_v42 = vmul.f32 3.7225988, %v596_v40  ;;  %2140 = vmatmul.msk.f32.gmra.mxu3 %vm205_vm0, %v2594_v31 }
 0x11e   : > { %v498_v44 = vpop.f32.mrf.mxu1 }
 0x11f   : > { %v736_v47 = vadd.f32 -1.7922626, %v680_v42  ;;  %v681_v50 = vmul.f32 3.7225988, %v498_v44 }
 0x121   : > { %v790_v49 = vpack.c.bf16 %v736_v47, %v735_v45  ;;  %2074 = vmatmul.msk.f32.gmra.mxu1 %vm205_vm0, %v361_v0  ;;  %2102 = vmatmul.msk.f32.gmra.mxu2 %vm205_vm0, %v361_v0  ;;  %v737_v57 = vadd.f32 -1.7922626, %v681_v50  ;;  %v2783_v0 = vpop.f32.mrf.mxu3 }
 0x122   : > { %2149 = vmatmul.msk.f32.gmra.mxu0 %vm205_vm0, %v2783_v0 }
 0x123   : > { %821 = vst.msk [vmem:[%s2750_s9 + $0x8] sm:$0xff] %vm2752_vm3, %v790_v49 }
 0x124   : > { %v599_v52 = vpop.f32.mrf.mxu2 }
 0x125   : > { %v682_v55 = vmul.f32 3.7225988, %v599_v52  ;;  %2141 = vmatmul.msk.f32.gmra.mxu3 %vm205_vm0, %v2615_v34 }
 0x126   : > { %v501_v24 = vpop.f32.mrf.mxu1 }
 0x127   : > { %v738_v58 = vadd.f32 -1.7922626, %v682_v55  ;;  %v683_v61 = vmul.f32 3.7225988, %v501_v24 }
 0x129   : > { %v791_v60 = vpack.c.bf16 %v738_v58, %v737_v57  ;;  %2075 = vmatmul.msk.f32.gmra.mxu1 %vm205_vm0, %v364_v8  ;;  %2103 = vmatmul.msk.f32.gmra.mxu2 %vm205_vm0, %v364_v8  ;;  %v739_v30 = vadd.f32 -1.7922626, %v683_v61  ;;  %v2794_v36 = vpop.f32.mrf.mxu3 }
 0x12a   : > { %2150 = vmatmul.msk.f32.gmra.mxu0 %vm205_vm0, %v2794_v36 }
 0x12b   : > { %822 = vst.msk [vmem:[%s2750_s9 + $0x10] sm:$0xff] %vm2752_vm3, %v791_v60 }
 0x12c   : > { %v602_v63 = vpop.f32.mrf.mxu2 }
 0x12d   : > { %v684_v20 = vmul.f32 3.7225988, %v602_v63 }
 0x12e   : > { %v504_v28 = vpop.f32.mrf.mxu1 }
 0x12f   : > { %v740_v7 = vadd.f32 -1.7922626, %v684_v20  ;;  %v685_v8 = vmul.f32 3.7225988, %v504_v28 }
 0x131   : > { %v792_v35 = vpack.c.bf16 %v740_v7, %v739_v30  ;;  %2076 = vmatmul.msk.f32.gmra.mxu1 %vm205_vm0, %v367_v14  ;;  %2104 = vmatmul.msk.f32.gmra.mxu2 %vm205_vm0, %v367_v14  ;;  %v741_v39 = vadd.f32 -1.7922626, %v685_v8  ;;  %v2807_v44 = vpop.f32.mrf.mxu3 }
 0x132   : > { %2151 = vmatmul.msk.f32.gmra.mxu0 %vm205_vm0, %v2807_v44 }
 0x133   : > { %823 = vst.msk [vmem:[%s2750_s9 + $0x18] sm:$0xff] %vm2752_vm3, %v792_v35 }
 0x134   : > { %v605_v13 = vpop.f32.mrf.mxu2 }
 0x135   : > { %v686_v37 = vmul.f32 3.7225988, %v605_v13 }
 0x136   : > { %v507_v31 = vpop.f32.mrf.mxu1 }
 0x137   : > { %v742_v18 = vadd.f32 -1.7922626, %v686_v37  ;;  %v687_v14 = vmul.f32 3.7225988, %v507_v31 }
 0x139   : > { %v793_v40 = vpack.c.bf16 %v742_v18, %v741_v39  ;;  %2077 = vmatmul.msk.f32.gmra.mxu1 %vm205_vm0, %v2665_v43  ;;  %2105 = vmatmul.msk.f32.gmra.mxu2 %vm205_vm0, %v2665_v43  ;;  %v743_v47 = vadd.f32 -1.7922626, %v687_v14  ;;  %v2818_v55 = vpop.f32.mrf.mxu3 }
 0x13a   : > { %2152 = vmatmul.msk.f32.gmra.mxu0 %vm205_vm0, %v2818_v55 }
 0x13b   : > { %824 = vst.msk [vmem:[%s2750_s9 + $0x20] sm:$0xff] %vm2752_vm3, %v793_v40 }
 0x13c   : > { %v608_v42 = vpop.f32.mrf.mxu2 }
 0x13d   : > { %v688_v45 = vmul.f32 3.7225988, %v608_v42 }
 0x13e   : > { %v510_v34 = vpop.f32.mrf.mxu1 }
 0x13f   : > { %v744_v49 = vadd.f32 -1.7922626, %v688_v45  ;;  %v689_v43 = vmul.f32 3.7225988, %v510_v34 }
 0x141   : > { %v794_v50 = vpack.c.bf16 %v744_v49, %v743_v47  ;;  %2078 = vmatmul.msk.f32.gmra.mxu1 %vm205_vm0, %v2671_v46  ;;  %2106 = vmatmul.msk.f32.gmra.mxu2 %vm205_vm0, %v2671_v46  ;;  %v745_v58 = vadd.f32 -1.7922626, %v689_v43  ;;  %v2829_v20 = vpop.f32.mrf.mxu3 }
 0x142   : > { %2153 = vmatmul.msk.f32.gmra.mxu0 %vm205_vm0, %v2829_v20 }
 0x143   : > { %825 = vst.msk [vmem:[%s2750_s9 + $0x28] sm:$0xff] %vm2752_vm3, %v794_v50 }
 0x144   : > { %v611_v52 = vpop.f32.mrf.mxu2 }
 0x145   : > { %v690_v24 = vmul.f32 3.7225988, %v611_v52 }
 0x146   : > { %v513_v57 = vpop.f32.mrf.mxu1 }
 0x147   : > { %v746_v60 = vadd.f32 -1.7922626, %v690_v24  ;;  %v691_v46 = vmul.f32 3.7225988, %v513_v57 }
 0x149   : > { %v795_v61 = vpack.c.bf16 %v746_v60, %v745_v58  ;;  %2079 = vmatmul.msk.f32.gmra.mxu1 %vm205_vm0, %v2677_v48  ;;  %2107 = vmatmul.msk.f32.gmra.mxu2 %vm205_vm0, %v2677_v48  ;;  %v747_v7 = vadd.f32 -1.7922626, %v691_v46  ;;  %v2840_v37 = vpop.f32.mrf.mxu3 }
 0x14a   : > { %2154 = vmatmul.msk.f32.gmra.mxu0 %vm205_vm0, %v2840_v37 }
 0x14b   : > { %826 = vst.msk [vmem:[%s2750_s9 + $0x30] sm:$0xff] %vm2752_vm3, %v795_v61 }
 0x14c   : > { %v614_v63 = vpop.f32.mrf.mxu2 }
 0x14d   : > { %v692_v28 = vmul.f32 3.7225988, %v614_v63 }
 0x14e   : > { %v516_v30 = vpop.f32.mrf.mxu1 }
 0x14f   : > { %v748_v35 = vadd.f32 -1.7922626, %v692_v28  ;;  %v693_v48 = vmul.f32 3.7225988, %v516_v30 }
 0x151   : > { %v796_v8 = vpack.c.bf16 %v748_v35, %v747_v7  ;;  %2080 = vmatmul.msk.f32.gmra.mxu1 %vm205_vm0, %v2683_v51  ;;  %2108 = vmatmul.msk.f32.gmra.mxu2 %vm205_vm0, %v2683_v51  ;;  %v749_v18 = vadd.f32 -1.7922626, %v693_v48  ;;  %v2851_v45 = vpop.f32.mrf.mxu3 }
 0x152   : > { %2155 = vmatmul.msk.f32.gmra.mxu0 %vm205_vm0, %v2851_v45 }
 0x153   : > { %827 = vst.msk [vmem:[%s2750_s9 + $0x38] sm:$0xff] %vm2752_vm3, %v796_v8 }
 0x154   : > { %v617_v13 = vpop.f32.mrf.mxu2 }
 0x155   : > { %v694_v31 = vmul.f32 3.7225988, %v617_v13 }
 0x156   : > { %v519_v39 = vpop.f32.mrf.mxu1 }
 0x157   : > { %v750_v40 = vadd.f32 -1.7922626, %v694_v31  ;;  %v695_v51 = vmul.f32 3.7225988, %v519_v39 }
 0x159   : > { %v797_v14 = vpack.c.bf16 %v750_v40, %v749_v18  ;;  %2081 = vmatmul.msk.f32.gmra.mxu1 %vm205_vm0, %v2689_v54  ;;  %2109 = vmatmul.msk.f32.gmra.mxu2 %vm205_vm0, %v2689_v54  ;;  %v751_v49 = vadd.f32 -1.7922626, %v695_v51  ;;  %v2862_v24 = vpop.f32.mrf.mxu3 }
 0x15a   : > { %2156 = vmatmul.msk.f32.gmra.mxu0 %vm205_vm0, %v2862_v24 }
 0x15b   : > { %828 = vst.msk [vmem:[%s2750_s9 + $0x40] sm:$0xff] %vm2752_vm3, %v797_v14 }
 0x15c   : > { %v620_v42 = vpop.f32.mrf.mxu2 }
 0x15d   : > { %v696_v34 = vmul.f32 3.7225988, %v620_v42 }
 0x15e   : > { %v522_v47 = vpop.f32.mrf.mxu1 }
 0x15f   : > { %v752_v50 = vadd.f32 -1.7922626, %v696_v34  ;;  %v697_v54 = vmul.f32 3.7225988, %v522_v47 }
 0x161   : > { %v798_v43 = vpack.c.bf16 %v752_v50, %v751_v49  ;;  %2082 = vmatmul.msk.f32.gmra.mxu1 %vm205_vm0, %v2696_v56  ;;  %2110 = vmatmul.msk.f32.gmra.mxu2 %vm205_vm0, %v2696_v56  ;;  %v753_v60 = vadd.f32 -1.7922626, %v697_v54  ;;  %v2873_v28 = vpop.f32.mrf.mxu3 }
 0x162   : > { %2157 = vmatmul.msk.f32.gmra.mxu0 %vm205_vm0, %v2873_v28 }
 0x163   : > { %829 = vst.msk [vmem:[%s2750_s9 + $0x48] sm:$0xff] %vm2752_vm3, %v798_v43 }
 0x164   : > { %v623_v52 = vpop.f32.mrf.mxu2 }
 0x165   : > { %v698_v57 = vmul.f32 3.7225988, %v623_v52 }
 0x166   : > { %v525_v58 = vpop.f32.mrf.mxu1 }
 0x167   : > { %v754_v61 = vadd.f32 -1.7922626, %v698_v57  ;;  %v699_v56 = vmul.f32 3.7225988, %v525_v58 }
 0x169   : > { %v799_v46 = vpack.c.bf16 %v754_v61, %v753_v60  ;;  %2083 = vmatmul.msk.f32.gmra.mxu1 %vm205_vm0, %v2702_v59  ;;  %2111 = vmatmul.msk.f32.gmra.mxu2 %vm205_vm0, %v2702_v59  ;;  %v755_v35 = vadd.f32 -1.7922626, %v699_v56  ;;  %v2881_v59 = vpop.f32.mrf.mxu0  ;;  %v2886_v39 = vpop.f32.mrf.mxu3 }
 0x16a   : > { %2158 = vmatmul.msk.f32.gmra.mxu0 %vm205_vm0, %v2886_v39 }
 0x16b   : > { %830 = vst.msk [vmem:[%s2750_s9 + $0x50] sm:$0xff] %vm2752_vm3, %v799_v46 }
 0x16c   : > { %v626_v63 = vpop.f32.mrf.mxu2 }
 0x16d   : > { %v700_v30 = vmul.f32 3.7225988, %v626_v63 }
 0x16e   : > { %v528_v7 = vpop.f32.mrf.mxu1 }
 0x16f   : > { %v756_v8 = vadd.f32 -1.7922626, %v700_v30  ;;  %v701_v13 = vmul.f32 3.7225988, %v528_v7 }
 0x171   : > { %v800_v48 = vpack.c.bf16 %v756_v8, %v755_v35  ;;  %2170 = vmatmul.msk.f32.vlgmr.msra.gmra.mxu1 %vm205_vm0, %v2708_v62  ;;  %2228 = vmatmul.msk.f32.vlgmr.msra.gmra.mxu2 %vm205_vm0, %v2416_v2  ;;  %v757_v14 = vadd.f32 -1.7922626, %v701_v13  ;;  %v2894_v2 = vpop.f32.mrf.mxu0  ;;  %v2899_v47 = vpop.f32.mrf.mxu3 }
 0x172   : > { %2159 = vmatmul.msk.f32.gmra.mxu0 %vm205_vm0, %v2899_v47 }
 0x173   : > { %831 = vst.msk [vmem:[%s2750_s9 + $0x58] sm:$0xff] %vm2752_vm3, %v800_v48 }
 0x174   : > { %v629_v31 = vpop.f32.mrf.mxu2 }
 0x175   : > { %v702_v18 = vmul.f32 3.7225988, %v629_v31 }
 0x176   : > { %v531_v40 = vpop.f32.mrf.mxu1 }
 0x177   : > { %v758_v62 = vadd.f32 -1.7922626, %v702_v18  ;;  %v703_v42 = vmul.f32 3.7225988, %v531_v40 }
 0x179   : > { %v801_v51 = vpack.c.bf16 %v758_v62, %v757_v14  ;;  %2171 = vmatmul.msk.f32.gmra.mxu1 %vm205_vm0, %v2716_v1  ;;  %2229 = vmatmul.msk.f32.gmra.mxu2 %vm205_vm0, %v2423_v3  ;;  %v759_v43 = vadd.f32 -1.7922626, %v703_v42  ;;  %v2907_v3 = vpop.f32.mrf.mxu0  ;;  %v2912_v58 = vpop.f32.mrf.mxu3 }
 0x17a   : > { %2160 = vmatmul.msk.f32.gmra.mxu0 %vm205_vm0, %v2912_v58 }
 0x17b   : > { %832 = vst.msk [vmem:[%s2750_s9 + $0x60] sm:$0xff] %vm2752_vm3, %v801_v51 }
 0x17c   : > { %v632_v34 = vpop.f32.mrf.mxu2 }
 0x17d   : > { %v704_v49 = vmul.f32 3.7225988, %v632_v34 }
 0x17e   : > { %v534_v50 = vpop.f32.mrf.mxu1 }
 0x17f   : > { %v760_v1 = vadd.f32 -1.7922626, %v704_v49  ;;  %v705_v52 = vmul.f32 3.7225988, %v534_v50 }
 0x181   : > { %v802_v54 = vpack.c.bf16 %v760_v1, %v759_v43  ;;  %2172 = vmatmul.msk.f32.gmra.mxu1 %vm205_vm0, %v2724_v9  ;;  %2230 = vmatmul.msk.f32.gmra.mxu2 %vm205_vm0, %v2430_v4  ;;  %v761_v46 = vadd.f32 -1.7922626, %v705_v52  ;;  %v2920_v4 = vpop.f32.mrf.mxu0  ;;  %v2925_v7 = vpop.f32.mrf.mxu3 }
 0x182   : > { %2161 = vmatmul.msk.f32.gmra.mxu0 %vm205_vm0, %v2925_v7 }
 0x183   : > { %833 = vst.msk [vmem:[%s2750_s9 + $0x68] sm:$0xff] %vm2752_vm3, %v802_v54 }
 0x184   : > { %v635_v57 = vpop.f32.mrf.mxu2 }
 0x185   : > { %v706_v60 = vmul.f32 3.7225988, %v635_v57 }
 0x186   : > { %v537_v61 = vpop.f32.mrf.mxu1 }
 0x187   : > { %v762_v9 = vadd.f32 -1.7922626, %v706_v60  ;;  %v707_v63 = vmul.f32 3.7225988, %v537_v61 }
 0x189   : > { %v803_v56 = vpack.c.bf16 %v762_v9, %v761_v46  ;;  %2173 = vmatmul.msk.f32.gmra.mxu1 %vm205_vm0, %v2732_v19  ;;  %2231 = vmatmul.msk.f32.gmra.mxu2 %vm205_vm0, %v2465_v10  ;;  %v763_v48 = vadd.f32 -1.7922626, %v707_v63  ;;  %v2933_v10 = vpop.f32.mrf.mxu0  ;;  %v2938_v40 = vpop.f32.mrf.mxu3 }
 0x18a   : > { %2162 = vmatmul.msk.f32.gmra.mxu0 %vm205_vm0, %v2938_v40 }
 0x18b   : > { %834 = vst.msk [vmem:[%s2750_s9 + $0x70] sm:$0xff] %vm2752_vm3, %v803_v56 }
 0x18c   : > { %v638_v30 = vpop.f32.mrf.mxu2 }
 0x18d   : > { %v708_v35 = vmul.f32 3.7225988, %v638_v30 }
 0x18e   : > { %v540_v8 = vpop.f32.mrf.mxu1 }
 0x18f   : > { %v764_v19 = vadd.f32 -1.7922626, %v708_v35  ;;  %v709_v31 = vmul.f32 3.7225988, %v540_v8 }
 0x191   : > { %v804_v13 = vpack.c.bf16 %v764_v19, %v763_v48  ;;  %2174 = vmatmul.msk.f32.gmra.mxu1 %vm205_vm0, %v2741_v33  ;;  %2232 = vmatmul.msk.f32.gmra.mxu2 %vm205_vm0, %v2496_v15  ;;  %v765_v51 = vadd.f32 -1.7922626, %v709_v31  ;;  %v2946_v15 = vpop.f32.mrf.mxu0  ;;  %v2951_v50 = vpop.f32.mrf.mxu3 }
 0x192   : > { %2163 = vmatmul.msk.f32.gmra.mxu0 %vm205_vm0, %v2951_v50 }
 0x193   : > { %835 = vst.msk [vmem:[%s2750_s9 + $0x78] sm:$0xff] %vm2752_vm3, %v804_v13 }
 0x194   : > { %v641_v18 = vpop.f32.mrf.mxu2 }
 0x195   : > { %v710_v14 = vmul.f32 3.7225988, %v641_v18 }
 0x196   : > { %v543_v62 = vpop.f32.mrf.mxu1 }
 0x197   : > { %v766_v33 = vadd.f32 -1.7922626, %v710_v14  ;;  %v711_v34 = vmul.f32 3.7225988, %v543_v62 }
 0x199   : > { %v805_v42 = vpack.c.bf16 %v766_v33, %v765_v51  ;;  %2175 = vmatmul.msk.f32.gmra.mxu1 %vm205_vm0, %v2761_v41  ;;  %2233 = vmatmul.msk.f32.gmra.mxu2 %vm205_vm0, %v2528_v21  ;;  %v767_v54 = vadd.f32 -1.7922626, %v711_v34  ;;  %v2959_v21 = vpop.f32.mrf.mxu0  ;;  %v2964_v61 = vpop.f32.mrf.mxu3 }
 0x19a   : > { %2164 = vmatmul.msk.f32.gmra.mxu0 %vm205_vm0, %v2964_v61 }
 0x19b   : > { %836 = vst.msk [vmem:[%s2750_s9 + $0x80] sm:$0xff] %vm2752_vm3, %v805_v42 }
 0x19c   : > { %v644_v49 = vpop.f32.mrf.mxu2 }
 0x19d   : > { %v712_v43 = vmul.f32 3.7225988, %v644_v49 }
 0x19e   : > { %v546_v1 = vpop.f32.mrf.mxu1 }
 0x19f   : > { %v768_v41 = vadd.f32 -1.7922626, %v712_v43  ;;  %v713_v57 = vmul.f32 3.7225988, %v546_v1 }
 0x1a1   : > { %v806_v52 = vpack.c.bf16 %v768_v41, %v767_v54  ;;  %2176 = vmatmul.msk.f32.gmra.mxu1 %vm205_vm0, %v2772_v53  ;;  %2234 = vmatmul.msk.f32.gmra.mxu2 %vm205_vm0, %v2556_v25  ;;  %v769_v56 = vadd.f32 -1.7922626, %v713_v57  ;;  %v2972_v25 = vpop.f32.mrf.mxu0  ;;  %v2977_v8 = vpop.f32.mrf.mxu3 }
 0x1a2   : > { %2165 = vmatmul.msk.f32.gmra.mxu0 %vm205_vm0, %v2977_v8 }
 0x1a3   : > { %837 = vst.msk [vmem:[%s2750_s9 + $0x88] sm:$0xff] %vm2752_vm3, %v806_v52 }
 0x1a4   : > { %v647_v60 = vpop.f32.mrf.mxu2 }
 0x1a5   : > { %v714_v46 = vmul.f32 3.7225988, %v647_v60 }
 0x1a6   : > { %v549_v9 = vpop.f32.mrf.mxu1 }
 0x1a7   : > { %v770_v53 = vadd.f32 -1.7922626, %v714_v46  ;;  %v715_v30 = vmul.f32 3.7225988, %v549_v9 }
 0x1a9   : > { %v807_v63 = vpack.c.bf16 %v770_v53, %v769_v56  ;;  %2177 = vmatmul.msk.f32.gmra.mxu1 %vm205_vm0, %v2783_v0  ;;  %2235 = vmatmul.msk.f32.gmra.mxu2 %vm205_vm0, %v2437_v5  ;;  %v771_v13 = vadd.f32 -1.7922626, %v715_v30  ;;  %v2985_v5 = vpop.f32.mrf.mxu0  ;;  %v2990_v62 = vpop.f32.mrf.mxu3 }
 0x1aa   : > { %2166 = vmatmul.msk.f32.gmra.mxu0 %vm205_vm0, %v2990_v62 }
 0x1ab   : > { %838 = vst.msk [vmem:[%s2750_s9 + $0x90] sm:$0xff] %vm2752_vm3, %v807_v63 }
 0x1ac   : > { %v650_v35 = vpop.f32.mrf.mxu2 }
 0x1ad   : > { %v716_v48 = vmul.f32 3.7225988, %v650_v35 }
 0x1ae   : > { %v552_v19 = vpop.f32.mrf.mxu1 }
 0x1af   : > { %v772_v0 = vadd.f32 -1.7922626, %v716_v48  ;;  %v717_v18 = vmul.f32 3.7225988, %v552_v19 }
 0x1b1   : > { %v808_v31 = vpack.c.bf16 %v772_v0, %v771_v13  ;;  %2178 = vmatmul.msk.f32.gmra.mxu1 %vm205_vm0, %v2794_v36  ;;  %2236 = vmatmul.msk.f32.gmra.mxu2 %vm205_vm0, %v2470_v11  ;;  %v773_v42 = vadd.f32 -1.7922626, %v717_v18  ;;  %v2998_v11 = vpop.f32.mrf.mxu0  ;;  %v3003_v1 = vpop.f32.mrf.mxu3 }
 0x1b2   : > { %2167 = vmatmul.msk.f32.gmra.mxu0 %vm205_vm0, %v3003_v1 }
 0x1b3   : > { %839 = vst.msk [vmem:[%s2750_s9 + $0x98] sm:$0xff] %vm2752_vm3, %v808_v31 }
 0x1b4   : > { %v653_v14 = vpop.f32.mrf.mxu2 }
 0x1b5   : > { %v718_v51 = vmul.f32 3.7225988, %v653_v14 }
 0x1b6   : > { %v555_v33 = vpop.f32.mrf.mxu1 }
 0x1b7   : > { %v774_v36 = vadd.f32 -1.7922626, %v718_v51  ;;  %v719_v49 = vmul.f32 3.7225988, %v555_v33 }
 0x1b9   : > { %v809_v34 = vpack.c.bf16 %v774_v36, %v773_v42  ;;  %2179 = vmatmul.msk.f32.gmra.mxu1 %vm205_vm0, %v2807_v44  ;;  %2237 = vmatmul.msk.f32.gmra.mxu2 %vm205_vm0, %v2501_v16  ;;  %v775_v52 = vadd.f32 -1.7922626, %v719_v49  ;;  %v3011_v16 = vpop.f32.mrf.mxu0  ;;  %v3016_v9 = vpop.f32.mrf.mxu3 }
 0x1ba   : > { %2168 = vmatmul.msk.f32.gmra.mxu0 %vm205_vm0, %v3016_v9 }
 0x1bb   : > { %840 = vst.msk [vmem:[%s2750_s9 + $0xa0] sm:$0xff] %vm2752_vm3, %v809_v34 }
 0x1bc   : > { %v656_v43 = vpop.f32.mrf.mxu2 }
 0x1bd   : > { %v720_v54 = vmul.f32 3.7225988, %v656_v43 }
 0x1be   : > { %v558_v41 = vpop.f32.mrf.mxu1 }
 0x1bf   : > { %v776_v44 = vadd.f32 -1.7922626, %v720_v54  ;;  %v721_v60 = vmul.f32 3.7225988, %v558_v41 }
 0x1c1   : > { %v810_v57 = vpack.c.bf16 %v776_v44, %v775_v52  ;;  %2180 = vmatmul.msk.f32.gmra.mxu1 %vm205_vm0, %v2818_v55  ;;  %2238 = vmatmul.msk.f32.gmra.mxu2 %vm205_vm0, %v2533_v22  ;;  %v777_v63 = vadd.f32 -1.7922626, %v721_v60  ;;  %v3024_v22 = vpop.f32.mrf.mxu0  ;;  %v3029_v19 = vpop.f32.mrf.mxu3 }
 0x1c2   : > { %2169 = vmatmul.msk.f32.gmra.mxu0 %vm205_vm0, %v3029_v19 }
 0x1c3   : > { %841 = vst.msk [vmem:[%s2750_s9 + $0xa8] sm:$0xff] %vm2752_vm3, %v810_v57 }
 0x1c4   : > { %v659_v46 = vpop.f32.mrf.mxu2 }
 0x1c5   : > { %v722_v56 = vmul.f32 3.7225988, %v659_v46 }
 0x1c6   : > { %v561_v53 = vpop.f32.mrf.mxu1 }
 0x1c7   : > { %v778_v55 = vadd.f32 -1.7922626, %v722_v56  ;;  %v723_v35 = vmul.f32 3.7225988, %v561_v53 }
 0x1c9   : > { %v811_v30 = vpack.c.bf16 %v778_v55, %v777_v63  ;;  %2181 = vmatmul.msk.f32.gmra.mxu1 %vm205_vm0, %v2829_v20  ;;  %2239 = vmatmul.msk.f32.gmra.mxu2 %vm205_vm0, %v2561_v26  ;;  %v779_v31 = vadd.f32 -1.7922626, %v723_v35  ;;  %v3037_v26 = vpop.f32.mrf.mxu0 }
 0x1cb   : > { %842 = vst.msk [vmem:[%s2750_s9 + $0xb0] sm:$0xff] %vm2752_vm3, %v811_v30  ;;  %v1238_v30 = vmul.f32 3.826981, %v2881_v59 }
 0x1cc   : > { %v662_v48 = vpop.f32.mrf.mxu2 }
 0x1cd   : > { %v724_v13 = vmul.f32 3.7225988, %v662_v48 }
 0x1ce   : > { %v564_v0 = vpop.f32.mrf.mxu1 }
 0x1cf   : > { %v780_v20 = vadd.f32 -1.7922626, %v724_v13  ;;  %v725_v14 = vmul.f32 3.7225988, %v564_v0 }
 0x1d1   : > { %v812_v18 = vpack.c.bf16 %v780_v20, %v779_v31  ;;  %2182 = vmatmul.msk.f32.gmra.mxu1 %vm205_vm0, %v2840_v37  ;;  %2240 = vmatmul.msk.f32.gmra.mxu2 %vm205_vm0, %v2584_v29  ;;  %v781_v36 = vadd.f32 -1.7922626, %v725_v14  ;;  %v3049_v43 = vpop.f32.mrf.mxu0 }
 0x1d3   : > { %843 = vst.msk [vmem:[%s2750_s9 + $0xb8] sm:$0xff] %vm2752_vm3, %v812_v18 }
 0x1d4   : > { %v665_v51 = vpop.f32.mrf.mxu2 }
 0x1d5   : > { %v726_v33 = vmul.f32 3.7225988, %v665_v51  ;;  %v1240_v51 = vmul.f32 3.826981, %v2894_v2 }
 0x1d6   : > { %v567_v42 = vpop.f32.mrf.mxu1 }
 0x1d7   : > { %v782_v34 = vadd.f32 -1.7922626, %v726_v33  ;;  %v727_v29 = vmul.f32 3.7225988, %v567_v42  ;;  %v1296_v42 = vadd.f32 -1.7520971, %v1240_v51 }
 0x1d8   : > { %v2361_v51 = vld [vmem:[%s3418_s1 + $0xb0] sm:$0xff] }
 0x1d9   : > { %v813_v49 = vpack.c.bf16 %v782_v34, %v781_v36  ;;  %2183 = vmatmul.msk.f32.gmra.mxu1 %vm205_vm0, %v2851_v45  ;;  %2241 = vmatmul.msk.f32.gmra.mxu2 %vm205_vm0, %v2605_v32  ;;  %v783_v52 = vadd.f32 -1.7922626, %v727_v29  ;;  %v3058_v56 = vpop.f32.mrf.mxu0 }
 0x1db   : > { %844 = vst.msk [vmem:[%s2750_s9 + $0xc0] sm:$0xff] %vm2752_vm3, %v813_v49  ;;  %v1242_v49 = vmul.f32 3.826981, %v2907_v3 }
 0x1dc   : > { %v668_v37 = vpop.f32.mrf.mxu2 }
 0x1dd   : > { %v728_v54 = vmul.f32 3.7225988, %v668_v37 }
 0x1de   : > { %v570_v41 = vpop.f32.mrf.mxu1 }
 0x1df   : > { %v784_v44 = vadd.f32 -1.7922626, %v728_v54  ;;  %v729_v32 = vmul.f32 3.7225988, %v570_v41 }
 0x1e1   : > { %v814_v57 = vpack.c.bf16 %v784_v44, %v783_v52  ;;  %2184 = vmatmul.msk.f32.gmra.mxu1 %vm205_vm0, %v2862_v24  ;;  %2242 = vmatmul.msk.f32.gmra.mxu2 %vm205_vm0, %v2442_v6  ;;  %v785_v53 = vadd.f32 -1.7922626, %v729_v32  ;;  %v3068_v20 = vpop.f32.mrf.mxu0  ;;  %v1244_v52 = vmul.f32 3.826981, %v2920_v4 }
 0x1e3   : > { %845 = vst.msk [vmem:[%s2750_s9 + $0xc8] sm:$0xff] %vm2752_vm3, %v814_v57 }
 0x1e4   : > { %v671_v45 = vpop.f32.mrf.mxu2 }
 0x1e5   : > { %v730_v60 = vmul.f32 3.7225988, %v671_v45 }
 0x1e6   : > { %v573_v46 = vpop.f32.mrf.mxu1 }
 0x1e7   : > { %v786_v63 = vadd.f32 -1.7922626, %v730_v60  ;;  %v731_v6 = vmul.f32 3.7225988, %v573_v46  ;;  %v1246_v60 = vmul.f32 3.826981, %v2933_v10 }
 0x1e8   : > { %v2359_v10 = vld [vmem:[%s3418_s1 + $0xa0] sm:$0xff] }
 0x1e9   : > { %v815_v55 = vpack.c.bf16 %v786_v63, %v785_v53  ;;  %2185 = vmatmul.msk.f32.gmra.mxu1 %vm205_vm0, %v2873_v28  ;;  %2243 = vmatmul.msk.f32.gmra.mxu2 %vm205_vm0, %v2475_v12  ;;  %v787_v13 = vadd.f32 -1.7922626, %v731_v6  ;;  %v1294_v28 = vadd.f32 -1.7520971, %v1238_v30  ;;  %v1302_v63 = vadd.f32 -1.7520971, %v1246_v60 }
 0x1ea   : > { %v1248_v30 = vmul.f32 3.826981, %v2946_v15  ;;  %v2360_v15 = vld [vmem:[%s3418_s1 + $0xa8] sm:$0xff] }
 0x1eb   : > { %846 = vst.msk [vmem:[%s2750_s9 + $0xd0] sm:$0xff] %vm2752_vm3, %v815_v55 }
 0x1ec   : > { %v674_v24 = vpop.f32.mrf.mxu2 }
 0x1ed   : > { %v732_v35 = vmul.f32 3.7225988, %v674_v24 }
 0x1ee   : > { %v1154_v48 = vpop.f32.mrf.mxu1 }
 0x1ef   : > { %v788_v0 = vadd.f32 -1.7922626, %v732_v35  ;;  %v1239_v31 = vmul.f32 3.826981, %v1154_v48 }
 0x1f1   : > { %v816_v18 = vpack.c.bf16 %v788_v0, %v787_v13  ;;  %v1295_v14 = vadd.f32 -1.7520971, %v1239_v31  ;;  %2186 = vmatmul.msk.f32.gmra.mxu1 %vm205_vm0, %v2886_v39  ;;  %2244 = vmatmul.msk.f32.gmra.mxu2 %vm205_vm0, %v2506_v17  ;;  %v3087_v17 = vpop.f32.mrf.mxu0  ;;  %v1304_v13 = vadd.f32 -1.7520971, %v1248_v30  ;;  %v1260_v30 = vmul.f32 3.826981, %v3024_v22 }
 0x1f3   : > { %847 = vst.msk [vmem:[%s2750_s9 + $0xd8] sm:$0xff] %vm2752_vm3, %v816_v18  ;;  %v1350_v12 = vpack.c.bf16 %v1295_v14, %v1294_v28  ;;  %v1250_v18 = vmul.f32 3.826981, %v2959_v21 }
 0x1f4   : > { %v1427_v59 = vpop.f32.mrf.mxu2 }
 0x1f5   : > { %2198 = vst.msk [vmem:[%s2750_s9 + $0xe0] sm:$0xff] %vm2752_vm3, %v1350_v12  ;;  %2256 = vmatmul.msk.f32.vlgmr.msra.gmra.mxu3 %vm205_vm0, %v1427_v59  ;;  %2284 = vmatmul.msk.f32.vlgmr.msra.gmra.mxu0 %vm205_vm0, %v1427_v59  ;;  %v1306_v12 = vadd.f32 -1.7520971, %v1250_v18 }
 0x1f6   : > { %v1157_v33 = vpop.f32.mrf.mxu1 }
 0x1f7   : > { %v1241_v39 = vmul.f32 3.826981, %v1157_v33 }
 0x1f9   : > { %v1297_v36 = vadd.f32 -1.7520971, %v1241_v39  ;;  %2187 = vmatmul.msk.f32.gmra.mxu1 %vm205_vm0, %v2899_v47  ;;  %2245 = vmatmul.msk.f32.gmra.mxu2 %vm205_vm0, %v2538_v23  ;;  %v1298_v47 = vadd.f32 -1.7520971, %v1242_v49  ;;  %v3099_v3 = vpop.f32.mrf.mxu0  ;;  %v2362_v49 = vld [vmem:[%s3418_s1 + $0xb8] sm:$0xff] }
 0x1fb   : > { %v1351_v2 = vpack.c.bf16 %v1297_v36, %v1296_v42  ;;  %v1252_v42 = vmul.f32 3.826981, %v2972_v25 }
 0x1fc   : > { %v1430_v34 = vpop.f32.mrf.mxu2 }
 0x1fd   : > { %2199 = vst.msk [vmem:[%s2750_s9 + $0xe8] sm:$0xff] %vm2752_vm3, %v1351_v2  ;;  %2257 = vmatmul.msk.f32.gmra.mxu3 %vm205_vm0, %v1430_v34  ;;  %2285 = vmatmul.msk.f32.gmra.mxu0 %vm205_vm0, %v1430_v34  ;;  %v1308_v2 = vadd.f32 -1.7520971, %v1252_v42 }
 0x1fe   : > { %v1160_v29 = vpop.f32.mrf.mxu1 }
 0x1ff   : > { %v1243_v37 = vmul.f32 3.826981, %v1160_v29 }
 0x201   : > { %v1299_v54 = vadd.f32 -1.7520971, %v1243_v37  ;;  %2188 = vmatmul.msk.f32.gmra.mxu1 %vm205_vm0, %v2912_v58  ;;  %2246 = vmatmul.msk.f32.gmra.mxu2 %vm205_vm0, %v2566_v27  ;;  %v1300_v58 = vadd.f32 -1.7520971, %v1244_v52  ;;  %v2358_v27 = vld [vmem:[%s3418_s1 + $0x98] sm:$0xff]  ;;  %v2363_v52 = vld [vmem:[%s3418_s1 + $0xc0] sm:$0xff] }
 0x203   : > { %v1352_v23 = vpack.c.bf16 %v1299_v54, %v1298_v47  ;;  %v1254_v47 = vmul.f32 3.826981, %v2985_v5 }
 0x204   : > { %v1433_v41 = vpop.f32.mrf.mxu2 }
 0x205   : > { %2200 = vst.msk [vmem:[%s2750_s9 + $0xf0] sm:$0xff] %vm2752_vm3, %v1352_v23  ;;  %2258 = vmatmul.msk.f32.gmra.mxu3 %vm205_vm0, %v1433_v41  ;;  %2286 = vmatmul.msk.f32.gmra.mxu0 %vm205_vm0, %v1433_v41  ;;  %v1310_v23 = vadd.f32 -1.7520971, %v1254_v47 }
 0x206   : > { %v1163_v44 = vpop.f32.mrf.mxu1 }
 0x207   : > { %v1245_v57 = vmul.f32 3.826981, %v1163_v44 }
 0x209   : > { %v1301_v32 = vadd.f32 -1.7520971, %v1245_v57  ;;  %2189 = vmatmul.msk.f32.gmra.mxu1 %vm205_vm0, %v2925_v7  ;;  %2247 = vmatmul.msk.f32.gmra.mxu2 %vm205_vm0, %v2358_v27  ;;  %v3119_v7 = vpop.f32.mrf.mxu0  ;;  %v1256_v57 = vmul.f32 3.826981, %v2998_v11  ;;  %v2364_v11 = vld [vmem:[%s3418_s1 + $0xc8] sm:$0xff] }
 0x20b   : > { %v1353_v4 = vpack.c.bf16 %v1301_v32, %v1300_v58  ;;  %v1312_v27 = vadd.f32 -1.7520971, %v1256_v57 }
 0x20c   : > { %v1436_v45 = vpop.f32.mrf.mxu2 }
 0x20d   : > { %2201 = vst.msk [vmem:[%s2750_s9 + $0xf8] sm:$0xff] %vm2752_vm3, %v1353_v4  ;;  %2259 = vmatmul.msk.f32.gmra.mxu3 %vm205_vm0, %v1436_v45  ;;  %2287 = vmatmul.msk.f32.gmra.mxu0 %vm205_vm0, %v1436_v45 }
 0x20e   : > { %v1166_v46 = vpop.f32.mrf.mxu1 }
 0x20f   : > { %v1247_v53 = vmul.f32 3.826981, %v1166_v46  ;;  %v1258_v46 = vmul.f32 3.826981, %v3011_v16  ;;  %v2365_v16 = vld [vmem:[%s3418_s1 + $0xd0] sm:$0xff] }
 0x211   : > { %v1303_v55 = vadd.f32 -1.7520971, %v1247_v53  ;;  %2190 = vmatmul.msk.f32.gmra.mxu1 %vm205_vm0, %v2938_v40  ;;  %2248 = vmatmul.msk.f32.gmra.mxu2 %vm205_vm0, %v2359_v10  ;;  %v3133_v48 = vpop.f32.mrf.mxu0 }
 0x213   : > { %v1354_v6 = vpack.c.bf16 %v1303_v55, %v1302_v63  ;;  %v1314_v55 = vadd.f32 -1.7520971, %v1258_v46 }
 0x214   : > { %v1439_v24 = vpop.f32.mrf.mxu2 }
 0x215   : > { %2202 = vst.msk [vmem:[%s2750_s9 + $0x100] sm:$0xff] %vm2752_vm3, %v1354_v6  ;;  %2260 = vmatmul.msk.f32.gmra.mxu3 %vm205_vm0, %v1439_v24  ;;  %2288 = vmatmul.msk.f32.gmra.mxu0 %vm205_vm0, %v1439_v24 }
 0x216   : > { %v1169_v35 = vpop.f32.mrf.mxu1 }
 0x217   : > { %v1249_v40 = vmul.f32 3.826981, %v1169_v35 }
 0x219   : > { %v1305_v0 = vadd.f32 -1.7520971, %v1249_v40  ;;  %2191 = vmatmul.msk.f32.gmra.mxu1 %vm205_vm0, %v2951_v50  ;;  %2249 = vmatmul.msk.f32.gmra.mxu2 %vm205_vm0, %v2360_v15  ;;  %v3153_v21 = vpop.f32.mrf.mxu0  ;;  %v1316_v40 = vadd.f32 -1.7520971, %v1260_v30 }
 0x21b   : > { %v1355_v31 = vpack.c.bf16 %v1305_v0, %v1304_v13  ;;  %v2366_v0 = vld [vmem:[%s3418_s1 + $0xd8] sm:$0xff] }
 0x21c   : > { %v1442_v28 = vpop.f32.mrf.mxu2 }
 0x21d   : > { %2203 = vst.msk [vmem:[%s2750_s9 + $0x108] sm:$0xff] %vm2752_vm3, %v1355_v31  ;;  %2261 = vmatmul.msk.f32.gmra.mxu3 %vm205_vm0, %v1442_v28  ;;  %2289 = vmatmul.msk.f32.gmra.mxu0 %vm205_vm0, %v1442_v28  ;;  %v1262_v28 = vmul.f32 3.826981, %v3037_v26 }
 0x21e   : > { %v1172_v14 = vpop.f32.mrf.mxu1 }
 0x21f   : > { %v1251_v50 = vmul.f32 3.826981, %v1172_v14  ;;  %v1318_v14 = vadd.f32 -1.7520971, %v1262_v28 }
 0x221   : > { %v1307_v59 = vadd.f32 -1.7520971, %v1251_v50  ;;  %2192 = vmatmul.msk.f32.gmra.mxu1 %vm205_vm0, %v2964_v61  ;;  %2250 = vmatmul.msk.f32.gmra.mxu2 %vm205_vm0, %v2361_v51  ;;  %v3167_v37 = vpop.f32.mrf.mxu0 }
 0x223   : > { %v1356_v33 = vpack.c.bf16 %v1307_v59, %v1306_v12 }
 0x224   : > { %v1445_v39 = vpop.f32.mrf.mxu2 }
 0x225   : > { %2204 = vst.msk [vmem:[%s2750_s9 + $0x110] sm:$0xff] %vm2752_vm3, %v1356_v33  ;;  %2262 = vmatmul.msk.f32.gmra.mxu3 %vm205_vm0, %v1445_v39  ;;  %2290 = vmatmul.msk.f32.gmra.mxu0 %vm205_vm0, %v1445_v39  ;;  %v1264_v33 = vmul.f32 3.826981, %v3049_v43 }
 0x226   : > { %v1175_v61 = vpop.f32.mrf.mxu1 }
 0x227   : > { %v1253_v36 = vmul.f32 3.826981, %v1175_v61  ;;  %v1320_v42 = vadd.f32 -1.7520971, %v1264_v33 }
 0x229   : > { %v1309_v34 = vadd.f32 -1.7520971, %v1253_v36  ;;  %2193 = vmatmul.msk.f32.gmra.mxu1 %vm205_vm0, %v2977_v8  ;;  %2251 = vmatmul.msk.f32.gmra.mxu2 %vm205_vm0, %v2362_v49 }
 0x22b   : > { %v1357_v25 = vpack.c.bf16 %v1309_v34, %v1308_v2  ;;  %v1266_v34 = vmul.f32 3.826981, %v3058_v56 }
 0x22c   : > { %v1448_v29 = vpop.f32.mrf.mxu2 }
 0x22d   : > { %2205 = vst.msk [vmem:[%s2750_s9 + $0x118] sm:$0xff] %vm2752_vm3, %v1357_v25  ;;  %2263 = vmatmul.msk.f32.gmra.mxu3 %vm205_vm0, %v1448_v29  ;;  %2291 = vmatmul.msk.f32.gmra.mxu0 %vm205_vm0, %v1448_v29  ;;  %v1322_v29 = vadd.f32 -1.7520971, %v1266_v34 }
 0x22e   : > { %v1178_v8 = vpop.f32.mrf.mxu1 }
 0x22f   : > { %v1255_v54 = vmul.f32 3.826981, %v1178_v8 }
 0x231   : > { %v1311_v41 = vadd.f32 -1.7520971, %v1255_v54  ;;  %2194 = vmatmul.msk.f32.gmra.mxu1 %vm205_vm0, %v2990_v62  ;;  %2252 = vmatmul.msk.f32.gmra.mxu2 %vm205_vm0, %v2363_v52  ;;  %v3187_v62 = vpop.f32.mrf.mxu0 }
 0x233   : > { %v1358_v5 = vpack.c.bf16 %v1311_v41, %v1310_v23  ;;  %v1268_v23 = vmul.f32 3.826981, %v3068_v20 }
 0x234   : > { %v1451_v44 = vpop.f32.mrf.mxu2 }
 0x235   : > { %2206 = vst.msk [vmem:[%s2750_s9 + $0x120] sm:$0xff] %vm2752_vm3, %v1358_v5  ;;  %2264 = vmatmul.msk.f32.gmra.mxu3 %vm205_vm0, %v1451_v44  ;;  %2292 = vmatmul.msk.f32.gmra.mxu0 %vm205_vm0, %v1451_v44  ;;  %v1324_v5 = vadd.f32 -1.7520971, %v1268_v23 }
 0x236   : > { %v1181_v58 = vpop.f32.mrf.mxu1 }
 0x237   : > { %v1257_v32 = vmul.f32 3.826981, %v1181_v58 }
 0x239   : > { %v1313_v4 = vadd.f32 -1.7520971, %v1257_v32  ;;  %2195 = vmatmul.msk.f32.gmra.mxu1 %vm205_vm0, %v3003_v1  ;;  %2253 = vmatmul.msk.f32.gmra.mxu2 %vm205_vm0, %v2364_v11  ;;  %v3201_v63 = vpop.f32.mrf.mxu0  ;;  %v1270_v32 = vmul.f32 3.826981, %v3087_v17 }
 0x23b   : > { %v1359_v45 = vpack.c.bf16 %v1313_v4, %v1312_v27  ;;  %v1326_v4 = vadd.f32 -1.7520971, %v1270_v32 }
 0x23c   : > { %v1454_v60 = vpop.f32.mrf.mxu2 }
 0x23d   : > { %2207 = vst.msk [vmem:[%s2750_s9 + $0x128] sm:$0xff] %vm2752_vm3, %v1359_v45  ;;  %2265 = vmatmul.msk.f32.gmra.mxu3 %vm205_vm0, %v1454_v60  ;;  %2293 = vmatmul.msk.f32.gmra.mxu0 %vm205_vm0, %v1454_v60 }
 0x23e   : > { %v1184_v53 = vpop.f32.mrf.mxu1 }
 0x23f   : > { %v1259_v1 = vmul.f32 3.826981, %v1184_v53  ;;  %v1272_v53 = vmul.f32 3.826981, %v3099_v3 }
 0x241   : > { %v1315_v10 = vadd.f32 -1.7520971, %v1259_v1  ;;  %2196 = vmatmul.msk.f32.gmra.mxu1 %vm205_vm0, %v3016_v9  ;;  %2254 = vmatmul.msk.f32.gmra.mxu2 %vm205_vm0, %v2365_v16  ;;  %v3221_v22 = vpop.f32.mrf.mxu0  ;;  %v1328_v16 = vadd.f32 -1.7520971, %v1272_v53 }
 0x243   : > { %v1360_v6 = vpack.c.bf16 %v1315_v10, %v1314_v55 }
 0x244   : > { %v1457_v24 = vpop.f32.mrf.mxu2 }
 0x245   : > { %2208 = vst.msk [vmem:[%s2750_s9 + $0x130] sm:$0xff] %vm2752_vm3, %v1360_v6  ;;  %2266 = vmatmul.msk.f32.gmra.mxu3 %vm205_vm0, %v1457_v24  ;;  %2294 = vmatmul.msk.f32.gmra.mxu0 %vm205_vm0, %v1457_v24 }
 0x246   : > { %v1187_v35 = vpop.f32.mrf.mxu1 }
 0x247   : > { %v1261_v9 = vmul.f32 3.826981, %v1187_v35 }
 0x249   : > { %v1317_v13 = vadd.f32 -1.7520971, %v1261_v9  ;;  %2197 = vmatmul.msk.f32.gmra.mxu1 %vm205_vm0, %v3029_v19  ;;  %2255 = vmatmul.msk.f32.gmra.mxu2 %vm205_vm0, %v2366_v0  ;;  %v3229_v51 = vpop.f32.mrf.mxu0 }
 0x24b   : > { %v1361_v15 = vpack.c.bf16 %v1317_v13, %v1316_v40  ;;  %v1274_v13 = vmul.f32 3.826981, %v3119_v7 }
 0x24c   : > { %v1460_v31 = vpop.f32.mrf.mxu2 }
 0x24d   : > { %2209 = vst.msk [vmem:[%s2750_s9 + $0x138] sm:$0xff] %vm2752_vm3, %v1361_v15  ;;  %2267 = vmatmul.msk.f32.gmra.mxu3 %vm205_vm0, %v1460_v31  ;;  %2295 = vmatmul.msk.f32.gmra.mxu0 %vm205_vm0, %v1460_v31 }
 0x24e   : > { %v1190_v19 = vpop.f32.mrf.mxu1 }
 0x24f   : > { %v1263_v18 = vmul.f32 3.826981, %v1190_v19 }
 0x251   : > { %v1319_v50 = vadd.f32 -1.7520971, %v1263_v18  ;;  %v3243_v49 = vpop.f32.mrf.mxu0  ;;  %v1330_v18 = vadd.f32 -1.7520971, %v1274_v13 }
 0x253   : > { %v1362_v12 = vpack.c.bf16 %v1319_v50, %v1318_v14 }
 0x254   : > { %v1463_v59 = vpop.f32.mrf.mxu2 }
 0x255   : > { %2210 = vst.msk [vmem:[%s2750_s9 + $0x140] sm:$0xff] %vm2752_vm3, %v1362_v12  ;;  %2268 = vmatmul.msk.f32.gmra.mxu3 %vm205_vm0, %v1463_v59  ;;  %2296 = vmatmul.msk.f32.gmra.mxu0 %vm205_vm0, %v1463_v59 }
 0x256   : > { %v1193_v26 = vpop.f32.mrf.mxu1 }
 0x257   : > { %v1265_v39 = vmul.f32 3.826981, %v1193_v26 }
 0x259   : > { %v1321_v61 = vadd.f32 -1.7520971, %v1265_v39  ;;  %v3251_v52 = vpop.f32.mrf.mxu0  ;;  %v1276_v39 = vmul.f32 3.826981, %v3133_v48 }
 0x25b   : > { %v1363_v36 = vpack.c.bf16 %v1321_v61, %v1320_v42 }
 0x25c   : > { %v1466_v2 = vpop.f32.mrf.mxu2 }
 0x25d   : > { %2211 = vst.msk [vmem:[%s2750_s9 + $0x148] sm:$0xff] %vm2752_vm3, %v1363_v36  ;;  %2269 = vmatmul.msk.f32.gmra.mxu3 %vm205_vm0, %v1466_v2  ;;  %2297 = vmatmul.msk.f32.gmra.mxu0 %vm205_vm0, %v1466_v2 }
 0x25e   : > { %v1196_v43 = vpop.f32.mrf.mxu1 }
 0x25f   : > { %v1267_v25 = vmul.f32 3.826981, %v1196_v43  ;;  %v1332_v43 = vadd.f32 -1.7520971, %v1276_v39 }
 0x261   : > { %v1323_v47 = vadd.f32 -1.7520971, %v1267_v25 }
 0x263   : > { %v1364_v8 = vpack.c.bf16 %v1323_v47, %v1322_v29 }
 0x264   : > { %v1469_v54 = vpop.f32.mrf.mxu2 }
 0x265   : > { %2212 = vst.msk [vmem:[%s2750_s9 + $0x150] sm:$0xff] %vm2752_vm3, %v1364_v8  ;;  %2270 = vmatmul.msk.f32.gmra.mxu3 %vm205_vm0, %v1469_v54  ;;  %2298 = vmatmul.msk.f32.gmra.mxu0 %vm205_vm0, %v1469_v54 }
 0x266   : > { %v1199_v56 = vpop.f32.mrf.mxu1 }
 0x267   : > { %v1269_v41 = vmul.f32 3.826981, %v1199_v56  ;;  %v1278_v56 = vmul.f32 3.826981, %v3153_v21 }
 0x269   : > { %v1325_v44 = vadd.f32 -1.7520971, %v1269_v41  ;;  %v1334_v32 = vadd.f32 -1.7520971, %v1278_v56 }
 0x26b   : > { %v1365_v57 = vpack.c.bf16 %v1325_v44, %v1324_v5 }
 0x26c   : > { %v1472_v58 = vpop.f32.mrf.mxu2 }
 0x26d   : > { %2213 = vst.msk [vmem:[%s2750_s9 + $0x158] sm:$0xff] %vm2752_vm3, %v1365_v57  ;;  %2271 = vmatmul.msk.f32.gmra.mxu3 %vm205_vm0, %v1472_v58  ;;  %2299 = vmatmul.msk.f32.gmra.mxu0 %vm205_vm0, %v1472_v58 }
 0x26e   : > { %v1202_v20 = vpop.f32.mrf.mxu1 }
 0x26f   : > { %v1271_v27 = vmul.f32 3.826981, %v1202_v20 }
 0x271   : > { %v1327_v11 = vadd.f32 -1.7520971, %v1271_v27 }
 0x272   : > { %v1713_v45 = vpop.f32.mrf.mxu0 }
 0x273   : > { %v1366_v60 = vpack.c.bf16 %v1327_v11, %v1326_v4  ;;  %v1798_v1 = vmul.f32 3.6261168, %v1713_v45 }
 0x274   : > { %v1475_v46 = vpop.f32.mrf.mxu2 }
 0x275   : > { %2214 = vst.msk [vmem:[%s2750_s9 + $0x160] sm:$0xff] %vm2752_vm3, %v1366_v60  ;;  %2272 = vmatmul.msk.f32.gmra.mxu3 %vm205_vm0, %v1475_v46  ;;  %2300 = vmatmul.msk.f32.gmra.mxu0 %vm205_vm0, %v1475_v46  ;;  %v1854_v35 = vadd.f32 -1.4802197, %v1798_v1  ;;  %v1280_v46 = vmul.f32 3.826981, %v3167_v37 }
 0x276   : > { %v1205_v17 = vpop.f32.mrf.mxu1 }
 0x277   : > { %v1273_v55 = vmul.f32 3.826981, %v1205_v17 }
 0x278   : > { %v1612_v10 = vpop.f32.mrf.mxu3 }
 0x279   : > { %v1329_v6 = vadd.f32 -1.7520971, %v1273_v55  ;;  %v1797_v24 = vmul.f32 3.6261168, %v1612_v10 }
 0x27a   : > { %v1716_v30 = vpop.f32.mrf.mxu0 }
 0x27b   : > { %v1367_v9 = vpack.c.bf16 %v1329_v6, %v1328_v16  ;;  %v1853_v3 = vadd.f32 -1.4802197, %v1797_v24  ;;  %v1800_v31 = vmul.f32 3.6261168, %v1716_v30  ;;  %v1336_v16 = vadd.f32 -1.7520971, %v1280_v46 }
 0x27c   : > { %v1478_v40 = vpop.f32.mrf.mxu2 }
 0x27d   : > { %2215 = vst.msk [vmem:[%s2750_s9 + $0x168] sm:$0xff] %vm2752_vm3, %v1367_v9  ;;  %v1909_v0 = vpack.c.bf16 %v1854_v35, %v1853_v3  ;;  %2273 = vmatmul.msk.f32.gmra.mxu3 %vm205_vm0, %v1478_v40  ;;  %2301 = vmatmul.msk.f32.gmra.mxu0 %vm205_vm0, %v1478_v40  ;;  %v1856_v12 = vadd.f32 -1.4802197, %v1800_v31  ;;  %v1282_v40 = vmul.f32 3.826981, %v3187_v62 }
 0x27e   : > { %v1208_v15 = vpop.f32.mrf.mxu1 }
 0x27f   : > { %2312 = vst.msk [vmem:[%s2750_s9 + $0x1c0] sm:$0xff] %vm2752_vm3, %v1909_v0  ;;  %v1275_v28 = vmul.f32 3.826981, %v1208_v15 }
 0x280   : > { %v1615_v19 = vpop.f32.mrf.mxu3 }
 0x281   : > { %v1331_v14 = vadd.f32 -1.7520971, %v1275_v28  ;;  %v1799_v7 = vmul.f32 3.6261168, %v1615_v19  ;;  %v1338_v19 = vadd.f32 -1.7520971, %v1282_v40 }
 0x282   : > { %v1719_v50 = vpop.f32.mrf.mxu0 }
 0x283   : > { %v1368_v59 = vpack.c.bf16 %v1331_v14, %v1330_v18  ;;  %v1855_v33 = vadd.f32 -1.4802197, %v1799_v7  ;;  %v1802_v36 = vmul.f32 3.6261168, %v1719_v50 }
 0x284   : > { %v1481_v26 = vpop.f32.mrf.mxu2 }
 0x285   : > { %2216 = vst.msk [vmem:[%s2750_s9 + $0x170] sm:$0xff] %vm2752_vm3, %v1368_v59  ;;  %v1910_v42 = vpack.c.bf16 %v1856_v12, %v1855_v33  ;;  %2274 = vmatmul.msk.f32.gmra.mxu3 %vm205_vm0, %v1481_v26  ;;  %2302 = vmatmul.msk.f32.gmra.mxu0 %vm205_vm0, %v1481_v26  ;;  %v1858_v47 = vadd.f32 -1.4802197, %v1802_v36  ;;  %v1284_v33 = vmul.f32 3.826981, %v3201_v63 }
 0x286   : > { %v1211_v61 = vpop.f32.mrf.mxu1 }
 0x287   : > { %2313 = vst.msk [vmem:[%s2750_s9 + $0x1c8] sm:$0xff] %vm2752_vm3, %v1910_v42  ;;  %v1277_v2 = vmul.f32 3.826981, %v1211_v61 }
 0x288   : > { %v1618_v34 = vpop.f32.mrf.mxu3 }
 0x289   : > { %v1333_v25 = vadd.f32 -1.7520971, %v1277_v2  ;;  %v1801_v48 = vmul.f32 3.6261168, %v1618_v34  ;;  %v1340_v2 = vadd.f32 -1.7520971, %v1284_v33 }
 0x28a   : > { %v1722_v29 = vpop.f32.mrf.mxu0 }
 0x28b   : > { %v1369_v8 = vpack.c.bf16 %v1333_v25, %v1332_v43  ;;  %v1857_v54 = vadd.f32 -1.4802197, %v1801_v48  ;;  %v1804_v44 = vmul.f32 3.6261168, %v1722_v29 }
 0x28c   : > { %v1484_v23 = vpop.f32.mrf.mxu2 }
 0x28d   : > { %2217 = vst.msk [vmem:[%s2750_s9 + $0x178] sm:$0xff] %vm2752_vm3, %v1369_v8  ;;  %v1911_v41 = vpack.c.bf16 %v1858_v47, %v1857_v54  ;;  %2275 = vmatmul.msk.f32.gmra.mxu3 %vm205_vm0, %v1484_v23  ;;  %2303 = vmatmul.msk.f32.gmra.mxu0 %vm205_vm0, %v1484_v23  ;;  %v1860_v4 = vadd.f32 -1.4802197, %v1804_v44  ;;  %v1286_v8 = vmul.f32 3.826981, %v3221_v22 }
 0x28e   : > { %v1214_v5 = vpop.f32.mrf.mxu1 }
 0x28f   : > { %2314 = vst.msk [vmem:[%s2750_s9 + $0x1d0] sm:$0xff] %vm2752_vm3, %v1911_v41  ;;  %v1279_v57 = vmul.f32 3.826981, %v1214_v5  ;;  %v1342_v44 = vadd.f32 -1.7520971, %v1286_v8 }
 0x290   : > { %v1621_v58 = vpop.f32.mrf.mxu3 }
 0x291   : > { %v1335_v20 = vadd.f32 -1.7520971, %v1279_v57  ;;  %v1803_v21 = vmul.f32 3.6261168, %v1621_v58 }
 0x292   : > { %v1725_v27 = vpop.f32.mrf.mxu0 }
 0x293   : > { %v1370_v11 = vpack.c.bf16 %v1335_v20, %v1334_v32  ;;  %v1859_v45 = vadd.f32 -1.4802197, %v1803_v21  ;;  %v1806_v1 = vmul.f32 3.6261168, %v1725_v27 }
 0x294   : > { %v1487_v60 = vpop.f32.mrf.mxu2 }
 0x295   : > { %2218 = vst.msk [vmem:[%s2750_s9 + $0x180] sm:$0xff] %vm2752_vm3, %v1370_v11  ;;  %v1912_v53 = vpack.c.bf16 %v1860_v4, %v1859_v45  ;;  %2276 = vmatmul.msk.f32.gmra.mxu3 %vm205_vm0, %v1487_v60  ;;  %2304 = vmatmul.msk.f32.gmra.mxu0 %vm205_vm0, %v1487_v60  ;;  %v1862_v30 = vadd.f32 -1.4802197, %v1806_v1  ;;  %v1288_v4 = vmul.f32 3.826981, %v3229_v51 }
 0x296   : > { %v1217_v17 = vpop.f32.mrf.mxu1 }
 0x297   : > { %2315 = vst.msk [vmem:[%s2750_s9 + $0x1d8] sm:$0xff] %vm2752_vm3, %v1912_v53  ;;  %v1281_v55 = vmul.f32 3.826981, %v1217_v17  ;;  %v1344_v17 = vadd.f32 -1.7520971, %v1288_v4 }
 0x298   : > { %v1624_v10 = vpop.f32.mrf.mxu3 }
 0x299   : > { %v1337_v6 = vadd.f32 -1.7520971, %v1281_v55  ;;  %v1805_v37 = vmul.f32 3.6261168, %v1624_v10 }
 0x29a   : > { %v1728_v24 = vpop.f32.mrf.mxu0 }
 0x29b   : > { %v1371_v35 = vpack.c.bf16 %v1337_v6, %v1336_v16  ;;  %v1861_v9 = vadd.f32 -1.4802197, %v1805_v37  ;;  %v1808_v15 = vmul.f32 3.6261168, %v1728_v24  ;;  %v1290_v24 = vmul.f32 3.826981, %v3243_v49 }
 0x29c   : > { %v1490_v3 = vpop.f32.mrf.mxu2 }
 0x29d   : > { %2219 = vst.msk [vmem:[%s2750_s9 + $0x188] sm:$0xff] %vm2752_vm3, %v1371_v35  ;;  %v1913_v13 = vpack.c.bf16 %v1862_v30, %v1861_v9  ;;  %2277 = vmatmul.msk.f32.gmra.mxu3 %vm205_vm0, %v1490_v3  ;;  %2305 = vmatmul.msk.f32.gmra.mxu0 %vm205_vm0, %v1490_v3  ;;  %v1864_v7 = vadd.f32 -1.4802197, %v1808_v15 }
 0x29e   : > { %v1220_v0 = vpop.f32.mrf.mxu1 }
 0x29f   : > { %2316 = vst.msk [vmem:[%s2750_s9 + $0x1e0] sm:$0xff] %vm2752_vm3, %v1913_v13  ;;  %v1283_v31 = vmul.f32 3.826981, %v1220_v0  ;;  %v1346_v13 = vadd.f32 -1.7520971, %v1290_v24 }
 0x2a0   : > { %v1627_v28 = vpop.f32.mrf.mxu3 }
 0x2a1   : > { %v1339_v18 = vadd.f32 -1.7520971, %v1283_v31  ;;  %v1807_v62 = vmul.f32 3.6261168, %v1627_v28 }
 0x2a2   : > { %v1731_v14 = vpop.f32.mrf.mxu0 }
 0x2a3   : > { %v1372_v50 = vpack.c.bf16 %v1339_v18, %v1338_v19  ;;  %v1863_v12 = vadd.f32 -1.4802197, %v1807_v62  ;;  %v1810_v42 = vmul.f32 3.6261168, %v1731_v14  ;;  %v1292_v62 = vmul.f32 3.826981, %v3251_v52 }
 0x2a4   : > { %v1493_v59 = vpop.f32.mrf.mxu2 }
 0x2a5   : > { %2220 = vst.msk [vmem:[%s2750_s9 + $0x190] sm:$0xff] %vm2752_vm3, %v1372_v50  ;;  %v1914_v26 = vpack.c.bf16 %v1864_v7, %v1863_v12  ;;  %2278 = vmatmul.msk.f32.gmra.mxu3 %vm205_vm0, %v1493_v59  ;;  %2306 = vmatmul.msk.f32.gmra.mxu0 %vm205_vm0, %v1493_v59  ;;  %v1866_v25 = vadd.f32 -1.4802197, %v1810_v42  ;;  %v1348_v33 = vadd.f32 -1.7520971, %v1292_v62 }
 0x2a6   : > { %v1223_v39 = vpop.f32.mrf.mxu1 }
 0x2a7   : > { %2317 = vst.msk [vmem:[%s2750_s9 + $0x1e8] sm:$0xff] %vm2752_vm3, %v1914_v26  ;;  %v1285_v61 = vmul.f32 3.826981, %v1223_v39 }
 0x2a8   : > { %v1630_v36 = vpop.f32.mrf.mxu3 }
 0x2a9   : > { %v1341_v34 = vadd.f32 -1.7520971, %v1285_v61  ;;  %v1809_v63 = vmul.f32 3.6261168, %v1630_v36 }
 0x2aa   : > { %v1734_v43 = vpop.f32.mrf.mxu0 }
 0x2ab   : > { %v1373_v48 = vpack.c.bf16 %v1341_v34, %v1340_v2  ;;  %v1865_v29 = vadd.f32 -1.4802197, %v1809_v63  ;;  %v1812_v56 = vmul.f32 3.6261168, %v1734_v43 }
 0x2ac   : > { %v1496_v47 = vpop.f32.mrf.mxu2 }
 0x2ad   : > { %2221 = vst.msk [vmem:[%s2750_s9 + $0x198] sm:$0xff] %vm2752_vm3, %v1373_v48  ;;  %v1915_v54 = vpack.c.bf16 %v1866_v25, %v1865_v29  ;;  %2279 = vmatmul.msk.f32.gmra.mxu3 %vm205_vm0, %v1496_v47  ;;  %2307 = vmatmul.msk.f32.gmra.mxu0 %vm205_vm0, %v1496_v47  ;;  %v1868_v32 = vadd.f32 -1.4802197, %v1812_v56 }
 0x2ae   : > { %v1226_v23 = vpop.f32.mrf.mxu1 }
 0x2af   : > { %2318 = vst.msk [vmem:[%s2750_s9 + $0x1f0] sm:$0xff] %vm2752_vm3, %v1915_v54  ;;  %v1287_v41 = vmul.f32 3.826981, %v1226_v23 }
 0x2b0   : > { %v1633_v5 = vpop.f32.mrf.mxu3 }
 0x2b1   : > { %v1343_v57 = vadd.f32 -1.7520971, %v1287_v41  ;;  %v1811_v22 = vmul.f32 3.6261168, %v1633_v5 }
 0x2b2   : > { %v1737_v58 = vpop.f32.mrf.mxu0 }
 0x2b3   : > { %v1374_v20 = vpack.c.bf16 %v1343_v57, %v1342_v44  ;;  %v1867_v21 = vadd.f32 -1.4802197, %v1811_v22  ;;  %v1814_v60 = vmul.f32 3.6261168, %v1737_v58 }
 0x2b4   : > { %v1499_v27 = vpop.f32.mrf.mxu2 }
 0x2b5   : > { %2222 = vst.msk [vmem:[%s2750_s9 + $0x1a0] sm:$0xff] %vm2752_vm3, %v1374_v20  ;;  %v1916_v11 = vpack.c.bf16 %v1868_v32, %v1867_v21  ;;  %2280 = vmatmul.msk.f32.gmra.mxu3 %vm205_vm0, %v1499_v27  ;;  %2308 = vmatmul.msk.f32.gmra.mxu0 %vm205_vm0, %v1499_v27  ;;  %v1870_v10 = vadd.f32 -1.4802197, %v1814_v60 }
 0x2b6   : > { %v1229_v45 = vpop.f32.mrf.mxu1 }
 0x2b7   : > { %2319 = vst.msk [vmem:[%s2750_s9 + $0x1f8] sm:$0xff] %vm2752_vm3, %v1916_v11  ;;  %v1289_v46 = vmul.f32 3.826981, %v1229_v45 }
 0x2b8   : > { %v1636_v53 = vpop.f32.mrf.mxu3 }
 0x2b9   : > { %v1345_v1 = vadd.f32 -1.7520971, %v1289_v46  ;;  %v1813_v51 = vmul.f32 3.6261168, %v1636_v53 }
 0x2ba   : > { %v1740_v55 = vpop.f32.mrf.mxu0 }
 0x2bb   : > { %v1375_v16 = vpack.c.bf16 %v1345_v1, %v1344_v17  ;;  %v1869_v6 = vadd.f32 -1.4802197, %v1813_v51  ;;  %v1816_v9 = vmul.f32 3.6261168, %v1740_v55 }
 0x2bc   : > { %v1502_v37 = vpop.f32.mrf.mxu2 }
 0x2bd   : > { %2223 = vst.msk [vmem:[%s2750_s9 + $0x1a8] sm:$0xff] %vm2752_vm3, %v1375_v16  ;;  %v1917_v30 = vpack.c.bf16 %v1870_v10, %v1869_v6  ;;  %2281 = vmatmul.msk.f32.gmra.mxu3 %vm205_vm0, %v1502_v37  ;;  %2309 = vmatmul.msk.f32.gmra.mxu0 %vm205_vm0, %v1502_v37  ;;  %v1872_v31 = vadd.f32 -1.4802197, %v1816_v9 }
 0x2be   : > { %v1232_v35 = vpop.f32.mrf.mxu1 }
 0x2bf   : > { %2320 = vst.msk [vmem:[%s2750_s9 + $0x200] sm:$0xff] %vm2752_vm3, %v1917_v30  ;;  %v1291_v3 = vmul.f32 3.826981, %v1232_v35 }
 0x2c0   : > { %v1639_v40 = vpop.f32.mrf.mxu3 }
 0x2c1   : > { %v1347_v0 = vadd.f32 -1.7520971, %v1291_v3  ;;  %v1815_v49 = vmul.f32 3.6261168, %v1639_v40 }
 0x2c2   : > { %v1743_v15 = vpop.f32.mrf.mxu0 }
 0x2c3   : > { %v1376_v28 = vpack.c.bf16 %v1347_v0, %v1346_v13  ;;  %v1871_v19 = vadd.f32 -1.4802197, %v1815_v49  ;;  %v1818_v50 = vmul.f32 3.6261168, %v1743_v15 }
 0x2c4   : > { %v1505_v18 = vpop.f32.mrf.mxu2 }
 0x2c5   : > { %2224 = vst.msk [vmem:[%s2750_s9 + $0x1b0] sm:$0xff] %vm2752_vm3, %v1376_v28  ;;  %v1918_v14 = vpack.c.bf16 %v1872_v31, %v1871_v19  ;;  %2282 = vmatmul.msk.f32.gmra.mxu3 %vm205_vm0, %v1505_v18  ;;  %2310 = vmatmul.msk.f32.gmra.mxu0 %vm205_vm0, %v1505_v18  ;;  %v1874_v42 = vadd.f32 -1.4802197, %v1818_v50 }
 0x2c6   : > { %v1235_v7 = vpop.f32.mrf.mxu1 }
 0x2c7   : > { %2321 = vst.msk [vmem:[%s2750_s9 + $0x208] sm:$0xff] %vm2752_vm3, %v1918_v14  ;;  %v1293_v12 = vmul.f32 3.826981, %v1235_v7 }
 0x2c8   : > { %v1642_v59 = vpop.f32.mrf.mxu3 }
 0x2c9   : > { %v1349_v26 = vadd.f32 -1.7520971, %v1293_v12  ;;  %v1817_v52 = vmul.f32 3.6261168, %v1642_v59 }
 0x2ca   : > { %v1746_v39 = vpop.f32.mrf.mxu0 }
 0x2cb   : > { %v1377_v61 = vpack.c.bf16 %v1349_v26, %v1348_v33  ;;  %v1873_v36 = vadd.f32 -1.4802197, %v1817_v52  ;;  %v1820_v63 = vmul.f32 3.6261168, %v1746_v39 }
 0x2cc   : > { %v1508_v2 = vpop.f32.mrf.mxu2 }
 0x2cd   : > { %2225 = vst.msk [vmem:[%s2750_s9 + $0x1b8] sm:$0xff] %vm2752_vm3, %v1377_v61  ;;  %v1919_v34 = vpack.c.bf16 %v1874_v42, %v1873_v36  ;;  %2283 = vmatmul.msk.f32.gmra.mxu3 %vm205_vm0, %v1508_v2  ;;  %2311 = vmatmul.msk.f32.gmra.mxu0 %vm205_vm0, %v1508_v2  ;;  %v1876_v29 = vadd.f32 -1.4802197, %v1820_v63 }
 0x2cf   : > { %2322 = vst.msk [vmem:[%s2750_s9 + $0x210] sm:$0xff] %vm2752_vm3, %v1919_v34 }
 0x2d0   : > { %v1645_v43 = vpop.f32.mrf.mxu3 }
 0x2d1   : > { %v1819_v25 = vmul.f32 3.6261168, %v1645_v43 }
 0x2d2   : > { %v1749_v48 = vpop.f32.mrf.mxu0 }
 0x2d3   : > { %v1875_v47 = vadd.f32 -1.4802197, %v1819_v25  ;;  %v1822_v54 = vmul.f32 3.6261168, %v1749_v48 }
 0x2d5   : > { %v1920_v8 = vpack.c.bf16 %v1876_v29, %v1875_v47  ;;  %v1878_v5 = vadd.f32 -1.4802197, %v1822_v54 }
 0x2d7   : > { %2323 = vst.msk [vmem:[%s2750_s9 + $0x218] sm:$0xff] %vm2752_vm3, %v1920_v8 }
 0x2d8   : > { %v1648_v23 = vpop.f32.mrf.mxu3 }
 0x2d9   : > { %v1821_v56 = vmul.f32 3.6261168, %v1648_v23 }
 0x2da   : > { %v1752_v41 = vpop.f32.mrf.mxu0 }
 0x2db   : > { %v1877_v44 = vadd.f32 -1.4802197, %v1821_v56  ;;  %v1824_v22 = vmul.f32 3.6261168, %v1752_v41 }
 0x2dd   : > { %v1921_v57 = vpack.c.bf16 %v1878_v5, %v1877_v44  ;;  %v1880_v21 = vadd.f32 -1.4802197, %v1824_v22 }
 0x2df   : > { %2324 = vst.msk [vmem:[%s2750_s9 + $0x220] sm:$0xff] %vm2752_vm3, %v1921_v57 }
 0x2e0   : > { %v1651_v58 = vpop.f32.mrf.mxu3 }
 0x2e1   : > { %v1823_v32 = vmul.f32 3.6261168, %v1651_v58 }
 0x2e2   : > { %v1755_v20 = vpop.f32.mrf.mxu0 }
 0x2e3   : > { %v1879_v27 = vadd.f32 -1.4802197, %v1823_v32  ;;  %v1826_v11 = vmul.f32 3.6261168, %v1755_v20 }
 0x2e5   : > { %v1922_v4 = vpack.c.bf16 %v1880_v21, %v1879_v27  ;;  %v1882_v53 = vadd.f32 -1.4802197, %v1826_v11 }
 0x2e7   : > { %2325 = vst.msk [vmem:[%s2750_s9 + $0x228] sm:$0xff] %vm2752_vm3, %v1922_v4 }
 0x2e8   : > { %v1654_v45 = vpop.f32.mrf.mxu3 }
 0x2e9   : > { %v1825_v60 = vmul.f32 3.6261168, %v1654_v45 }
 0x2ea   : > { %v1758_v46 = vpop.f32.mrf.mxu0 }
 0x2eb   : > { %v1881_v17 = vadd.f32 -1.4802197, %v1825_v60  ;;  %v1828_v51 = vmul.f32 3.6261168, %v1758_v46 }
 0x2ed   : > { %v1923_v1 = vpack.c.bf16 %v1882_v53, %v1881_v17  ;;  %v1884_v6 = vadd.f32 -1.4802197, %v1828_v51 }
 0x2ef   : > { %2326 = vst.msk [vmem:[%s2750_s9 + $0x230] sm:$0xff] %vm2752_vm3, %v1923_v1 }
 0x2f0   : > { %v1657_v55 = vpop.f32.mrf.mxu3 }
 0x2f1   : > { %v1827_v10 = vmul.f32 3.6261168, %v1657_v55 }
 0x2f2   : > { %v1761_v16 = vpop.f32.mrf.mxu0 }
 0x2f3   : > { %v1883_v37 = vadd.f32 -1.4802197, %v1827_v10  ;;  %v1830_v30 = vmul.f32 3.6261168, %v1761_v16 }
 0x2f5   : > { %v1924_v24 = vpack.c.bf16 %v1884_v6, %v1883_v37  ;;  %v1886_v40 = vadd.f32 -1.4802197, %v1830_v30 }
 0x2f7   : > { %2327 = vst.msk [vmem:[%s2750_s9 + $0x238] sm:$0xff] %vm2752_vm3, %v1924_v24 }
 0x2f8   : > { %v1660_v35 = vpop.f32.mrf.mxu3 }
 0x2f9   : > { %v1829_v9 = vmul.f32 3.6261168, %v1660_v35 }
 0x2fa   : > { %v1764_v3 = vpop.f32.mrf.mxu0 }
 0x2fb   : > { %v1885_v13 = vadd.f32 -1.4802197, %v1829_v9  ;;  %v1832_v49 = vmul.f32 3.6261168, %v1764_v3 }
 0x2fd   : > { %v1925_v0 = vpack.c.bf16 %v1886_v40, %v1885_v13  ;;  %v1888_v19 = vadd.f32 -1.4802197, %v1832_v49 }
 0x2ff   : > { %2328 = vst.msk [vmem:[%s2750_s9 + $0x240] sm:$0xff] %vm2752_vm3, %v1925_v0 }
 0x300   : > { %v1663_v15 = vpop.f32.mrf.mxu3 }
 0x301   : > { %v1831_v31 = vmul.f32 3.6261168, %v1663_v15 }
 0x302   : > { %v1767_v28 = vpop.f32.mrf.mxu0 }
 0x303   : > { %v1887_v18 = vadd.f32 -1.4802197, %v1831_v31  ;;  %v1834_v14 = vmul.f32 3.6261168, %v1767_v28 }
 0x305   : > { %v1926_v62 = vpack.c.bf16 %v1888_v19, %v1887_v18  ;;  %v1890_v59 = vadd.f32 -1.4802197, %v1834_v14 }
 0x307   : > { %2329 = vst.msk [vmem:[%s2750_s9 + $0x248] sm:$0xff] %vm2752_vm3, %v1926_v62 }
 0x308   : > { %v1666_v7 = vpop.f32.mrf.mxu3 }
 0x309   : > { %v1833_v50 = vmul.f32 3.6261168, %v1666_v7 }
 0x30a   : > { %v1770_v12 = vpop.f32.mrf.mxu0 }
 0x30b   : > { %v1889_v33 = vadd.f32 -1.4802197, %v1833_v50  ;;  %v1836_v52 = vmul.f32 3.6261168, %v1770_v12 }
 0x30d   : > { %v1927_v26 = vpack.c.bf16 %v1890_v59, %v1889_v33  ;;  %v1892_v36 = vadd.f32 -1.4802197, %v1836_v52 }
 0x30f   : > { %2330 = vst.msk [vmem:[%s2750_s9 + $0x250] sm:$0xff] %vm2752_vm3, %v1927_v26 }
 0x310   : > { %v1669_v39 = vpop.f32.mrf.mxu3 }
 0x311   : > { %v1835_v42 = vmul.f32 3.6261168, %v1669_v39 }
 0x312   : > { %v1773_v61 = vpop.f32.mrf.mxu0 }
 0x313   : > { %v1891_v2 = vadd.f32 -1.4802197, %v1835_v42  ;;  %v1838_v63 = vmul.f32 3.6261168, %v1773_v61 }
 0x315   : > { %v1928_v34 = vpack.c.bf16 %v1892_v36, %v1891_v2  ;;  %v1894_v29 = vadd.f32 -1.4802197, %v1838_v63 }
 0x317   : > { %2331 = vst.msk [vmem:[%s2750_s9 + $0x258] sm:$0xff] %vm2752_vm3, %v1928_v34 }
 0x318   : > { %v1672_v43 = vpop.f32.mrf.mxu3 }
 0x319   : > { %v1837_v25 = vmul.f32 3.6261168, %v1672_v43 }
 0x31a   : > { %v1776_v48 = vpop.f32.mrf.mxu0 }
 0x31b   : > { %v1893_v47 = vadd.f32 -1.4802197, %v1837_v25  ;;  %v1840_v54 = vmul.f32 3.6261168, %v1776_v48 }
 0x31d   : > { %v1929_v8 = vpack.c.bf16 %v1894_v29, %v1893_v47  ;;  %v1896_v5 = vadd.f32 -1.4802197, %v1840_v54 }
 0x31f   : > { %2332 = vst.msk [vmem:[%s2750_s9 + $0x260] sm:$0xff] %vm2752_vm3, %v1929_v8 }
 0x320   : > { %v1675_v23 = vpop.f32.mrf.mxu3 }
 0x321   : > { %v1839_v56 = vmul.f32 3.6261168, %v1675_v23 }
 0x322   : > { %v1779_v41 = vpop.f32.mrf.mxu0 }
 0x323   : > { %v1895_v44 = vadd.f32 -1.4802197, %v1839_v56  ;;  %v1842_v22 = vmul.f32 3.6261168, %v1779_v41 }
 0x325   : > { %v1930_v57 = vpack.c.bf16 %v1896_v5, %v1895_v44  ;;  %v1898_v21 = vadd.f32 -1.4802197, %v1842_v22 }
 0x327   : > { %2333 = vst.msk [vmem:[%s2750_s9 + $0x268] sm:$0xff] %vm2752_vm3, %v1930_v57 }
 0x328   : > { %v1678_v58 = vpop.f32.mrf.mxu3 }
 0x329   : > { %v1841_v32 = vmul.f32 3.6261168, %v1678_v58 }
 0x32a   : > { %v1782_v20 = vpop.f32.mrf.mxu0 }
 0x32b   : > { %v1897_v27 = vadd.f32 -1.4802197, %v1841_v32  ;;  %v1844_v11 = vmul.f32 3.6261168, %v1782_v20 }
 0x32d   : > { %v1931_v4 = vpack.c.bf16 %v1898_v21, %v1897_v27  ;;  %v1900_v53 = vadd.f32 -1.4802197, %v1844_v11 }
 0x32f   : > { %2334 = vst.msk [vmem:[%s2750_s9 + $0x270] sm:$0xff] %vm2752_vm3, %v1931_v4 }
 0x330   : > { %v1681_v45 = vpop.f32.mrf.mxu3 }
 0x331   : > { %v1843_v60 = vmul.f32 3.6261168, %v1681_v45 }
 0x332   : > { %v1785_v46 = vpop.f32.mrf.mxu0 }
 0x333   : > { %v1899_v17 = vadd.f32 -1.4802197, %v1843_v60  ;;  %v1846_v51 = vmul.f32 3.6261168, %v1785_v46 }
 0x335   : > { %v1932_v1 = vpack.c.bf16 %v1900_v53, %v1899_v17  ;;  %v1902_v6 = vadd.f32 -1.4802197, %v1846_v51 }
 0x337   : > { %2335 = vst.msk [vmem:[%s2750_s9 + $0x278] sm:$0xff] %vm2752_vm3, %v1932_v1 }
 0x338   : > { %v1684_v55 = vpop.f32.mrf.mxu3 }
 0x339   : > { %v1845_v10 = vmul.f32 3.6261168, %v1684_v55 }
 0x33a   : > { %v1788_v16 = vpop.f32.mrf.mxu0 }
 0x33b   : > { %v1901_v37 = vadd.f32 -1.4802197, %v1845_v10  ;;  %v1848_v30 = vmul.f32 3.6261168, %v1788_v16 }
 0x33d   : > { %v1933_v24 = vpack.c.bf16 %v1902_v6, %v1901_v37  ;;  %v1904_v40 = vadd.f32 -1.4802197, %v1848_v30 }
 0x33f   : > { %2336 = vst.msk [vmem:[%s2750_s9 + $0x280] sm:$0xff] %vm2752_vm3, %v1933_v24 }
 0x340   : > { %v1687_v35 = vpop.f32.mrf.mxu3 }
 0x341   : > { %v1847_v9 = vmul.f32 3.6261168, %v1687_v35 }
 0x342   : > { %v1791_v3 = vpop.f32.mrf.mxu0 }
 0x343   : > { %v1903_v13 = vadd.f32 -1.4802197, %v1847_v9  ;;  %v1850_v49 = vmul.f32 3.6261168, %v1791_v3 }
 0x345   : > { %v1934_v0 = vpack.c.bf16 %v1904_v40, %v1903_v13  ;;  %v1906_v28 = vadd.f32 -1.4802197, %v1850_v49 }
 0x347   : > { %2337 = vst.msk [vmem:[%s2750_s9 + $0x288] sm:$0xff] %vm2752_vm3, %v1934_v0 }
 0x348   : > { %v1690_v15 = vpop.f32.mrf.mxu3 }
 0x349   : > { %v1849_v31 = vmul.f32 3.6261168, %v1690_v15 }
 0x34a   : > { %v1794_v18 = vpop.f32.mrf.mxu0 }
 0x34b   : > { %v1905_v19 = vadd.f32 -1.4802197, %v1849_v31  ;;  %v1852_v14 = vmul.f32 3.6261168, %v1794_v18 }
 0x34d   : > { %v1935_v62 = vpack.c.bf16 %v1906_v28, %v1905_v19  ;;  %v1908_v12 = vadd.f32 -1.4802197, %v1852_v14 }
 0x34f   : > { %2338 = vst.msk [vmem:[%s2750_s9 + $0x290] sm:$0xff] %vm2752_vm3, %v1935_v62 }
 0x350   : > { %v1693_v7 = vpop.f32.mrf.mxu3 }
 0x351   : > { %v1851_v50 = vmul.f32 3.6261168, %v1693_v7 }
 0x353   : > { %v1907_v59 = vadd.f32 -1.4802197, %v1851_v50 }
 0x355   : > { %v1936_v33 = vpack.c.bf16 %v1908_v12, %v1907_v59 }
 0x357   : > { %2339 = vst.msk [vmem:[%s2750_s9 + $0x298] sm:$0xff] %vm2752_vm3, %v1936_v33 }
 0x358 PF: > { %s13_s12 = sadd.s32 1, %s2373_s12  }
 0x359   : > { %p10_p4 = scmp.ge.s32.totalorder %s13_s12, 6  }
 0x35b   :  { %12 = sbr.rel (!%p10_p4) target bundleno = 1 (0x1), region = 66 }

// kernel: clip_loss.5
= control target key start
LH: loop header
LB: loop body
LE: loop exit
PB: predicated region body
PF: predicated region fallthrough
CT: control target
= control target key end

     0   :  { %vm34_vm0 = vcmask 257026   ;;  %s169_s0 = inlined_call_operand.vmem [shape: f32[4,32], index: 0, kind: input, shape index: {}]   ;;  %s170_s1 = inlined_call_operand.hbm [shape: f32[1,1], index: 1, kind: output, shape index: {}]  }
   0x1   :  { %v9_v0 = vld [vmem:[%s169_s0] sm:$0xf] }
   0x2   :  { %6 = vsyncpa [#allocation3], 0  ;;  %v18_v1 = vmul.f32 %v9_v0, %v9_v0  ;;  %v11_v2 = vrot.slane %v9_v0, 2  ;;  %vm14_vm1 = vcmask 254976   ;;  %vm71_vm10 = vcmask 1024   ;;  %s152_s9 = smov [#allocation2]  }
   0x3   :  { %v151_v46 = vmov 2.0   ;;  %s100_s10 = sshll.u32 %s152_s9, 4  ;;  %s102_s14 = sshll.u32 %s170_s1, 4  ;;  %vm93_vm12 = vcmask 0   ;;  %s101_s10 = int_to_ptr.vmem [resolvable:$true] %s100_s10  ;;  %s103_s14 = int_to_ptr.hbm [resolvable:$true] %s102_s14 }
   0x4   :  { %v35_v3 = vsel %vm34_vm0, %v18_v1, 0.0  ;;  %v13_v4 = vmul.f32 %v11_v2, %v9_v0  ;;  %v19_v6 = vsel %vm14_vm1, %v18_v1, 0.0 }
   0x5   :  { %36 = vadd.xlane.f32.xlu0 %v35_v3 }
   0x6   :  { %v15_v5 = vsel %vm14_vm1, %v13_v4, 0.0 }
   0x7   :  { %16 = vadd.xlane.f32.xlu1 %v15_v5 }
   0xd   :  { %20 = vadd.xlane.f32.xlu0 %v19_v6 }
  0x78   :  { %v37_v7 = vpop.xlane.xlu0 %36 }
  0x79   :  { %117 = vrsqrt.f32 %v37_v7  ;;  %vm45_vm2 = vcmp.eq.f32.partialorder %v37_v7, inf  ;;  %v48_v21 = vand.u32 2147483648, %v37_v7  ;;  %vm47_vm3 = vcmp.eq.f32.partialorder %v37_v7, 0.0 }
  0x7a   :  { %v17_v41 = vpop.xlane.xlu1 %16 }
  0x7f   :  { %v118_v8 = vpop.eup %117 }
  0x80   :  { %v39_v9 = vmul.f32 %v118_v8, %v37_v7  ;;  %v21_v10 = vpop.xlane.xlu0 %20 }
  0x81   :  { %119 = vrsqrt.f32 %v21_v10  ;;  %vm29_vm4 = vcmp.eq.f32.partialorder %v21_v10, inf  ;;  %v32_v27 = vand.u32 2147483648, %v21_v10  ;;  %vm31_vm5 = vcmp.eq.f32.partialorder %v21_v10, 0.0 }
  0x82   :  { %v40_v11 = vmul.f32 %v118_v8, %v39_v9 }
  0x84   :  { %v41_v12 = vmul.f32 0.5, %v40_v11 }
  0x86   :  { %v42_v13 = vsub.f32 1.5, %v41_v12 }
  0x87   :  { %v120_v14 = vpop.eup %119 }
  0x88   :  { %v43_v15 = vmul.f32 %v118_v8, %v42_v13  ;;  %v23_v16 = vmul.f32 %v120_v14, %v21_v10 }
  0x8a   :  { %v44_v17 = vmul.f32 %v43_v15, %v37_v7  ;;  %v24_v18 = vmul.f32 %v120_v14, %v23_v16 }
  0x8c   :  { %v46_v19 = vsel %vm45_vm2, %v37_v7, %v44_v17  ;;  %v25_v20 = vmul.f32 0.5, %v24_v18 }
  0x8d   :  { %v49_v23 = vsel %vm47_vm3, %v48_v21, %v46_v19 }
  0x8e   :  { %v26_v22 = vsub.f32 1.5, %v25_v20  ;;  %v51_v25 = vmax.f32 %v49_v23, 1e-08 }
  0x90   :  { %v27_v24 = vmul.f32 %v120_v14, %v26_v22  ;;  %v53_v30 = vrot.slane %v51_v25, 2 }
  0x92   :  { %v28_v26 = vmul.f32 %v27_v24, %v21_v10 }
  0x94   :  { %v30_v28 = vsel %vm29_vm4, %v21_v10, %v28_v26 }
  0x95   :  { %v33_v29 = vsel %vm31_vm5, %v32_v27, %v30_v28 }
  0x96   :  { %v50_v31 = vmax.f32 %v33_v29, 1e-08 }
  0x98   :  { %v55_v32 = vmul.f32 %v53_v30, %v50_v31 }
  0x9a   :  { %121 = vrcp.f32 %v55_v32  ;;  %v67_v36 = vand.u32 2147483648, %v55_v32  ;;  %v65_v38 = vand.u32 2147483647, %v55_v32  ;;  %vm61_vm7 = vweird.f32 %v55_v32 }
  0x9b   :  { %123 = vrcp.f32 %v151_v46 }
  0x9c   :  { %v68_v40 = vor.u32 1.1754944e-38, %v67_v36  ;;  %vm66_vm9 = vcmp.eq.f32.partialorder %v65_v38, 8.507059e+37 }
  0xa0   :  { %v122_v33 = vpop.eup %121 }
  0xa1   :  { %v57_v34 = vmul.f32 %v122_v33, %v55_v32  ;;  %vm62_vm6 = vweird.f32 %v122_v33  ;;  %v124_v47 = vpop.eup %123 }
  0xa2   :  { %vm63_vm8 = vmor %vm61_vm7, %vm62_vm6  ;;  %v83_v48 = vmul.f32 2.0, %v124_v47  ;;  %vm87_vm11 = vweird.f32 %v124_v47 }
  0xa3   :  { %v58_v35 = vsub.f32 1.0, %v57_v34 }
  0xa4   :  { %v84_v49 = vsub.f32 1.0, %v83_v48 }
  0xa5   :  { %v59_v37 = vmul.f32 %v122_v33, %v58_v35 }
  0xa6   :  { %v85_v53 = vmul.f32 %v124_v47, %v84_v49 }
  0xa7   :  { %v60_v39 = vadd.f32 %v122_v33, %v59_v37 }
  0xa8   :  { %v86_v56 = vadd.f32 %v124_v47, %v85_v53 }
  0xa9   :  { %v64_v42 = vsel %vm63_vm8, %v122_v33, %v60_v39 }
  0xaa   :  { %v69_v43 = vsel %vm66_vm9, %v68_v40, %v64_v42  ;;  %v88_v59 = vsel %vm87_vm11, %v124_v47, %v86_v56 }
  0xab   :  { %v70_v44 = vmul.f32 %v69_v43, %v17_v41 }
  0xad   :  { %v72_v45 = vsel %vm71_vm10, %v70_v44, 0.0 }
  0xae   :  { %73 = vadd.xlane.f32.xlu1 %v72_v45 }
 0x121   :  { %v74_v50 = vpop.xlane.xlu1 %73 }
 0x122   :  { %v75_v51 = vrot.slane %v74_v50, 4 }
 0x124   :  { %v76_v52 = vadd.f32 %v75_v51, %v74_v50 }
 0x126   :  { %v77_v54 = vrot.slane %v76_v52, 2 }
 0x128   :  { %v78_v55 = vadd.f32 %v77_v54, %v76_v52 }
 0x12a   :  { %v79_v57 = vrot.slane %v78_v55, 1 }
 0x12c   :  { %v80_v58 = vadd.f32 %v79_v57, %v78_v55 }
 0x12e   :  { %111 = vpush %v80_v58 }
 0x12f   :  { %113 = vpush %v88_v59 }
 0x15f   :  { %s112_s0 = spop %111 }
 0x160   :  { %s114_s8 = spop %113 }
 0x161   :  { %s90_s11 = smul.f32 %s114_s8, %s112_s0 }
 0x163   :  { %s91_s15 = ssub.f32 1.0, %s90_s11 }
 0x165   :  { %v92_v60 = vstv %s91_s15 }
 0x166   :  { %94 = vst.msk [vmem:[#allocation2] sm:$0x1] %vm93_vm12, %v92_v60 }
 0x167   :  { %105 = dma.vmem_to_hbm [thread:$0]  %s101_s10, 16, %s103_s14, [#allocation3]  }
 0x168   :  { %149 = dma.done.wait [#allocation3], 16  }
 0x169   :  { %150 = vsyncadd [#allocation3], 4294967280 }
 0x16a   :  { %110 = vsyncpa [#allocation3], 1 }

// kernel: clip_loss.4
= control target key start
LH: loop header
LB: loop body
LE: loop exit
PB: predicated region body
PF: predicated region fallthrough
CT: control target
= control target key end

     0   :  { %s14113_s0 = inlined_call_operand.vmem [shape: bf16[4,50,3072], index: 0, kind: input, shape index: {}]   ;;  %s14114_s1 = inlined_call_operand.vmem [shape: bf16[3072,64], index: 1, kind: input, shape index: {}]   ;;  %s14115_s2 = inlined_call_operand.vmem [shape: f32[50,64], index: 2, kind: input, shape index: {}]   ;;  %s14116_s3 = inlined_call_operand.vmem [shape: f32[1,64], index: 3, kind: input, shape index: {}]   ;;  %s14117_s4 = inlined_call_operand.vmem [shape: f32[1,64], index: 4, kind: input, shape index: {}]   ;;  %s14118_s5 = inlined_call_operand.vmem [shape: f32[2,1,64], index: 5, kind: input, shape index: {}]   ;;  %s14119_s6 = inlined_call_operand.vmem [shape: f32[2,1,64], index: 6, kind: input, shape index: {}]   ;;  %s14120_s7 = inlined_call_operand.vmem [shape: f32[2,64,192], index: 7, kind: input, shape index: {}]   ;;  %s14121_s8 = inlined_call_operand.vmem [shape: f32[2,1,192], index: 8, kind: input, shape index: {}]   ;;  %s14122_s9 = inlined_call_operand.vmem [shape: f32[2,64,64], index: 9, kind: input, shape index: {}]   ;;  %s14123_s10 = inlined_call_operand.vmem [shape: f32[2,1,64], index: 10, kind: input, shape index: {}]   ;;  %s14124_s11 = inlined_call_operand.vmem [shape: f32[2,1,64], index: 11, kind: input, shape index: {}]   ;;  %s14125_s12 = inlined_call_operand.vmem [shape: f32[2,1,64], index: 12, kind: input, shape index: {}]   ;;  %s14126_s13 = inlined_call_operand.vmem [shape: f32[2,64,256], index: 13, kind: input, shape index: {}]   ;;  %s14127_s14 = inlined_call_operand.vmem [shape: f32[2,1,256], index: 14, kind: input, shape index: {}]   ;;  %s14128_s15 = inlined_call_operand.vmem [shape: f32[2,256,64], index: 15, kind: input, shape index: {}]   ;;  %s14129_s16 = inlined_call_operand.vmem [shape: f32[2,1,64], index: 16, kind: input, shape index: {}]   ;;  %s14130_s17 = inlined_call_operand.vmem [shape: f32[1,64], index: 17, kind: input, shape index: {}]   ;;  %s14131_s18 = inlined_call_operand.vmem [shape: f32[1,64], index: 18, kind: input, shape index: {}]   ;;  %s14132_s19 = inlined_call_operand.vmem [shape: f32[64,32], index: 19, kind: input, shape index: {}]   ;;  %s14133_s20 = inlined_call_operand.vmem [shape: f32[4,1,32], index: 20, kind: output, shape index: {}]  }
   0x1   :  { %14148 = sst [smem:[#allocation9_spill]] %s14113_s0 }
   0x2   :  { %14149 = sst [smem:[#allocation10_spill]] %s14114_s1  ;;  %s10606_s1 = smov 0  }
   0x3   :  { %14150 = sst [smem:[#allocation11_spill]] %s14115_s2 }
   0x4   :  { %14151 = sst [smem:[#allocation12_spill]] %s14116_s3 }
   0x5   :  { %14152 = sst [smem:[#allocation13_spill]] %s14117_s4 }
   0x6 LB: > { %s8229_s22 = sadd.s32 4294967295, %s10491_s1   ;;  %p8233_p0 = scmp.ge.s32.totalorder %s10491_s1, 1  ;;  %s10491_s1 = sphi %s10606_s1, %s30_s1  }
   0x7   : > { %p562_p1 = scmp.lt.s32.totalorder %s10491_s1, 5 }
   0x9   : > { %p563_p2 = pnand %p8233_p0, %p562_p1 }
   0xb   : > { %566 = sbr.rel (%p563_p2) target bundleno = 6401 (0x1901), region = 100 }
  0x10   : > { %s14153_s2 = sld [smem:[#allocation10_spill]]  ;;  %p618_p3 = scmp.lt.s32.totalorder %s8229_s22, 3  ;;  %vm3371_vm0 = vcmask 523264   ;;  %vm3390_vm1 = vcmask 517120  }
  0x11   : > { %s14154_s4 = sld [smem:[#allocation9_spill]]  ;;  %s14146_s25 = smov 48  }
  0x12   : > { %s14189_s22 = smov (!%p618_p3, %s8229_s22), 3  ;;  %s14171_s27 = sld [smem:[#allocation13_spill]] }
  0x13   : > { %s9954_s23 = smul.u32 672, %s14189_s22  ;;  %s14142_s3 = smov 16  }
  0x14   : > { %s14140_s26 = smov 32   ;;  %s14136_s28 = smov 80  }
  0x15   : > { %s14179_s30 = smov 112   ;;  %s14180_s0 = smov 16  }
  0x16   : > { %v9769_v0 = vld [vmem:[%s14153_s2 + $0x38] sm:$0xff]  ;;  %v9768_v4 = vld [vmem:[%s14153_s2 + $0x30] sm:$0xff]  ;;  %v9767_v8 = vld [vmem:[%s14153_s2 + $0x28] sm:$0xff] }
  0x17   : > { %v9777_v1 = vld [vmem:[%s14153_s2 + $0x78] sm:$0xff]  ;;  %2697 = vmatpush.bf16.msra.mxu0 %v9769_v0  ;;  %v9776_v5 = vld [vmem:[%s14153_s2 + $0x70] sm:$0xff]  ;;  %v9775_v9 = vld [vmem:[%s14153_s2 + $0x68] sm:$0xff]  ;;  %s10702_s29 = scalar_lea.vmem %s14154_s4, %s9954_s23  ;;  %s14155_s4 = sld [smem:[#allocation11_spill]] }
  0x18   : > { %v9785_v2 = vld [vmem:[%s14153_s2 + $0xb8] sm:$0xff]  ;;  %2725 = vmatpush.bf16.msra.mxu1 %v9777_v1  ;;  %v9784_v6 = vld [vmem:[%s14153_s2 + $0xb0] sm:$0xff]  ;;  %v9783_v10 = vld [vmem:[%s14153_s2 + $0xa8] sm:$0xff]  ;;  %s14170_s23 = sld [smem:[#allocation12_spill]] }
  0x19   : > { %v9793_v3 = vld [vmem:[%s14153_s2 + $0xf8] sm:$0xff]  ;;  %2753 = vmatpush.bf16.msra.mxu2 %v9785_v2  ;;  %v9792_v7 = vld [vmem:[%s14153_s2 + $0xf0] sm:$0xff]  ;;  %v9791_v11 = vld [vmem:[%s14153_s2 + $0xe8] sm:$0xff] }
  0x1a   : > { %2781 = vmatpush.bf16.msra.mxu3 %v9793_v3  ;;  %v9766_v12 = vld [vmem:[%s14153_s2 + $0x20] sm:$0xff]  ;;  %v9765_v16 = vld [vmem:[%s14153_s2 + $0x18] sm:$0xff]  ;;  %v9764_v20 = vld [vmem:[%s14153_s2 + $0x10] sm:$0xff] }
  0x1b   : > { %2698 = vmatpush.bf16.msra.mxu0 %v9768_v4  ;;  %v9774_v13 = vld [vmem:[%s14153_s2 + $0x60] sm:$0xff]  ;;  %v9773_v17 = vld [vmem:[%s14153_s2 + $0x58] sm:$0xff]  ;;  %v9772_v21 = vld [vmem:[%s14153_s2 + $0x50] sm:$0xff] }
  0x1c   : > { %2726 = vmatpush.bf16.msra.mxu1 %v9776_v5  ;;  %v9782_v14 = vld [vmem:[%s14153_s2 + $0xa0] sm:$0xff]  ;;  %v9781_v18 = vld [vmem:[%s14153_s2 + $0x98] sm:$0xff]  ;;  %v9780_v22 = vld [vmem:[%s14153_s2 + $0x90] sm:$0xff] }
  0x1d   : > { %2754 = vmatpush.bf16.msra.mxu2 %v9784_v6  ;;  %v9790_v15 = vld [vmem:[%s14153_s2 + $0xe0] sm:$0xff]  ;;  %v9789_v19 = vld [vmem:[%s14153_s2 + $0xd8] sm:$0xff]  ;;  %v9788_v23 = vld [vmem:[%s14153_s2 + $0xd0] sm:$0xff] }
  0x1e   : > { %2782 = vmatpush.bf16.msra.mxu3 %v9792_v7  ;;  %v9763_v24 = vld [vmem:[%s14153_s2 + $0x8] sm:$0xff]  ;;  %v9762_v28 = vld [vmem:[%s14153_s2] sm:$0xff]  ;;  %v9801_v44 = vld [vmem:[%s14153_s2 + $0x138] sm:$0xff] }
  0x1f   : > { %2699 = vmatpush.bf16.msra.mxu0 %v9767_v8  ;;  %v9771_v25 = vld [vmem:[%s14153_s2 + $0x48] sm:$0xff]  ;;  %v9770_v29 = vld [vmem:[%s14153_s2 + $0x40] sm:$0xff]  ;;  %v9809_v45 = vld [vmem:[%s14153_s2 + $0x178] sm:$0xff] }
  0x20   : > { %2727 = vmatpush.bf16.msra.mxu1 %v9775_v9  ;;  %v9779_v26 = vld [vmem:[%s14153_s2 + $0x88] sm:$0xff]  ;;  %v9778_v30 = vld [vmem:[%s14153_s2 + $0x80] sm:$0xff]  ;;  %v9817_v46 = vld [vmem:[%s14153_s2 + $0x1b8] sm:$0xff] }
  0x21   : > { %2755 = vmatpush.bf16.msra.mxu2 %v9783_v10  ;;  %v9787_v27 = vld [vmem:[%s14153_s2 + $0xc8] sm:$0xff]  ;;  %v9786_v31 = vld [vmem:[%s14153_s2 + $0xc0] sm:$0xff]  ;;  %v9825_v47 = vld [vmem:[%s14153_s2 + $0x1f8] sm:$0xff] }
  0x22   : > { %2783 = vmatpush.bf16.msra.mxu3 %v9791_v11  ;;  %v8237_v32 = vld [vmem:[%s10702_s29] sm:$0xf]  ;;  %v9690_v34 = vld [vmem:[%s10702_s29 + $0x4] sm:$0xf]  ;;  %v8245_v36 = vld [vmem:[%s10702_s29 + $0x8] sm:$0xf] }
  0x23   : > { %2700 = vmatpush.bf16.msra.mxu0 %v9766_v12  ;;  %v9702_v33 = vld [vmem:[%s10702_s29 + $0x5c] sm:$0xf0]  ;;  %v8239_v35 = vld [vmem:[%s10702_s29 + $0x60] sm:$0xf0]  ;;  %v9703_v37 = vld [vmem:[%s10702_s29 + $0x64] sm:$0xf0] }
  0x24   : > { %2728 = vmatpush.bf16.msra.mxu1 %v9774_v13  ;;  %v9691_v38 = vld [vmem:[%s10702_s29 + $0xc] sm:$0xf]  ;;  %v8238_v40 = vor.u32 %v9702_v33, %v8237_v32  ;;  %v8242_v41 = vor.u32 %v9690_v34, %v8239_v35  ;;  %v8246_v42 = vor.u32 %v9703_v37, %v8245_v36  ;;  %v9800_v48 = vld [vmem:[%s14153_s2 + $0x130] sm:$0xff]  ;;  %v8333_v54 = vld [vmem:[%s10702_s29 + $0xc0] sm:$0xf] }
  0x25   : > { %2756 = vmatpush.bf16.msra.mxu2 %v9782_v14  ;;  %v8247_v39 = vld [vmem:[%s10702_s29 + $0x68] sm:$0xf0]  ;;  %v9808_v49 = vld [vmem:[%s14153_s2 + $0x170] sm:$0xff]  ;;  %v9726_v57 = vld [vmem:[%s10702_s29 + $0x11c] sm:$0xf0] }
  0x26   : > { %2784 = vmatpush.bf16.msra.mxu3 %v9790_v15  ;;  %v8250_v43 = vor.u32 %v9691_v38, %v8247_v39  ;;  %v9816_v50 = vld [vmem:[%s14153_s2 + $0x1b0] sm:$0xff]  ;;  %v9799_v52 = vld [vmem:[%s14153_s2 + $0x128] sm:$0xff]  ;;  %v9714_v58 = vld [vmem:[%s10702_s29 + $0xc4] sm:$0xf]  ;;  %v8334_v4 = vor.u32 %v9726_v57, %v8333_v54 }
  0x27   : > { %2701 = vmatpush.bf16.msra.mxu0 %v9765_v16  ;;  %v9824_v51 = vld [vmem:[%s14153_s2 + $0x1f0] sm:$0xff]  ;;  %v9807_v53 = vld [vmem:[%s14153_s2 + $0x168] sm:$0xff]  ;;  %v8335_v59 = vld [vmem:[%s10702_s29 + $0x120] sm:$0xf0] }
  0x28   : > { %2729 = vmatpush.bf16.msra.mxu1 %v9773_v17  ;;  %v9815_v55 = vld [vmem:[%s14153_s2 + $0x1a8] sm:$0xff]  ;;  %v9798_v0 = vld [vmem:[%s14153_s2 + $0x120] sm:$0xff]  ;;  %v8338_v5 = vor.u32 %v9714_v58, %v8335_v59  ;;  %v9797_v8 = vld [vmem:[%s14153_s2 + $0x118] sm:$0xff] }
  0x29   : > { %2757 = vmatpush.bf16.msra.mxu2 %v9781_v18  ;;  %v9823_v56 = vld [vmem:[%s14153_s2 + $0x1e8] sm:$0xff]  ;;  %v9806_v1 = vld [vmem:[%s14153_s2 + $0x160] sm:$0xff]  ;;  %v9805_v9 = vld [vmem:[%s14153_s2 + $0x158] sm:$0xff] }
  0x2a   : > { %2785 = vmatpush.bf16.msra.mxu3 %v9789_v19  ;;  %v8341_v60 = vld [vmem:[%s10702_s29 + $0xc8] sm:$0xf]  ;;  %v9715_v62 = vld [vmem:[%s10702_s29 + $0xcc] sm:$0xf]  ;;  %v9814_v2 = vld [vmem:[%s14153_s2 + $0x1a0] sm:$0xff] }
  0x2b   : > { %2702 = vmatpush.bf16.msra.mxu0 %v9764_v20  ;;  %v9727_v61 = vld [vmem:[%s10702_s29 + $0x124] sm:$0xf0]  ;;  %v8343_v63 = vld [vmem:[%s10702_s29 + $0x128] sm:$0xf0]  ;;  %v9822_v3 = vld [vmem:[%s14153_s2 + $0x1e0] sm:$0xff] }
  0x2c   : > { %2730 = vmatpush.bf16.msra.mxu1 %v9772_v21  ;;  %v8342_v6 = vor.u32 %v9727_v61, %v8341_v60  ;;  %v8346_v7 = vor.u32 %v9715_v62, %v8343_v63  ;;  %v9813_v10 = vld [vmem:[%s14153_s2 + $0x198] sm:$0xff]  ;;  %v9796_v12 = vld [vmem:[%s14153_s2 + $0x110] sm:$0xff]  ;;  %v9795_v16 = vld [vmem:[%s14153_s2 + $0x108] sm:$0xff] }
  0x2d   : > { %2758 = vmatpush.bf16.msra.mxu2 %v9780_v22  ;;  %v9821_v11 = vld [vmem:[%s14153_s2 + $0x1d8] sm:$0xff]  ;;  %v9804_v13 = vld [vmem:[%s14153_s2 + $0x150] sm:$0xff]  ;;  %v9803_v17 = vld [vmem:[%s14153_s2 + $0x148] sm:$0xff] }
  0x2e   : > { %2786 = vmatpush.bf16.msra.mxu3 %v9788_v23  ;;  %v9812_v14 = vld [vmem:[%s14153_s2 + $0x190] sm:$0xff]  ;;  %v8429_v18 = vld [vmem:[%s10702_s29 + $0x180] sm:$0xf]  ;;  %v9811_v19 = vld [vmem:[%s14153_s2 + $0x188] sm:$0xff] }
  0x2f   : > { %2703 = vmatpush.bf16.msra.mxu0 %v9763_v24  ;;  %v9820_v15 = vld [vmem:[%s14153_s2 + $0x1d0] sm:$0xff]  ;;  %v9819_v20 = vld [vmem:[%s14153_s2 + $0x1c8] sm:$0xff]  ;;  %v9750_v21 = vld [vmem:[%s10702_s29 + $0x1dc] sm:$0xf0] }
  0x30   : > { %2731 = vmatpush.bf16.msra.mxu1 %v9771_v25  ;;  %v9738_v22 = vld [vmem:[%s10702_s29 + $0x184] sm:$0xf]  ;;  %v8437_v24 = vld [vmem:[%s10702_s29 + $0x188] sm:$0xf]  ;;  %v8430_v32 = vor.u32 %v9750_v21, %v8429_v18  ;;  %v9833_v58 = vld [vmem:[%s14153_s2 + $0x238] sm:$0xff] }
  0x31   : > { %2759 = vmatpush.bf16.msra.mxu2 %v9779_v26  ;;  %v8431_v23 = vld [vmem:[%s10702_s29 + $0x1e0] sm:$0xf0]  ;;  %v9751_v25 = vld [vmem:[%s10702_s29 + $0x1e4] sm:$0xf0]  ;;  %v9739_v26 = vld [vmem:[%s10702_s29 + $0x18c] sm:$0xf] }
  0x32   : > { %2787 = vmatpush.bf16.msra.mxu3 %v9787_v27  ;;  %v8439_v27 = vld [vmem:[%s10702_s29 + $0x1e8] sm:$0xf0]  ;;  %v8434_v33 = vor.u32 %v9738_v22, %v8431_v23  ;;  %v8438_v34 = vor.u32 %v9751_v25, %v8437_v24  ;;  %v698_v36 = vld [vmem:[%s10702_s29 + $0x240] sm:$0x11]  ;;  %v9841_v59 = vld [vmem:[%s14153_s2 + $0x278] sm:$0xff] }
  0x33   : > { %2704 = vmatpush.bf16.msra.mxu0 %v9762_v28  ;;  %v9794_v28 = vld [vmem:[%s14153_s2 + $0x100] sm:$0xff]  ;;  %v8442_v35 = vor.u32 %v9739_v26, %v8439_v27  ;;  %v699_v37 = vld [vmem:[%s10702_s29 + $0x248] sm:$0x11]  ;;  %v1329_v38 = vunpack.c.l.b16 %v698_v36  ;;  %v1330_v39 = vunpack.c.h.b16 %v698_v36  ;;  %v9849_v60 = vld [vmem:[%s14153_s2 + $0x2b8] sm:$0xff] }
  0x34   : > { %2732 = vmatpush.bf16.msra.mxu1 %v9770_v29  ;;  %v9802_v29 = vld [vmem:[%s14153_s2 + $0x140] sm:$0xff]  ;;  %v9857_v61 = vld [vmem:[%s14153_s2 + $0x2f8] sm:$0xff]  ;;  %v9832_v62 = vld [vmem:[%s14153_s2 + $0x230] sm:$0xff] }
  0x35   : > { %2760 = vmatpush.bf16.msra.mxu2 %v9778_v30  ;;  %v9810_v30 = vld [vmem:[%s14153_s2 + $0x180] sm:$0xff]  ;;  %v9840_v63 = vld [vmem:[%s14153_s2 + $0x270] sm:$0xff]  ;;  %v9829_v22 = vld [vmem:[%s14153_s2 + $0x218] sm:$0xff] }
  0x36   : > { %2788 = vmatpush.bf16.msra.mxu3 %v9786_v31  ;;  %2705 = vmatmul.bf16.vlgmr.msra.gmra.mxu0 %v8238_v40  ;;  %v9818_v31 = vld [vmem:[%s14153_s2 + $0x1c0] sm:$0xff]  ;;  %v1331_v40 = vunpack.c.l.b16 %v699_v37  ;;  %v9837_v23 = vld [vmem:[%s14153_s2 + $0x258] sm:$0xff]  ;;  %v9828_v26 = vld [vmem:[%s14153_s2 + $0x210] sm:$0xff] }
  0x37   : > { %2733 = vmatmul.bf16.vlgmr.msra.gmra.mxu1 %v8242_v41  ;;  %2809 = vmatpush.bf16.msrb.mxu0 %v9801_v44  ;;  %v1332_v41 = vunpack.c.h.b16 %v699_v37  ;;  %v9845_v24 = vld [vmem:[%s14153_s2 + $0x298] sm:$0xff]  ;;  %v9836_v27 = vld [vmem:[%s14153_s2 + $0x250] sm:$0xff] }
  0x38   : > { %2761 = vmatmul.bf16.vlgmr.msra.gmra.mxu2 %v8246_v42  ;;  %2837 = vmatpush.bf16.msrb.mxu1 %v9809_v45  ;;  %v1425_v42 = vpack.c.b16 %v1329_v38, %v1329_v38  ;;  %v1427_v44 = vpack.c.b16 %v1331_v40, %v1331_v40  ;;  %v9853_v25 = vld [vmem:[%s14153_s2 + $0x2d8] sm:$0xff]  ;;  %v9740_v36 = vld [vmem:[%s10702_s29 + $0x194] sm:$0xf] }
  0x39   : > { %2789 = vmatmul.bf16.vlgmr.msra.gmra.mxu3 %v8250_v43  ;;  %2865 = vmatpush.bf16.msrb.mxu2 %v9817_v46  ;;  %v1426_v43 = vpack.c.b16 %v1330_v39, %v1330_v39  ;;  %v1428_v45 = vpack.c.b16 %v1332_v41, %v1332_v41  ;;  %v8253_v46 = vld [vmem:[%s10702_s29 + $0x10] sm:$0xf]  ;;  %v8447_v37 = vld [vmem:[%s10702_s29 + $0x1f0] sm:$0xf0]  ;;  %v8453_v38 = vld [vmem:[%s10702_s29 + $0x198] sm:$0xf] }
  0x3a   : > { %2893 = vmatpush.bf16.msrb.mxu3 %v9825_v47  ;;  %v9704_v47 = vld [vmem:[%s10702_s29 + $0x6c] sm:$0xf0]  ;;  %v9753_v39 = vld [vmem:[%s10702_s29 + $0x1f4] sm:$0xf0]  ;;  %v9741_v40 = vld [vmem:[%s10702_s29 + $0x19c] sm:$0xf] }
  0x3b   : > { %2810 = vmatpush.bf16.msrb.mxu0 %v9800_v48  ;;  %v9692_v48 = vld [vmem:[%s10702_s29 + $0x14] sm:$0xf]  ;;  %v8254_v54 = vor.u32 %v9704_v47, %v8253_v46  ;;  %v8455_v41 = vld [vmem:[%s10702_s29 + $0x1f8] sm:$0xf0]  ;;  %v9842_v46 = vld [vmem:[%s14153_s2 + $0x280] sm:$0xff]  ;;  %v8454_v47 = vor.u32 %v9753_v39, %v8453_v38 }
  0x3c   : > { %2838 = vmatpush.bf16.msrb.mxu1 %v9808_v49  ;;  %v8255_v49 = vld [vmem:[%s10702_s29 + $0x70] sm:$0xf0]  ;;  %v9887_v38 = vld [vmem:[%s14153_s2 + $0x3e8] sm:$0xff] }
  0x3d   : > { %2866 = vmatpush.bf16.msrb.mxu2 %v9816_v50  ;;  %v8261_v50 = vld [vmem:[%s10702_s29 + $0x18] sm:$0xf]  ;;  %v9731_v39 = vld [vmem:[%s10702_s29 + $0x144] sm:$0xf0] }
  0x3e   : > { %2894 = vmatpush.bf16.msrb.mxu3 %v9824_v51  ;;  %v9705_v51 = vld [vmem:[%s10702_s29 + $0x74] sm:$0xf0] }
  0x3f   : > { %2811 = vmatpush.bf16.msrb.mxu0 %v9799_v52  ;;  %v9693_v52 = vld [vmem:[%s10702_s29 + $0x1c] sm:$0xf] }
  0x40   : > { %2839 = vmatpush.bf16.msrb.mxu1 %v9807_v53  ;;  %v8263_v53 = vld [vmem:[%s10702_s29 + $0x78] sm:$0xf0] }
  0x41   : > { %2867 = vmatpush.bf16.msrb.mxu2 %v9815_v55  ;;  %v8258_v55 = vor.u32 %v9692_v48, %v8255_v49  ;;  %v8266_v57 = vor.u32 %v9693_v52, %v8263_v53  ;;  %v8458_v48 = vor.u32 %v9741_v40, %v8455_v41  ;;  %v9850_v49 = vld [vmem:[%s14153_s2 + $0x2c0] sm:$0xff]  ;;  %v9719_v40 = vld [vmem:[%s10702_s29 + $0xec] sm:$0xf] }
  0x42   : > { %2895 = vmatpush.bf16.msrb.mxu3 %v9823_v56  ;;  %v8262_v56 = vor.u32 %v9705_v51, %v8261_v50  ;;  %v700_v50 = vld [vmem:[%s10702_s29 + $0x250] sm:$0x11]  ;;  %v701_v51 = vld [vmem:[%s10702_s29 + $0x258] sm:$0x11]  ;;  %v8375_v41 = vld [vmem:[%s10702_s29 + $0x148] sm:$0xf0] }
  0x43   : > { %2812 = vmatpush.bf16.msrb.mxu0 %v9798_v0  ;;  %v9848_v0 = vld [vmem:[%s14153_s2 + $0x2b0] sm:$0xff]  ;;  %v1333_v52 = vunpack.c.l.b16 %v700_v50  ;;  %v1334_v53 = vunpack.c.h.b16 %v700_v50 }
  0x44   : > { %2840 = vmatpush.bf16.msrb.mxu1 %v9806_v1  ;;  %v9856_v1 = vld [vmem:[%s14153_s2 + $0x2f0] sm:$0xff] }
  0x45   : > { %2868 = vmatpush.bf16.msrb.mxu2 %v9814_v2  ;;  %v9831_v2 = vld [vmem:[%s14153_s2 + $0x228] sm:$0xff] }
  0x46   : > { %2896 = vmatpush.bf16.msrb.mxu3 %v9822_v3  ;;  %2710 = vmatmul.bf16.gmra.mxu0 %v8334_v4  ;;  %v9839_v3 = vld [vmem:[%s14153_s2 + $0x268] sm:$0xff]  ;;  %v8349_v4 = vld [vmem:[%s10702_s29 + $0xd0] sm:$0xf] }
  0x47   : > { %2738 = vmatmul.bf16.gmra.mxu1 %v8338_v5  ;;  %2813 = vmatpush.bf16.msrb.mxu0 %v9797_v8  ;;  %v9847_v5 = vld [vmem:[%s14153_s2 + $0x2a8] sm:$0xff]  ;;  %v9716_v8 = vld [vmem:[%s10702_s29 + $0xd4] sm:$0xf] }
  0x48   : > { %2766 = vmatmul.bf16.gmra.mxu2 %v8342_v6  ;;  %2841 = vmatpush.bf16.msrb.mxu1 %v9805_v9  ;;  %v9855_v6 = vld [vmem:[%s14153_s2 + $0x2e8] sm:$0xff]  ;;  %v8351_v9 = vld [vmem:[%s10702_s29 + $0x130] sm:$0xf0] }
  0x49   : > { %2794 = vmatmul.bf16.gmra.mxu3 %v8346_v7  ;;  %2869 = vmatpush.bf16.msrb.mxu2 %v9813_v10  ;;  %v9728_v7 = vld [vmem:[%s10702_s29 + $0x12c] sm:$0xf0]  ;;  %v8357_v10 = vld [vmem:[%s10702_s29 + $0xd8] sm:$0xf] }
  0x4a   : > { %2897 = vmatpush.bf16.msrb.mxu3 %v9821_v11  ;;  %v9729_v11 = vld [vmem:[%s10702_s29 + $0x134] sm:$0xf0]  ;;  %v8350_v18 = vor.u32 %v9728_v7, %v8349_v4  ;;  %v1094_v4 = vld [vmem:[%s14155_s4] sm:$0xff] }
  0x4b   : > { %2814 = vmatpush.bf16.msrb.mxu0 %v9796_v12  ;;  %v9717_v12 = vld [vmem:[%s10702_s29 + $0xdc] sm:$0xf] }
  0x4c   : > { %2842 = vmatpush.bf16.msrb.mxu1 %v9804_v13  ;;  %v8359_v13 = vld [vmem:[%s10702_s29 + $0x138] sm:$0xf0] }
  0x4d   : > { %2870 = vmatpush.bf16.msrb.mxu2 %v9812_v14  ;;  %v9830_v14 = vld [vmem:[%s14153_s2 + $0x220] sm:$0xff]  ;;  %v8362_v21 = vor.u32 %v9717_v12, %v8359_v13  ;;  %v9865_v13 = vld [vmem:[%s14153_s2 + $0x338] sm:$0xff] }
  0x4e   : > { %2898 = vmatpush.bf16.msrb.mxu3 %v9820_v15  ;;  %v9838_v15 = vld [vmem:[%s14153_s2 + $0x260] sm:$0xff] }
  0x4f   : > { %2815 = vmatpush.bf16.msrb.mxu0 %v9795_v16  ;;  %v9846_v16 = vld [vmem:[%s14153_s2 + $0x2a0] sm:$0xff] }
  0x50   : > { %2843 = vmatpush.bf16.msrb.mxu1 %v9803_v17  ;;  %v9854_v17 = vld [vmem:[%s14153_s2 + $0x2e0] sm:$0xff] }
  0x51   : > { %2871 = vmatpush.bf16.msrb.mxu2 %v9811_v19  ;;  %v8354_v19 = vor.u32 %v9716_v8, %v8351_v9 }
  0x52   : > { %2899 = vmatpush.bf16.msrb.mxu3 %v9819_v20  ;;  %v8358_v20 = vor.u32 %v9729_v11, %v8357_v10 }
  0x53   : > { %2816 = vmatpush.bf16.msrb.mxu0 %v9794_v28  ;;  %v9844_v28 = vld [vmem:[%s14153_s2 + $0x290] sm:$0xff] }
  0x54   : > { %2844 = vmatpush.bf16.msrb.mxu1 %v9802_v29  ;;  %v9852_v29 = vld [vmem:[%s14153_s2 + $0x2d0] sm:$0xff] }
  0x55   : > { %2872 = vmatpush.bf16.msrb.mxu2 %v9810_v30  ;;  %v9827_v30 = vld [vmem:[%s14153_s2 + $0x208] sm:$0xff] }
  0x56   : > { %2900 = vmatpush.bf16.msrb.mxu3 %v9818_v31  ;;  %2715 = vmatmul.bf16.gmra.mxu0 %v8430_v32  ;;  %v9835_v31 = vld [vmem:[%s14153_s2 + $0x248] sm:$0xff] }
  0x57   : > { %2743 = vmatmul.bf16.gmra.mxu1 %v8434_v33  ;;  %2921 = vmatpush.bf16.msra.mxu0 %v9833_v58  ;;  %v9843_v32 = vld [vmem:[%s14153_s2 + $0x288] sm:$0xff] }
  0x58   : > { %2771 = vmatmul.bf16.gmra.mxu2 %v8438_v34  ;;  %2949 = vmatpush.bf16.msra.mxu1 %v9841_v59  ;;  %v9851_v33 = vld [vmem:[%s14153_s2 + $0x2c8] sm:$0xff]  ;;  %v8445_v34 = vld [vmem:[%s10702_s29 + $0x190] sm:$0xf] }
  0x59   : > { %2799 = vmatmul.bf16.gmra.mxu3 %v8442_v35  ;;  %2977 = vmatpush.bf16.msra.mxu2 %v9849_v60  ;;  %v9752_v35 = vld [vmem:[%s10702_s29 + $0x1ec] sm:$0xf0]  ;;  %v8269_v60 = vld [vmem:[%s10702_s29 + $0x20] sm:$0xf] }
  0x5a   : > { %3005 = vmatpush.bf16.msra.mxu3 %v9857_v61  ;;  %v9706_v61 = vld [vmem:[%s10702_s29 + $0x7c] sm:$0xf0] }
  0x5b   : > { %2922 = vmatpush.bf16.msra.mxu0 %v9832_v62  ;;  %v9694_v62 = vld [vmem:[%s10702_s29 + $0x24] sm:$0xf] }
  0x5c   : > { %2950 = vmatpush.bf16.msra.mxu1 %v9840_v63  ;;  %v8271_v63 = vld [vmem:[%s10702_s29 + $0x80] sm:$0xf0] }
  0x5d   : > { %2978 = vmatpush.bf16.msra.mxu2 %v9848_v0  ;;  %v8277_v0 = vld [vmem:[%s10702_s29 + $0x28] sm:$0xf] }
  0x5e   : > { %3006 = vmatpush.bf16.msra.mxu3 %v9856_v1  ;;  %v9707_v1 = vld [vmem:[%s10702_s29 + $0x84] sm:$0xf0] }
  0x5f   : > { %2923 = vmatpush.bf16.msra.mxu0 %v9831_v2  ;;  %v9695_v2 = vld [vmem:[%s10702_s29 + $0x2c] sm:$0xf]  ;;  %v8278_v9 = vor.u32 %v9707_v1, %v8277_v0 }
  0x60   : > { %2951 = vmatpush.bf16.msra.mxu1 %v9839_v3  ;;  %v8279_v3 = vld [vmem:[%s10702_s29 + $0x88] sm:$0xf0] }
  0x61   : > { %2979 = vmatpush.bf16.msra.mxu2 %v9847_v5  ;;  %v8270_v5 = vor.u32 %v9706_v61, %v8269_v60  ;;  %v8282_v10 = vor.u32 %v9695_v2, %v8279_v3  ;;  %v9869_v60 = vld [vmem:[%s14153_s2 + $0x358] sm:$0xff]  ;;  %v9860_v2 = vld [vmem:[%s14153_s2 + $0x310] sm:$0xff] }
  0x62   : > { %3007 = vmatpush.bf16.msra.mxu3 %v9855_v6  ;;  %v8274_v6 = vor.u32 %v9694_v62, %v8271_v63  ;;  %v9877_v61 = vld [vmem:[%s14153_s2 + $0x398] sm:$0xff]  ;;  %v9868_v3 = vld [vmem:[%s14153_s2 + $0x350] sm:$0xff] }
  0x63   : > { %2924 = vmatpush.bf16.msra.mxu0 %v9830_v14  ;;  %v9873_v14 = vld [vmem:[%s14153_s2 + $0x378] sm:$0xff] }
  0x64   : > { %2952 = vmatpush.bf16.msra.mxu1 %v9838_v15  ;;  %v9881_v15 = vld [vmem:[%s14153_s2 + $0x3b8] sm:$0xff] }
  0x65   : > { %2980 = vmatpush.bf16.msra.mxu2 %v9846_v16  ;;  %v9889_v16 = vld [vmem:[%s14153_s2 + $0x3f8] sm:$0xff] }
  0x66   : > { %2720 = vmatmul.bf16.gmra.mxu0 %v1425_v42  ;;  %3008 = vmatpush.bf16.msra.mxu3 %v9854_v17  ;;  %v8446_v42 = vor.u32 %v9752_v35, %v8445_v34  ;;  %v1095_v17 = vld [vmem:[%s14155_s4 + $0x8] sm:$0xff]  ;;  %v9885_v62 = vld [vmem:[%s14153_s2 + $0x3d8] sm:$0xff] }
  0x67   : > { %2748 = vmatmul.bf16.gmra.mxu1 %v1426_v43  ;;  %2925 = vmatpush.bf16.msra.mxu0 %v9829_v22  ;;  %v8450_v43 = vor.u32 %v9740_v36, %v8447_v37  ;;  %v9880_v22 = vld [vmem:[%s14153_s2 + $0x3b0] sm:$0xff]  ;;  %v9871_v34 = vld [vmem:[%s14153_s2 + $0x368] sm:$0xff]  ;;  %v8367_v36 = vld [vmem:[%s10702_s29 + $0x140] sm:$0xf0] }
  0x68   : > { %2776 = vmatmul.bf16.gmra.mxu2 %v1427_v44  ;;  %2953 = vmatpush.bf16.msra.mxu1 %v9837_v23  ;;  %v9826_v44 = vld [vmem:[%s14153_s2 + $0x200] sm:$0xff]  ;;  %v9879_v35 = vld [vmem:[%s14153_s2 + $0x3a8] sm:$0xff]  ;;  %v1097_v63 = vld [vmem:[%s14155_s4 + $0x18] sm:$0xff] }
  0x69   : > { %2804 = vmatmul.bf16.gmra.mxu3 %v1428_v45  ;;  %2981 = vmatpush.bf16.msra.mxu2 %v9845_v24  ;;  %v9834_v45 = vld [vmem:[%s14153_s2 + $0x240] sm:$0xff]  ;;  %v8373_v37 = vld [vmem:[%s10702_s29 + $0xe8] sm:$0xf] }
  0x6a   : > { %3009 = vmatpush.bf16.msra.mxu3 %v9853_v25 }
  0x6b   : > { %2926 = vmatpush.bf16.msra.mxu0 %v9828_v26  ;;  %v9888_v26 = vld [vmem:[%s14153_s2 + $0x3f0] sm:$0xff] }
  0x6c   : > { %2954 = vmatpush.bf16.msra.mxu1 %v9836_v27 }
  0x6d   : > { %2982 = vmatpush.bf16.msra.mxu2 %v9844_v28 }
  0x6e   : > { %3010 = vmatpush.bf16.msra.mxu3 %v9852_v29  ;;  %v8365_v29 = vld [vmem:[%s10702_s29 + $0xe0] sm:$0xf] }
  0x6f   : > { %2927 = vmatpush.bf16.msra.mxu0 %v9827_v30  ;;  %v9730_v30 = vld [vmem:[%s10702_s29 + $0x13c] sm:$0xf0] }
  0x70   : > { %2955 = vmatpush.bf16.msra.mxu1 %v9835_v31  ;;  %v9718_v31 = vld [vmem:[%s10702_s29 + $0xe4] sm:$0xf] }
  0x71   : > { %2983 = vmatpush.bf16.msra.mxu2 %v9843_v32 }
  0x72   : > { %3011 = vmatpush.bf16.msra.mxu3 %v9851_v33  ;;  %v9863_v33 = vld [vmem:[%s14153_s2 + $0x328] sm:$0xff] }
  0x73   : > { %2928 = vmatpush.bf16.msra.mxu0 %v9826_v44 }
  0x74   : > { %2956 = vmatpush.bf16.msra.mxu1 %v9834_v45  ;;  %v8366_v45 = vor.u32 %v9730_v30, %v8365_v29  ;;  %v9858_v30 = vld [vmem:[%s14153_s2 + $0x300] sm:$0xff] }
  0x75   : > { %2984 = vmatpush.bf16.msra.mxu2 %v9842_v46  ;;  %v8370_v46 = vor.u32 %v9718_v31, %v8367_v36  ;;  %v9866_v31 = vld [vmem:[%s14153_s2 + $0x340] sm:$0xff] }
  0x76   : > { %2817 = vmatmul.bf16.vlgmr.msrb.gmra.mxu0 %v8254_v54  ;;  %3012 = vmatpush.bf16.msra.mxu3 %v9850_v49  ;;  %v1335_v54 = vunpack.c.l.b16 %v701_v51 }
  0x77   : > { %2845 = vmatmul.bf16.vlgmr.msrb.gmra.mxu1 %v8258_v55  ;;  %v1336_v55 = vunpack.c.h.b16 %v701_v51  ;;  %3033 = vmatpush.bf16.msrb.mxu0 %v9865_v13  ;;  %v9867_v13 = vld [vmem:[%s14153_s2 + $0x348] sm:$0xff] }
  0x78   : > { %2873 = vmatmul.bf16.vlgmr.msrb.gmra.mxu2 %v8262_v56  ;;  %v1429_v56 = vpack.c.b16 %v1333_v52, %v1333_v52  ;;  %v1431_v58 = vpack.c.b16 %v1335_v54, %v1335_v54  ;;  %3061 = vmatpush.bf16.msrb.mxu1 %v9873_v14  ;;  %v8374_v52 = vor.u32 %v9731_v39, %v8373_v37  ;;  %v9882_v39 = vld [vmem:[%s14153_s2 + $0x3c0] sm:$0xff] }
  0x79   : > { %2901 = vmatmul.bf16.vlgmr.msrb.gmra.mxu3 %v8266_v57  ;;  %v1430_v57 = vpack.c.b16 %v1334_v53, %v1334_v53  ;;  %v1432_v59 = vpack.c.b16 %v1336_v55, %v1336_v55  ;;  %3089 = vmatpush.bf16.msrb.mxu2 %v9881_v15  ;;  %v8378_v53 = vor.u32 %v9719_v40, %v8375_v41  ;;  %v9878_v55 = vld [vmem:[%s14153_s2 + $0x3a0] sm:$0xff] }
  0x7a   : > { %3117 = vmatpush.bf16.msrb.mxu3 %v9889_v16  ;;  %v9754_v15 = vld [vmem:[%s10702_s29 + $0x1fc] sm:$0xf0]  ;;  %v9742_v16 = vld [vmem:[%s10702_s29 + $0x1a4] sm:$0xf] }
  0x7d   : > { %3090 = vmatpush.bf16.msrb.mxu2 %v9880_v22  ;;  %v9875_v22 = vld [vmem:[%s14153_s2 + $0x388] sm:$0xff] }
  0x7e   : > { %3118 = vmatpush.bf16.msrb.mxu3 %v9888_v26 }
  0x81   : > { %3091 = vmatpush.bf16.msrb.mxu2 %v9879_v35 }
  0x82   : > { %3119 = vmatpush.bf16.msrb.mxu3 %v9887_v38  ;;  %v9874_v38 = vld [vmem:[%s14153_s2 + $0x380] sm:$0xff] }
  0x85   : > { %3092 = vmatpush.bf16.msrb.mxu2 %v9878_v55 }
  0x86   : > { %2822 = vmatmul.bf16.gmra.mxu0 %v8350_v18 }
  0x87   : > { %2850 = vmatmul.bf16.gmra.mxu1 %v8354_v19 }
  0x88   : > { %2878 = vmatmul.bf16.gmra.mxu2 %v8358_v20  ;;  %v9864_v20 = vld [vmem:[%s14153_s2 + $0x330] sm:$0xff] }
  0x89   : > { %2906 = vmatmul.bf16.gmra.mxu3 %v8362_v21  ;;  %v9872_v21 = vld [vmem:[%s14153_s2 + $0x370] sm:$0xff]  ;;  %3034 = vmatpush.bf16.msrb.mxu0 %v9864_v20  ;;  %v9743_v20 = vld [vmem:[%s10702_s29 + $0x1ac] sm:$0xf] }
  0x8a   : > { %3062 = vmatpush.bf16.msrb.mxu1 %v9872_v21  ;;  %3093 = vmatpush.bf16.msrb.mxu2 %v9877_v61  ;;  %v8471_v21 = vld [vmem:[%s10702_s29 + $0x208] sm:$0xf0] }
  0x8b   : > { %v8474_v36 = vor.u32 %v9743_v20, %v8471_v21  ;;  %v9697_v20 = vld [vmem:[%s10702_s29 + $0x3c] sm:$0xf] }
  0x8c   : > { %v8295_v21 = vld [vmem:[%s10702_s29 + $0x98] sm:$0xf0] }
  0x8d   : > { %3035 = vmatpush.bf16.msrb.mxu0 %v9863_v33 }
  0x8e   : > { %3063 = vmatpush.bf16.msrb.mxu1 %v9871_v34 }
  0x96   : > { %2827 = vmatmul.bf16.gmra.mxu0 %v8446_v42  ;;  %v1096_v42 = vld [vmem:[%s14155_s4 + $0x10] sm:$0xff] }
  0x97   : > { %2855 = vmatmul.bf16.gmra.mxu1 %v8450_v43 }
  0x98   : > { %2883 = vmatmul.bf16.gmra.mxu2 %v8454_v47  ;;  %v9862_v47 = vld [vmem:[%s14153_s2 + $0x320] sm:$0xff] }
  0x99   : > { %2911 = vmatmul.bf16.gmra.mxu3 %v8458_v48  ;;  %v9870_v48 = vld [vmem:[%s14153_s2 + $0x360] sm:$0xff]  ;;  %3036 = vmatpush.bf16.msrb.mxu0 %v9862_v47 }
  0x9a   : > { %3064 = vmatpush.bf16.msrb.mxu1 %v9870_v48  ;;  %v702_v48 = vld [vmem:[%s10702_s29 + $0x260] sm:$0x11] }
  0x9e   : > { %3065 = vmatpush.bf16.msrb.mxu1 %v9869_v60 }
  0xa2   : > { %3066 = vmatpush.bf16.msrb.mxu1 %v9868_v3 }
  0xa6   : > { %2832 = vmatmul.bf16.gmra.mxu0 %v1429_v56  ;;  %v9886_v56 = vld [vmem:[%s14153_s2 + $0x3e0] sm:$0xff]  ;;  %3067 = vmatpush.bf16.msrb.mxu1 %v9867_v13 }
  0xa7   : > { %2860 = vmatmul.bf16.gmra.mxu1 %v1430_v57  ;;  %3120 = vmatpush.bf16.msrb.mxu3 %v9886_v56 }
  0xa8   : > { %2888 = vmatmul.bf16.gmra.mxu2 %v1431_v58 }
  0xa9   : > { %2916 = vmatmul.bf16.gmra.mxu3 %v1432_v59  ;;  %v9861_v59 = vld [vmem:[%s14153_s2 + $0x318] sm:$0xff] }
  0xaa   : > { %3037 = vmatpush.bf16.msrb.mxu0 %v9861_v59  ;;  %3068 = vmatpush.bf16.msrb.mxu1 %v9866_v31 }
  0xab   : > { %3121 = vmatpush.bf16.msrb.mxu3 %v9885_v62 }
  0xae   : > { %3038 = vmatpush.bf16.msrb.mxu0 %v9860_v2 }
  0xb3   : > { %v2706_v7 = vpop.f32.mrf.mxu0 }
  0xb4   : > { %v2734_v8 = vpop.f32.mrf.mxu1  ;;  %v2707_v11 = vadd.f32 %v2706_v7, %v1094_v4 }
  0xb6   : > { %v2735_v12 = vadd.f32 %v2734_v8, %v2707_v11  ;;  %2929 = vmatmul.bf16.vlgmr.msra.gmra.mxu0 %v8270_v5  ;;  %v9876_v8 = vld [vmem:[%s14153_s2 + $0x390] sm:$0xff]  ;;  %v8461_v11 = vld [vmem:[%s10702_s29 + $0x1a0] sm:$0xf] }
  0xb7   : > { %2957 = vmatmul.bf16.vlgmr.msra.gmra.mxu1 %v8274_v6  ;;  %3094 = vmatpush.bf16.msrb.mxu2 %v9876_v8 }
  0xb8   : > { %2985 = vmatmul.bf16.vlgmr.msra.gmra.mxu2 %v8278_v9  ;;  %v9884_v9 = vld [vmem:[%s14153_s2 + $0x3d0] sm:$0xff] }
  0xb9   : > { %3013 = vmatmul.bf16.vlgmr.msra.gmra.mxu3 %v8282_v10 }
  0xba   : > { %3122 = vmatpush.bf16.msrb.mxu3 %v9884_v9 }
  0xbb   : > { %v2762_v18 = vpop.f32.mrf.mxu2  ;;  %v2708_v24 = vpop.f32.mrf.mxu0  ;;  %3095 = vmatpush.bf16.msrb.mxu2 %v9875_v22 }
  0xbc   : > { %v2790_v19 = vpop.f32.mrf.mxu3  ;;  %v2763_v23 = vadd.f32 %v2762_v18, %v2735_v12  ;;  %v2736_v25 = vpop.f32.mrf.mxu1  ;;  %v2709_v27 = vadd.f32 %v2708_v24, %v1095_v17  ;;  %v9859_v12 = vld [vmem:[%s14153_s2 + $0x308] sm:$0xff]  ;;  %v8463_v17 = vld [vmem:[%s10702_s29 + $0x200] sm:$0xf0] }
  0xbd   : > { %v8469_v18 = vld [vmem:[%s10702_s29 + $0x1a8] sm:$0xf]  ;;  %v1098_v24 = vld [vmem:[%s14155_s4 + $0x20] sm:$0xff]  ;;  %3039 = vmatpush.bf16.msrb.mxu0 %v9859_v12  ;;  %v8466_v29 = vor.u32 %v9742_v16, %v8463_v17  ;;  %v9696_v16 = vld [vmem:[%s10702_s29 + $0x34] sm:$0xf] }
  0xbe   : > { %v11004_v28 = vadd.f32 %v2790_v19, %v2763_v23  ;;  %v2737_v32 = vadd.f32 %v2736_v25, %v2709_v27  ;;  %v9755_v19 = vld [vmem:[%s10702_s29 + $0x204] sm:$0xf0]  ;;  %v8462_v27 = vor.u32 %v9754_v15, %v8461_v11  ;;  %v9708_v15 = vld [vmem:[%s10702_s29 + $0x8c] sm:$0xf0]  ;;  %v8287_v17 = vld [vmem:[%s10702_s29 + $0x90] sm:$0xf0] }
  0xbf   : > { %v9883_v23 = vld [vmem:[%s14153_s2 + $0x3c8] sm:$0xff]  ;;  %v8470_v35 = vor.u32 %v9755_v19, %v8469_v18  ;;  %3096 = vmatpush.bf16.msrb.mxu2 %v9874_v38  ;;  %v8293_v18 = vld [vmem:[%s10702_s29 + $0x38] sm:$0xf]  ;;  %v9896_v38 = vld [vmem:[%s14153_s2 + $0x430] sm:$0xff] }
  0xc0   : > { %3123 = vmatpush.bf16.msrb.mxu3 %v9883_v23  ;;  %v9709_v19 = vld [vmem:[%s10702_s29 + $0x94] sm:$0xf0] }
  0xc1   : > { %3040 = vmatpush.bf16.msrb.mxu0 %v9858_v30  ;;  %v8298_v30 = vor.u32 %v9697_v20, %v8295_v21 }
  0xc3   : > { %v2764_v43 = vpop.f32.mrf.mxu2  ;;  %v2711_v50 = vpop.f32.mrf.mxu0 }
  0xc4   : > { %v2792_v44 = vpop.f32.mrf.mxu3  ;;  %v2765_v49 = vadd.f32 %v2764_v43, %v2737_v32  ;;  %v2739_v51 = vpop.f32.mrf.mxu1  ;;  %v2712_v54 = vadd.f32 %v2711_v50, %v1096_v42  ;;  %3124 = vmatpush.bf16.msrb.mxu3 %v9882_v39  ;;  %v1099_v42 = vld [vmem:[%s14155_s4 + $0x28] sm:$0xff]  ;;  %v9904_v39 = vld [vmem:[%s14153_s2 + $0x470] sm:$0xff] }
  0xc5   : > { %v703_v50 = vld [vmem:[%s10702_s29 + $0x268] sm:$0x11] }
  0xc6   : > { %v11041_v57 = vadd.f32 %v2792_v44, %v2765_v49  ;;  %v2740_v58 = vadd.f32 %v2739_v51, %v2712_v54  ;;  %2934 = vmatmul.bf16.gmra.mxu0 %v8366_v45  ;;  %v1338_v54 = vunpack.c.h.b16 %v702_v48  ;;  %v1339_v55 = vunpack.c.l.b16 %v703_v50 }
  0xc7   : > { %2962 = vmatmul.bf16.gmra.mxu1 %v8370_v46  ;;  %v1340_v56 = vunpack.c.h.b16 %v703_v50  ;;  %v9720_v50 = vld [vmem:[%s10702_s29 + $0xf4] sm:$0xf] }
  0xc8   : > { %2990 = vmatmul.bf16.gmra.mxu2 %v8374_v52  ;;  %v1434_v62 = vpack.c.b16 %v1338_v54, %v1338_v54  ;;  %v1435_v2 = vpack.c.b16 %v1339_v55, %v1339_v55  ;;  %v9911_v54 = vld [vmem:[%s14153_s2 + $0x4a8] sm:$0xff]  ;;  %v8383_v55 = vld [vmem:[%s10702_s29 + $0x150] sm:$0xf0] }
  0xc9   : > { %3018 = vmatmul.bf16.gmra.mxu3 %v8378_v53  ;;  %v1337_v53 = vunpack.c.l.b16 %v702_v48  ;;  %v1436_v3 = vpack.c.b16 %v1340_v56, %v1340_v56  ;;  %v8381_v48 = vld [vmem:[%s10702_s29 + $0xf0] sm:$0xf]  ;;  %v8389_v56 = vld [vmem:[%s10702_s29 + $0xf8] sm:$0xf] }
  0xcb   : > { %v2767_v0 = vpop.f32.mrf.mxu2  ;;  %v2713_v5 = vpop.f32.mrf.mxu0  ;;  %v1433_v61 = vpack.c.b16 %v1337_v53, %v1337_v53  ;;  %v9895_v53 = vld [vmem:[%s14153_s2 + $0x428] sm:$0xff] }
  0xcc   : > { %v2795_v1 = vpop.f32.mrf.mxu3  ;;  %v2768_v4 = vadd.f32 %v2767_v0, %v2740_v58  ;;  %v2741_v6 = vpop.f32.mrf.mxu1  ;;  %v2714_v7 = vadd.f32 %v2713_v5, %v1097_v63  ;;  %v1100_v58 = vld [vmem:[%s14155_s4 + $0x30] sm:$0x3] }
  0xce   : > { %v11070_v10 = vadd.f32 %v2795_v1, %v2768_v4  ;;  %v2742_v14 = vadd.f32 %v2741_v6, %v2714_v7 }
  0xd3   : > { %v2769_v25 = vpop.f32.mrf.mxu2  ;;  %v2716_v33 = vpop.f32.mrf.mxu0 }
  0xd4   : > { %v2797_v26 = vpop.f32.mrf.mxu3  ;;  %v2770_v32 = vadd.f32 %v2769_v25, %v2742_v14  ;;  %v2744_v34 = vpop.f32.mrf.mxu1  ;;  %v2717_v37 = vadd.f32 %v2716_v33, %v1098_v24  ;;  %v8285_v14 = vld [vmem:[%s10702_s29 + $0x30] sm:$0xf]  ;;  %v8290_v25 = vor.u32 %v9696_v16, %v8287_v17  ;;  %v9897_v33 = vld [vmem:[%s14153_s2 + $0x438] sm:$0xff] }
  0xd5   : > { %v8286_v24 = vor.u32 %v9708_v15, %v8285_v14  ;;  %3145 = vmatpush.bf16.msra.mxu0 %v9897_v33  ;;  %v9918_v14 = vld [vmem:[%s14153_s2 + $0x4e0] sm:$0xff]  ;;  %v9893_v17 = vld [vmem:[%s14153_s2 + $0x418] sm:$0xff]  ;;  %v9907_v33 = vld [vmem:[%s14153_s2 + $0x488] sm:$0xff] }
  0xd6   : > { %v11107_v40 = vadd.f32 %v2797_v26, %v2770_v32  ;;  %v2745_v41 = vadd.f32 %v2744_v34, %v2717_v37  ;;  %2939 = vmatmul.bf16.gmra.mxu0 %v8462_v27  ;;  %v9905_v34 = vld [vmem:[%s14153_s2 + $0x478] sm:$0xff] }
  0xd7   : > { %2967 = vmatmul.bf16.gmra.mxu1 %v8466_v29  ;;  %v8294_v29 = vor.u32 %v9709_v19, %v8293_v18  ;;  %v9909_v18 = vld [vmem:[%s14153_s2 + $0x498] sm:$0xff] }
  0xd8   : > { %2995 = vmatmul.bf16.gmra.mxu2 %v8470_v35  ;;  %v9913_v35 = vld [vmem:[%s14153_s2 + $0x4b8] sm:$0xff]  ;;  %3173 = vmatpush.bf16.msra.mxu1 %v9905_v34 }
  0xd9   : > { %3023 = vmatmul.bf16.gmra.mxu3 %v8474_v36  ;;  %3201 = vmatpush.bf16.msra.mxu2 %v9913_v35  ;;  %v9917_v19 = vld [vmem:[%s14153_s2 + $0x4d8] sm:$0xff]  ;;  %v8477_v35 = vld [vmem:[%s10702_s29 + $0x1b0] sm:$0xf] }
  0xda   : > { %3146 = vmatpush.bf16.msra.mxu0 %v9896_v38  ;;  %v8485_v38 = vld [vmem:[%s10702_s29 + $0x1b8] sm:$0xf] }
  0xdb   : > { %v2772_v43 = vpop.f32.mrf.mxu2  ;;  %v2718_v46 = vpop.f32.mrf.mxu0 }
  0xdc   : > { %v2800_v44 = vpop.f32.mrf.mxu3  ;;  %v2773_v45 = vadd.f32 %v2772_v43, %v2745_v41  ;;  %v2746_v47 = vpop.f32.mrf.mxu1  ;;  %v2719_v49 = vadd.f32 %v2718_v46, %v1099_v42  ;;  %v9912_v41 = vld [vmem:[%s14153_s2 + $0x4b0] sm:$0xff]  ;;  %3174 = vmatpush.bf16.msra.mxu1 %v9904_v39  ;;  %v9757_v39 = vld [vmem:[%s10702_s29 + $0x214] sm:$0xf0] }
  0xdd   : > { %3202 = vmatpush.bf16.msra.mxu2 %v9912_v41  ;;  %v9745_v41 = vld [vmem:[%s10702_s29 + $0x1bc] sm:$0xf] }
  0xde   : > { %v11114_v51 = vadd.f32 %v2800_v44, %v2773_v45  ;;  %v2747_v52 = vadd.f32 %v2746_v47, %v2719_v49  ;;  %v9920_v45 = vld [vmem:[%s14153_s2 + $0x4f0] sm:$0xff]  ;;  %3147 = vmatpush.bf16.msra.mxu0 %v9895_v53 }
  0xdf   : > { %v9732_v49 = vld [vmem:[%s10702_s29 + $0x14c] sm:$0xf0] }
  0xe1   : > { %3203 = vmatpush.bf16.msra.mxu2 %v9911_v54 }
  0xe3   : > { %v2774_v59 = vpop.f32.mrf.mxu2  ;;  %v2721_v0 = vpop.f32.mrf.mxu0 }
  0xe4   : > { %v2802_v60 = vpop.f32.mrf.mxu3  ;;  %v2775_v63 = vadd.f32 %v2774_v59, %v2747_v52  ;;  %v2749_v1 = vpop.f32.mrf.mxu1  ;;  %v2722_v4 = vadd.f32 %v2721_v0, %v1100_v58  ;;  %v9919_v58 = vld [vmem:[%s14153_s2 + $0x4e8] sm:$0xff]  ;;  %v9733_v59 = vld [vmem:[%s10702_s29 + $0x154] sm:$0xf0]  ;;  %v8382_v0 = vor.u32 %v9732_v49, %v8381_v48  ;;  %v9890_v49 = vld [vmem:[%s14153_s2 + $0x400] sm:$0xff] }
  0xe6   : > { %v11119_v5 = vadd.f32 %v2802_v60, %v2775_v63  ;;  %v2750_v6 = vadd.f32 %v2749_v1, %v2722_v4  ;;  %2944 = vmatmul.bf16.gmra.mxu0 %v1433_v61  ;;  %v9721_v60 = vld [vmem:[%s10702_s29 + $0xfc] sm:$0xf]  ;;  %v8386_v1 = vor.u32 %v9720_v50, %v8383_v55  ;;  %v9910_v4 = vld [vmem:[%s14153_s2 + $0x4a0] sm:$0xff]  ;;  %v8486_v55 = vor.u32 %v9757_v39, %v8485_v38 }
  0xe7   : > { %2972 = vmatmul.bf16.gmra.mxu1 %v1434_v62  ;;  %v8391_v61 = vld [vmem:[%s10702_s29 + $0x158] sm:$0xf0]  ;;  %3204 = vmatpush.bf16.msra.mxu2 %v9910_v4  ;;  %v9898_v50 = vld [vmem:[%s14153_s2 + $0x440] sm:$0xff] }
  0xe8   : > { %3000 = vmatmul.bf16.gmra.mxu2 %v1435_v2  ;;  %v9894_v2 = vld [vmem:[%s14153_s2 + $0x420] sm:$0xff]  ;;  %v705_v4 = vld [vmem:[%s10702_s29 + $0x278] sm:$0x11] }
  0xe9   : > { %3028 = vmatmul.bf16.gmra.mxu3 %v1436_v3  ;;  %v9902_v3 = vld [vmem:[%s14153_s2 + $0x460] sm:$0xff]  ;;  %3148 = vmatpush.bf16.msra.mxu0 %v9894_v2  ;;  %v704_v2 = vld [vmem:[%s10702_s29 + $0x270] sm:$0x11] }
  0xeb   : > { %v2777_v7 = vpop.f32.mrf.mxu2  ;;  %v2723_v11 = vpop.f32.mrf.mxu0  ;;  %3205 = vmatpush.bf16.msra.mxu2 %v9909_v18 }
  0xec   : > { %v2805_v8 = vpop.f32.mrf.mxu3  ;;  %v2778_v9 = vadd.f32 %v2777_v7, %v2750_v6  ;;  %v2751_v12 = vpop.f32.mrf.mxu1  ;;  %v8394_v11 = vor.u32 %v9721_v60, %v8391_v61 }
  0xed   : > { %3149 = vmatpush.bf16.msra.mxu0 %v9893_v17 }
  0xee   : > { %v11121_v13 = vadd.f32 %v2805_v8, %v2778_v9  ;;  %v8390_v9 = vor.u32 %v9733_v59, %v8389_v56  ;;  %v9914_v59 = vld [vmem:[%s14153_s2 + $0x4c0] sm:$0xff] }
  0xf3   : > { %v2779_v22 = vpop.f32.mrf.mxu2  ;;  %v2818_v26 = vpop.f32.mrf.mxu0 }
  0xf4   : > { %v2807_v23 = vpop.f32.mrf.mxu3  ;;  %v2846_v27 = vpop.f32.mrf.mxu1  ;;  %v2819_v31 = vadd.f32 %v2818_v26, %v11004_v28  ;;  %v9921_v28 = vld [vmem:[%s14153_s2 + $0x4f8] sm:$0xff]  ;;  %v9892_v22 = vld [vmem:[%s14153_s2 + $0x410] sm:$0xff] }
  0xf5   : > { %3229 = vmatpush.bf16.msra.mxu3 %v9921_v28  ;;  %v9900_v23 = vld [vmem:[%s14153_s2 + $0x450] sm:$0xff]  ;;  %3150 = vmatpush.bf16.msra.mxu0 %v9892_v22 }
  0xf6   : > { %v2847_v32 = vadd.f32 %v2846_v27, %v2819_v31  ;;  %3041 = vmatmul.bf16.vlgmr.msrb.gmra.mxu0 %v8286_v24  ;;  %v9908_v24 = vld [vmem:[%s14153_s2 + $0x490] sm:$0xff] }
  0xf7   : > { %3069 = vmatmul.bf16.vlgmr.msrb.gmra.mxu1 %v8290_v25  ;;  %3206 = vmatpush.bf16.msra.mxu2 %v9908_v24  ;;  %v9756_v28 = vld [vmem:[%s10702_s29 + $0x20c] sm:$0xf0] }
  0xf8   : > { %3097 = vmatmul.bf16.vlgmr.msrb.gmra.mxu2 %v8294_v29 }
  0xf9   : > { %3125 = vmatmul.bf16.vlgmr.msrb.gmra.mxu3 %v8298_v30  ;;  %v9916_v30 = vld [vmem:[%s14153_s2 + $0x4d0] sm:$0xff] }
  0xfa   : > { %3230 = vmatpush.bf16.msra.mxu3 %v9920_v45 }
  0xfb   : > { %v2874_v36 = vpop.f32.mrf.mxu2  ;;  %v2820_v43 = vpop.f32.mrf.mxu0  ;;  %3207 = vmatpush.bf16.msra.mxu2 %v9907_v33  ;;  %v9698_v33 = vld [vmem:[%s10702_s29 + $0x44] sm:$0xf] }
  0xfc   : > { %v2902_v37 = vpop.f32.mrf.mxu3  ;;  %v2875_v42 = vadd.f32 %v2874_v36, %v2847_v32  ;;  %v2848_v44 = vpop.f32.mrf.mxu1  ;;  %v2821_v46 = vadd.f32 %v2820_v43, %v11041_v57  ;;  %v9903_v57 = vld [vmem:[%s14153_s2 + $0x468] sm:$0xff]  ;;  %v9744_v36 = vld [vmem:[%s10702_s29 + $0x1b4] sm:$0xf] }
  0xfd   : > { %3175 = vmatpush.bf16.msra.mxu1 %v9903_v57  ;;  %v9891_v32 = vld [vmem:[%s14153_s2 + $0x408] sm:$0xff] }
  0xfe   : > { %v11157_v47 = vadd.f32 %v2902_v37, %v2875_v42  ;;  %v2849_v52 = vadd.f32 %v2848_v44, %v2821_v46  ;;  %3231 = vmatpush.bf16.msra.mxu3 %v9919_v58  ;;  %v8479_v37 = vld [vmem:[%s10702_s29 + $0x210] sm:$0xf0]  ;;  %v8487_v42 = vld [vmem:[%s10702_s29 + $0x218] sm:$0xf0]  ;;  %3151 = vmatpush.bf16.msra.mxu0 %v9891_v32  ;;  %v9915_v43 = vld [vmem:[%s14153_s2 + $0x4c8] sm:$0xff]  ;;  %v8478_v46 = vor.u32 %v9756_v28, %v8477_v35 }
  0xff   : > { %v8482_v48 = vor.u32 %v9744_v36, %v8479_v37  ;;  %v8490_v56 = vor.u32 %v9745_v41, %v8487_v42  ;;  %v8309_v35 = vld [vmem:[%s10702_s29 + $0x48] sm:$0xf]  ;;  %v9699_v36 = vld [vmem:[%s10702_s29 + $0x4c] sm:$0xf] }
 0x100   : > { %v9711_v28 = vld [vmem:[%s10702_s29 + $0xa4] sm:$0xf0]  ;;  %v8311_v37 = vld [vmem:[%s10702_s29 + $0xa8] sm:$0xf0] }
 0x101   : > { %3176 = vmatpush.bf16.msra.mxu1 %v9902_v3 }
 0x102   : > { %3232 = vmatpush.bf16.msra.mxu3 %v9918_v14  ;;  %3152 = vmatpush.bf16.msra.mxu0 %v9890_v49 }
 0x103   : > { %v2876_v62 = vpop.f32.mrf.mxu2  ;;  %v2823_v7 = vpop.f32.mrf.mxu0 }
 0x104   : > { %v2904_v63 = vpop.f32.mrf.mxu3  ;;  %v2877_v6 = vadd.f32 %v2876_v62, %v2849_v52  ;;  %v2851_v8 = vpop.f32.mrf.mxu1  ;;  %v2824_v12 = vadd.f32 %v2823_v7, %v11070_v10  ;;  %v9901_v10 = vld [vmem:[%s14153_s2 + $0x458] sm:$0xff]  ;;  %v9906_v52 = vld [vmem:[%s14153_s2 + $0x480] sm:$0xff] }
 0x105   : > { %3177 = vmatpush.bf16.msra.mxu1 %v9901_v10  ;;  %3208 = vmatpush.bf16.msra.mxu2 %v9906_v52  ;;  %v9937_v52 = vld [vmem:[%s14153_s2 + $0x578] sm:$0xff] }
 0x106   : > { %v11192_v15 = vadd.f32 %v2904_v63, %v2877_v6  ;;  %v2852_v16 = vadd.f32 %v2851_v8, %v2824_v12  ;;  %3046 = vmatmul.bf16.gmra.mxu0 %v8382_v0  ;;  %3233 = vmatpush.bf16.msra.mxu3 %v9917_v19  ;;  %v1341_v8 = vunpack.c.l.b16 %v704_v2  ;;  %v1344_v12 = vunpack.c.h.b16 %v705_v4 }
 0x107   : > { %3074 = vmatmul.bf16.gmra.mxu1 %v8386_v1 }
 0x108   : > { %3102 = vmatmul.bf16.gmra.mxu2 %v8390_v9  ;;  %v1342_v9 = vunpack.c.h.b16 %v704_v2  ;;  %v1437_v17 = vpack.c.b16 %v1341_v8, %v1341_v8  ;;  %v1440_v22 = vpack.c.b16 %v1344_v12, %v1344_v12  ;;  %v9734_v2 = vld [vmem:[%s10702_s29 + $0x15c] sm:$0xf0]  ;;  %v9943_v8 = vld [vmem:[%s14153_s2 + $0x5a8] sm:$0xff] }
 0x109   : > { %3130 = vmatmul.bf16.gmra.mxu3 %v8394_v11  ;;  %3178 = vmatpush.bf16.msra.mxu1 %v9900_v23  ;;  %v1343_v11 = vunpack.c.l.b16 %v705_v4  ;;  %v9951_v12 = vld [vmem:[%s14153_s2 + $0x5e8] sm:$0xff] }
 0x10a   : > { %3234 = vmatpush.bf16.msra.mxu3 %v9916_v30  ;;  %v1438_v10 = vpack.c.b16 %v1342_v9, %v1342_v9  ;;  %v8399_v9 = vld [vmem:[%s10702_s29 + $0x160] sm:$0xf0] }
 0x10b   : > { %v2879_v20 = vpop.f32.mrf.mxu2  ;;  %v2825_v26 = vpop.f32.mrf.mxu0 }
 0x10c   : > { %v2907_v21 = vpop.f32.mrf.mxu3  ;;  %v2880_v25 = vadd.f32 %v2879_v20, %v2852_v16  ;;  %v2853_v27 = vpop.f32.mrf.mxu1  ;;  %v2826_v29 = vadd.f32 %v2825_v26, %v11107_v40  ;;  %v9899_v40 = vld [vmem:[%s14153_s2 + $0x448] sm:$0xff] }
 0x10d   : > { %3179 = vmatpush.bf16.msra.mxu1 %v9899_v40  ;;  %v9710_v40 = vld [vmem:[%s10702_s29 + $0x9c] sm:$0xf0] }
 0x10e   : > { %v11219_v31 = vadd.f32 %v2907_v21, %v2880_v25  ;;  %v2854_v34 = vadd.f32 %v2853_v27, %v2826_v29  ;;  %3235 = vmatpush.bf16.msra.mxu3 %v9915_v43  ;;  %v1439_v21 = vpack.c.b16 %v1343_v11, %v1343_v11  ;;  %v8405_v11 = vld [vmem:[%s10702_s29 + $0x108] sm:$0xf] }
 0x111   : > { %3180 = vmatpush.bf16.msra.mxu1 %v9898_v50  ;;  %v9929_v50 = vld [vmem:[%s14153_s2 + $0x538] sm:$0xff] }
 0x112   : > { %3236 = vmatpush.bf16.msra.mxu3 %v9914_v59  ;;  %3257 = vmatpush.bf16.msrb.mxu0 %v9929_v50  ;;  %v9939_v50 = vld [vmem:[%s14153_s2 + $0x588] sm:$0xff] }
 0x113   : > { %v2881_v44 = vpop.f32.mrf.mxu2  ;;  %v2828_v57 = vpop.f32.mrf.mxu0 }
 0x114   : > { %v2909_v45 = vpop.f32.mrf.mxu3  ;;  %v2882_v53 = vadd.f32 %v2881_v44, %v2854_v34  ;;  %v2856_v54 = vpop.f32.mrf.mxu1  ;;  %v2829_v58 = vadd.f32 %v2828_v57, %v11114_v51  ;;  %v8303_v34 = vld [vmem:[%s10702_s29 + $0xa0] sm:$0xf0] }
 0x115   : > { %v8306_v42 = vor.u32 %v9698_v33, %v8303_v34  ;;  %3285 = vmatpush.bf16.msrb.mxu1 %v9937_v52  ;;  %v9925_v34 = vld [vmem:[%s14153_s2 + $0x518] sm:$0xff] }
 0x116   : > { %v11254_v60 = vadd.f32 %v2909_v45, %v2882_v53  ;;  %v2857_v61 = vadd.f32 %v2856_v54, %v2829_v58  ;;  %3051 = vmatmul.bf16.gmra.mxu0 %v8478_v46  ;;  %v8310_v45 = vor.u32 %v9711_v28, %v8309_v35  ;;  %v8314_v46 = vor.u32 %v9699_v36, %v8311_v37  ;;  %v9945_v53 = vld [vmem:[%s14153_s2 + $0x5b8] sm:$0xff]  ;;  %v9944_v58 = vld [vmem:[%s14153_s2 + $0x5b0] sm:$0xff] }
 0x117   : > { %3079 = vmatmul.bf16.gmra.mxu1 %v8482_v48  ;;  %3313 = vmatpush.bf16.msrb.mxu2 %v9945_v53  ;;  %v9941_v35 = vld [vmem:[%s14153_s2 + $0x598] sm:$0xff]  ;;  %v8493_v53 = vld [vmem:[%s10702_s29 + $0x1c0] sm:$0xf] }
 0x118   : > { %3107 = vmatmul.bf16.gmra.mxu2 %v8486_v55  ;;  %v9928_v55 = vld [vmem:[%s14153_s2 + $0x530] sm:$0xff]  ;;  %v9949_v28 = vld [vmem:[%s14153_s2 + $0x5d8] sm:$0xff] }
 0x119   : > { %3135 = vmatmul.bf16.gmra.mxu3 %v8490_v56  ;;  %v9936_v56 = vld [vmem:[%s14153_s2 + $0x570] sm:$0xff]  ;;  %3258 = vmatpush.bf16.msrb.mxu0 %v9928_v55  ;;  %v8501_v55 = vld [vmem:[%s10702_s29 + $0x1c8] sm:$0xf] }
 0x11a   : > { %3286 = vmatpush.bf16.msrb.mxu1 %v9936_v56  ;;  %v9759_v56 = vld [vmem:[%s10702_s29 + $0x224] sm:$0xf0] }
 0x11b   : > { %v2884_v62 = vpop.f32.mrf.mxu2  ;;  %v2830_v0 = vpop.f32.mrf.mxu0  ;;  %3314 = vmatpush.bf16.msrb.mxu2 %v9944_v58  ;;  %v9747_v58 = vld [vmem:[%s10702_s29 + $0x1cc] sm:$0xf] }
 0x11c   : > { %v2912_v51 = vpop.f32.mrf.mxu3  ;;  %v2885_v63 = vadd.f32 %v2884_v62, %v2857_v61  ;;  %v2858_v1 = vpop.f32.mrf.mxu1  ;;  %v2831_v3 = vadd.f32 %v2830_v0, %v11119_v5 }
 0x11e   : > { %v11259_v6 = vadd.f32 %v2912_v51, %v2885_v63  ;;  %v2859_v7 = vadd.f32 %v2858_v1, %v2831_v3  ;;  %v9952_v51 = vld [vmem:[%s14153_s2 + $0x5f0] sm:$0xff]  ;;  %v8397_v1 = vld [vmem:[%s10702_s29 + $0x100] sm:$0xf]  ;;  %v9722_v3 = vld [vmem:[%s10702_s29 + $0x104] sm:$0xf] }
 0x11f   : > { %3315 = vmatpush.bf16.msrb.mxu2 %v9943_v8 }
 0x123   : > { %v2886_v14 = vpop.f32.mrf.mxu2  ;;  %v2833_v19 = vpop.f32.mrf.mxu0 }
 0x124   : > { %v2914_v16 = vpop.f32.mrf.mxu3  ;;  %v2887_v18 = vadd.f32 %v2886_v14, %v2859_v7  ;;  %v2861_v20 = vpop.f32.mrf.mxu1  ;;  %v2834_v5 = vadd.f32 %v2833_v19, %v11121_v13  ;;  %v8301_v13 = vld [vmem:[%s10702_s29 + $0x40] sm:$0xf]  ;;  %v9927_v7 = vld [vmem:[%s14153_s2 + $0x528] sm:$0xff]  ;;  %v8398_v19 = vor.u32 %v9734_v2, %v8397_v1 }
 0x125   : > { %v8302_v41 = vor.u32 %v9710_v40, %v8301_v13  ;;  %v9735_v14 = vld [vmem:[%s10702_s29 + $0x164] sm:$0xf0]  ;;  %3259 = vmatpush.bf16.msrb.mxu0 %v9927_v7  ;;  %v9950_v13 = vld [vmem:[%s14153_s2 + $0x5e0] sm:$0xff] }
 0x126   : > { %v11262_v23 = vadd.f32 %v2914_v16, %v2887_v18  ;;  %v2862_v24 = vadd.f32 %v2861_v20, %v2834_v5  ;;  %3056 = vmatmul.bf16.gmra.mxu0 %v1437_v17  ;;  %v9723_v16 = vld [vmem:[%s10702_s29 + $0x10c] sm:$0xf]  ;;  %v8402_v20 = vor.u32 %v9722_v3, %v8399_v9  ;;  %v9942_v5 = vld [vmem:[%s14153_s2 + $0x5a0] sm:$0xff]  ;;  %v8502_v9 = vor.u32 %v9759_v56, %v8501_v55 }
 0x127   : > { %3084 = vmatmul.bf16.gmra.mxu1 %v1438_v10  ;;  %v8407_v17 = vld [vmem:[%s10702_s29 + $0x168] sm:$0xf0]  ;;  %3316 = vmatpush.bf16.msrb.mxu2 %v9942_v5  ;;  %v9922_v2 = vld [vmem:[%s14153_s2 + $0x500] sm:$0xff] }
 0x128   : > { %3112 = vmatmul.bf16.gmra.mxu2 %v1439_v21  ;;  %v9926_v21 = vld [vmem:[%s14153_s2 + $0x520] sm:$0xff]  ;;  %v707_v5 = vld [vmem:[%s10702_s29 + $0x288] sm:$0x11] }
 0x129   : > { %3140 = vmatmul.bf16.gmra.mxu3 %v1440_v22  ;;  %v9934_v22 = vld [vmem:[%s14153_s2 + $0x560] sm:$0xff]  ;;  %3260 = vmatpush.bf16.msrb.mxu0 %v9926_v21 }
 0x12a   : > { %v9930_v3 = vld [vmem:[%s14153_s2 + $0x540] sm:$0xff] }
 0x12b   : > { %v2889_v25 = vpop.f32.mrf.mxu2  ;;  %v2835_v29 = vpop.f32.mrf.mxu0  ;;  %3317 = vmatpush.bf16.msrb.mxu2 %v9941_v35  ;;  %v706_v21 = vld [vmem:[%s10702_s29 + $0x280] sm:$0x11] }
 0x12c   : > { %v2917_v26 = vpop.f32.mrf.mxu3  ;;  %v2890_v27 = vadd.f32 %v2889_v25, %v2862_v24  ;;  %v2863_v30 = vpop.f32.mrf.mxu1  ;;  %v8410_v29 = vor.u32 %v9723_v16, %v8407_v17 }
 0x12d   : > { %3261 = vmatpush.bf16.msrb.mxu0 %v9925_v34 }
 0x12e   : > { %v11264_v32 = vadd.f32 %v2917_v26, %v2890_v27  ;;  %v8406_v27 = vor.u32 %v9735_v14, %v8405_v11  ;;  %v9946_v14 = vld [vmem:[%s14153_s2 + $0x5c0] sm:$0xff] }
 0x133   : > { %v2891_v38 = vpop.f32.mrf.mxu2  ;;  %v2930_v43 = vpop.f32.mrf.mxu0 }
 0x134   : > { %v2919_v39 = vpop.f32.mrf.mxu3  ;;  %v2958_v44 = vpop.f32.mrf.mxu1  ;;  %v2931_v48 = vadd.f32 %v2930_v43, %v11157_v47  ;;  %v9953_v47 = vld [vmem:[%s14153_s2 + $0x5f8] sm:$0xff]  ;;  %v9924_v38 = vld [vmem:[%s14153_s2 + $0x510] sm:$0xff] }
 0x135   : > { %3341 = vmatpush.bf16.msrb.mxu3 %v9953_v47  ;;  %v9932_v39 = vld [vmem:[%s14153_s2 + $0x550] sm:$0xff]  ;;  %3262 = vmatpush.bf16.msrb.mxu0 %v9924_v38  ;;  %v9758_v47 = vld [vmem:[%s10702_s29 + $0x21c] sm:$0xf0] }
 0x136   : > { %v2959_v49 = vadd.f32 %v2958_v44, %v2931_v48  ;;  %3153 = vmatmul.bf16.vlgmr.msra.gmra.mxu0 %v8302_v41  ;;  %v9940_v41 = vld [vmem:[%s14153_s2 + $0x590] sm:$0xff] }
 0x137   : > { %3181 = vmatmul.bf16.vlgmr.msra.gmra.mxu1 %v8306_v42  ;;  %3318 = vmatpush.bf16.msrb.mxu2 %v9940_v41 }
 0x138   : > { %3209 = vmatmul.bf16.vlgmr.msra.gmra.mxu2 %v8310_v45 }
 0x139   : > { %3237 = vmatmul.bf16.vlgmr.msra.gmra.mxu3 %v8314_v46  ;;  %v9948_v46 = vld [vmem:[%s14153_s2 + $0x5d0] sm:$0xff] }
 0x13a   : > { %3342 = vmatpush.bf16.msrb.mxu3 %v9952_v51 }
 0x13b   : > { %v2986_v57 = vpop.f32.mrf.mxu2  ;;  %v2932_v61 = vpop.f32.mrf.mxu0  ;;  %3319 = vmatpush.bf16.msrb.mxu2 %v9939_v50  ;;  %v9700_v50 = vld [vmem:[%s10702_s29 + $0x54] sm:$0xf] }
 0x13c   : > { %v3014_v54 = vpop.f32.mrf.mxu3  ;;  %v2987_v59 = vadd.f32 %v2986_v57, %v2959_v49  ;;  %v2960_v62 = vpop.f32.mrf.mxu1  ;;  %v2933_v63 = vadd.f32 %v2932_v61, %v11192_v15  ;;  %v9935_v15 = vld [vmem:[%s14153_s2 + $0x568] sm:$0xff]  ;;  %v9746_v57 = vld [vmem:[%s10702_s29 + $0x1c4] sm:$0xf] }
 0x13d   : > { %3287 = vmatpush.bf16.msrb.mxu1 %v9935_v15  ;;  %v9923_v49 = vld [vmem:[%s14153_s2 + $0x508] sm:$0xff] }
 0x13e   : > { %v11300_v0 = vadd.f32 %v3014_v54, %v2987_v59  ;;  %v2961_v4 = vadd.f32 %v2960_v62, %v2933_v63  ;;  %3343 = vmatpush.bf16.msrb.mxu3 %v9951_v12  ;;  %v8495_v54 = vld [vmem:[%s10702_s29 + $0x220] sm:$0xf0]  ;;  %v8503_v59 = vld [vmem:[%s10702_s29 + $0x228] sm:$0xf0]  ;;  %3263 = vmatpush.bf16.msrb.mxu0 %v9923_v49  ;;  %v8494_v63 = vor.u32 %v9758_v47, %v8493_v53  ;;  %v8325_v53 = vld [vmem:[%s10702_s29 + $0x58] sm:$0xf] }
 0x13f   : > { %v9947_v61 = vld [vmem:[%s14153_s2 + $0x5c8] sm:$0xff]  ;;  %v8498_v1 = vor.u32 %v9746_v57, %v8495_v54  ;;  %v8506_v11 = vor.u32 %v9747_v58, %v8503_v59  ;;  %v9713_v47 = vld [vmem:[%s10702_s29 + $0xb4] sm:$0xf0]  ;;  %v9701_v57 = vld [vmem:[%s10702_s29 + $0x5c] sm:$0xf] }
 0x140   : > { %v8327_v54 = vld [vmem:[%s10702_s29 + $0xb8] sm:$0xf0] }
 0x141   : > { %3288 = vmatpush.bf16.msrb.mxu1 %v9934_v22 }
 0x142   : > { %3344 = vmatpush.bf16.msrb.mxu3 %v9950_v13  ;;  %3264 = vmatpush.bf16.msrb.mxu0 %v9922_v2 }
 0x143   : > { %v2988_v10 = vpop.f32.mrf.mxu2  ;;  %v2935_v25 = vpop.f32.mrf.mxu0 }
 0x144   : > { %v3016_v18 = vpop.f32.mrf.mxu3  ;;  %v2989_v24 = vadd.f32 %v2988_v10, %v2961_v4  ;;  %v2963_v26 = vpop.f32.mrf.mxu1  ;;  %v2936_v30 = vadd.f32 %v2935_v25, %v11219_v31  ;;  %v9933_v31 = vld [vmem:[%s14153_s2 + $0x558] sm:$0xff]  ;;  %v9938_v4 = vld [vmem:[%s14153_s2 + $0x580] sm:$0xff] }
 0x145   : > { %3289 = vmatpush.bf16.msrb.mxu1 %v9933_v31  ;;  %3320 = vmatpush.bf16.msrb.mxu2 %v9938_v4 }
 0x146   : > { %v11335_v40 = vadd.f32 %v3016_v18, %v2989_v24  ;;  %v2964_v33 = vadd.f32 %v2963_v26, %v2936_v30  ;;  %3158 = vmatmul.bf16.gmra.mxu0 %v8398_v19  ;;  %3345 = vmatpush.bf16.msrb.mxu3 %v9949_v28  ;;  %v1345_v26 = vunpack.c.l.b16 %v706_v21  ;;  %v1348_v30 = vunpack.c.h.b16 %v707_v5 }
 0x147   : > { %3186 = vmatmul.bf16.gmra.mxu1 %v8402_v20 }
 0x148   : > { %3214 = vmatmul.bf16.gmra.mxu2 %v8406_v27  ;;  %v1346_v27 = vunpack.c.h.b16 %v706_v21  ;;  %v1441_v34 = vpack.c.b16 %v1345_v26, %v1345_v26  ;;  %v1444_v38 = vpack.c.b16 %v1348_v30, %v1348_v30  ;;  %v8509_v30 = vld [vmem:[%s10702_s29 + $0x1d0] sm:$0xf] }
 0x149   : > { %3242 = vmatmul.bf16.gmra.mxu3 %v8410_v29  ;;  %3290 = vmatpush.bf16.msrb.mxu1 %v9932_v39  ;;  %v1347_v29 = vunpack.c.l.b16 %v707_v5 }
 0x14a   : > { %3346 = vmatpush.bf16.msrb.mxu3 %v9948_v46  ;;  %v1442_v31 = vpack.c.b16 %v1346_v27, %v1346_v27 }
 0x14b   : > { %v2991_v36 = vpop.f32.mrf.mxu2  ;;  %v2937_v43 = vpop.f32.mrf.mxu0 }
 0x14c   : > { %v3019_v37 = vpop.f32.mrf.mxu3  ;;  %v2992_v42 = vadd.f32 %v2991_v36, %v2964_v33  ;;  %v2965_v44 = vpop.f32.mrf.mxu1  ;;  %v2938_v45 = vadd.f32 %v2937_v43, %v11254_v60  ;;  %v9931_v60 = vld [vmem:[%s14153_s2 + $0x548] sm:$0xff] }
 0x14d   : > { %3291 = vmatpush.bf16.msrb.mxu1 %v9931_v60  ;;  %v9712_v60 = vld [vmem:[%s10702_s29 + $0xac] sm:$0xf0] }
 0x14e   : > { %v11362_v48 = vadd.f32 %v3019_v37, %v2992_v42  ;;  %v2966_v52 = vadd.f32 %v2965_v44, %v2938_v45  ;;  %3347 = vmatpush.bf16.msrb.mxu3 %v9947_v61  ;;  %v1443_v37 = vpack.c.b16 %v1347_v29, %v1347_v29 }
 0x151   : > { %3292 = vmatpush.bf16.msrb.mxu1 %v9930_v3 }
 0x152   : > { %3348 = vmatpush.bf16.msrb.mxu3 %v9946_v14  ;;  %v9725_v14 = vld [vmem:[%s10702_s29 + $0x11c] sm:$0xf] }
 0x153   : > { %v2993_v62 = vpop.f32.mrf.mxu2  ;;  %v2940_v15 = vpop.f32.mrf.mxu0 }
 0x154   : > { %v3021_v51 = vpop.f32.mrf.mxu3  ;;  %v2994_v7 = vadd.f32 %v2993_v62, %v2966_v52  ;;  %v2968_v8 = vpop.f32.mrf.mxu1  ;;  %v2941_v12 = vadd.f32 %v2940_v15, %v11259_v6  ;;  %v8319_v52 = vld [vmem:[%s10702_s29 + $0xb0] sm:$0xf0]  ;;  %v9736_v15 = vld [vmem:[%s10702_s29 + $0x16c] sm:$0xf0] }
 0x155   : > { %v8322_v59 = vor.u32 %v9700_v50, %v8319_v52  ;;  %v708_v52 = vld [vmem:[%s10702_s29 + $0x290] sm:$0x11] }
 0x156   : > { %v11397_v16 = vadd.f32 %v3021_v51, %v2994_v7  ;;  %v2969_v17 = vadd.f32 %v2968_v8, %v2941_v12  ;;  %3163 = vmatmul.bf16.gmra.mxu0 %v8494_v63  ;;  %v8326_v51 = vor.u32 %v9713_v47, %v8325_v53  ;;  %v8330_v63 = vor.u32 %v9701_v57, %v8327_v54  ;;  %v8413_v7 = vld [vmem:[%s10702_s29 + $0x110] sm:$0xf]  ;;  %v9724_v8 = vld [vmem:[%s10702_s29 + $0x114] sm:$0xf]  ;;  %v9737_v12 = vld [vmem:[%s10702_s29 + $0x174] sm:$0xf0] }
 0x157   : > { %3191 = vmatmul.bf16.gmra.mxu1 %v8498_v1  ;;  %v709_v53 = vld [vmem:[%s10702_s29 + $0x298] sm:$0x11]  ;;  %v1349_v47 = vunpack.c.l.b16 %v708_v52  ;;  %v1350_v57 = vunpack.c.h.b16 %v708_v52 }
 0x158   : > { %3219 = vmatmul.bf16.gmra.mxu2 %v8502_v9  ;;  %v8415_v9 = vld [vmem:[%s10702_s29 + $0x170] sm:$0xf0]  ;;  %v1351_v54 = vunpack.c.l.b16 %v709_v53 }
 0x159   : > { %3247 = vmatmul.bf16.gmra.mxu3 %v8506_v11  ;;  %v8421_v11 = vld [vmem:[%s10702_s29 + $0x118] sm:$0xf] }
 0x15b   : > { %v2996_v10 = vpop.f32.mrf.mxu2  ;;  %v2942_v19 = vpop.f32.mrf.mxu0 }
 0x15c   : > { %v3024_v6 = vpop.f32.mrf.mxu3  ;;  %v2997_v18 = vadd.f32 %v2996_v10, %v2969_v17  ;;  %v2970_v20 = vpop.f32.mrf.mxu1  ;;  %v2943_v22 = vadd.f32 %v2942_v19, %v11262_v23  ;;  %v8423_v17 = vld [vmem:[%s10702_s29 + $0x178] sm:$0xf0]  ;;  %v8418_v19 = vor.u32 %v9724_v8, %v8415_v9 }
 0x15d   : > { %v8426_v5 = vor.u32 %v9725_v14, %v8423_v17 }
 0x15e   : > { %v11402_v24 = vadd.f32 %v3024_v6, %v2997_v18  ;;  %v2971_v25 = vadd.f32 %v2970_v20, %v2943_v22  ;;  %v8414_v18 = vor.u32 %v9736_v15, %v8413_v7  ;;  %v8422_v22 = vor.u32 %v9737_v12, %v8421_v11 }
 0x15f   : > { %v1447_v15 = vpack.c.b16 %v1351_v54, %v1351_v54 }
 0x163   : > { %v2998_v13 = vpop.f32.mrf.mxu2  ;;  %v2945_v28 = vpop.f32.mrf.mxu0 }
 0x164   : > { %v3026_v33 = vpop.f32.mrf.mxu3  ;;  %v2999_v35 = vadd.f32 %v2998_v13, %v2971_v25  ;;  %v2973_v36 = vpop.f32.mrf.mxu1  ;;  %v2946_v23 = vadd.f32 %v2945_v28, %v11264_v32  ;;  %v8317_v32 = vld [vmem:[%s10702_s29 + $0x50] sm:$0xf]  ;;  %v9749_v28 = vld [vmem:[%s10702_s29 + $0x1dc] sm:$0xf] }
 0x165   : > { %v8318_v58 = vor.u32 %v9712_v60, %v8317_v32  ;;  %v9760_v13 = vld [vmem:[%s10702_s29 + $0x22c] sm:$0xf0] }
 0x166   : > { %v11405_v39 = vadd.f32 %v3026_v33, %v2999_v35  ;;  %v2974_v41 = vadd.f32 %v2973_v36, %v2946_v23  ;;  %3168 = vmatmul.bf16.gmra.mxu0 %v1441_v34  ;;  %v9748_v33 = vld [vmem:[%s10702_s29 + $0x1d4] sm:$0xf]  ;;  %v9761_v35 = vld [vmem:[%s10702_s29 + $0x234] sm:$0xf0]  ;;  %v8519_v36 = vld [vmem:[%s10702_s29 + $0x238] sm:$0xf0]  ;;  %v8510_v23 = vor.u32 %v9760_v13, %v8509_v30 }
 0x167   : > { %3196 = vmatmul.bf16.gmra.mxu1 %v1442_v31  ;;  %v8511_v34 = vld [vmem:[%s10702_s29 + $0x230] sm:$0xf0]  ;;  %v8517_v31 = vld [vmem:[%s10702_s29 + $0x1d8] sm:$0xf]  ;;  %s10494_s29 = smov 64  }
 0x168   : > { %3224 = vmatmul.bf16.gmra.mxu2 %v1443_v37 }
 0x169   : > { %3252 = vmatmul.bf16.gmra.mxu3 %v1444_v38 }
 0x16b   : > { %v3001_v42 = vpop.f32.mrf.mxu2  ;;  %v2947_v45 = vpop.f32.mrf.mxu0 }
 0x16c   : > { %v3029_v43 = vpop.f32.mrf.mxu3  ;;  %v3002_v44 = vadd.f32 %v3001_v42, %v2974_v41  ;;  %v2975_v46 = vpop.f32.mrf.mxu1  ;;  %v8514_v41 = vor.u32 %v9748_v33, %v8511_v34  ;;  %v8522_v45 = vor.u32 %v9749_v28, %v8519_v36 }
 0x16e   : > { %v11407_v49 = vadd.f32 %v3029_v43, %v3002_v44  ;;  %v8518_v44 = vor.u32 %v9761_v35, %v8517_v31 }
 0x173   : > { %v3003_v55 = vpop.f32.mrf.mxu2  ;;  %v11417_v61 = vpop.f32.mrf.mxu0 }
 0x174   : > { %v3031_v56 = vpop.f32.mrf.mxu3  ;;  %v11419_v62 = vpop.f32.mrf.mxu1  ;;  %v1352_v55 = vunpack.c.h.b16 %v709_v53 }
 0x176   : > { %3265 = vmatmul.bf16.vlgmr.msrb.gmra.mxu0 %v8318_v58  ;;  %v1448_v8 = vpack.c.b16 %v1352_v55, %v1352_v55 }
 0x177   : > { %3293 = vmatmul.bf16.vlgmr.msrb.gmra.mxu1 %v8322_v59  ;;  %v1445_v59 = vpack.c.b16 %v1349_v47, %v1349_v47 }
 0x178   : > { %3321 = vmatmul.bf16.vlgmr.msrb.gmra.mxu2 %v8326_v51  ;;  %v1446_v51 = vpack.c.b16 %v1350_v57, %v1350_v57 }
 0x179   : > { %3349 = vmatmul.bf16.vlgmr.msrb.gmra.mxu3 %v8330_v63 }
 0x17b   : > { %v11421_v1 = vpop.f32.mrf.mxu2  ;;  %v11425_v3 = vpop.f32.mrf.mxu0 }
 0x17c   : > { %v11423_v2 = vpop.f32.mrf.mxu3  ;;  %v11427_v4 = vpop.f32.mrf.mxu1 }
 0x183   : > { %v11437_v10 = vpop.f32.mrf.mxu2  ;;  %v11441_v20 = vpop.f32.mrf.mxu0 }
 0x184   : > { %v11439_v6 = vpop.f32.mrf.mxu3  ;;  %v11443_v21 = vpop.f32.mrf.mxu1 }
 0x186   : > { %3270 = vmatmul.bf16.gmra.mxu0 %v8414_v18 }
 0x187   : > { %3298 = vmatmul.bf16.gmra.mxu1 %v8418_v19 }
 0x188   : > { %3326 = vmatmul.bf16.gmra.mxu2 %v8422_v22 }
 0x189   : > { %3354 = vmatmul.bf16.gmra.mxu3 %v8426_v5 }
 0x18b   : > { %v11445_v25 = vpop.f32.mrf.mxu2  ;;  %v11449_v27 = vpop.f32.mrf.mxu0 }
 0x18c   : > { %v11447_v26 = vpop.f32.mrf.mxu3  ;;  %v11451_v29 = vpop.f32.mrf.mxu1 }
 0x193   : > { %v11461_v37 = vpop.f32.mrf.mxu2  ;;  %v11465_v42 = vpop.f32.mrf.mxu0 }
 0x194   : > { %v11463_v38 = vpop.f32.mrf.mxu3  ;;  %v11467_v43 = vpop.f32.mrf.mxu1 }
 0x196   : > { %3275 = vmatmul.bf16.gmra.mxu0 %v8510_v23 }
 0x197   : > { %3303 = vmatmul.bf16.gmra.mxu1 %v8514_v41 }
 0x198   : > { %3331 = vmatmul.bf16.gmra.mxu2 %v8518_v44 }
 0x199   : > { %3359 = vmatmul.bf16.gmra.mxu3 %v8522_v45 }
 0x19b   : > { %v11469_v46 = vpop.f32.mrf.mxu2  ;;  %v11473_v60 = vpop.f32.mrf.mxu0 }
 0x19c   : > { %v11471_v32 = vpop.f32.mrf.mxu3  ;;  %v11475_v50 = vpop.f32.mrf.mxu1 }
 0x1a3   : > { %v11479_v56 = vpop.f32.mrf.mxu2  ;;  %v11483_v63 = vpop.f32.mrf.mxu0 }
 0x1a4   : > { %v11481_v58 = vpop.f32.mrf.mxu3  ;;  %v11485_v7 = vpop.f32.mrf.mxu1 }
 0x1a6   : > { %3280 = vmatmul.bf16.gmra.mxu0 %v1445_v59 }
 0x1a7   : > { %3308 = vmatmul.bf16.gmra.mxu1 %v1446_v51  ;;  %v3043_v51 = vadd.f32 %v11417_v61, %v11300_v0 }
 0x1a8   : > { %3336 = vmatmul.bf16.gmra.mxu2 %v1447_v15 }
 0x1a9   : > { %3364 = vmatmul.bf16.gmra.mxu3 %v1448_v8  ;;  %v3071_v15 = vadd.f32 %v11419_v62, %v3043_v51 }
 0x1ab   : > { %v11487_v9 = vpop.f32.mrf.mxu2  ;;  %v3059_v12 = vpop.f32.mrf.mxu0 }
 0x1ac   : > { %v11489_v11 = vpop.f32.mrf.mxu3  ;;  %v3087_v14 = vpop.f32.mrf.mxu1 }
 0x1ad   : > { %14156 = vst [vmem:[#allocation2_spill] sm:$0xff] %v11489_v11  ;;  %v3099_v14 = vadd.f32 %v11421_v1, %v3071_v15  ;;  %v3045_v11 = vadd.f32 %v11425_v3, %v11335_v40  ;;  %v3048_v15 = vadd.f32 %v11441_v20, %v11362_v48 }
 0x1b3   : > { %v3115_v17 = vpop.f32.mrf.mxu2  ;;  %v3154_v19 = vpop.f32.mrf.mxu0 }
 0x1b4   : > { %v3143_v18 = vpop.f32.mrf.mxu3  ;;  %v3182_v22 = vpop.f32.mrf.mxu1 }
 0x1bb   : > { %v3210_v5 = vpop.f32.mrf.mxu2  ;;  %v3156_v13 = vpop.f32.mrf.mxu0 }
 0x1bc   : > { %v3238_v30 = vpop.f32.mrf.mxu3  ;;  %v3184_v33 = vpop.f32.mrf.mxu1 }
 0x1c3   : > { %v3212_v34 = vpop.f32.mrf.mxu2  ;;  %v3159_v35 = vpop.f32.mrf.mxu0 }
 0x1c4   : > { %v3240_v31 = vpop.f32.mrf.mxu3  ;;  %v3187_v28 = vpop.f32.mrf.mxu1 }
 0x1cb   : > { %v3215_v36 = vpop.f32.mrf.mxu2  ;;  %v11493_v41 = vpop.f32.mrf.mxu0 }
 0x1cc   : > { %v11491_v23 = vpop.f32.mrf.mxu3  ;;  %v11495_v44 = vpop.f32.mrf.mxu1 }
 0x1d3   : > { %v11497_v45 = vpop.f32.mrf.mxu2  ;;  %v11501_v53 = vpop.f32.mrf.mxu0 }
 0x1d4   : > { %v11499_v52 = vpop.f32.mrf.mxu3  ;;  %v11503_v47 = vpop.f32.mrf.mxu1 }
 0x1db   : > { %v11505_v57 = vpop.f32.mrf.mxu2  ;;  %v11509_v55 = vpop.f32.mrf.mxu0 }
 0x1dc   : > { %v11507_v54 = vpop.f32.mrf.mxu3  ;;  %v11511_v59 = vpop.f32.mrf.mxu1 }
 0x1dd   : > { %14157 = vst [vmem:[#allocation3_spill] sm:$0xff] %v11507_v54  ;;  %v3073_v54 = vadd.f32 %v11427_v4, %v3045_v11 }
 0x1de   : > { %14158 = vst [vmem:[#allocation4_spill] sm:$0xff] %v11511_v59  ;;  %v3127_v59 = vadd.f32 %v11423_v2, %v3099_v14  ;;  %v3076_v2 = vadd.f32 %v11443_v21, %v3048_v15 }
 0x1df   : > { %v3101_v51 = vadd.f32 %v11437_v10, %v3073_v54  ;;  %v3050_v10 = vadd.f32 %v11449_v27, %v11397_v16  ;;  %v3053_v16 = vadd.f32 %v11465_v42, %v11402_v24 }
 0x1e0   : > { %v3155_v0 = vadd.f32 %v3154_v19, %v3127_v59  ;;  %v3104_v19 = vadd.f32 %v11445_v25, %v3076_v2 }
 0x1e2   : > { %v3132_v48 = vadd.f32 %v11447_v26, %v3104_v19 }
 0x1e3   : > { %v11516_v8 = vpop.f32.mrf.mxu2  ;;  %v11521_v17 = vpop.f32.mrf.mxu0 }
 0x1e4   : > { %v11518_v12 = vpop.f32.mrf.mxu3  ;;  %14160 = vst [vmem:[#allocation6_spill] sm:$0xff] %v11521_v17  ;;  %v11523_v18 = vpop.f32.mrf.mxu1  ;;  %v3129_v17 = vadd.f32 %v11439_v6, %v3101_v51  ;;  %v3078_v6 = vadd.f32 %v11451_v29, %v3050_v10 }
 0x1e5   : > { %14159 = vst [vmem:[#allocation5_spill] sm:$0xff] %v11518_v12 }
 0x1e6   : > { %14161 = vst [vmem:[#allocation7_spill] sm:$0xff] %v11523_v18  ;;  %v3183_v18 = vadd.f32 %v3182_v22, %v3155_v0  ;;  %v3157_v3 = vadd.f32 %v3156_v13, %v3129_v17  ;;  %v3160_v22 = vadd.f32 %v3159_v35, %v3132_v48  ;;  %v3106_v17 = vadd.f32 %v11461_v37, %v3078_v6 }
 0x1e7   : > { %v3081_v37 = vadd.f32 %v11467_v43, %v3053_v16 }
 0x1e8   : > { %v3211_v40 = vadd.f32 %v3210_v5, %v3183_v18  ;;  %v3185_v54 = vadd.f32 %v3184_v33, %v3157_v3  ;;  %v3188_v27 = vadd.f32 %v3187_v28, %v3160_v22  ;;  %v3134_v29 = vadd.f32 %v11463_v38, %v3106_v17 }
 0x1e9   : > { %v3109_v24 = vadd.f32 %v11469_v46, %v3081_v37  ;;  %v3055_v38 = vadd.f32 %v11473_v60, %v11405_v39 }
 0x1ea   : > { %v3239_v59 = vadd.f32 %v3238_v30, %v3211_v40  ;;  %v3213_v20 = vadd.f32 %v3212_v34, %v3185_v54  ;;  %v3216_v34 = vadd.f32 %v3215_v36, %v3188_v27 }
 0x1eb   : > { %v11529_v61 = vpop.f32.mrf.mxu2  ;;  %v3171_v12 = vpop.f32.mrf.mxu0 }
 0x1ec   : > { %v11531_v62 = vpop.f32.mrf.mxu3  ;;  %v3199_v1 = vpop.f32.mrf.mxu1  ;;  %v3241_v25 = vadd.f32 %v3240_v31, %v3213_v20  ;;  %v3162_v31 = vadd.f32 %v11493_v41, %v3134_v29  ;;  %v3244_v42 = vadd.f32 %v11491_v23, %v3216_v34  ;;  %v3137_v41 = vadd.f32 %v11471_v32, %v3109_v24  ;;  %v14167_v29 = vld [vmem:[#allocation5_spill] sm:$0xff] }
 0x1ed   : > { %14162 = vst [vmem:[#allocation8_spill] sm:$0xff] %v11531_v62  ;;  %v3083_v23 = vadd.f32 %v11475_v50, %v3055_v38 }
 0x1ee   : > { %v3190_v36 = vadd.f32 %v11495_v44, %v3162_v31 }
 0x1ef   : > { %v3111_v60 = vadd.f32 %v11479_v56, %v3083_v23 }
 0x1f0   : > { %v3218_v3 = vadd.f32 %v11497_v45, %v3190_v36  ;;  %v3058_v45 = vadd.f32 %v11483_v63, %v11407_v49 }
 0x1f1   : > { %v3139_v50 = vadd.f32 %v11481_v58, %v3111_v60 }
 0x1f2   : > { %v3246_v44 = vadd.f32 %v11499_v52, %v3218_v3  ;;  %v3086_v52 = vadd.f32 %v11485_v7, %v3058_v45 }
 0x1f3   : > { %v3227_v4 = vpop.f32.mrf.mxu2  ;;  %v3266_v14 = vpop.f32.mrf.mxu0  ;;  %v3167_v48 = vadd.f32 %v11509_v55, %v3139_v50 }
 0x1f4   : > { %v3255_v11 = vpop.f32.mrf.mxu3  ;;  %v3294_v62 = vpop.f32.mrf.mxu1  ;;  %v3267_v12 = vadd.f32 %v3266_v14, %v3239_v59  ;;  %v3165_v4 = vadd.f32 %v11501_v53, %v3137_v41  ;;  %v3114_v63 = vadd.f32 %v11487_v9, %v3086_v52  ;;  %v14169_v38 = vld [vmem:[#allocation8_spill] sm:$0xff] }
 0x1f6   : > { %v3295_v21 = vadd.f32 %v3294_v62, %v3267_v12  ;;  %v3193_v10 = vadd.f32 %v11503_v47, %v3165_v4  ;;  %v14163_v47 = vld [vmem:[#allocation3_spill] sm:$0xff] }
 0x1f8   : > { %v3221_v53 = vadd.f32 %v11505_v57, %v3193_v10  ;;  %v10493_v10 = vmov 64.0  }
 0x1f9   : > { %10075 = vrcp.f32 %v10493_v10 }
 0x1fa   : > { %v3249_v22 = vadd.f32 %v14163_v47, %v3221_v53 }
 0x1fb   : > { %v3322_v5 = vpop.f32.mrf.mxu2  ;;  %v3268_v18 = vpop.f32.mrf.mxu0 }
 0x1fc   : > { %v3350_v13 = vpop.f32.mrf.mxu3  ;;  %v3323_v30 = vadd.f32 %v3322_v5, %v3295_v21  ;;  %v3296_v0 = vpop.f32.mrf.mxu1  ;;  %v3269_v33 = vadd.f32 %v3268_v18, %v3241_v25 }
 0x1fe   : > { %v11546_v26 = vadd.f32 %v3350_v13, %v3323_v30  ;;  %v3297_v62 = vadd.f32 %v3296_v0, %v3269_v33  ;;  %v14164_v13 = vld [vmem:[#allocation4_spill] sm:$0xff]  ;;  %v14165_v30 = vld [vmem:[#allocation2_spill] sm:$0xff] }
 0x1ff   : > { %v3195_v57 = vadd.f32 %v14164_v13, %v3167_v48  ;;  %v3142_v18 = vadd.f32 %v14165_v30, %v3114_v63  ;;  %v14166_v0 = vld [vmem:[#allocation6_spill] sm:$0xff] }
 0x200   : > { %v3372_v35 = vsel %vm3371_vm0, %v11546_v26, 0.0 }
 0x201   : > { %3373 = vadd.xlane.f32.xlu0 %v3372_v35  ;;  %v3223_v7 = vadd.f32 %v11516_v8, %v3195_v57  ;;  %v3170_v9 = vadd.f32 %v14166_v0, %v3142_v18 }
 0x203   : > { %v3324_v51 = vpop.f32.mrf.mxu2  ;;  %v3271_v15 = vpop.f32.mrf.mxu0  ;;  %v3251_v34 = vadd.f32 %v14167_v29, %v3223_v7 }
 0x204   : > { %v3352_v1 = vpop.f32.mrf.mxu3  ;;  %v3325_v28 = vadd.f32 %v3324_v51, %v3297_v62  ;;  %v3299_v40 = vpop.f32.mrf.mxu1  ;;  %v3272_v43 = vadd.f32 %v3271_v15, %v3244_v42  ;;  %v14168_v62 = vld [vmem:[#allocation7_spill] sm:$0xff] }
 0x205   : > { %v3198_v51 = vadd.f32 %v14168_v62, %v3170_v9 }
 0x206   : > { %v11558_v2 = vadd.f32 %v3352_v1, %v3325_v28  ;;  %v3300_v11 = vadd.f32 %v3299_v40, %v3272_v43 }
 0x207   : > { %v3226_v8 = vadd.f32 %v11529_v61, %v3198_v51 }
 0x208   : > { %v3375_v46 = vsel %vm3371_vm0, %v11558_v2, 0.0 }
 0x209   : > { %3376 = vadd.xlane.f32.xlu0 %v3375_v46  ;;  %v3254_v36 = vadd.f32 %v14169_v38, %v3226_v8 }
 0x20b   : > { %v3327_v19 = vpop.f32.mrf.mxu2  ;;  %v3273_v14 = vpop.f32.mrf.mxu0 }
 0x20c   : > { %v3355_v39 = vpop.f32.mrf.mxu3  ;;  %v3328_v59 = vadd.f32 %v3327_v19, %v3300_v11  ;;  %v3301_v32 = vpop.f32.mrf.mxu1  ;;  %v3274_v54 = vadd.f32 %v3273_v14, %v3246_v44 }
 0x20e   : > { %v11571_v12 = vadd.f32 %v3355_v39, %v3328_v59  ;;  %v3302_v20 = vadd.f32 %v3301_v32, %v3274_v54  ;;  %v10076_v54 = vpop.eup %10075 }
 0x20f   : > { %v3395_v50 = vmul.f32 64.0, %v10076_v54  ;;  %vm3399_vm2 = vweird.f32 %v10076_v54 }
 0x210   : > { %v3378_v56 = vsel %vm3371_vm0, %v11571_v12, 0.0 }
 0x211   : > { %3379 = vadd.xlane.f32.xlu1 %v3378_v56  ;;  %v3396_v53 = vsub.f32 1.0, %v3395_v50 }
 0x213   : > { %v3329_v6 = vpop.f32.mrf.mxu2  ;;  %v3276_v5 = vpop.f32.mrf.mxu0  ;;  %v3397_v56 = vmul.f32 %v10076_v54, %v3396_v53 }
 0x214   : > { %v3357_v49 = vpop.f32.mrf.mxu3  ;;  %v3330_v21 = vadd.f32 %v3329_v6, %v3302_v20  ;;  %v3304_v58 = vpop.f32.mrf.mxu1  ;;  %v3277_v25 = vadd.f32 %v3276_v5, %v3249_v22 }
 0x215   : > { %v3398_v52 = vadd.f32 %v10076_v54, %v3397_v56 }
 0x216   : > { %v11582_v17 = vadd.f32 %v3357_v49, %v3330_v21  ;;  %v3305_v16 = vadd.f32 %v3304_v58, %v3277_v25 }
 0x217   : > { %v11596_v48 = vsel %vm3399_vm2, %v10076_v54, %v3398_v52 }
 0x218   : > { %v3381_v55 = vsel %vm3371_vm0, %v11582_v17, 0.0 }
 0x219   : > { %3382 = vadd.xlane.f32.xlu1 %v3381_v55 }
 0x21b   : > { %v3332_v27 = vpop.f32.mrf.mxu2  ;;  %v3278_v37 = vpop.f32.mrf.mxu0 }
 0x21c   : > { %v3360_v33 = vpop.f32.mrf.mxu3  ;;  %v3333_v35 = vadd.f32 %v3332_v27, %v3305_v16  ;;  %v3306_v31 = vpop.f32.mrf.mxu1  ;;  %v3279_v1 = vadd.f32 %v3278_v37, %v3251_v34 }
 0x21e   : > { %v3361_v24 = vadd.f32 %v3360_v33, %v3333_v35  ;;  %v3307_v28 = vadd.f32 %v3306_v31, %v3279_v1 }
 0x220   : > { %v3384_v42 = vsel %vm3371_vm0, %v3361_v24, 0.0 }
 0x221   : > { %3385 = vadd.xlane.f32.xlu2 %v3384_v42 }
 0x223   : > { %v3334_v15 = vpop.f32.mrf.mxu2  ;;  %v3281_v41 = vpop.f32.mrf.mxu0 }
 0x224   : > { %v3362_v40 = vpop.f32.mrf.mxu3  ;;  %v3335_v43 = vadd.f32 %v3334_v15, %v3307_v28  ;;  %v3309_v3 = vpop.f32.mrf.mxu1  ;;  %v3282_v23 = vadd.f32 %v3281_v41, %v3254_v36 }
 0x226   : > { %v3363_v46 = vadd.f32 %v3362_v40, %v3335_v43  ;;  %v3310_v11 = vadd.f32 %v3309_v3, %v3282_v23 }
 0x228   : > { %v3387_v4 = vsel %vm3371_vm0, %v3363_v46, 0.0 }
 0x229   : > { %3388 = vadd.xlane.f32.xlu2 %v3387_v4 }
 0x22b   : > { %v3337_v19 = vpop.f32.mrf.mxu2  ;;  %v3283_v60 = vpop.f32.mrf.mxu0 }
 0x22c   : > { %v3365_v39 = vpop.f32.mrf.mxu3  ;;  %v3338_v61 = vadd.f32 %v3337_v19, %v3310_v11  ;;  %v3311_v44 = vpop.f32.mrf.mxu1 }
 0x22d   : > { %v11650_v44 = vld [vmem:[%s14170_s23] ss:$0 sm:$0xff]  ;;  %s14144_s23 = smov 112  }
 0x22e   : > { %v3366_v59 = vadd.f32 %v3365_v39, %v3338_v61 }
 0x230   : > { %v3391_v14 = vsel %vm3390_vm1, %v3366_v59, 0.0 }
 0x231   : > { %3392 = vadd.xlane.f32.xlu1 %v3391_v14 }
 0x233   : > { %v3339_v32 = vpop.f32.mrf.mxu2 }
 0x234   : > { %v3367_v45 = vpop.f32.mrf.mxu3 }
 0x235   : > { %v11656_v45 = vld [vmem:[%s14171_s27] ss:$0 sm:$0xff]  ;;  %s14138_s27 = smov 96  }
 0x274   : > { %v3374_v20 = vpop.xlane.xlu0 %3373 }
 0x275   : > { %v3401_v6 = vmul.f32 %v11596_v48, %v3374_v20 }
 0x277   : > { %v11600_v49 = vsub.f32 %v11546_v26, %v3401_v6 }
 0x279   : > { %v3415_v63 = vmul.f32 %v11600_v49, %v11600_v49 }
 0x27b   : > { %v3422_v47 = vsel %vm3371_vm0, %v3415_v63, 0.0 }
 0x27c   : > { %3423 = vadd.xlane.f32.xlu0 %v3422_v47  ;;  %v3377_v22 = vpop.xlane.xlu0 %3376 }
 0x27d   : > { %v3402_v21 = vmul.f32 %v11596_v48, %v3377_v22 }
 0x27f   : > { %v11607_v5 = vsub.f32 %v11558_v2, %v3402_v21 }
 0x281   : > { %v3416_v58 = vmul.f32 %v11607_v5, %v11607_v5 }
 0x283   : > { %v3425_v13 = vsel %vm3371_vm0, %v3416_v58, 0.0 }
 0x284   : > { %v3380_v57 = vpop.xlane.xlu1 %3379  ;;  %3426 = vadd.xlane.f32.xlu2 %v3425_v13 }
 0x285   : > { %v3403_v26 = vmul.f32 %v11596_v48, %v3380_v57 }
 0x287   : > { %v11614_v25 = vsub.f32 %v11571_v12, %v3403_v26 }
 0x289   : > { %v3417_v30 = vmul.f32 %v11614_v25, %v11614_v25 }
 0x28b   : > { %v3428_v18 = vsel %vm3371_vm0, %v3417_v30, 0.0 }
 0x28c   : > { %v3383_v7 = vpop.xlane.xlu1 %3382  ;;  %3429 = vadd.xlane.f32.xlu0 %v3428_v18 }
 0x28d   : > { %v3404_v2 = vmul.f32 %v11596_v48, %v3383_v7 }
 0x28f   : > { %v11621_v55 = vsub.f32 %v11582_v17, %v3404_v2 }
 0x291   : > { %v3418_v0 = vmul.f32 %v11621_v55, %v11621_v55 }
 0x293   : > { %v3431_v9 = vsel %vm3371_vm0, %v3418_v0, 0.0 }
 0x294   : > { %v3386_v16 = vpop.xlane.xlu2 %3385  ;;  %3432 = vadd.xlane.f32.xlu1 %v3431_v9 }
 0x295   : > { %v3405_v12 = vmul.f32 %v11596_v48, %v3386_v16 }
 0x297   : > { %v11627_v27 = vsub.f32 %v3361_v24, %v3405_v12 }
 0x299   : > { %v3419_v33 = vmul.f32 %v11627_v27, %v11627_v27 }
 0x29b   : > { %v3434_v29 = vsel %vm3371_vm0, %v3419_v33, 0.0 }
 0x29c   : > { %v3389_v34 = vpop.xlane.xlu2 %3388  ;;  %3435 = vadd.xlane.f32.xlu2 %v3434_v29 }
 0x29d   : > { %v3406_v17 = vmul.f32 %v11596_v48, %v3389_v34 }
 0x29f   : > { %v11633_v35 = vsub.f32 %v3363_v46, %v3406_v17 }
 0x2a1   : > { %v3420_v37 = vmul.f32 %v11633_v35, %v11633_v35 }
 0x2a3   : > { %v3437_v31 = vsel %vm3371_vm0, %v3420_v37, 0.0 }
 0x2a4   : > { %v3393_v62 = vpop.xlane.xlu1 %3392  ;;  %3438 = vadd.xlane.f32.xlu0 %v3437_v31 }
 0x2a5   : > { %v3407_v51 = vmul.f32 %v11596_v48, %v3393_v62 }
 0x2a7   : > { %v11639_v1 = vsub.f32 %v3366_v59, %v3407_v51 }
 0x2a9   : > { %v3421_v24 = vmul.f32 %v11639_v1, %v11639_v1 }
 0x2ab   : > { %v3440_v8 = vsel %vm3390_vm1, %v3421_v24, 0.0 }
 0x2ac   : > { %3441 = vadd.xlane.f32.xlu1 %v3440_v8 }
 0x2ef   : > { %v3424_v42 = vpop.xlane.xlu0 %3423 }
 0x2f0   : > { %v3443_v28 = vmul.f32 %v3424_v42, %v11596_v48 }
 0x2f2   : > { %v3450_v15 = vadd.f32 1e-05, %v3443_v28 }
 0x2f4   : > { %10077 = vrsqrt.f32 %v3450_v15  ;;  %vm3463_vm4 = vweird.f32 %v3450_v15 }
 0x2f7   : > { %v3427_v40 = vpop.xlane.xlu2 %3426 }
 0x2f8   : > { %v3444_v38 = vmul.f32 %v3427_v40, %v11596_v48 }
 0x2fa   : > { %v10078_v36 = vpop.eup %10077  ;;  %v3451_v43 = vadd.f32 1e-05, %v3444_v38 }
 0x2fb   : > { %v3458_v41 = vmul.f32 %v10078_v36, %v3450_v15  ;;  %vm3464_vm3 = vweird.f32 %v10078_v36 }
 0x2fc   : > { %10079 = vrsqrt.f32 %v3451_v43  ;;  %vm3465_vm5 = vmor %vm3463_vm4, %vm3464_vm3  ;;  %vm3473_vm7 = vweird.f32 %v3451_v43 }
 0x2fd   : > { %v3459_v3 = vmul.f32 %v10078_v36, %v3458_v41 }
 0x2ff   : > { %v3460_v46 = vmul.f32 0.5, %v3459_v3  ;;  %v3430_v23 = vpop.xlane.xlu0 %3429 }
 0x300   : > { %v3445_v4 = vmul.f32 %v3430_v23, %v11596_v48 }
 0x301   : > { %v3461_v11 = vsub.f32 1.5, %v3460_v46 }
 0x302   : > { %v10080_v19 = vpop.eup %10079  ;;  %v3452_v39 = vadd.f32 1e-05, %v3445_v4 }
 0x303   : > { %v3462_v61 = vmul.f32 %v10078_v36, %v3461_v11  ;;  %v3468_v60 = vmul.f32 %v10080_v19, %v3451_v43  ;;  %vm3474_vm6 = vweird.f32 %v10080_v19 }
 0x304   : > { %10081 = vrsqrt.f32 %v3452_v39  ;;  %vm3475_vm8 = vmor %vm3473_vm7, %vm3474_vm6  ;;  %vm3483_vm10 = vweird.f32 %v3452_v39 }
 0x305   : > { %v3469_v59 = vmul.f32 %v10080_v19, %v3468_v60  ;;  %v3466_v14 = vsel %vm3465_vm5, %v10078_v36, %v3462_v61 }
 0x306   : > { %v3527_v32 = vmul.f32 %v3466_v14, %v11600_v49 }
 0x307   : > { %v3470_v10 = vmul.f32 0.5, %v3469_v59  ;;  %v3433_v54 = vpop.xlane.xlu1 %3432 }
 0x308   : > { %v3446_v50 = vmul.f32 %v3433_v54, %v11596_v48  ;;  %v3537_v53 = vmul.f32 %v11650_v44, %v3527_v32 }
 0x309   : > { %v3471_v56 = vsub.f32 1.5, %v3470_v10 }
 0x30a   : > { %v10082_v52 = vpop.eup %10081  ;;  %v3453_v20 = vadd.f32 1e-05, %v3446_v50  ;;  %v11661_v6 = vadd.f32 %v11656_v45, %v3537_v53 }
 0x30b   : > { %v3472_v63 = vmul.f32 %v10080_v19, %v3471_v56  ;;  %v3478_v49 = vmul.f32 %v10082_v52, %v3452_v39  ;;  %vm3484_vm9 = vweird.f32 %v10082_v52 }
 0x30c   : > { %10083 = vrsqrt.f32 %v3453_v20  ;;  %v3556_v47 = vsel %vm3371_vm0, %v11661_v6, 0.0  ;;  %vm3485_vm11 = vmor %vm3483_vm10, %vm3484_vm9  ;;  %vm3493_vm13 = vweird.f32 %v3453_v20 }
 0x30d   : > { %v3479_v22 = vmul.f32 %v10082_v52, %v3478_v49  ;;  %3557 = vadd.xlane.f32.xlu2 %v3556_v47  ;;  %v3476_v21 = vsel %vm3475_vm8, %v10080_v19, %v3472_v63 }
 0x30e   : > { %v3528_v58 = vmul.f32 %v3476_v21, %v11607_v5 }
 0x30f   : > { %v3480_v13 = vmul.f32 0.5, %v3479_v22  ;;  %v3436_v57 = vpop.xlane.xlu2 %3435 }
 0x310   : > { %v3447_v26 = vmul.f32 %v3436_v57, %v11596_v48  ;;  %v3538_v30 = vmul.f32 %v11650_v44, %v3528_v58 }
 0x311   : > { %v3481_v18 = vsub.f32 1.5, %v3480_v13 }
 0x312   : > { %v10084_v7 = vpop.eup %10083  ;;  %v3454_v2 = vadd.f32 1e-05, %v3447_v26  ;;  %v11669_v0 = vadd.f32 %v11656_v45, %v3538_v30 }
 0x313   : > { %v3482_v9 = vmul.f32 %v10082_v52, %v3481_v18  ;;  %v3488_v16 = vmul.f32 %v10084_v7, %v3453_v20  ;;  %vm3494_vm12 = vweird.f32 %v10084_v7 }
 0x314   : > { %10085 = vrsqrt.f32 %v3454_v2  ;;  %v3559_v5 = vsel %vm3371_vm0, %v11669_v0, 0.0  ;;  %vm3495_vm14 = vmor %vm3493_vm13, %vm3494_vm12  ;;  %vm3503_vm2 = vweird.f32 %v3454_v2 }
 0x315   : > { %v3489_v12 = vmul.f32 %v10084_v7, %v3488_v16  ;;  %3560 = vadd.xlane.f32.xlu0 %v3559_v5  ;;  %v3486_v33 = vsel %vm3485_vm11, %v10082_v52, %v3482_v9 }
 0x316   : > { %v3529_v29 = vmul.f32 %v3486_v33, %v11614_v25 }
 0x317   : > { %v3490_v34 = vmul.f32 0.5, %v3489_v12  ;;  %v3439_v17 = vpop.xlane.xlu0 %3438 }
 0x318   : > { %v3448_v37 = vmul.f32 %v3439_v17, %v11596_v48  ;;  %v3539_v31 = vmul.f32 %v11650_v44, %v3529_v29 }
 0x319   : > { %v3491_v62 = vsub.f32 1.5, %v3490_v34 }
 0x31a   : > { %v10086_v51 = vpop.eup %10085  ;;  %v3455_v24 = vadd.f32 1e-05, %v3448_v37  ;;  %v11677_v8 = vadd.f32 %v11656_v45, %v3539_v31 }
 0x31b   : > { %v3492_v42 = vmul.f32 %v10084_v7, %v3491_v62  ;;  %v3498_v28 = vmul.f32 %v10086_v51, %v3454_v2  ;;  %vm3504_vm15 = vweird.f32 %v10086_v51 }
 0x31c   : > { %10087 = vrsqrt.f32 %v3455_v24  ;;  %v3562_v25 = vsel %vm3371_vm0, %v11677_v8, 0.0  ;;  %vm3505_vm3 = vmor %vm3503_vm2, %vm3504_vm15  ;;  %vm3513_vm5 = vweird.f32 %v3455_v24 }
 0x31d   : > { %v3499_v15 = vmul.f32 %v10086_v51, %v3498_v28  ;;  %3563 = vadd.xlane.f32.xlu1 %v3562_v25  ;;  %v3496_v40 = vsel %vm3495_vm14, %v10084_v7, %v3492_v42 }
 0x31e   : > { %v3530_v38 = vmul.f32 %v3496_v40, %v11621_v55 }
 0x31f   : > { %v3500_v36 = vmul.f32 0.5, %v3499_v15  ;;  %v3442_v43 = vpop.xlane.xlu1 %3441 }
 0x320   : > { %v3449_v41 = vmul.f32 %v3442_v43, %v11596_v48  ;;  %v3540_v3 = vmul.f32 %v11650_v44, %v3530_v38 }
 0x321   : > { %v3501_v46 = vsub.f32 1.5, %v3500_v36 }
 0x322   : > { %v10088_v23 = vpop.eup %10087  ;;  %v3456_v4 = vadd.f32 1e-05, %v3449_v41  ;;  %v11685_v11 = vadd.f32 %v11656_v45, %v3540_v3 }
 0x323   : > { %v3502_v19 = vmul.f32 %v10086_v51, %v3501_v46  ;;  %v3508_v39 = vmul.f32 %v10088_v23, %v3455_v24  ;;  %vm3514_vm4 = vweird.f32 %v10088_v23 }
 0x324   : > { %10089 = vrsqrt.f32 %v3456_v4  ;;  %v3565_v55 = vsel %vm3371_vm0, %v11685_v11, 0.0  ;;  %vm3515_vm6 = vmor %vm3513_vm5, %vm3514_vm4  ;;  %vm3523_vm8 = vweird.f32 %v3456_v4 }
 0x325   : > { %v3509_v61 = vmul.f32 %v10088_v23, %v3508_v39  ;;  %3566 = vadd.xlane.f32.xlu2 %v3565_v55  ;;  %v3506_v60 = vsel %vm3505_vm3, %v10086_v51, %v3502_v19 }
 0x326   : > { %v3531_v59 = vmul.f32 %v3506_v60, %v11627_v27  ;;  %v3744_v60 = vld [vmem:[%s14120_s7 + $0x70] sm:$0xff] }
 0x327   : > { %v3510_v14 = vmul.f32 0.5, %v3509_v61  ;;  %3781 = vmatpush.msra.mxu0 %v3744_v60 }
 0x328   : > { %v3541_v32 = vmul.f32 %v11650_v44, %v3531_v59  ;;  %v3745_v59 = vld [vmem:[%s14120_s7 + $0x78] sm:$0xff] }
 0x329   : > { %v3511_v10 = vsub.f32 1.5, %v3510_v14  ;;  %3819 = vmatpush.msra.mxu1 %v3745_v59  ;;  %v3742_v14 = vld [vmem:[%s14120_s7 + $0x60] sm:$0xff] }
 0x32a   : > { %v10090_v54 = vpop.eup %10089  ;;  %v11692_v50 = vadd.f32 %v11656_v45, %v3541_v32  ;;  %v3743_v32 = vld [vmem:[%s14120_s7 + $0x68] sm:$0xff]  ;;  %3782 = vmatpush.msra.mxu0 %v3742_v14 }
 0x32b   : > { %v3512_v53 = vmul.f32 %v10088_v23, %v3511_v10  ;;  %v3518_v56 = vmul.f32 %v10090_v54, %v3456_v4  ;;  %vm3524_vm7 = vweird.f32 %v10090_v54  ;;  %3820 = vmatpush.msra.mxu1 %v3743_v32  ;;  %v3740_v10 = vld [vmem:[%s14120_s7 + $0x50] sm:$0xff] }
 0x32c   : > { %v3568_v52 = vsel %vm3371_vm0, %v11692_v50, 0.0  ;;  %vm3525_vm9 = vmor %vm3523_vm8, %vm3524_vm7  ;;  %3783 = vmatpush.msra.mxu0 %v3740_v10 }
 0x32d   : > { %v3519_v20 = vmul.f32 %v10090_v54, %v3518_v56  ;;  %3569 = vadd.xlane.f32.xlu0 %v3568_v52  ;;  %v3516_v63 = vsel %vm3515_vm6, %v10088_v23, %v3512_v53  ;;  %v3738_v53 = vld [vmem:[%s14120_s7 + $0x40] sm:$0xff]  ;;  %v3739_v56 = vld [vmem:[%s14120_s7 + $0x48] sm:$0xff]  ;;  %v3736_v52 = vld [vmem:[%s14120_s7 + $0x30] sm:$0xff] }
 0x32e   : > { %v3532_v27 = vmul.f32 %v3516_v63, %v11633_v35  ;;  %3784 = vmatpush.msra.mxu0 %v3738_v53  ;;  %v3734_v63 = vld [vmem:[%s14120_s7 + $0x20] sm:$0xff] }
 0x32f   : > { %v3520_v49 = vmul.f32 0.5, %v3519_v20  ;;  %v3737_v20 = vld [vmem:[%s14120_s7 + $0x38] sm:$0xff] }
 0x330   : > { %v3542_v47 = vmul.f32 %v11650_v44, %v3532_v27  ;;  %3785 = vmatpush.msra.mxu0 %v3736_v52  ;;  %v3735_v27 = vld [vmem:[%s14120_s7 + $0x28] sm:$0xff] }
 0x331   : > { %v3521_v22 = vsub.f32 1.5, %v3520_v49  ;;  %v3732_v49 = vld [vmem:[%s14120_s7 + $0x10] sm:$0xff] }
 0x332   : > { %v11699_v21 = vadd.f32 %v11656_v45, %v3542_v47  ;;  %3786 = vmatpush.msra.mxu0 %v3734_v63  ;;  %v3733_v47 = vld [vmem:[%s14120_s7 + $0x18] sm:$0xff] }
 0x333   : > { %v3522_v58 = vmul.f32 %v10090_v54, %v3521_v22  ;;  %v3730_v22 = vld [vmem:[%s14120_s7] sm:$0xff] }
 0x334   : > { %v3571_v13 = vsel %vm3371_vm0, %v11699_v21, 0.0  ;;  %3787 = vmatpush.msra.mxu0 %v3732_v49 }
 0x335   : > { %3572 = vadd.xlane.f32.xlu1 %v3571_v13  ;;  %v3526_v57 = vsel %vm3525_vm9, %v10090_v54, %v3522_v58  ;;  %v3741_v54 = vld [vmem:[%s14120_s7 + $0x58] sm:$0xff]  ;;  %v3731_v58 = vld [vmem:[%s14120_s7 + $0x8] sm:$0xff] }
 0x336   : > { %v3533_v26 = vmul.f32 %v3526_v57, %v11639_v1  ;;  %3821 = vmatpush.msra.mxu1 %v3741_v54  ;;  %3788 = vmatpush.msra.mxu0 %v3730_v22 }
 0x338   : > { %v3543_v35 = vmul.f32 %v11650_v44, %v3533_v26  ;;  %3822 = vmatpush.msra.mxu1 %v3739_v56 }
 0x33a   : > { %v11706_v30 = vadd.f32 %v11656_v45, %v3543_v35  ;;  %3823 = vmatpush.msra.mxu1 %v3737_v20 }
 0x33c   : > { %v3574_v18 = vsel %vm3390_vm1, %v11706_v30, 0.0  ;;  %3824 = vmatpush.msra.mxu1 %v3735_v27 }
 0x33d   : > { %3575 = vadd.xlane.f32.xlu0 %v3574_v18 }
 0x33e   : > { %3825 = vmatpush.msra.mxu1 %v3733_v47 }
 0x340   : > { %3826 = vmatpush.msra.mxu1 %v3731_v58 }
 0x380   : > { %v3558_v7 = vpop.xlane.xlu2 %3557 }
 0x381   : > { %v3577_v2 = vmul.f32 %v3558_v7, %v11596_v48 }
 0x383   : > { %v11712_v9 = vsub.f32 %v11661_v6, %v3577_v2 }
 0x385   : > { %v3591_v16 = vmul.f32 %v11712_v9, %v11712_v9 }
 0x387   : > { %v3598_v1 = vsel %vm3371_vm0, %v3591_v16, 0.0 }
 0x388   : > { %3599 = vadd.xlane.f32.xlu2 %v3598_v1  ;;  %v3561_v44 = vpop.xlane.xlu0 %3560 }
 0x389   : > { %v3578_v45 = vmul.f32 %v3561_v44, %v11596_v48 }
 0x38b   : > { %v11719_v5 = vsub.f32 %v11669_v0, %v3578_v45 }
 0x38d   : > { %v3592_v12 = vmul.f32 %v11719_v5, %v11719_v5 }
 0x38f   : > { %v3601_v33 = vsel %vm3371_vm0, %v3592_v12, 0.0 }
 0x390   : > { %v3564_v29 = vpop.xlane.xlu1 %3563  ;;  %3602 = vadd.xlane.f32.xlu1 %v3601_v33 }
 0x391   : > { %v3579_v34 = vmul.f32 %v3564_v29, %v11596_v48 }
 0x393   : > { %v11726_v17 = vsub.f32 %v11677_v8, %v3579_v34 }
 0x395   : > { %v3593_v37 = vmul.f32 %v11726_v17, %v11726_v17 }
 0x397   : > { %v3604_v31 = vsel %vm3371_vm0, %v3593_v37, 0.0 }
 0x398   : > { %v3567_v62 = vpop.xlane.xlu2 %3566  ;;  %3605 = vadd.xlane.f32.xlu2 %v3604_v31 }
 0x399   : > { %v3580_v51 = vmul.f32 %v3567_v62, %v11596_v48  ;;  %v11813_v62 = vld [vmem:[%s14118_s5] ss:$0 sm:$0xff] }
 0x39b   : > { %v11733_v24 = vsub.f32 %v11685_v11, %v3580_v51 }
 0x39d   : > { %v3594_v42 = vmul.f32 %v11733_v24, %v11733_v24 }
 0x39f   : > { %v3607_v28 = vsel %vm3371_vm0, %v3594_v42, 0.0 }
 0x3a0   : > { %3608 = vadd.xlane.f32.xlu0 %v3607_v28  ;;  %v3570_v25 = vpop.xlane.xlu0 %3569  ;;  %v11818_v28 = vld [vmem:[%s14119_s6] ss:$0 sm:$0xff] }
 0x3a1   : > { %v3581_v15 = vmul.f32 %v3570_v25, %v11596_v48 }
 0x3a3   : > { %v11740_v40 = vsub.f32 %v11692_v50, %v3581_v15 }
 0x3a5   : > { %v3595_v38 = vmul.f32 %v11740_v40, %v11740_v40 }
 0x3a7   : > { %v3610_v36 = vsel %vm3371_vm0, %v3595_v38, 0.0 }
 0x3a8   : > { %v3573_v43 = vpop.xlane.xlu1 %3572  ;;  %3611 = vadd.xlane.f32.xlu1 %v3610_v36 }
 0x3a9   : > { %v3582_v41 = vmul.f32 %v3573_v43, %v11596_v48 }
 0x3ab   : > { %v11747_v3 = vsub.f32 %v11699_v21, %v3582_v41 }
 0x3ad   : > { %v3596_v46 = vmul.f32 %v11747_v3, %v11747_v3 }
 0x3af   : > { %v3613_v23 = vsel %vm3371_vm0, %v3596_v46, 0.0 }
 0x3b0   : > { %3614 = vadd.xlane.f32.xlu2 %v3613_v23  ;;  %v3576_v4 = vpop.xlane.xlu0 %3575 }
 0x3b1   : > { %v3583_v19 = vmul.f32 %v3576_v4, %v11596_v48 }
 0x3b3   : > { %v11754_v39 = vsub.f32 %v11706_v30, %v3583_v19 }
 0x3b5   : > { %v3597_v55 = vmul.f32 %v11754_v39, %v11754_v39 }
 0x3b7   : > { %v3616_v61 = vsel %vm3390_vm1, %v3597_v55, 0.0 }
 0x3b8   : > { %3617 = vadd.xlane.f32.xlu0 %v3616_v61 }
 0x3fb   : > { %v3600_v13 = vpop.xlane.xlu2 %3599 }
 0x3fc   : > { %v3619_v57 = vmul.f32 %v3600_v13, %v11596_v48 }
 0x3fe   : > { %v3626_v26 = vadd.f32 1e-05, %v3619_v57 }
 0x400   : > { %10091 = vrsqrt.f32 %v3626_v26  ;;  %vm3639_vm11 = vweird.f32 %v3626_v26 }
 0x403   : > { %v3603_v35 = vpop.xlane.xlu1 %3602 }
 0x404   : > { %v3620_v18 = vmul.f32 %v3603_v35, %v11596_v48 }
 0x406   : > { %v10092_v7 = vpop.eup %10091  ;;  %v3627_v2 = vadd.f32 1e-05, %v3620_v18 }
 0x407   : > { %v3634_v16 = vmul.f32 %v10092_v7, %v3626_v26  ;;  %vm3640_vm10 = vweird.f32 %v10092_v7 }
 0x408   : > { %10093 = vrsqrt.f32 %v3627_v2  ;;  %vm3641_vm12 = vmor %vm3639_vm11, %vm3640_vm10  ;;  %vm3649_vm14 = vweird.f32 %v3627_v2 }
 0x409   : > { %v3635_v1 = vmul.f32 %v10092_v7, %v3634_v16 }
 0x40b   : > { %v3636_v44 = vmul.f32 0.5, %v3635_v1  ;;  %v3606_v45 = vpop.xlane.xlu2 %3605 }
 0x40c   : > { %v3621_v12 = vmul.f32 %v3606_v45, %v11596_v48 }
 0x40d   : > { %v3637_v33 = vsub.f32 1.5, %v3636_v44 }
 0x40e   : > { %v10094_v29 = vpop.eup %10093  ;;  %v3628_v34 = vadd.f32 1e-05, %v3621_v12 }
 0x40f   : > { %v3638_v37 = vmul.f32 %v10092_v7, %v3637_v33  ;;  %v3644_v31 = vmul.f32 %v10094_v29, %v3627_v2  ;;  %vm3650_vm13 = vweird.f32 %v10094_v29 }
 0x410   : > { %10095 = vrsqrt.f32 %v3628_v34  ;;  %vm3651_vm15 = vmor %vm3649_vm14, %vm3650_vm13  ;;  %vm3659_vm3 = vweird.f32 %v3628_v34 }
 0x411   : > { %v3642_v51 = vsel %vm3641_vm12, %v10092_v7, %v3638_v37  ;;  %v3645_v42 = vmul.f32 %v10094_v29, %v3644_v31 }
 0x412   : > { %v3703_v25 = vmul.f32 %v3642_v51, %v11712_v9 }
 0x413   : > { %v3646_v15 = vmul.f32 0.5, %v3645_v42  ;;  %v3609_v38 = vpop.xlane.xlu0 %3608 }
 0x414   : > { %v3713_v36 = vmul.f32 %v11813_v62, %v3703_v25  ;;  %v3622_v43 = vmul.f32 %v3609_v38, %v11596_v48 }
 0x415   : > { %v3647_v41 = vsub.f32 1.5, %v3646_v15 }
 0x416   : > { %v10096_v46 = vpop.eup %10095  ;;  %v3723_v23 = vadd.f32 %v11818_v28, %v3713_v36  ;;  %v3629_v4 = vadd.f32 1e-05, %v3622_v43 }
 0x417   : > { %v3648_v19 = vmul.f32 %v10094_v29, %v3647_v41  ;;  %v3654_v55 = vmul.f32 %v10096_v46, %v3628_v34  ;;  %vm3660_vm2 = vweird.f32 %v10096_v46 }
 0x418   : > { %10097 = vrsqrt.f32 %v3629_v4  ;;  %9291 = vmatmul.msk.f32.vlgmr.msra.gmra.mxu0 %vm3371_vm0, %v3723_v23  ;;  %9298 = vmatmul.msk.f32.vlgmr.msra.gmra.mxu1 %vm3371_vm0, %v3723_v23  ;;  %vm3661_vm4 = vmor %vm3659_vm3, %vm3660_vm2  ;;  %vm3669_vm6 = vweird.f32 %v3629_v4  ;;  %vm4059_vm3 = vcmask 1041408  }
 0x419   : > { %v3652_v9 = vsel %vm3651_vm15, %v10094_v29, %v3648_v19  ;;  %v3655_v61 = vmul.f32 %v10096_v46, %v3654_v55 }
 0x41a   : > { %v3704_v60 = vmul.f32 %v3652_v9, %v11719_v5 }
 0x41b   : > { %v3656_v59 = vmul.f32 0.5, %v3655_v61  ;;  %v3612_v14 = vpop.xlane.xlu1 %3611 }
 0x41c   : > { %v3623_v32 = vmul.f32 %v3612_v14, %v11596_v48  ;;  %v3714_v10 = vmul.f32 %v11813_v62, %v3704_v60 }
 0x41d   : > { %v3657_v54 = vsub.f32 1.5, %v3656_v59 }
 0x41e   : > { %v10098_v53 = vpop.eup %10097  ;;  %v3630_v56 = vadd.f32 1e-05, %v3623_v32  ;;  %v3724_v52 = vadd.f32 %v11818_v28, %v3714_v10 }
 0x41f   : > { %v3658_v20 = vmul.f32 %v10096_v46, %v3657_v54  ;;  %v3664_v63 = vmul.f32 %v10098_v53, %v3629_v4  ;;  %vm3670_vm5 = vweird.f32 %v10098_v53 }
 0x420   : > { %10099 = vrsqrt.f32 %v3630_v56  ;;  %9292 = vmatmul.msk.f32.gmra.mxu0 %vm3371_vm0, %v3724_v52  ;;  %9299 = vmatmul.msk.f32.gmra.mxu1 %vm3371_vm0, %v3724_v52  ;;  %vm3671_vm7 = vmor %vm3669_vm6, %vm3670_vm5  ;;  %vm3679_vm9 = vweird.f32 %v3630_v56  ;;  %v3746_v52 = vld [vmem:[%s14121_s8] sm:$0x3]  ;;  %vm3959_vm5 = vcmask 408576   ;;  %vm3978_vm6 = vcmask 402432  }
 0x421   : > { %v3662_v5 = vsel %vm3661_vm4, %v10096_v46, %v3658_v20  ;;  %v3665_v27 = vmul.f32 %v10098_v53, %v3664_v63  ;;  %v3749_v20 = vperm.slane %v3746_v52, 1  ;;  %vm3885_vm4 = vcmask 130048  }
 0x422   : > { %v3705_v49 = vmul.f32 %v3662_v5, %v11726_v17 }
 0x423   : > { %v3666_v47 = vmul.f32 0.5, %v3665_v27  ;;  %v3615_v22 = vpop.xlane.xlu2 %3614 }
 0x424   : > { %v3624_v58 = vmul.f32 %v3615_v22, %v11596_v48  ;;  %v3715_v13 = vmul.f32 %v11813_v62, %v3705_v49 }
 0x425   : > { %v3667_v57 = vsub.f32 1.5, %v3666_v47 }
 0x426   : > { %v10100_v26 = vpop.eup %10099  ;;  %v3631_v35 = vadd.f32 1e-05, %v3624_v58  ;;  %v3725_v18 = vadd.f32 %v11818_v28, %v3715_v13 }
 0x427   : > { %v3668_v7 = vmul.f32 %v10098_v53, %v3667_v57  ;;  %v3674_v2 = vmul.f32 %v10100_v26, %v3630_v56  ;;  %vm3680_vm8 = vweird.f32 %v10100_v26 }
 0x428   : > { %10101 = vrsqrt.f32 %v3631_v35  ;;  %9293 = vmatmul.msk.f32.gmra.mxu0 %vm3371_vm0, %v3725_v18  ;;  %9300 = vmatmul.msk.f32.gmra.mxu1 %vm3371_vm0, %v3725_v18  ;;  %vm3681_vm10 = vmor %vm3679_vm9, %vm3680_vm8  ;;  %vm3689_vm12 = vweird.f32 %v3631_v35 }
 0x429   : > { %v3672_v17 = vsel %vm3671_vm7, %v10098_v53, %v3668_v7  ;;  %v3675_v16 = vmul.f32 %v10100_v26, %v3674_v2 }
 0x42a   : > { %v3706_v1 = vmul.f32 %v3672_v17, %v11733_v24 }
 0x42b   : > { %v3676_v44 = vmul.f32 0.5, %v3675_v16  ;;  %v3618_v45 = vpop.xlane.xlu0 %3617 }
 0x42c   : > { %v3625_v12 = vmul.f32 %v3618_v45, %v11596_v48  ;;  %v3716_v33 = vmul.f32 %v11813_v62, %v3706_v1 }
 0x42d   : > { %v3677_v29 = vsub.f32 1.5, %v3676_v44 }
 0x42e   : > { %v10102_v34 = vpop.eup %10101  ;;  %v3632_v37 = vadd.f32 1e-05, %v3625_v12  ;;  %v3726_v31 = vadd.f32 %v11818_v28, %v3716_v33 }
 0x42f   : > { %v3678_v51 = vmul.f32 %v10100_v26, %v3677_v29  ;;  %v3684_v42 = vmul.f32 %v10102_v34, %v3631_v35  ;;  %vm3690_vm11 = vweird.f32 %v10102_v34 }
 0x430   : > { %10103 = vrsqrt.f32 %v3632_v37  ;;  %9294 = vmatmul.msk.f32.gmra.mxu0 %vm3371_vm0, %v3726_v31  ;;  %9301 = vmatmul.msk.f32.gmra.mxu1 %vm3371_vm0, %v3726_v31  ;;  %vm3691_vm13 = vmor %vm3689_vm12, %vm3690_vm11  ;;  %vm3699_vm15 = vweird.f32 %v3632_v37 }
 0x431   : > { %v3682_v24 = vsel %vm3681_vm10, %v10100_v26, %v3678_v51  ;;  %v3685_v25 = vmul.f32 %v10102_v34, %v3684_v42  ;;  %v3748_v26 = vperm.slane %v3746_v52, 0 }
 0x432   : > { %v3707_v15 = vmul.f32 %v3682_v24, %v11740_v40 }
 0x433   : > { %v3686_v38 = vmul.f32 0.5, %v3685_v25 }
 0x434   : > { %v3717_v36 = vmul.f32 %v11813_v62, %v3707_v15 }
 0x435   : > { %v3687_v43 = vsub.f32 1.5, %v3686_v38 }
 0x436   : > { %v10104_v41 = vpop.eup %10103  ;;  %v3727_v46 = vadd.f32 %v11818_v28, %v3717_v36 }
 0x437   : > { %v3688_v23 = vmul.f32 %v10102_v34, %v3687_v43  ;;  %v3694_v4 = vmul.f32 %v10104_v41, %v3632_v37  ;;  %vm3700_vm14 = vweird.f32 %v10104_v41 }
 0x438   : > { %9295 = vmatmul.msk.f32.gmra.mxu0 %vm3371_vm0, %v3727_v46  ;;  %9302 = vmatmul.msk.f32.gmra.mxu1 %vm3371_vm0, %v3727_v46  ;;  %vm3701_vm2 = vmor %vm3699_vm15, %vm3700_vm14 }
 0x439   : > { %v3692_v19 = vsel %vm3691_vm13, %v10102_v34, %v3688_v23  ;;  %v3695_v55 = vmul.f32 %v10104_v41, %v3694_v4 }
 0x43a   : > { %v3708_v40 = vmul.f32 %v3692_v19, %v11747_v3 }
 0x43b   : > { %v3696_v9 = vmul.f32 0.5, %v3695_v55 }
 0x43c   : > { %v3718_v61 = vmul.f32 %v11813_v62, %v3708_v40 }
 0x43d   : > { %v3697_v60 = vsub.f32 1.5, %v3696_v9 }
 0x43e   : > { %v3728_v59 = vadd.f32 %v11818_v28, %v3718_v61 }
 0x43f   : > { %v3698_v14 = vmul.f32 %v10104_v41, %v3697_v60 }
 0x440   : > { %9296 = vmatmul.msk.f32.gmra.mxu0 %vm3371_vm0, %v3728_v59  ;;  %9303 = vmatmul.msk.f32.gmra.mxu1 %vm3371_vm0, %v3728_v59 }
 0x441   : > { %v3702_v32 = vsel %vm3701_vm2, %v10104_v41, %v3698_v14 }
 0x442   : > { %v3709_v10 = vmul.f32 %v3702_v32, %v11754_v39 }
 0x444   : > { %v3719_v54 = vmul.f32 %v11813_v62, %v3709_v10 }
 0x446   : > { %v3729_v3 = vadd.f32 %v11818_v28, %v3719_v54 }
 0x448   : > { %9297 = vmatmul.msk.f32.gmra.mxu0 %vm3371_vm0, %v3729_v3  ;;  %9304 = vmatmul.msk.f32.gmra.mxu1 %vm3371_vm0, %v3729_v3 }
 0x495   : > { %v3790_v53 = vpop.f32.mrf.mxu0  ;;  %v3828_v56 = vpop.f32.mrf.mxu1 }
 0x496   : > { %v3829_v27 = vadd.f32 %v3828_v56, %v3749_v20  ;;  %v11892_v51 = vadd.f32 %v3790_v53, %v3748_v26 }
 0x498   : > { %v11911_v23 = vmul.f32 0.25, %v11892_v51 }
 0x49d   : > { %v3793_v63 = vpop.f32.mrf.mxu0  ;;  %v3831_v5 = vpop.f32.mrf.mxu1 }
 0x49e   : > { %v3832_v49 = vadd.f32 %v3831_v5, %v3749_v20  ;;  %v11870_v16 = vadd.f32 %v3793_v63, %v3748_v26 }
 0x4a0   : > { %v11862_v39 = vpack.i.bf16 %v3829_v27, %v3832_v49  ;;  %v11916_v4 = vmul.f32 0.25, %v11870_v16 }
 0x4a5   : > { %v3796_v62 = vpop.f32.mrf.mxu0  ;;  %v3834_v47 = vpop.f32.mrf.mxu1 }
 0x4a6   : > { %v3835_v58 = vadd.f32 %v3834_v47, %v3749_v20  ;;  %v11894_v42 = vadd.f32 %v3796_v62, %v3748_v26 }
 0x4a8   : > { %v11921_v19 = vmul.f32 0.25, %v11894_v42 }
 0x4ad   : > { %v3799_v28 = vpop.f32.mrf.mxu0  ;;  %v3837_v22 = vpop.f32.mrf.mxu1 }
 0x4ae   : > { %v3838_v13 = vadd.f32 %v3837_v22, %v3749_v20  ;;  %v11880_v34 = vadd.f32 %v3799_v28, %v3748_v26 }
 0x4b0   : > { %v11864_v57 = vpack.i.bf16 %v3835_v58, %v3838_v13  ;;  %v11926_v55 = vmul.f32 0.25, %v11880_v34 }
 0x4b5   : > { %v3802_v35 = vpop.f32.mrf.mxu0  ;;  %v3840_v18 = vpop.f32.mrf.mxu1 }
 0x4b6   : > { %v11866_v7 = vadd.f32 %v3802_v35, %v3748_v26  ;;  %v3841_v1 = vadd.f32 %v3840_v18, %v3749_v20 }
 0x4b8   : > { %3879 = vrot.lane.b32.xlu0 %v11866_v7, %s10494_s29  ;;  %v11931_v40 = vmul.f32 0.25, %v11866_v7 }
 0x4bd   : > { %v3805_v2 = vpop.f32.mrf.mxu0  ;;  %v3843_v17 = vpop.f32.mrf.mxu1 }
 0x4be   : > { %v11872_v44 = vadd.f32 %v3805_v2, %v3748_v26  ;;  %v3844_v45 = vadd.f32 %v3843_v17, %v3749_v20 }
 0x4c0   : > { %3881 = vrot.lane.b32.xlu2 %v11872_v44, %s10494_s29  ;;  %3873 = vrot.lane.b32.xlu0 %v11870_v16, %s10494_s29  ;;  %v11878_v12 = vpack.i.bf16 %v3841_v1, %v3844_v45  ;;  %v11936_v9 = vmul.f32 0.25, %v11872_v44 }
 0x4c5   : > { %v3808_v33 = vpop.f32.mrf.mxu0  ;;  %v3846_v29 = vpop.f32.mrf.mxu1 }
 0x4c6   : > { %v11882_v37 = vadd.f32 %v3808_v33, %v3748_v26  ;;  %v11884_v31 = vadd.f32 %v3846_v29, %v3749_v20 }
 0x4c8   : > { %3877 = vrot.lane.b32.xlu2 %v11880_v34, %s10494_s29  ;;  %9319 = vmatpush.msk.msra.mxu3 %vm4059_vm3, %v11884_v31  ;;  %v11941_v61 = vmul.f32 0.25, %v11882_v37 }
 0x4c9   : > { %3883 = vrot.lane.b32.xlu1 %v11882_v37, %s10494_s29 }
 0x4ca   : > { %4073 = vmatpush.msra.mxu3 %v3844_v45 }
 0x4cc   : > { %4074 = vmatpush.msra.mxu3 %v3841_v1 }
 0x4ce   : > { %4075 = vmatpush.msra.mxu3 %v3838_v13 }
 0x4d0   : > { %3871 = vrot.lane.b32.xlu2 %v11892_v51, %s10494_s29  ;;  %4076 = vmatpush.msra.mxu3 %v3835_v58 }
 0x4d1   : > { %3875 = vrot.lane.b32.xlu1 %v11894_v42, %s10494_s29 }
 0x4d2   : > { %4077 = vmatpush.msra.mxu3 %v3832_v49 }
 0x4d4   : > { %4078 = vmatpush.msra.mxu3 %v3829_v27 }
 0x4d8   : > { %4127 = vrot.lane.b32.xlu2 %v11882_v37, %s14146_s25 }
 0x51a   : > { %v3882_v24 = vpop.permute.xlu2 %3881 }
 0x522   : > { %v3878_v25 = vpop.permute.xlu2 %3877 }
 0x52a   : > { %v3872_v15 = vpop.permute.xlu2 %3871  ;;  %v3880_v43 = vpop.permute.xlu0 %3879 }
 0x532   : > { %v4128_v38 = vpop.permute.xlu2 %4127  ;;  %v3874_v46 = vpop.permute.xlu0 %3873 }
 0x533   : > { %9327 = vmatpush.xpose.msk.msrb.mxu0 %vm3885_vm4, %v4128_v38 }
 0x53b   : > { %v3884_v36 = vpop.permute.xlu1 %3883 }
 0x53c   : > { %9305 = vmatpush.xpose.msk.msra.mxu2 %vm3885_vm4, %v3884_v36 }
 0x540   : > { %9306 = vmatpush.xpose.msk.msra.mxu2 %vm3885_vm4, %v3882_v24 }
 0x543   : > { %v3876_v41 = vpop.permute.xlu1 %3875 }
 0x544   : > { %9307 = vmatpush.xpose.msk.msra.mxu2 %vm3885_vm4, %v3880_v43 }
 0x548   : > { %9308 = vmatpush.xpose.msk.msra.mxu2 %vm3885_vm4, %v3878_v25 }
 0x54c   : > { %9309 = vmatpush.xpose.msk.msra.mxu2 %vm3885_vm4, %v3876_v41 }
 0x550   : > { %9310 = vmatpush.xpose.msk.msra.mxu2 %vm3885_vm4, %v3874_v46 }
 0x554   : > { %9311 = vmatpush.xpose.msk.msra.mxu2 %vm3885_vm4, %v3872_v15 }
 0x557   : > { %9312 = vmatmul.msk.f32.vlgmr.msra.gmra.mxu2 %vm3885_vm4, %v11911_v23 }
 0x55f   : > { %9313 = vmatmul.msk.f32.gmra.mxu2 %vm3885_vm4, %v11916_v4 }
 0x567   : > { %9314 = vmatmul.msk.f32.gmra.mxu2 %vm3885_vm4, %v11921_v19 }
 0x56f   : > { %9315 = vmatmul.msk.f32.gmra.mxu2 %vm3885_vm4, %v11926_v55 }
 0x577   : > { %9316 = vmatmul.msk.f32.gmra.mxu2 %vm3885_vm4, %v11931_v40 }
 0x57f   : > { %9317 = vmatmul.msk.f32.gmra.mxu2 %vm3885_vm4, %v11936_v9 }
 0x587   : > { %9318 = vmatmul.msk.f32.gmra.mxu2 %vm3885_vm4, %v11941_v61 }
 0x5da   : > { %v3938_v60 = vpop.f32.mrf.mxu2 }
 0x5db   : > { %v3960_v59 = vsel %vm3959_vm5, %v3938_v60, -inf }
 0x5dc   : > { %3961 = vmax.xlane.f32.xlu1 %v3960_v59 }
 0x5e2   : > { %v3941_v14 = vpop.f32.mrf.mxu2 }
 0x5e3   : > { %v3963_v32 = vsel %vm3959_vm5, %v3941_v14, -inf }
 0x5e4   : > { %3964 = vmax.xlane.f32.xlu0 %v3963_v32 }
 0x5ea   : > { %v3944_v10 = vpop.f32.mrf.mxu2 }
 0x5eb   : > { %v3966_v54 = vsel %vm3959_vm5, %v3944_v10, -inf }
 0x5ec   : > { %3967 = vmax.xlane.f32.xlu2 %v3966_v54 }
 0x5f2   : > { %v3947_v3 = vpop.f32.mrf.mxu2 }
 0x5f3   : > { %v3969_v53 = vsel %vm3959_vm5, %v3947_v3, -inf }
 0x5f4   : > { %3970 = vmax.xlane.f32.xlu1 %v3969_v53 }
 0x5fa   : > { %v3950_v56 = vpop.f32.mrf.mxu2 }
 0x5fb   : > { %v3972_v52 = vsel %vm3959_vm5, %v3950_v56, -inf }
 0x5fc   : > { %3973 = vmax.xlane.f32.xlu0 %v3972_v52 }
 0x602   : > { %v3953_v20 = vpop.f32.mrf.mxu2 }
 0x603   : > { %v3975_v63 = vsel %vm3959_vm5, %v3953_v20, -inf }
 0x604   : > { %3976 = vmax.xlane.f32.xlu2 %v3975_v63 }
 0x60a   : > { %v11951_v5 = vpop.f32.mrf.mxu2 }
 0x60b   : > { %v3979_v27 = vsel %vm3978_vm6, %v11951_v5, -inf }
 0x60c   : > { %3980 = vmax.xlane.f32.xlu1 %v3979_v27 }
 0x64f   : > { %v3962_v49 = vpop.xlane.xlu1 %3961 }
 0x650   : > { %v3982_v62 = vsub.f32 %v3938_v60, %v3962_v49 }
 0x652   : > { %v3989_v47 = vmul.f32 1.442695, %v3982_v62 }
 0x654   : > { %10105 = vpow2.f32 %v3989_v47 }
 0x657   : > { %v3965_v28 = vpop.xlane.xlu0 %3964 }
 0x658   : > { %v3983_v22 = vsub.f32 %v3941_v14, %v3965_v28 }
 0x65a   : > { %v10106_v58 = vpop.eup %10105  ;;  %v3991_v13 = vmul.f32 1.442695, %v3983_v22 }
 0x65b   : > { %v4003_v26 = vsel %vm3959_vm5, %v10106_v58, 0.0 }
 0x65c   : > { %10107 = vpow2.f32 %v3991_v13  ;;  %4004 = vadd.xlane.f32.xlu0 %v4003_v26 }
 0x65f   : > { %v3968_v35 = vpop.xlane.xlu2 %3967 }
 0x660   : > { %v3984_v18 = vsub.f32 %v3944_v10, %v3968_v35 }
 0x662   : > { %v10108_v2 = vpop.eup %10107  ;;  %v3993_v17 = vmul.f32 1.442695, %v3984_v18 }
 0x663   : > { %v4006_v1 = vsel %vm3959_vm5, %v10108_v2, 0.0 }
 0x664   : > { %10109 = vpow2.f32 %v3993_v17  ;;  %4007 = vadd.xlane.f32.xlu2 %v4006_v1 }
 0x667   : > { %v3971_v29 = vpop.xlane.xlu1 %3970 }
 0x668   : > { %v3985_v24 = vsub.f32 %v3947_v3, %v3971_v29 }
 0x66a   : > { %v10110_v45 = vpop.eup %10109  ;;  %v3995_v38 = vmul.f32 1.442695, %v3985_v24 }
 0x66b   : > { %v4009_v33 = vsel %vm3959_vm5, %v10110_v45, 0.0 }
 0x66c   : > { %4010 = vadd.xlane.f32.xlu1 %v4009_v33  ;;  %10111 = vpow2.f32 %v3995_v38 }
 0x66f   : > { %v3974_v25 = vpop.xlane.xlu0 %3973 }
 0x670   : > { %4123 = vrot.lane.b32.xlu0 %v11866_v7, %s14146_s25  ;;  %v3986_v15 = vsub.f32 %v3950_v56, %v3974_v25 }
 0x672   : > { %v3997_v36 = vmul.f32 1.442695, %v3986_v15  ;;  %v11966_v46 = vpop.eup %10111 }
 0x673   : > { %v4012_v14 = vsel %vm3959_vm5, %v11966_v46, 0.0 }
 0x674   : > { %10113 = vpow2.f32 %v3997_v36 }
 0x677   : > { %v3977_v43 = vpop.xlane.xlu2 %3976 }
 0x678   : > { %4119 = vrot.lane.b32.xlu0 %v11894_v42, %s14146_s25  ;;  %v3987_v41 = vsub.f32 %v3953_v20, %v3977_v43 }
 0x67a   : > { %v11968_v60 = vpop.eup %10113  ;;  %v3999_v59 = vmul.f32 1.442695, %v3987_v41 }
 0x67b   : > { %v4015_v32 = vsel %vm3959_vm5, %v11968_v60, 0.0 }
 0x67c   : > { %4121 = vrot.lane.b32.xlu2 %v11880_v34, %s14146_s25  ;;  %10115 = vpow2.f32 %v3999_v59 }
 0x67f   : > { %v3981_v56 = vpop.xlane.xlu1 %3980 }
 0x680   : > { %v3988_v27 = vsub.f32 %v11951_v5, %v3981_v56 }
 0x682   : > { %v11974_v10 = vpop.eup %10115  ;;  %v4001_v47 = vmul.f32 1.442695, %v3988_v27 }
 0x683   : > { %v4018_v54 = vsel %vm3959_vm5, %v11974_v10, 0.0 }
 0x685   : > { %4125 = vrot.lane.b32.xlu1 %v11872_v44, %s14146_s25 }
 0x6a2   : > { %4013 = vadd.xlane.f32.xlu0 %v4012_v14 }
 0x6a5   : > { %4016 = vadd.xlane.f32.xlu2 %v4015_v32 }
 0x6af   : > { %4019 = vadd.xlane.f32.xlu1 %v4018_v54 }
 0x6b6   : > { %4101 = vrot.lane.b32.xlu0 %v11911_v23, %s14144_s23 }
 0x6bd   : > { %4115 = vrot.lane.b32.xlu2 %v11892_v51, %s14146_s25 }
 0x6be   : > { %4107 = vrot.lane.b32.xlu0 %v11926_v55, %s14144_s23 }
 0x6c5   : > { %4105 = vrot.lane.b32.xlu2 %v11921_v19, %s14144_s23 }
 0x6c6   : > { %4109 = vrot.lane.b32.xlu0 %v11931_v40, %s14144_s23 }
 0x6c8   : > { %4117 = vrot.lane.b32.xlu1 %v11870_v16, %s14146_s25  ;;  %s625_s25 = scalar_lea.vmem %s14133_s20, %s14189_s22 }
 0x6cd   : > { %4821 = vrot.lane.b32.xlu2 %v11882_v37, %s14142_s3 }
 0x6cf   : > { %v4005_v3 = vpop.xlane.xlu0 %4004 }
 0x6d0   : > { %10117 = vrcp.f32 %v4005_v3  ;;  %4103 = vrot.lane.b32.xlu1 %v11916_v4, %s14144_s23 }
 0x6d5   : > { %4819 = vrot.lane.b32.xlu2 %v11872_v44, %s14142_s3 }
 0x6d6   : > { %v10118_v53 = vpop.eup %10117 }
 0x6d7   : > { %v4031_v52 = vmul.f32 %v10118_v53, %v10106_v58  ;;  %v4008_v20 = vpop.xlane.xlu2 %4007 }
 0x6d8   : > { %10119 = vrcp.f32 %v4008_v20  ;;  %4503 = vrot.lane.b32.xlu1 %v11882_v37, %s14140_s26 }
 0x6d9   : > { %9320 = vmatmul.msk.f32.vlgmr.msra.gmra.mxu3 %vm3959_vm5, %v4031_v52 }
 0x6dd   : > { %4111 = vrot.lane.b32.xlu2 %v11936_v9, %s14144_s23 }
 0x6de   : > { %v10120_v63 = vpop.eup %10119 }
 0x6df   : > { %v4011_v49 = vpop.xlane.xlu1 %4010  ;;  %v4032_v62 = vmul.f32 %v10120_v63, %v10108_v2  ;;  %v4122_v13 = vpop.permute.xlu2 %4121 }
 0x6e0   : > { %10121 = vrcp.f32 %v4011_v49  ;;  %4501 = vrot.lane.b32.xlu1 %v11872_v44, %s14140_s26 }
 0x6e1   : > { %9321 = vmatmul.msk.f32.gmra.mxu3 %vm3959_vm5, %v4032_v62  ;;  %10123 = vpow2.f32 %v4001_v47 }
 0x6e2   : > { %v4124_v58 = vpop.permute.xlu0 %4123 }
 0x6e5   : > { %4495 = vrot.lane.b32.xlu2 %v11894_v42, %s14140_s26 }
 0x6e6   : > { %v10122_v37 = vpop.eup %10121 }
 0x6e7   : > { %v4033_v28 = vmul.f32 %v10122_v37, %v10110_v45  ;;  %v12010_v5 = vpop.eup %10123 }
 0x6e8   : > { %4817 = vrot.lane.b32.xlu1 %v11866_v7, %s14142_s3  ;;  %v4021_v44 = vsel %vm3978_vm6, %v12010_v5, 0.0 }
 0x6e9   : > { %9322 = vmatmul.msk.f32.gmra.mxu3 %vm3959_vm5, %v4033_v28 }
 0x6ea   : > { %v4120_v26 = vpop.permute.xlu0 %4119 }
 0x6ed   : > { %4493 = vrot.lane.b32.xlu2 %v11870_v16, %s14140_s26 }
 0x6f0   : > { %4815 = vrot.lane.b32.xlu1 %v11880_v34, %s14142_s3  ;;  %4022 = vadd.xlane.f32.xlu0 %v4021_v44 }
 0x6f5   : > { %4809 = vrot.lane.b32.xlu2 %v11892_v51, %s14142_s3 }
 0x6f7   : > { %v4126_v22 = vpop.permute.xlu1 %4125 }
 0x6f8   : > { %4113 = vrot.lane.b32.xlu1 %v11941_v61, %s14144_s23  ;;  %9328 = vmatpush.xpose.msk.msrb.mxu0 %vm3885_vm4, %v4126_v22 }
 0x6fc   : > { %9329 = vmatpush.xpose.msk.msrb.mxu0 %vm3885_vm4, %v4124_v58 }
 0x6fd   : > { %4479 = vrot.lane.b32.xlu2 %v11916_v4, %s14138_s27 }
 0x700   : > { %4491 = vrot.lane.b32.xlu1 %v11892_v51, %s14140_s26  ;;  %9330 = vmatpush.xpose.msk.msrb.mxu0 %vm3885_vm4, %v4122_v13  ;;  %v3850_v51 = vld [vmem:[%s14122_s9 + $0x8] sm:$0xff] }
 0x701   : > { %4453 = vmatpush.msrb.mxu3 %v3850_v51 }
 0x704   : > { %4499 = vrot.lane.b32.xlu0 %v11866_v7, %s14140_s26  ;;  %9331 = vmatpush.xpose.msk.msrb.mxu0 %vm3885_vm4, %v4120_v26  ;;  %v3849_v7 = vld [vmem:[%s14122_s9] sm:$0xff] }
 0x705   : > { %4799 = vrot.lane.b32.xlu2 %v11921_v19, %s14136_s28  ;;  %4454 = vmatpush.msrb.mxu3 %v3849_v7 }
 0x708   : > { %4795 = vrot.lane.b32.xlu1 %v11911_v23, %s14136_s28 }
 0x70c   : > { %4497 = vrot.lane.b32.xlu0 %v11880_v34, %s14140_s26 }
 0x70d   : > { %4485 = vrot.lane.b32.xlu2 %v11931_v40, %s14138_s27 }
 0x710   : > { %4481 = vrot.lane.b32.xlu1 %v11921_v19, %s14138_s27 }
 0x714   : > { %4813 = vrot.lane.b32.xlu0 %v11894_v42, %s14142_s3 }
 0x715   : > { %v4014_v34 = vpop.xlane.xlu0 %4013  ;;  %4805 = vrot.lane.b32.xlu2 %v11936_v9, %s14136_s28 }
 0x716   : > { %10125 = vrcp.f32 %v4014_v34 }
 0x718   : > { %v4017_v35 = vpop.xlane.xlu2 %4016  ;;  %4801 = vrot.lane.b32.xlu1 %v11926_v55, %s14136_s28 }
 0x719   : > { %10127 = vrcp.f32 %v4017_v35 }
 0x71c   : > { %v10126_v18 = vpop.eup %10125  ;;  %4811 = vrot.lane.b32.xlu0 %v11870_v16, %s14142_s3  ;;  %s14183_s3 = smov 80  }
 0x71d   : > { %v4034_v19 = vmul.f32 %v10126_v18, %v11966_v46 }
 0x71f   : > { %9323 = vmatmul.msk.f32.gmra.mxu3 %vm3959_vm5, %v4034_v19  ;;  %v10128_v42 = vpop.eup %10127 }
 0x720   : > { %v4116_v2 = vpop.permute.xlu2 %4115  ;;  %4487 = vrot.lane.b32.xlu1 %v11936_v9, %s14138_s27  ;;  %v4035_v1 = vmul.f32 %v10128_v42, %v11968_v60 }
 0x722   : > { %v4020_v17 = vpop.xlane.xlu1 %4019 }
 0x723   : > { %10129 = vrcp.f32 %v4020_v17 }
 0x724   : > { %4477 = vrot.lane.b32.xlu0 %v11911_v23, %s14138_s27 }
 0x727   : > { %9324 = vmatmul.msk.f32.gmra.mxu3 %vm3959_vm5, %v4035_v1 }
 0x728   : > { %v4106_v45 = vpop.permute.xlu2 %4105  ;;  %4807 = vrot.lane.b32.xlu1 %v11941_v61, %s14136_s28 }
 0x729   : > { %v10130_v16 = vpop.eup %10129 }
 0x72a   : > { %v4036_v9 = vmul.f32 %v10130_v16, %v11974_v10 }
 0x72c   : > { %4797 = vrot.lane.b32.xlu0 %v11916_v4, %s14136_s28  ;;  %v4102_v4 = vpop.permute.xlu0 %4101 }
 0x72f   : > { %9325 = vmatmul.msk.f32.gmra.mxu3 %vm3959_vm5, %v4036_v9 }
 0x730   : > { %v4822_v33 = vpop.permute.xlu2 %4821 }
 0x731   : > { %9392 = vmatpush.xpose.msk.msra.mxu3 %vm3885_vm4, %v4822_v33 }
 0x734   : > { %4483 = vrot.lane.b32.xlu0 %v11926_v55, %s14138_s27  ;;  %v4108_v25 = vpop.permute.xlu0 %4107 }
 0x738   : > { %v4820_v23 = vpop.permute.xlu2 %4819 }
 0x739   : > { %9393 = vmatpush.xpose.msk.msra.mxu3 %vm3885_vm4, %v4820_v23 }
 0x73a   : > { %v4118_v29 = vpop.permute.xlu1 %4117 }
 0x73b   : > { %9332 = vmatpush.xpose.msk.msrb.mxu0 %vm3885_vm4, %v4118_v29 }
 0x73c   : > { %4803 = vrot.lane.b32.xlu0 %v11931_v40, %s14136_s28  ;;  %v4110_v38 = vpop.permute.xlu0 %4109 }
 0x73f   : > { %9333 = vmatpush.xpose.msk.msrb.mxu0 %vm3885_vm4, %v4116_v2 }
 0x740   : > { %v4112_v43 = vpop.permute.xlu2 %4111 }
 0x742   : > { %9334 = vmatmul.msk.f32.vlgmr.msrb.gmra.mxu0 %vm3885_vm4, %v4102_v4  ;;  %v4104_v24 = vpop.permute.xlu1 %4103 }
 0x744   : > { %4489 = vrot.lane.b32.xlu0 %v11941_v61, %s14138_s27 }
 0x748   : > { %v4496_v10 = vpop.permute.xlu2 %4495 }
 0x74a   : > { %9335 = vmatmul.msk.f32.gmra.mxu0 %vm3885_vm4, %v4104_v24  ;;  %v4504_v55 = vpop.permute.xlu1 %4503 }
 0x74b   : > { %9363 = vmatpush.xpose.msk.msra.mxu0 %vm3885_vm4, %v4504_v55 }
 0x750   : > { %v4494_v53 = vpop.permute.xlu2 %4493 }
 0x752   : > { %9336 = vmatmul.msk.f32.gmra.mxu0 %vm3885_vm4, %v4106_v45  ;;  %v4502_v15 = vpop.permute.xlu1 %4501 }
 0x753   : > { %9364 = vmatpush.xpose.msk.msra.mxu0 %vm3885_vm4, %v4502_v15 }
 0x758   : > { %v4810_v63 = vpop.permute.xlu2 %4809 }
 0x75a   : > { %9337 = vmatmul.msk.f32.gmra.mxu0 %vm3885_vm4, %v4108_v25  ;;  %v4818_v40 = vpop.permute.xlu1 %4817 }
 0x75b   : > { %9394 = vmatpush.xpose.msk.msra.mxu3 %vm3885_vm4, %v4818_v40 }
 0x75c   : > { %v4080_v60 = vpop.f32.mrf.mxu3 }
 0x760   : > { %v4480_v62 = vpop.permute.xlu2 %4479 }
 0x762   : > { %9338 = vmatmul.msk.f32.gmra.mxu0 %vm3885_vm4, %v4110_v38  ;;  %v4816_v61 = vpop.permute.xlu1 %4815 }
 0x763   : > { %v4023_v36 = vpop.xlane.xlu0 %4022  ;;  %9395 = vmatpush.xpose.msk.msra.mxu3 %vm3885_vm4, %v4816_v61 }
 0x764   : > { %10131 = vrcp.f32 %v4023_v36  ;;  %v4083_v32 = vpop.f32.mrf.mxu3 }
 0x768   : > { %v4800_v44 = vpop.permute.xlu2 %4799 }
 0x76a   : > { %v10132_v41 = vpop.eup %10131  ;;  %9339 = vmatmul.msk.f32.gmra.mxu0 %vm3885_vm4, %v4112_v43  ;;  %v4114_v59 = vpop.permute.xlu1 %4113 }
 0x76b   : > { %v4037_v46 = vmul.f32 %v10132_v41, %v12010_v5 }
 0x76c   : > { %v4086_v3 = vpop.f32.mrf.mxu3 }
 0x76d   : > { %9326 = vmatmul.msk.f32.gmra.mxu3 %vm3959_vm5, %v4037_v46 }
 0x770   : > { %v4486_v26 = vpop.permute.xlu2 %4485 }
 0x772   : > { %9340 = vmatmul.msk.f32.gmra.mxu0 %vm3885_vm4, %v4114_v59  ;;  %v4492_v52 = vpop.permute.xlu1 %4491 }
 0x775   : > { %9356 = vmatmul.msk.f32.vlgmr.msrb.gmra.mxu3 %vm3885_vm4, %v4080_v60 }
 0x776   : > { %v4500_v14 = vpop.permute.xlu0 %4499 }
 0x777   : > { %9365 = vmatpush.xpose.msk.msra.mxu0 %vm3885_vm4, %v4500_v14 }
 0x778   : > { %v4806_v15 = vpop.permute.xlu2 %4805 }
 0x77a   : > { %v4796_v49 = vpop.permute.xlu1 %4795 }
 0x77d   : > { %9357 = vmatmul.msk.f32.gmra.mxu3 %vm3885_vm4, %v4083_v32 }
 0x77e   : > { %v4498_v54 = vpop.permute.xlu0 %4497 }
 0x77f   : > { %9366 = vmatpush.xpose.msk.msra.mxu0 %vm3885_vm4, %v4498_v54 }
 0x782   : > { %v4482_v28 = vpop.permute.xlu1 %4481 }
 0x783   : > { %9367 = vmatpush.xpose.msk.msra.mxu0 %vm3885_vm4, %v4496_v10 }
 0x785   : > { %9358 = vmatmul.msk.f32.gmra.mxu3 %vm3885_vm4, %v4086_v3 }
 0x786   : > { %v4814_v56 = vpop.permute.xlu0 %4813 }
 0x787   : > { %9368 = vmatpush.xpose.msk.msra.mxu0 %vm3885_vm4, %v4494_v53  ;;  %9396 = vmatpush.xpose.msk.msra.mxu3 %vm3885_vm4, %v4814_v56 }
 0x78a   : > { %v4802_v13 = vpop.permute.xlu1 %4801 }
 0x78b   : > { %9369 = vmatpush.xpose.msk.msra.mxu0 %vm3885_vm4, %v4492_v52 }
 0x78e   : > { %v4812_v20 = vpop.permute.xlu0 %4811 }
 0x78f   : > { %9397 = vmatpush.xpose.msk.msra.mxu3 %vm3885_vm4, %v4812_v20 }
 0x792   : > { %v4488_v7 = vpop.permute.xlu1 %4487 }
 0x793   : > { %9398 = vmatpush.xpose.msk.msra.mxu3 %vm3885_vm4, %v4810_v63 }
 0x796   : > { %v4478_v27 = vpop.permute.xlu0 %4477 }
 0x797   : > { %9370 = vmatmul.msk.f32.vlgmr.msra.gmra.mxu0 %vm3885_vm4, %v4478_v27 }
 0x79a   : > { %v4808_v40 = vpop.permute.xlu1 %4807 }
 0x79e   : > { %v4798_v37 = vpop.permute.xlu0 %4797 }
 0x79f   : > { %9371 = vmatmul.msk.f32.gmra.mxu0 %vm3885_vm4, %v4480_v62 }
 0x7a2   : > { %v4089_v47 = vpop.f32.mrf.mxu3 }
 0x7a3   : > { %9359 = vmatmul.msk.f32.gmra.mxu3 %vm3885_vm4, %v4089_v47 }
 0x7a6   : > { %v4484_v22 = vpop.permute.xlu0 %4483 }
 0x7a7   : > { %9372 = vmatmul.msk.f32.gmra.mxu0 %vm3885_vm4, %v4482_v28 }
 0x7aa   : > { %v4092_v5 = vpop.f32.mrf.mxu3 }
 0x7ab   : > { %9360 = vmatmul.msk.f32.gmra.mxu3 %vm3885_vm4, %v4092_v5 }
 0x7ae   : > { %v4804_v51 = vpop.permute.xlu0 %4803 }
 0x7af   : > { %9373 = vmatmul.msk.f32.gmra.mxu0 %vm3885_vm4, %v4484_v22 }
 0x7b2   : > { %v4095_v58 = vpop.f32.mrf.mxu3 }
 0x7b3   : > { %9361 = vmatmul.msk.f32.gmra.mxu3 %vm3885_vm4, %v4095_v58 }
 0x7b6   : > { %v4490_v18 = vpop.permute.xlu0 %4489 }
 0x7b7   : > { %9374 = vmatmul.msk.f32.gmra.mxu0 %vm3885_vm4, %v4486_v26 }
 0x7bf   : > { %v4174_v34 = vpop.f32.mrf.mxu0  ;;  %9375 = vmatmul.msk.f32.gmra.mxu0 %vm3885_vm4, %v4488_v7 }
 0x7c0   : > { %v4195_v35 = vsel %vm3959_vm5, %v4174_v34, -inf }
 0x7c1   : > { %4196 = vmax.xlane.f32.xlu2 %v4195_v35 }
 0x7c7   : > { %v4177_v19 = vpop.f32.mrf.mxu0  ;;  %9376 = vmatmul.msk.f32.gmra.mxu0 %vm3885_vm4, %v4490_v18 }
 0x7c8   : > { %v4198_v2 = vsel %vm3959_vm5, %v4177_v19, -inf }
 0x7c9   : > { %4199 = vmax.xlane.f32.xlu0 %v4198_v2 }
 0x7cf   : > { %v4180_v42 = vpop.f32.mrf.mxu0 }
 0x7d0   : > { %v4201_v17 = vsel %vm3959_vm5, %v4180_v42, -inf }
 0x7d1   : > { %4202 = vmax.xlane.f32.xlu1 %v4201_v17 }
 0x7d7   : > { %v12117_v1 = vpop.f32.mrf.mxu0 }
 0x7d8   : > { %v4204_v45 = vsel %vm3959_vm5, %v12117_v1, -inf }
 0x7d9   : > { %4205 = vmax.xlane.f32.xlu2 %v4204_v45 }
 0x7df   : > { %v12121_v16 = vpop.f32.mrf.mxu0 }
 0x7e0   : > { %v4207_v9 = vsel %vm3959_vm5, %v12121_v16, -inf }
 0x7e1   : > { %4208 = vmax.xlane.f32.xlu0 %v4207_v9 }
 0x7e7   : > { %v12125_v33 = vpop.f32.mrf.mxu0 }
 0x7e8   : > { %v4210_v23 = vsel %vm3959_vm5, %v12125_v33, -inf }
 0x7e9   : > { %4211 = vmax.xlane.f32.xlu1 %v4210_v23 }
 0x7ef   : > { %v12129_v29 = vpop.f32.mrf.mxu0 }
 0x7f0   : > { %v4098_v4 = vpop.f32.mrf.mxu3  ;;  %v4213_v24 = vsel %vm3978_vm6, %v12129_v29, -inf }
 0x7f1   : > { %9362 = vmatmul.msk.f32.gmra.mxu3 %vm3885_vm4, %v4098_v4  ;;  %4214 = vmax.xlane.f32.xlu2 %v4213_v24 }
 0x7f5   : > { %4290 = vrot.lane.b32.xlu0 %v11884_v31, %s14144_s23 }
 0x7f8   : > { %v12179_v28 = vpop.f32.mrf.mxu3 }
 0x7f9   : > { %9399 = vmatmul.msk.f32.vlgmr.msra.gmra.mxu3 %vm3885_vm4, %v4796_v49 }
 0x800   : > { %v12188_v58 = vpop.f32.mrf.mxu3 }
 0x801   : > { %9400 = vmatmul.msk.f32.gmra.mxu3 %vm3885_vm4, %v4798_v37 }
 0x802   : > { %9972 = vrot.lane.b32.xlu1 %v11878_v12, %s14144_s23 }
 0x809   : > { %9401 = vmatmul.msk.f32.gmra.mxu3 %vm3885_vm4, %v4800_v44 }
 0x80a   : > { %9982 = vrot.lane.b32.xlu1 %v11862_v39, %s14144_s23 }
 0x811   : > { %9402 = vmatmul.msk.f32.gmra.mxu3 %vm3885_vm4, %v4802_v13 }
 0x814   : > { %v12145_v55 = vpop.f32.mrf.mxu0 }
 0x815   : > { %v4571_v25 = vsel %vm3959_vm5, %v12145_v55, -inf }
 0x819   : > { %9403 = vmatmul.msk.f32.gmra.mxu3 %vm3885_vm4, %v4804_v51 }
 0x81c   : > { %v12151_v43 = vpop.f32.mrf.mxu0 }
 0x81d   : > { %v4574_v9 = vsel %vm3959_vm5, %v12151_v43, -inf }
 0x81f   : > { %4572 = vmax.xlane.f32.xlu0 %v4571_v25 }
 0x821   : > { %9404 = vmatmul.msk.f32.gmra.mxu3 %vm3885_vm4, %v4806_v15 }
 0x824   : > { %v12157_v10 = vpop.f32.mrf.mxu0 }
 0x825   : > { %v4577_v63 = vsel %vm3959_vm5, %v12157_v10, -inf }
 0x829   : > { %9405 = vmatmul.msk.f32.gmra.mxu3 %vm3885_vm4, %v4808_v40 }
 0x82c   : > { %v12165_v20 = vpop.f32.mrf.mxu0 }
 0x82d   : > { %v4580_v49 = vsel %vm3959_vm5, %v12165_v20, -inf }
 0x834   : > { %v4197_v38 = vpop.xlane.xlu2 %4196  ;;  %v12173_v62 = vpop.f32.mrf.mxu0 }
 0x835   : > { %v4216_v61 = vsub.f32 %v4174_v34, %v4197_v38  ;;  %v4583_v37 = vsel %vm3959_vm5, %v12173_v62, -inf  ;;  %v12196_v34 = vpop.f32.mrf.mxu3 }
 0x837   : > { %v4223_v36 = vmul.f32 1.442695, %v4216_v61 }
 0x839   : > { %10133 = vpow2.f32 %v4223_v36 }
 0x83c   : > { %v4200_v41 = vpop.xlane.xlu0 %4199  ;;  %v12181_v5 = vpop.f32.mrf.mxu0 }
 0x83d   : > { %v4217_v46 = vsub.f32 %v4177_v19, %v4200_v41  ;;  %v4586_v22 = vsel %vm3959_vm5, %v12181_v5, -inf  ;;  %v12199_v17 = vpop.f32.mrf.mxu3 }
 0x83f   : > { %v12153_v60 = vpop.eup %10133  ;;  %v4225_v59 = vmul.f32 1.442695, %v4217_v46 }
 0x840   : > { %v4237_v14 = vsel %vm3959_vm5, %v12153_v60, 0.0 }
 0x841   : > { %10135 = vpow2.f32 %v4225_v59  ;;  %4238 = vadd.xlane.f32.xlu2 %v4237_v14 }
 0x844   : > { %v4203_v32 = vpop.xlane.xlu1 %4202  ;;  %v12190_v26 = vpop.f32.mrf.mxu0 }
 0x845   : > { %v4218_v54 = vsub.f32 %v4180_v42, %v4203_v32  ;;  %v4589_v51 = vsel %vm3978_vm6, %v12190_v26, -inf  ;;  %v12206_v24 = vpop.f32.mrf.mxu3 }
 0x847   : > { %v12159_v3 = vpop.eup %10135  ;;  %v4227_v53 = vmul.f32 1.442695, %v4218_v54 }
 0x848   : > { %v4240_v56 = vsel %vm3959_vm5, %v12159_v3, 0.0 }
 0x849   : > { %10137 = vpow2.f32 %v4227_v53  ;;  %4241 = vadd.xlane.f32.xlu1 %v4240_v56 }
 0x84c   : > { %v4206_v35 = vpop.xlane.xlu2 %4205 }
 0x84d   : > { %v4219_v2 = vsub.f32 %v12117_v1, %v4206_v35  ;;  %v12216_v61 = vpop.f32.mrf.mxu3 }
 0x84f   : > { %v12163_v52 = vpop.eup %10137  ;;  %v4229_v42 = vmul.f32 1.442695, %v4219_v2 }
 0x850   : > { %v4243_v27 = vsel %vm3959_vm5, %v12163_v52, 0.0 }
 0x851   : > { %4578 = vmax.xlane.f32.xlu1 %v4577_v63  ;;  %4244 = vadd.xlane.f32.xlu0 %v4243_v27  ;;  %10139 = vpow2.f32 %v4229_v42 }
 0x854   : > { %v4209_v47 = vpop.xlane.xlu0 %4208 }
 0x855   : > { %v4220_v45 = vsub.f32 %v12121_v16, %v4209_v47 }
 0x857   : > { %v4231_v23 = vmul.f32 1.442695, %v4220_v45  ;;  %v12204_v4 = vpop.eup %10139 }
 0x858   : > { %v4246_v1 = vsel %vm3959_vm5, %v12204_v4, 0.0 }
 0x859   : > { %9977 = vrot.lane.b32.xlu2 %v11864_v57, %s14144_s23  ;;  %4581 = vmax.xlane.f32.xlu1 %v4580_v49  ;;  %10141 = vpow2.f32 %v4231_v23 }
 0x85c   : > { %v4212_v13 = vpop.xlane.xlu1 %4211 }
 0x85d   : > { %v4221_v25 = vsub.f32 %v12125_v33, %v4212_v13 }
 0x85f   : > { %v4233_v16 = vmul.f32 1.442695, %v4221_v25  ;;  %v12213_v40 = vpop.eup %10141 }
 0x860   : > { %v4249_v36 = vsel %vm3959_vm5, %v12213_v40, 0.0 }
 0x861   : > { %4584 = vmax.xlane.f32.xlu1 %v4583_v37  ;;  %10143 = vpow2.f32 %v4233_v16 }
 0x864   : > { %v4215_v15 = vpop.xlane.xlu2 %4214 }
 0x865   : > { %9992 = vrot.lane.b32.xlu0 %v11864_v57, %s14138_s27  ;;  %v4222_v38 = vsub.f32 %v12129_v29, %v4215_v15 }
 0x867   : > { %v4291_v44 = vpop.permute.xlu0 %4290  ;;  %v4235_v46 = vmul.f32 1.442695, %v4222_v38  ;;  %v12223_v14 = vpop.eup %10143 }
 0x868   : > { %9341 = vmatpush.msk.msrb.mxu1 %vm4059_vm3, %v4291_v44  ;;  %v4252_v29 = vsel %vm3959_vm5, %v12223_v14, 0.0 }
 0x869   : > { %4587 = vmax.xlane.f32.xlu1 %v4586_v22 }
 0x86d   : > { %9997 = vrot.lane.b32.xlu0 %v11862_v39, %s14138_s27 }
 0x871   : > { %4590 = vmax.xlane.f32.xlu1 %v4589_v51 }
 0x874   : > { %v9973_v7 = vpop.permute.xlu1 %9972  ;;  %v12225_v32 = vpop.f32.mrf.mxu3 }
 0x875   : > { %v9974_v18 = vunpack.i.l.bf16 %v9973_v7  ;;  %v9975_v19 = vunpack.i.h.bf16 %v9973_v7 }
 0x877   : > { %4331 = vmatpush.msrb.mxu1 %v9974_v18 }
 0x879   : > { %4332 = vmatpush.msrb.mxu1 %v9975_v19 }
 0x87c   : > { %v12239_v63 = vpop.f32.mrf.mxu3  ;;  %v9983_v49 = vpop.permute.xlu1 %9982 }
 0x87d   : > { %v9984_v7 = vunpack.i.l.bf16 %v9983_v49  ;;  %v9985_v18 = vunpack.i.h.bf16 %v9983_v49 }
 0x882   : > { %4575 = vmax.xlane.f32.xlu2 %v4574_v9 }
 0x884   : > { %v12241_v27 = vpop.f32.mrf.mxu3 }
 0x88a   : > { %4247 = vadd.xlane.f32.xlu2 %v4246_v1  ;;  %9987 = vrot.lane.b32.xlu1 %v11878_v12, %s14138_s27 }
 0x892   : > { %v4573_v33 = vpop.xlane.xlu0 %4572  ;;  %4250 = vadd.xlane.f32.xlu2 %v4249_v36  ;;  %4978 = vrot.lane.b32.xlu1 %v11884_v31, %s14136_s28 }
 0x893   : > { %v4592_v41 = vsub.f32 %v12145_v55, %v4573_v33 }
 0x895   : > { %v4599_v59 = vmul.f32 1.442695, %v4592_v41 }
 0x897   : > { %10145 = vpow2.f32 %v4599_v59 }
 0x898   : > { %10147 = vpow2.f32 %v4235_v46 }
 0x89a   : > { %10002 = vrot.lane.b32.xlu1 %v11878_v12, %s14136_s28  ;;  %4253 = vadd.xlane.f32.xlu2 %v4252_v29  ;;  %v12243_v12 = vpop.f32.mrf.mxu3 }
 0x89d   : > { %v12231_v54 = vpop.eup %10145 }
 0x89e   : > { %v12233_v53 = vpop.eup %10147  ;;  %v4613_v55 = vsel %vm3959_vm5, %v12231_v54, 0.0 }
 0x89f   : > { %4614 = vadd.xlane.f32.xlu0 %v4613_v55  ;;  %v4255_v56 = vsel %vm3978_vm6, %v12233_v53, 0.0 }
 0x8a2   : > { %4256 = vadd.xlane.f32.xlu2 %v4255_v56  ;;  %v12247_v35 = vpop.f32.mrf.mxu3 }
 0x8aa   : > { %v12252_v23 = vpop.f32.mrf.mxu3 }
 0x8b2   : > { %v12261_v15 = vpop.f32.mrf.mxu3 }
 0x8b4   : > { %v4239_v47 = vpop.xlane.xlu2 %4238 }
 0x8b5   : > { %10149 = vrcp.f32 %v4239_v47 }
 0x8ba   : > { %4660 = vrot.lane.b32.xlu2 %v11884_v31, %s14138_s27  ;;  %v12266_v36 = vpop.f32.mrf.mxu3  ;;  %s14181_s27 = smov 32  }
 0x8bb   : > { %v10150_v51 = vpop.eup %10149  ;;  %v4907_v33 = vsel %vm3978_vm6, %v12266_v36, -inf }
 0x8bc   : > { %v9978_v37 = vpop.permute.xlu2 %9977  ;;  %v4242_v44 = vpop.xlane.xlu1 %4241  ;;  %v4265_v19 = vmul.f32 %v10150_v51, %v12153_v60 }
 0x8bd   : > { %v9979_v22 = vunpack.i.l.bf16 %v9978_v37  ;;  %v9980_v13 = vunpack.i.h.bf16 %v9978_v37  ;;  %10151 = vrcp.f32 %v4242_v44 }
 0x8bf   : > { %4333 = vmatpush.msrb.mxu1 %v9979_v22 }
 0x8c1   : > { %4334 = vmatpush.msrb.mxu1 %v9980_v13 }
 0x8c3   : > { %4335 = vmatpush.msrb.mxu1 %v9984_v7  ;;  %v10152_v9 = vpop.eup %10151 }
 0x8c4   : > { %v4579_v2 = vpop.xlane.xlu1 %4578  ;;  %v4245_v45 = vpop.xlane.xlu0 %4244  ;;  %v4266_v25 = vmul.f32 %v10152_v9, %v12159_v3 }
 0x8c5   : > { %v4594_v42 = vsub.f32 %v12157_v10, %v4579_v2  ;;  %4336 = vmatpush.msrb.mxu1 %v9985_v18 }
 0x8c6   : > { %9342 = vmatmul.msk.f32.vlgmr.msrb.gmra.mxu1 %vm3959_vm5, %v4265_v19 }
 0x8c7   : > { %v4603_v31 = vmul.f32 1.442695, %v4594_v42 }
 0x8c9   : > { %10153 = vpow2.f32 %v4603_v31  ;;  %v3852_v31 = vld [vmem:[%s14122_s9 + $0x18] sm:$0xff] }
 0x8ca   : > { %10155 = vrcp.f32 %v4245_v45  ;;  %4394 = vmatpush.msrb.mxu2 %v3852_v31 }
 0x8cc   : > { %v12263_v38 = vpop.xlane.xlu1 %4581 }
 0x8ce   : > { %9343 = vmatmul.msk.f32.gmra.mxu1 %vm3959_vm5, %v4266_v25 }
 0x8cf   : > { %v12256_v1 = vpop.eup %10153 }
 0x8d0   : > { %v4619_v60 = vsel %vm3959_vm5, %v12256_v1, 0.0  ;;  %v10156_v10 = vpop.eup %10155 }
 0x8d1   : > { %4620 = vadd.xlane.f32.xlu1 %v4619_v60  ;;  %v4267_v16 = vmul.f32 %v10156_v10, %v12163_v52  ;;  %v4895_v60 = vsel %vm3959_vm5, %v12243_v12, -inf }
 0x8d4   : > { %v12268_v3 = vpop.xlane.xlu1 %4584 }
 0x8d6   : > { %9344 = vmatmul.msk.f32.gmra.mxu1 %vm3959_vm5, %v4267_v16 }
 0x8d7   : > { %v9993_v13 = vpop.permute.xlu0 %9992 }
 0x8dc   : > { %v12272_v41 = vpop.xlane.xlu1 %4587 }
 0x8df   : > { %v9998_v9 = vpop.permute.xlu0 %9997 }
 0x8e3   : > { %4908 = vmax.xlane.f32.xlu2 %v4907_v33 }
 0x8e4   : > { %v12274_v46 = vpop.xlane.xlu1 %4590 }
 0x8f5   : > { %v4576_v59 = vpop.xlane.xlu2 %4575 }
 0x8f6   : > { %v4593_v52 = vsub.f32 %v12151_v43, %v4576_v59 }
 0x8f8   : > { %v4601_v29 = vmul.f32 1.442695, %v4593_v52 }
 0x8fa   : > { %10157 = vpow2.f32 %v4601_v29 }
 0x8fb   : > { %10007 = vrot.lane.b32.xlu2 %v11864_v57, %s14136_s28  ;;  %v4889_v57 = vsel %vm3959_vm5, %v12239_v63, -inf }
 0x8fc   : > { %v9988_v55 = vpop.permute.xlu1 %9987 }
 0x8fd   : > { %v4248_v56 = vpop.xlane.xlu2 %4247  ;;  %v9989_v52 = vunpack.i.l.bf16 %v9988_v55  ;;  %v9990_v29 = vunpack.i.h.bf16 %v9988_v55 }
 0x8fe   : > { %10159 = vrcp.f32 %v4248_v56  ;;  %v9994_v56 = vunpack.i.l.bf16 %v9993_v13 }
 0x900   : > { %v12279_v49 = vpop.eup %10157 }
 0x901   : > { %v4616_v47 = vsel %vm3959_vm5, %v12279_v49, 0.0 }
 0x902   : > { %4617 = vadd.xlane.f32.xlu0 %v4616_v47  ;;  %v3851_v47 = vld [vmem:[%s14122_s9 + $0x10] sm:$0xff] }
 0x903   : > { %4395 = vmatpush.msrb.mxu2 %v3851_v47 }
 0x904   : > { %v10160_v37 = vpop.eup %10159  ;;  %v4979_v44 = vpop.permute.xlu1 %4978 }
 0x905   : > { %v4251_v22 = vpop.xlane.xlu2 %4250  ;;  %9406 = vmatpush.msk.msrb.mxu0 %vm4059_vm3, %v4979_v44  ;;  %v4268_v43 = vmul.f32 %v10160_v37, %v12204_v4  ;;  %v4892_v4 = vsel %vm3959_vm5, %v12241_v27, -inf  ;;  %v9999_v44 = vunpack.i.l.bf16 %v9998_v9 }
 0x906   : > { %10161 = vrcp.f32 %v4251_v22  ;;  %v10000_v22 = vunpack.i.h.bf16 %v9998_v9 }
 0x907   : > { %9345 = vmatmul.msk.f32.gmra.mxu1 %vm3959_vm5, %v4268_v43  ;;  %v4901_v43 = vsel %vm3959_vm5, %v12252_v23, -inf }
 0x90a   : > { %4890 = vmax.xlane.f32.xlu0 %v4889_v57  ;;  %v4904_v57 = vsel %vm3959_vm5, %v12261_v15, -inf }
 0x90c   : > { %v10162_v51 = vpop.eup %10161  ;;  %v10003_v7 = vpop.permute.xlu1 %10002 }
 0x90d   : > { %v10004_v18 = vunpack.i.l.bf16 %v10003_v7  ;;  %v4254_v19 = vpop.xlane.xlu2 %4253  ;;  %v4269_v2 = vmul.f32 %v10162_v51, %v12213_v40  ;;  %v10005_v42 = vunpack.i.h.bf16 %v10003_v7 }
 0x90e   : > { %10163 = vrcp.f32 %v4254_v19 }
 0x90f   : > { %9346 = vmatmul.msk.f32.gmra.mxu1 %vm3959_vm5, %v4269_v2  ;;  %5019 = vmatpush.msrb.mxu0 %v10004_v18 }
 0x911   : > { %5020 = vmatpush.msrb.mxu0 %v10005_v42 }
 0x912   : > { %4893 = vmax.xlane.f32.xlu0 %v4892_v4  ;;  %v4615_v16 = vpop.xlane.xlu0 %4614 }
 0x914   : > { %v10164_v45 = vpop.eup %10163 }
 0x915   : > { %v4257_v25 = vpop.xlane.xlu2 %4256  ;;  %v4270_v40 = vmul.f32 %v10164_v45, %v12223_v14  ;;  %v4898_v14 = vsel %vm3959_vm5, %v12247_v35, -inf }
 0x916   : > { %10165 = vrcp.f32 %v4257_v25  ;;  %v4595_v25 = vsub.f32 %v12165_v20, %v12263_v38  ;;  %v4596_v38 = vsub.f32 %v12173_v62, %v12268_v3 }
 0x917   : > { %9347 = vmatmul.msk.f32.gmra.mxu1 %vm3959_vm5, %v4270_v40  ;;  %10167 = vrcp.f32 %v4615_v16 }
 0x91a   : > { %4896 = vmax.xlane.f32.xlu0 %v4895_v60 }
 0x91c   : > { %v10166_v10 = vpop.eup %10165 }
 0x91d   : > { %v4661_v33 = vpop.permute.xlu2 %4660  ;;  %v4271_v59 = vmul.f32 %v10166_v10, %v12233_v53  ;;  %v9995_v53 = vunpack.i.h.bf16 %v9993_v13  ;;  %v10168_v37 = vpop.eup %10167  ;;  %v4605_v10 = vmul.f32 1.442695, %v4595_v25 }
 0x91e   : > { %9377 = vmatpush.msk.msra.mxu1 %vm4059_vm3, %v4661_v33  ;;  %v4641_v55 = vmul.f32 %v10168_v37, %v12231_v54 }
 0x91f   : > { %9348 = vmatmul.msk.f32.gmra.mxu1 %vm3959_vm5, %v4271_v59 }
 0x920   : > { %4701 = vmatpush.msra.mxu1 %v9989_v52 }
 0x922   : > { %4899 = vmax.xlane.f32.xlu0 %v4898_v14  ;;  %4702 = vmatpush.msra.mxu1 %v9990_v29  ;;  %v4607_v14 = vmul.f32 1.442695, %v4596_v38 }
 0x924   : > { %4703 = vmatpush.msra.mxu1 %v9994_v56 }
 0x926   : > { %4704 = vmatpush.msra.mxu1 %v9995_v53 }
 0x928   : > { %4705 = vmatpush.msra.mxu1 %v9999_v44 }
 0x92a   : > { %4902 = vmax.xlane.f32.xlu0 %v4901_v43  ;;  %4706 = vmatpush.msra.mxu1 %v10000_v22 }
 0x92b   : > { %9378 = vmatmul.msk.f32.vlgmr.msra.gmra.mxu1 %vm3959_vm5, %v4641_v55 }
 0x932   : > { %4905 = vmax.xlane.f32.xlu0 %v4904_v57 }
 0x943   : > { %v4338_v13 = vpop.f32.mrf.mxu1 }
 0x944   : > { %9349 = vmatmul.msk.f32.vlgmr.msrb.gmra.mxu2 %vm3885_vm4, %v4338_v13  ;;  %v4621_v4 = vpop.xlane.xlu1 %4620 }
 0x946   : > { %10012 = vrot.lane.b32.xlu0 %v11862_v39, %s14136_s28  ;;  %s14182_s28 = smov 96  }
 0x94b   : > { %v4341_v51 = vpop.f32.mrf.mxu1 }
 0x94c   : > { %9350 = vmatmul.msk.f32.gmra.mxu2 %vm3885_vm4, %v4341_v51 }
 0x953   : > { %v4344_v54 = vpop.f32.mrf.mxu1 }
 0x954   : > { %9351 = vmatmul.msk.f32.gmra.mxu2 %vm3885_vm4, %v4344_v54 }
 0x956   : > { %v4909_v7 = vpop.xlane.xlu2 %4908 }
 0x957   : > { %v4916_v44 = vsub.f32 %v12266_v36, %v4909_v7 }
 0x959   : > { %v4929_v57 = vmul.f32 1.442695, %v4916_v44 }
 0x95e   : > { %v10008_v18 = vpop.permute.xlu2 %10007 }
 0x95f   : > { %v10009_v19 = vunpack.i.l.bf16 %v10008_v18  ;;  %v10010_v2 = vunpack.i.h.bf16 %v10008_v18 }
 0x961   : > { %5021 = vmatpush.msrb.mxu0 %v10009_v19 }
 0x963   : > { %5022 = vmatpush.msrb.mxu0 %v10010_v2 }
 0x975   : > { %v4618_v42 = vpop.xlane.xlu0 %4617 }
 0x976   : > { %10169 = vrcp.f32 %v4618_v42 }
 0x977   : > { %10171 = vrcp.f32 %v4621_v4 }
 0x97c   : > { %v10170_v31 = vpop.eup %10169 }
 0x97d   : > { %v4891_v45 = vpop.xlane.xlu0 %4890  ;;  %v4642_v39 = vmul.f32 %v10170_v31, %v12279_v49  ;;  %v10172_v60 = vpop.eup %10171 }
 0x97e   : > { %v4910_v9 = vsub.f32 %v12239_v63, %v4891_v45  ;;  %v4643_v59 = vmul.f32 %v10172_v60, %v12256_v1  ;;  %v3854_v63 = vld [vmem:[%s14122_s9 + $0x28] sm:$0xff]  ;;  %v3853_v1 = vld [vmem:[%s14122_s9 + $0x20] sm:$0xff] }
 0x97f   : > { %9379 = vmatmul.msk.f32.gmra.mxu1 %vm3959_vm5, %v4642_v39  ;;  %4764 = vmatpush.msra.mxu2 %v3854_v63 }
 0x980   : > { %v4917_v40 = vmul.f32 1.442695, %v4910_v9 }
 0x981   : > { %4765 = vmatpush.msra.mxu2 %v3853_v1 }
 0x982   : > { %10173 = vpow2.f32 %v4917_v40 }
 0x983   : > { %10175 = vpow2.f32 %v4605_v10 }
 0x984   : > { %v4347_v16 = vpop.f32.mrf.mxu1 }
 0x985   : > { %v4894_v33 = vpop.xlane.xlu0 %4893  ;;  %9352 = vmatmul.msk.f32.gmra.mxu2 %vm3885_vm4, %v4347_v16 }
 0x986   : > { %v4911_v52 = vsub.f32 %v12241_v27, %v4894_v33  ;;  %v4598_v27 = vsub.f32 %v12190_v26, %v12274_v46  ;;  %v4597_v26 = vsub.f32 %v12181_v5, %v12272_v41 }
 0x987   : > { %9380 = vmatmul.msk.f32.gmra.mxu1 %vm3959_vm5, %v4643_v59 }
 0x988   : > { %v12330_v20 = vpop.eup %10173  ;;  %v4919_v49 = vmul.f32 1.442695, %v4911_v52  ;;  %v4611_v47 = vmul.f32 1.442695, %v4598_v27 }
 0x989   : > { %v4931_v29 = vsel %vm3959_vm5, %v12330_v20, 0.0  ;;  %v12342_v62 = vpop.eup %10175 }
 0x98a   : > { %10177 = vpow2.f32 %v4919_v49  ;;  %4932 = vadd.xlane.f32.xlu1 %v4931_v29  ;;  %v4622_v55 = vsel %vm3959_vm5, %v12342_v62, 0.0 }
 0x98b   : > { %10179 = vpow2.f32 %v4607_v14 }
 0x98c   : > { %v4350_v56 = vpop.f32.mrf.mxu1  ;;  %10181 = vpow2.f32 %v4611_v47 }
 0x98d   : > { %v4897_v53 = vpop.xlane.xlu0 %4896  ;;  %9353 = vmatmul.msk.f32.gmra.mxu2 %vm3885_vm4, %v4350_v56 }
 0x98e   : > { %v4912_v3 = vsub.f32 %v12243_v12, %v4897_v53  ;;  %v4609_v12 = vmul.f32 1.442695, %v4597_v26 }
 0x990   : > { %v12345_v37 = vpop.eup %10177  ;;  %v4921_v46 = vmul.f32 1.442695, %v4912_v3 }
 0x991   : > { %v4934_v22 = vsel %vm3959_vm5, %v12345_v37, 0.0  ;;  %v12355_v5 = vpop.eup %10179 }
 0x992   : > { %10183 = vpow2.f32 %v4921_v46  ;;  %4935 = vadd.xlane.f32.xlu2 %v4934_v22  ;;  %4623 = vadd.xlane.f32.xlu1 %v4622_v55  ;;  %v12357_v41 = vpop.eup %10181  ;;  %v4625_v7 = vsel %vm3959_vm5, %v12355_v5, 0.0 }
 0x993   : > { %10185 = vpow2.f32 %v4609_v12  ;;  %v4631_v18 = vsel %vm3978_vm6, %v12357_v41, 0.0 }
 0x994   : > { %v4353_v43 = vpop.f32.mrf.mxu1  ;;  %10187 = vpow2.f32 %v4929_v57 }
 0x995   : > { %v4900_v13 = vpop.xlane.xlu0 %4899  ;;  %9354 = vmatmul.msk.f32.gmra.mxu2 %vm3885_vm4, %v4353_v43 }
 0x996   : > { %v4913_v51 = vsub.f32 %v12247_v35, %v4900_v13 }
 0x998   : > { %v12359_v36 = vpop.eup %10183  ;;  %v4923_v19 = vmul.f32 1.442695, %v4913_v51 }
 0x999   : > { %v4937_v54 = vsel %vm3959_vm5, %v12359_v36, 0.0  ;;  %v12369_v4 = vpop.eup %10185 }
 0x99a   : > { %4938 = vadd.xlane.f32.xlu0 %v4937_v54  ;;  %4626 = vadd.xlane.f32.xlu1 %v4625_v7  ;;  %v12371_v35 = vpop.eup %10187  ;;  %10189 = vpow2.f32 %v4923_v19  ;;  %v4628_v45 = vsel %vm3959_vm5, %v12369_v4, 0.0  ;;  %v3856_v7 = vld [vmem:[%s14122_s9 + $0x38] sm:$0xff] }
 0x99b   : > { %4632 = vadd.xlane.f32.xlu2 %v4631_v18  ;;  %v4949_v39 = vsel %vm3978_vm6, %v12371_v35, 0.0  ;;  %5082 = vmatpush.msrb.mxu1 %v3856_v7 }
 0x99c   : > { %v4356_v2 = vpop.f32.mrf.mxu1 }
 0x99d   : > { %v4903_v42 = vpop.xlane.xlu0 %4902  ;;  %9355 = vmatmul.msk.f32.gmra.mxu2 %vm3885_vm4, %v4356_v2 }
 0x99e   : > { %v4914_v31 = vsub.f32 %v12252_v23, %v4903_v42 }
 0x9a0   : > { %v4925_v9 = vmul.f32 1.442695, %v4914_v31  ;;  %v12378_v40 = vpop.eup %10189 }
 0x9a1   : > { %v4940_v23 = vsel %vm3959_vm5, %v12378_v40, 0.0 }
 0x9a2   : > { %4629 = vadd.xlane.f32.xlu1 %v4628_v45  ;;  %10191 = vpow2.f32 %v4925_v9 }
 0x9a3   : > { %4950 = vadd.xlane.f32.xlu2 %v4949_v39 }
 0x9a5   : > { %v4906_v25 = vpop.xlane.xlu0 %4905 }
 0x9a6   : > { %v4915_v60 = vsub.f32 %v12261_v15, %v4906_v25 }
 0x9a8   : > { %v4708_v10 = vpop.f32.mrf.mxu1  ;;  %v4927_v16 = vmul.f32 1.442695, %v4915_v60  ;;  %v10192_v33 = vpop.eup %10191 }
 0x9a9   : > { %9385 = vmatmul.msk.f32.vlgmr.msra.gmra.mxu2 %vm3885_vm4, %v4708_v10  ;;  %v4943_v59 = vsel %vm3959_vm5, %v10192_v33, 0.0 }
 0x9aa   : > { %4941 = vadd.xlane.f32.xlu1 %v4940_v23  ;;  %10193 = vpow2.f32 %v4927_v16 }
 0x9b0   : > { %v12385_v52 = vpop.eup %10193 }
 0x9b1   : > { %v4946_v15 = vsel %vm3959_vm5, %v12385_v52, 0.0 }
 0x9b2   : > { %4944 = vadd.xlane.f32.xlu1 %v4943_v59 }
 0x9b8   : > { %v10013_v63 = vpop.permute.xlu0 %10012 }
 0x9b9   : > { %v10014_v38 = vunpack.i.l.bf16 %v10013_v63  ;;  %v10015_v49 = vunpack.i.h.bf16 %v10013_v63 }
 0x9ba   : > { %4947 = vadd.xlane.f32.xlu1 %v4946_v15 }
 0x9bb   : > { %5023 = vmatpush.msrb.mxu0 %v10014_v38 }
 0x9bd   : > { %5024 = vmatpush.msrb.mxu0 %v10015_v49 }
 0x9c7   : > { %v4397_v15 = vpop.f32.mrf.mxu2 }
 0x9fc   : > { %v4711_v1 = vpop.f32.mrf.mxu1 }
 0x9fd   : > { %v4933_v27 = vpop.xlane.xlu1 %4932  ;;  %9386 = vmatmul.msk.f32.gmra.mxu2 %vm3885_vm4, %v4711_v1  ;;  %v4400_v1 = vpop.f32.mrf.mxu2 }
 0x9fe   : > { %10195 = vrcp.f32 %v4933_v27 }
 0xa04   : > { %v10196_v29 = vpop.eup %10195  ;;  %v4714_v14 = vpop.f32.mrf.mxu1 }
 0xa05   : > { %v4959_v56 = vmul.f32 %v10196_v29, %v12330_v20  ;;  %v4936_v47 = vpop.xlane.xlu2 %4935  ;;  %v4624_v53 = vpop.xlane.xlu1 %4623  ;;  %9387 = vmatmul.msk.f32.gmra.mxu2 %vm3885_vm4, %v4714_v14 }
 0xa06   : > { %10197 = vrcp.f32 %v4936_v47  ;;  %v4403_v27 = vpop.f32.mrf.mxu2 }
 0xa07   : > { %10199 = vrcp.f32 %v4624_v53  ;;  %9407 = vmatmul.msk.f32.vlgmr.msrb.gmra.mxu0 %vm3959_vm5, %v4959_v56 }
 0xa0c   : > { %v10198_v3 = vpop.eup %10197 }
 0xa0d   : > { %v10200_v26 = vpop.eup %10199  ;;  %v4939_v46 = vpop.xlane.xlu0 %4938  ;;  %v4960_v22 = vmul.f32 %v10198_v3, %v12345_v37  ;;  %v4457_v3 = vadd.f32 %v12179_v28, %v4397_v15 }
 0xa0e   : > { %v4627_v44 = vpop.xlane.xlu1 %4626  ;;  %10201 = vrcp.f32 %v4939_v46  ;;  %v4644_v55 = vmul.f32 %v10200_v26, %v12342_v62  ;;  %v4633_v37 = vpop.xlane.xlu2 %4632 }
 0xa0f   : > { %9408 = vmatmul.msk.f32.gmra.mxu0 %vm3959_vm5, %v4960_v22  ;;  %10203 = vrcp.f32 %v4627_v44  ;;  %v4406_v29 = vpop.f32.mrf.mxu2  ;;  %v10065_v22 = vld [vmem:[%s14123_s10] ss:$0 sm:$0xff] }
 0xa10   : > { %9381 = vmatmul.msk.f32.gmra.mxu1 %vm3959_vm5, %v4644_v55 }
 0xa14   : > { %v10202_v20 = vpop.eup %10201 }
 0xa15   : > { %v4961_v43 = vmul.f32 %v10202_v20, %v12359_v36  ;;  %v10204_v57 = vpop.eup %10203 }
 0xa16   : > { %v4630_v12 = vpop.xlane.xlu1 %4629  ;;  %v4645_v13 = vmul.f32 %v10204_v57, %v12355_v5  ;;  %v4951_v45 = vpop.xlane.xlu2 %4950 }
 0xa17   : > { %10205 = vrcp.f32 %v4630_v12  ;;  %9409 = vmatmul.msk.f32.gmra.mxu0 %vm3959_vm5, %v4961_v43  ;;  %v4409_v14 = vpop.f32.mrf.mxu2  ;;  %v4460_v12 = vadd.f32 %v12188_v58, %v4400_v1 }
 0xa18   : > { %9382 = vmatmul.msk.f32.gmra.mxu1 %vm3959_vm5, %v4645_v13  ;;  %10207 = vrcp.f32 %v4633_v37 }
 0xa1d   : > { %v10206_v51 = vpop.eup %10205 }
 0xa1e   : > { %v4942_v62 = vpop.xlane.xlu1 %4941  ;;  %v4646_v54 = vmul.f32 %v10206_v51, %v12369_v4  ;;  %v10208_v36 = vpop.eup %10207 }
 0xa1f   : > { %10209 = vrcp.f32 %v4942_v62  ;;  %v4647_v2 = vmul.f32 %v10208_v36, %v12357_v41  ;;  %v4412_v56 = vpop.f32.mrf.mxu2 }
 0xa20   : > { %9383 = vmatmul.msk.f32.gmra.mxu1 %vm3959_vm5, %v4646_v54  ;;  %v4463_v54 = vadd.f32 %v12196_v34, %v4403_v27  ;;  %v4466_v34 = vadd.f32 %v12199_v17, %v4406_v29 }
 0xa25   : > { %v10210_v5 = vpop.eup %10209 }
 0xa26   : > { %v4945_v18 = vpop.xlane.xlu1 %4944  ;;  %v4962_v19 = vmul.f32 %v10210_v5, %v12378_v40  ;;  %v3855_v40 = vld [vmem:[%s14122_s9 + $0x30] sm:$0xff] }
 0xa27   : > { %10211 = vrcp.f32 %v4945_v18  ;;  %5083 = vmatpush.msrb.mxu1 %v3855_v40  ;;  %v4415_v47 = vpop.f32.mrf.mxu2 }
 0xa28   : > { %9410 = vmatmul.msk.f32.gmra.mxu0 %vm3959_vm5, %v4962_v19  ;;  %9384 = vmatmul.msk.f32.gmra.mxu1 %vm3959_vm5, %v4647_v2 }
 0xa2d   : > { %v10212_v42 = vpop.eup %10211 }
 0xa2e   : > { %v4948_v4 = vpop.xlane.xlu1 %4947  ;;  %v4963_v31 = vmul.f32 %v10212_v42, %v10192_v33 }
 0xa2f   : > { %10213 = vrcp.f32 %v4948_v4  ;;  %v4767_v53 = vpop.f32.mrf.mxu2 }
 0xa30   : > { %9411 = vmatmul.msk.f32.gmra.mxu0 %vm3959_vm5, %v4963_v31  ;;  %10215 = vrcp.f32 %v4951_v45  ;;  %v4788_v26 = vadd.f32 %v4767_v53, %v4457_v3 }
 0xa35   : > { %v10214_v39 = vpop.eup %10213 }
 0xa36   : > { %v4964_v9 = vmul.f32 %v10214_v39, %v12385_v52  ;;  %v10216_v25 = vpop.eup %10215 }
 0xa37   : > { %v4965_v41 = vmul.f32 %v10216_v25, %v12371_v35 }
 0xa38   : > { %9412 = vmatmul.msk.f32.gmra.mxu0 %vm3959_vm5, %v4964_v9  ;;  %v4469_v9 = vadd.f32 %v12206_v24, %v4409_v14 }
 0xa40   : > { %9413 = vmatmul.msk.f32.gmra.mxu0 %vm3959_vm5, %v4965_v41 }
 0xa80   : > { %v4770_v55 = vpop.f32.mrf.mxu2 }
 0xa81   : > { %v4789_v57 = vadd.f32 %v4770_v55, %v4460_v12 }
 0xa84   : > { %v5026_v60 = vpop.f32.mrf.mxu0 }
 0xa85   : > { %9414 = vmatmul.msk.f32.vlgmr.msrb.gmra.mxu1 %vm3885_vm4, %v5026_v60 }
 0xa88   : > { %v4773_v62 = vpop.f32.mrf.mxu2 }
 0xa89   : > { %v4790_v36 = vadd.f32 %v4773_v62, %v4463_v54 }
 0xa8c   : > { %v5029_v10 = vpop.f32.mrf.mxu0 }
 0xa8d   : > { %v4717_v23 = vpop.f32.mrf.mxu1  ;;  %9415 = vmatmul.msk.f32.gmra.mxu1 %vm3885_vm4, %v5029_v10 }
 0xa8e   : > { %9388 = vmatmul.msk.f32.gmra.mxu2 %vm3885_vm4, %v4717_v23  ;;  %v4472_v23 = vadd.f32 %v12216_v61, %v4412_v56 }
 0xa94   : > { %v5032_v16 = vpop.f32.mrf.mxu0 }
 0xa95   : > { %9416 = vmatmul.msk.f32.gmra.mxu1 %vm3885_vm4, %v5032_v16  ;;  %v4720_v35 = vpop.f32.mrf.mxu1 }
 0xa96   : > { %9389 = vmatmul.msk.f32.gmra.mxu2 %vm3885_vm4, %v4720_v35 }
 0xa9d   : > { %v4723_v33 = vpop.f32.mrf.mxu1 }
 0xa9e   : > { %9390 = vmatmul.msk.f32.gmra.mxu2 %vm3885_vm4, %v4723_v33 }
 0xaa5   : > { %v5035_v59 = vpop.f32.mrf.mxu0  ;;  %v4726_v52 = vpop.f32.mrf.mxu1 }
 0xaa6   : > { %9417 = vmatmul.msk.f32.gmra.mxu1 %vm3885_vm4, %v5035_v59  ;;  %9391 = vmatmul.msk.f32.gmra.mxu2 %vm3885_vm4, %v4726_v52 }
 0xaad   : > { %v5038_v63 = vpop.f32.mrf.mxu0 }
 0xaae   : > { %9418 = vmatmul.msk.f32.gmra.mxu1 %vm3885_vm4, %v5038_v63  ;;  %v4475_v63 = vadd.f32 %v12225_v32, %v4415_v47 }
 0xab5   : > { %v5041_v38 = vpop.f32.mrf.mxu0 }
 0xab6   : > { %9419 = vmatmul.msk.f32.gmra.mxu1 %vm3885_vm4, %v5041_v38 }
 0xabd   : > { %v5044_v49 = vpop.f32.mrf.mxu0 }
 0xabe   : > { %9420 = vmatmul.msk.f32.gmra.mxu1 %vm3885_vm4, %v5044_v49 }
 0xb02   : > { %v5085_v46 = vpop.f32.mrf.mxu1 }
 0xb03   : > { %v5106_v44 = vadd.f32 %v5085_v46, %v4788_v26 }
 0xb05   : > { %v5113_v20 = vadd.f32 %v5106_v44, %v11661_v6 }
 0xb07   : > { %v12435_v43 = vadd.f32 %v10065_v22, %v5113_v20 }
 0xb09   : > { %v5133_v13 = vsel %vm3371_vm0, %v12435_v43, 0.0 }
 0xb0a   : > { %v5088_v37 = vpop.f32.mrf.mxu1  ;;  %5134 = vadd.xlane.f32.xlu1 %v5133_v13 }
 0xb0b   : > { %v5107_v28 = vadd.f32 %v5088_v37, %v4789_v57 }
 0xb0d   : > { %v5114_v51 = vadd.f32 %v5107_v28, %v11669_v0 }
 0xb0f   : > { %v12441_v7 = vadd.f32 %v10065_v22, %v5114_v51 }
 0xb11   : > { %v5136_v6 = vsel %vm3371_vm0, %v12441_v7, 0.0  ;;  %v4776_v2 = vpop.f32.mrf.mxu2 }
 0xb12   : > { %v5091_v58 = vpop.f32.mrf.mxu1  ;;  %5137 = vadd.xlane.f32.xlu2 %v5136_v6  ;;  %v4791_v42 = vadd.f32 %v4776_v2, %v4466_v34 }
 0xb13   : > { %v5108_v5 = vadd.f32 %v5091_v58, %v4790_v36 }
 0xb15   : > { %v5115_v18 = vadd.f32 %v5108_v5, %v11677_v8 }
 0xb17   : > { %v12446_v19 = vadd.f32 %v10065_v22, %v5115_v18 }
 0xb19   : > { %v5139_v0 = vsel %vm3371_vm0, %v12446_v19, 0.0  ;;  %v4779_v4 = vpop.f32.mrf.mxu2 }
 0xb1a   : > { %5140 = vadd.xlane.f32.xlu0 %v5139_v0  ;;  %v4792_v8 = vadd.f32 %v4779_v4, %v4469_v9  ;;  %v5321_v9 = vld [vmem:[%s14126_s13 + $0x70] sm:$0xff] }
 0xb1b   : > { %5358 = vmatpush.msrb.mxu2 %v5321_v9 }
 0xb21   : > { %v4782_v10 = vpop.f32.mrf.mxu2 }
 0xb22   : > { %v4793_v35 = vadd.f32 %v4782_v10, %v4472_v23  ;;  %v5318_v10 = vld [vmem:[%s14126_s13 + $0x58] sm:$0xff]  ;;  %v5316_v23 = vld [vmem:[%s14126_s13 + $0x48] sm:$0xff] }
 0xb23   : > { %v5094_v31 = vpop.f32.mrf.mxu1 }
 0xb24   : > { %v5109_v45 = vadd.f32 %v5094_v31, %v4791_v42 }
 0xb26   : > { %v5116_v39 = vadd.f32 %v5109_v45, %v11685_v11 }
 0xb28   : > { %v12453_v25 = vadd.f32 %v10065_v22, %v5116_v39 }
 0xb29   : > { %v4785_v52 = vpop.f32.mrf.mxu2 }
 0xb2a   : > { %v5142_v41 = vsel %vm3371_vm0, %v12453_v25, 0.0  ;;  %v4794_v15 = vadd.f32 %v4785_v52, %v4475_v63  ;;  %v5310_v52 = vld [vmem:[%s14126_s13 + $0x18] sm:$0xff]  ;;  %v5307_v63 = vld [vmem:[%s14126_s13] sm:$0xff] }
 0xb2b   : > { %v5097_v40 = vpop.f32.mrf.mxu1  ;;  %5143 = vadd.xlane.f32.xlu1 %v5142_v41  ;;  %v5319_v41 = vld [vmem:[%s14126_s13 + $0x60] sm:$0xff] }
 0xb2c   : > { %v5110_v60 = vadd.f32 %v5097_v40, %v4792_v8  ;;  %v5322_v8 = vld [vmem:[%s14126_s13 + $0x78] sm:$0xff]  ;;  %v5320_v40 = vld [vmem:[%s14126_s13 + $0x68] sm:$0xff]  ;;  %5359 = vmatpush.msrb.mxu2 %v5319_v41 }
 0xb2d   : > { %5396 = vmatpush.msrb.mxu3 %v5322_v8 }
 0xb2e   : > { %v5117_v17 = vadd.f32 %v5110_v60, %v11692_v50  ;;  %v5317_v60 = vld [vmem:[%s14126_s13 + $0x50] sm:$0xff] }
 0xb2f   : > { %5397 = vmatpush.msrb.mxu3 %v5320_v40  ;;  %5360 = vmatpush.msrb.mxu2 %v5317_v60 }
 0xb30   : > { %v12459_v16 = vadd.f32 %v10065_v22, %v5117_v17  ;;  %v5315_v17 = vld [vmem:[%s14126_s13 + $0x40] sm:$0xff] }
 0xb31   : > { %5398 = vmatpush.msrb.mxu3 %v5318_v10  ;;  %5361 = vmatpush.msrb.mxu2 %v5315_v17 }
 0xb32   : > { %v5145_v11 = vsel %vm3371_vm0, %v12459_v16, 0.0 }
 0xb33   : > { %v5100_v24 = vpop.f32.mrf.mxu1  ;;  %5146 = vadd.xlane.f32.xlu2 %v5145_v11  ;;  %5399 = vmatpush.msrb.mxu3 %v5316_v23  ;;  %v5314_v11 = vld [vmem:[%s14126_s13 + $0x38] sm:$0xff] }
 0xb34   : > { %v5111_v33 = vadd.f32 %v5100_v24, %v4793_v35  ;;  %v5313_v35 = vld [vmem:[%s14126_s13 + $0x30] sm:$0xff]  ;;  %v5311_v24 = vld [vmem:[%s14126_s13 + $0x20] sm:$0xff] }
 0xb35   : > { %5362 = vmatpush.msrb.mxu2 %v5313_v35  ;;  %5400 = vmatpush.msrb.mxu3 %v5314_v11 }
 0xb36   : > { %v5118_v59 = vadd.f32 %v5111_v33, %v11699_v21  ;;  %v5312_v33 = vld [vmem:[%s14126_s13 + $0x28] sm:$0xff] }
 0xb37   : > { %5363 = vmatpush.msrb.mxu2 %v5311_v24  ;;  %5401 = vmatpush.msrb.mxu3 %v5312_v33 }
 0xb38   : > { %v12465_v38 = vadd.f32 %v10065_v22, %v5118_v59  ;;  %v5309_v59 = vld [vmem:[%s14126_s13 + $0x10] sm:$0xff] }
 0xb39   : > { %5364 = vmatpush.msrb.mxu2 %v5309_v59  ;;  %5402 = vmatpush.msrb.mxu3 %v5310_v52 }
 0xb3a   : > { %v5148_v50 = vsel %vm3371_vm0, %v12465_v38, 0.0 }
 0xb3b   : > { %v5103_v61 = vpop.f32.mrf.mxu1  ;;  %5149 = vadd.xlane.f32.xlu0 %v5148_v50  ;;  %5365 = vmatpush.msrb.mxu2 %v5307_v63 }
 0xb3c   : > { %v5112_v49 = vadd.f32 %v5103_v61, %v4794_v15  ;;  %v5308_v15 = vld [vmem:[%s14126_s13 + $0x8] sm:$0xff] }
 0xb3d   : > { %5403 = vmatpush.msrb.mxu3 %v5308_v15 }
 0xb3e   : > { %v5119_v1 = vadd.f32 %v5112_v49, %v11706_v30 }
 0xb40   : > { %v12470_v27 = vadd.f32 %v10065_v22, %v5119_v1 }
 0xb42   : > { %v5151_v29 = vsel %vm3390_vm1, %v12470_v27, 0.0 }
 0xb43   : > { %5152 = vadd.xlane.f32.xlu2 %v5151_v29 }
 0xb7d   : > { %v5135_v21 = vpop.xlane.xlu1 %5134 }
 0xb7e   : > { %v5154_v32 = vmul.f32 %v5135_v21, %v11596_v48 }
 0xb80   : > { %v12476_v14 = vsub.f32 %v12435_v43, %v5154_v32 }
 0xb82   : > { %v5168_v56 = vmul.f32 %v12476_v14, %v12476_v14 }
 0xb84   : > { %v5175_v47 = vsel %vm3371_vm0, %v5168_v56, 0.0 }
 0xb85   : > { %v5138_v53 = vpop.xlane.xlu2 %5137  ;;  %5176 = vadd.xlane.f32.xlu1 %v5175_v47 }
 0xb86   : > { %v5155_v30 = vmul.f32 %v5138_v53, %v11596_v48 }
 0xb88   : > { %v12483_v3 = vsub.f32 %v12441_v7, %v5155_v30 }
 0xb8a   : > { %v5169_v26 = vmul.f32 %v12483_v3, %v12483_v3 }
 0xb8c   : > { %v5178_v46 = vsel %vm3371_vm0, %v5169_v26, 0.0 }
 0xb8d   : > { %v5141_v44 = vpop.xlane.xlu0 %5140  ;;  %5179 = vadd.xlane.f32.xlu0 %v5178_v46 }
 0xb8e   : > { %v5156_v22 = vmul.f32 %v5141_v44, %v11596_v48 }
 0xb90   : > { %v12490_v55 = vsub.f32 %v12446_v19, %v5156_v22 }
 0xb92   : > { %v5170_v20 = vmul.f32 %v12490_v55, %v12490_v55 }
 0xb94   : > { %v5181_v12 = vsel %vm3371_vm0, %v5170_v20, 0.0 }
 0xb95   : > { %5182 = vadd.xlane.f32.xlu1 %v5181_v12 }
 0xb9e   : > { %v5144_v57 = vpop.xlane.xlu1 %5143 }
 0xb9f   : > { %v5157_v13 = vmul.f32 %v5144_v57, %v11596_v48  ;;  %v12577_v57 = vld [vmem:[%s14124_s11] ss:$0 sm:$0xff] }
 0xba1   : > { %v12497_v37 = vsub.f32 %v12453_v25, %v5157_v13 }
 0xba3   : > { %v5171_v28 = vmul.f32 %v12497_v37, %v12497_v37 }
 0xba5   : > { %v5184_v51 = vsel %vm3371_vm0, %v5171_v28, 0.0 }
 0xba6   : > { %v5147_v62 = vpop.xlane.xlu2 %5146  ;;  %5185 = vadd.xlane.f32.xlu2 %v5184_v51  ;;  %v12582_v51 = vld [vmem:[%s14125_s12] ss:$0 sm:$0xff] }
 0xba7   : > { %v5158_v54 = vmul.f32 %v5147_v62, %v11596_v48 }
 0xba9   : > { %v12504_v36 = vsub.f32 %v12459_v16, %v5158_v54 }
 0xbab   : > { %v5172_v6 = vmul.f32 %v12504_v36, %v12504_v36 }
 0xbad   : > { %v5187_v58 = vsel %vm3371_vm0, %v5172_v6, 0.0 }
 0xbae   : > { %5188 = vadd.xlane.f32.xlu0 %v5187_v58  ;;  %v5150_v5 = vpop.xlane.xlu0 %5149 }
 0xbaf   : > { %v5159_v18 = vmul.f32 %v5150_v5, %v11596_v48 }
 0xbb1   : > { %v12511_v2 = vsub.f32 %v12465_v38, %v5159_v18 }
 0xbb3   : > { %v5173_v0 = vmul.f32 %v12511_v2, %v12511_v2 }
 0xbb5   : > { %v5190_v34 = vsel %vm3371_vm0, %v5173_v0, 0.0 }
 0xbb6   : > { %5191 = vadd.xlane.f32.xlu1 %v5190_v34  ;;  %v5153_v42 = vpop.xlane.xlu2 %5152 }
 0xbb7   : > { %v5160_v4 = vmul.f32 %v5153_v42, %v11596_v48 }
 0xbb9   : > { %v12518_v31 = vsub.f32 %v12470_v27, %v5160_v4 }
 0xbbb   : > { %v5174_v45 = vmul.f32 %v12518_v31, %v12518_v31 }
 0xbbd   : > { %v5193_v39 = vsel %vm3390_vm1, %v5174_v45, 0.0 }
 0xbbe   : > { %5194 = vadd.xlane.f32.xlu2 %v5193_v39 }
 0xbf8   : > { %v5177_v50 = vpop.xlane.xlu1 %5176 }
 0xbf9   : > { %v5196_v61 = vmul.f32 %v5177_v50, %v11596_v48 }
 0xbfb   : > { %v5203_v49 = vadd.f32 1e-05, %v5196_v61 }
 0xbfd   : > { %10217 = vrsqrt.f32 %v5203_v49  ;;  %vm5216_vm8 = vweird.f32 %v5203_v49 }
 0xc00   : > { %v5180_v1 = vpop.xlane.xlu0 %5179 }
 0xc01   : > { %v5197_v29 = vmul.f32 %v5180_v1, %v11596_v48 }
 0xc03   : > { %v10218_v21 = vpop.eup %10217  ;;  %v5204_v32 = vadd.f32 1e-05, %v5197_v29 }
 0xc04   : > { %v5211_v56 = vmul.f32 %v10218_v21, %v5203_v49  ;;  %vm5217_vm7 = vweird.f32 %v10218_v21 }
 0xc05   : > { %10219 = vrsqrt.f32 %v5204_v32  ;;  %vm5218_vm9 = vmor %vm5216_vm8, %vm5217_vm7  ;;  %vm5226_vm11 = vweird.f32 %v5204_v32 }
 0xc06   : > { %v5212_v47 = vmul.f32 %v10218_v21, %v5211_v56 }
 0xc08   : > { %v5213_v53 = vmul.f32 0.5, %v5212_v47  ;;  %v5183_v30 = vpop.xlane.xlu1 %5182 }
 0xc09   : > { %v5198_v26 = vmul.f32 %v5183_v30, %v11596_v48 }
 0xc0a   : > { %v5214_v46 = vsub.f32 1.5, %v5213_v53 }
 0xc0b   : > { %v10220_v44 = vpop.eup %10219  ;;  %v5205_v22 = vadd.f32 1e-05, %v5198_v26 }
 0xc0c   : > { %v5215_v20 = vmul.f32 %v10218_v21, %v5214_v46  ;;  %v5221_v12 = vmul.f32 %v10220_v44, %v5204_v32  ;;  %vm5227_vm10 = vweird.f32 %v10220_v44 }
 0xc0d   : > { %10221 = vrsqrt.f32 %v5205_v22  ;;  %vm5228_vm12 = vmor %vm5226_vm11, %vm5227_vm10  ;;  %vm5236_vm14 = vweird.f32 %v5205_v22 }
 0xc0e   : > { %v5219_v13 = vsel %vm5218_vm9, %v10218_v21, %v5215_v20  ;;  %v5222_v28 = vmul.f32 %v10220_v44, %v5221_v12 }
 0xc0f   : > { %v5280_v62 = vmul.f32 %v5219_v13, %v12476_v14 }
 0xc10   : > { %v5223_v54 = vmul.f32 0.5, %v5222_v28 }
 0xc11   : > { %v5290_v6 = vmul.f32 %v12577_v57, %v5280_v62 }
 0xc12   : > { %v5224_v58 = vsub.f32 1.5, %v5223_v54 }
 0xc13   : > { %v10222_v5 = vpop.eup %10221  ;;  %v5300_v18 = vadd.f32 %v12582_v51, %v5290_v6 }
 0xc14   : > { %v5225_v0 = vmul.f32 %v10220_v44, %v5224_v58  ;;  %v5231_v34 = vmul.f32 %v10222_v5, %v5205_v22  ;;  %vm5237_vm13 = vweird.f32 %v10222_v5 }
 0xc15   : > { %9421 = vmatmul.msk.f32.vlgmr.msrb.gmra.mxu2 %vm3371_vm0, %v5300_v18  ;;  %9428 = vmatmul.msk.f32.vlgmr.msrb.gmra.mxu3 %vm3371_vm0, %v5300_v18  ;;  %vm5238_vm15 = vmor %vm5236_vm14, %vm5237_vm13 }
 0xc16   : > { %v5229_v42 = vsel %vm5228_vm12, %v10220_v44, %v5225_v0  ;;  %v5232_v4 = vmul.f32 %v10222_v5, %v5231_v34 }
 0xc17   : > { %v5281_v14 = vmul.f32 %v5229_v42, %v12483_v3 }
 0xc18   : > { %v5233_v45 = vmul.f32 0.5, %v5232_v4 }
 0xc19   : > { %v5186_v39 = vpop.xlane.xlu2 %5185  ;;  %v5291_v8 = vmul.f32 %v12577_v57, %v5281_v14 }
 0xc1a   : > { %v5199_v9 = vmul.f32 %v5186_v39, %v11596_v48  ;;  %v5234_v41 = vsub.f32 1.5, %v5233_v45 }
 0xc1b   : > { %v5301_v60 = vadd.f32 %v12582_v51, %v5291_v8 }
 0xc1c   : > { %v5206_v40 = vadd.f32 1e-05, %v5199_v9  ;;  %v5235_v10 = vmul.f32 %v10222_v5, %v5234_v41 }
 0xc1d   : > { %9422 = vmatmul.msk.f32.gmra.mxu2 %vm3371_vm0, %v5301_v60  ;;  %9429 = vmatmul.msk.f32.gmra.mxu3 %vm3371_vm0, %v5301_v60 }
 0xc1e   : > { %10223 = vrsqrt.f32 %v5206_v40  ;;  %v5239_v3 = vsel %vm5238_vm15, %v10222_v5, %v5235_v10  ;;  %vm5246_vm7 = vweird.f32 %v5206_v40 }
 0xc1f   : > { %v5282_v17 = vmul.f32 %v5239_v3, %v12490_v55  ;;  %v5735_v3 = vld [vmem:[%s14128_s15 + $0x78] sm:$0xff] }
 0xc20   : > { %5752 = vmatpush.msra.mxu0 %v5735_v3 }
 0xc21   : > { %v5189_v23 = vpop.xlane.xlu0 %5188  ;;  %v5292_v11 = vmul.f32 %v12577_v57, %v5282_v17  ;;  %v5751_v17 = vld [vmem:[%s14128_s15 + $0xf8] sm:$0xff] }
 0xc22   : > { %v5200_v35 = vmul.f32 %v5189_v23, %v11596_v48  ;;  %5790 = vmatpush.msra.mxu1 %v5751_v17  ;;  %v5749_v23 = vld [vmem:[%s14128_s15 + $0xe8] sm:$0xff] }
 0xc23   : > { %v5302_v59 = vadd.f32 %v12582_v51, %v5292_v11  ;;  %v5748_v11 = vld [vmem:[%s14128_s15 + $0xe0] sm:$0xff] }
 0xc24   : > { %v10224_v24 = vpop.eup %10223  ;;  %v5207_v33 = vadd.f32 1e-05, %v5200_v35  ;;  %v5732_v35 = vld [vmem:[%s14128_s15 + $0x60] sm:$0xff] }
 0xc25   : > { %v5241_v52 = vmul.f32 %v10224_v24, %v5206_v40  ;;  %9423 = vmatmul.msk.f32.gmra.mxu2 %vm3371_vm0, %v5302_v59  ;;  %9430 = vmatmul.msk.f32.gmra.mxu3 %vm3371_vm0, %v5302_v59  ;;  %vm5247_vm2 = vweird.f32 %v10224_v24  ;;  %v5730_v59 = vld [vmem:[%s14128_s15 + $0x50] sm:$0xff] }
 0xc26   : > { %10225 = vrsqrt.f32 %v5207_v33  ;;  %vm5248_vm8 = vmor %vm5246_vm7, %vm5247_vm2  ;;  %vm5256_vm10 = vweird.f32 %v5207_v33 }
 0xc27   : > { %v5242_v63 = vmul.f32 %v10224_v24, %v5241_v52  ;;  %v5746_v52 = vld [vmem:[%s14128_s15 + $0xd0] sm:$0xff] }
 0xc29   : > { %v5243_v15 = vmul.f32 0.5, %v5242_v63  ;;  %v5192_v50 = vpop.xlane.xlu1 %5191  ;;  %v5729_v63 = vld [vmem:[%s14128_s15 + $0x48] sm:$0xff] }
 0xc2a   : > { %v5201_v55 = vmul.f32 %v5192_v50, %v11596_v48  ;;  %v5728_v50 = vld [vmem:[%s14128_s15 + $0x40] sm:$0xff] }
 0xc2b   : > { %v5244_v61 = vsub.f32 1.5, %v5243_v15  ;;  %v5745_v15 = vld [vmem:[%s14128_s15 + $0xc8] sm:$0xff] }
 0xc2c   : > { %v10226_v49 = vpop.eup %10225  ;;  %v5208_v1 = vadd.f32 1e-05, %v5201_v55  ;;  %v5744_v55 = vld [vmem:[%s14128_s15 + $0xc0] sm:$0xff] }
 0xc2d   : > { %v5245_v29 = vmul.f32 %v10224_v24, %v5244_v61  ;;  %v5251_v21 = vmul.f32 %v10226_v49, %v5207_v33  ;;  %vm5257_vm9 = vweird.f32 %v10226_v49  ;;  %v5747_v33 = vld [vmem:[%s14128_s15 + $0xd8] sm:$0xff]  ;;  %v5323_v61 = vld [vmem:[%s14127_s14] sm:$0x3] }
 0xc2e   : > { %10227 = vrsqrt.f32 %v5208_v1  ;;  %vm5258_vm11 = vmor %vm5256_vm10, %vm5257_vm9  ;;  %vm5266_vm13 = vweird.f32 %v5208_v1 }
 0xc2f   : > { %v5249_v32 = vsel %vm5248_vm8, %v10224_v24, %v5245_v29  ;;  %v5252_v56 = vmul.f32 %v10226_v49, %v5251_v21  ;;  %v5731_v24 = vld [vmem:[%s14128_s15 + $0x58] sm:$0xff]  ;;  %v5726_v29 = vld [vmem:[%s14128_s15 + $0x30] sm:$0xff] }
 0xc30   : > { %v5283_v47 = vmul.f32 %v5249_v32, %v12497_v37  ;;  %v5742_v21 = vld [vmem:[%s14128_s15 + $0xb0] sm:$0xff]  ;;  %v12686_v32 = vperm.slane %v5323_v61, 0 }
 0xc31   : > { %v5253_v53 = vmul.f32 0.5, %v5252_v56  ;;  %v5195_v30 = vpop.xlane.xlu2 %5194  ;;  %v12688_v56 = vperm.slane %v5323_v61, 1 }
 0xc32   : > { %v5202_v26 = vmul.f32 %v5195_v30, %v11596_v48  ;;  %v5293_v46 = vmul.f32 %v12577_v57, %v5283_v47  ;;  %v5725_v47 = vld [vmem:[%s14128_s15 + $0x28] sm:$0xff] }
 0xc33   : > { %v5254_v44 = vsub.f32 1.5, %v5253_v53  ;;  %v5741_v53 = vld [vmem:[%s14128_s15 + $0xa8] sm:$0xff] }
 0xc34   : > { %v10228_v22 = vpop.eup %10227  ;;  %v5209_v20 = vadd.f32 1e-05, %v5202_v26  ;;  %v5303_v12 = vadd.f32 %v12582_v51, %v5293_v46  ;;  %v5724_v46 = vld [vmem:[%s14128_s15 + $0x20] sm:$0xff] }
 0xc35   : > { %v5255_v13 = vmul.f32 %v10226_v49, %v5254_v44  ;;  %v5261_v28 = vmul.f32 %v10228_v22, %v5208_v1  ;;  %vm5267_vm12 = vweird.f32 %v10228_v22  ;;  %v5743_v1 = vld [vmem:[%s14128_s15 + $0xb8] sm:$0xff]  ;;  %v5740_v44 = vld [vmem:[%s14128_s15 + $0xa0] sm:$0xff] }
 0xc36   : > { %10229 = vrsqrt.f32 %v5209_v20  ;;  %9424 = vmatmul.msk.f32.gmra.mxu2 %vm3371_vm0, %v5303_v12  ;;  %9431 = vmatmul.msk.f32.gmra.mxu3 %vm3371_vm0, %v5303_v12  ;;  %vm5268_vm14 = vmor %vm5266_vm13, %vm5267_vm12  ;;  %vm5276_vm2 = vweird.f32 %v5209_v20  ;;  %v5723_v12 = vld [vmem:[%s14128_s15 + $0x18] sm:$0xff] }
 0xc37   : > { %v5259_v37 = vsel %vm5258_vm11, %v10226_v49, %v5255_v13  ;;  %v5262_v62 = vmul.f32 %v10228_v22, %v5261_v28  ;;  %v5727_v49 = vld [vmem:[%s14128_s15 + $0x38] sm:$0xff] }
 0xc38   : > { %v5284_v54 = vmul.f32 %v5259_v37, %v12504_v36  ;;  %v5739_v13 = vld [vmem:[%s14128_s15 + $0x98] sm:$0xff] }
 0xc39   : > { %v5263_v6 = vmul.f32 0.5, %v5262_v62  ;;  %v5722_v62 = vld [vmem:[%s14128_s15 + $0x10] sm:$0xff] }
 0xc3a   : > { %v5294_v58 = vmul.f32 %v12577_v57, %v5284_v54  ;;  %v5738_v54 = vld [vmem:[%s14128_s15 + $0x90] sm:$0xff] }
 0xc3b   : > { %v5264_v5 = vsub.f32 1.5, %v5263_v6 }
 0xc3c   : > { %v10230_v18 = vpop.eup %10229  ;;  %v5304_v0 = vadd.f32 %v12582_v51, %v5294_v58 }
 0xc3d   : > { %v5265_v34 = vmul.f32 %v10228_v22, %v5264_v5  ;;  %v5271_v42 = vmul.f32 %v10230_v18, %v5209_v20  ;;  %vm5277_vm15 = vweird.f32 %v10230_v18  ;;  %v5721_v5 = vld [vmem:[%s14128_s15 + $0x8] sm:$0xff] }
 0xc3e   : > { %9425 = vmatmul.msk.f32.gmra.mxu2 %vm3371_vm0, %v5304_v0  ;;  %9432 = vmatmul.msk.f32.gmra.mxu3 %vm3371_vm0, %v5304_v0  ;;  %vm5278_vm7 = vmor %vm5276_vm2, %vm5277_vm15 }
 0xc3f   : > { %v5269_v4 = vsel %vm5268_vm14, %v10228_v22, %v5265_v34  ;;  %v5272_v14 = vmul.f32 %v10230_v18, %v5271_v42  ;;  %v5720_v42 = vld [vmem:[%s14128_s15] sm:$0xff] }
 0xc40   : > { %v5285_v36 = vmul.f32 %v5269_v4, %v12511_v2  ;;  %v5736_v4 = vld [vmem:[%s14128_s15 + $0x80] sm:$0xff] }
 0xc41   : > { %v5273_v45 = vmul.f32 0.5, %v5272_v14 }
 0xc42   : > { %v5295_v39 = vmul.f32 %v12577_v57, %v5285_v36 }
 0xc43   : > { %v5274_v9 = vsub.f32 1.5, %v5273_v45 }
 0xc44   : > { %v5305_v8 = vadd.f32 %v12582_v51, %v5295_v39 }
 0xc45   : > { %v5275_v41 = vmul.f32 %v10230_v18, %v5274_v9 }
 0xc46   : > { %9426 = vmatmul.msk.f32.gmra.mxu2 %vm3371_vm0, %v5305_v8  ;;  %9433 = vmatmul.msk.f32.gmra.mxu3 %vm3371_vm0, %v5305_v8 }
 0xc47   : > { %v5279_v40 = vsel %vm5278_vm7, %v10230_v18, %v5275_v41  ;;  %v5737_v18 = vld [vmem:[%s14128_s15 + $0x88] sm:$0xff] }
 0xc48   : > { %v5286_v60 = vmul.f32 %v5279_v40, %v12518_v31  ;;  %v5734_v31 = vld [vmem:[%s14128_s15 + $0x70] sm:$0xff] }
 0xc49   : > { %5753 = vmatpush.msra.mxu0 %v5734_v31 }
 0xc4a   : > { %v5296_v10 = vmul.f32 %v12577_v57, %v5286_v60  ;;  %v5750_v57 = vld [vmem:[%s14128_s15 + $0xf0] sm:$0xff] }
 0xc4b   : > { %5791 = vmatpush.msra.mxu1 %v5750_v57 }
 0xc4c   : > { %v5306_v2 = vadd.f32 %v12582_v51, %v5296_v10  ;;  %v5733_v51 = vld [vmem:[%s14128_s15 + $0x68] sm:$0xff] }
 0xc4d   : > { %5754 = vmatpush.msra.mxu0 %v5733_v51  ;;  %5792 = vmatpush.msra.mxu1 %v5749_v23 }
 0xc4e   : > { %9427 = vmatmul.msk.f32.gmra.mxu2 %vm3371_vm0, %v5306_v2  ;;  %9434 = vmatmul.msk.f32.gmra.mxu3 %vm3371_vm0, %v5306_v2 }
 0xc4f   : > { %5755 = vmatpush.msra.mxu0 %v5732_v35  ;;  %5793 = vmatpush.msra.mxu1 %v5748_v11 }
 0xc51   : > { %5756 = vmatpush.msra.mxu0 %v5731_v24  ;;  %5794 = vmatpush.msra.mxu1 %v5747_v33 }
 0xc53   : > { %5757 = vmatpush.msra.mxu0 %v5730_v59  ;;  %5795 = vmatpush.msra.mxu1 %v5746_v52 }
 0xc55   : > { %5758 = vmatpush.msra.mxu0 %v5729_v63  ;;  %5796 = vmatpush.msra.mxu1 %v5745_v15 }
 0xc57   : > { %5759 = vmatpush.msra.mxu0 %v5728_v50  ;;  %5797 = vmatpush.msra.mxu1 %v5744_v55 }
 0xc59   : > { %5760 = vmatpush.msra.mxu0 %v5727_v49  ;;  %5798 = vmatpush.msra.mxu1 %v5743_v1 }
 0xc5b   : > { %5761 = vmatpush.msra.mxu0 %v5726_v29  ;;  %5799 = vmatpush.msra.mxu1 %v5742_v21 }
 0xc5d   : > { %5762 = vmatpush.msra.mxu0 %v5725_v47  ;;  %5800 = vmatpush.msra.mxu1 %v5741_v53 }
 0xc5f   : > { %5763 = vmatpush.msra.mxu0 %v5724_v46  ;;  %5801 = vmatpush.msra.mxu1 %v5740_v44 }
 0xc61   : > { %5764 = vmatpush.msra.mxu0 %v5723_v12  ;;  %5802 = vmatpush.msra.mxu1 %v5739_v13 }
 0xc63   : > { %5765 = vmatpush.msra.mxu0 %v5722_v62  ;;  %5803 = vmatpush.msra.mxu1 %v5738_v54 }
 0xc65   : > { %5766 = vmatpush.msra.mxu0 %v5721_v5  ;;  %5804 = vmatpush.msra.mxu1 %v5737_v18 }
 0xc67   : > { %5767 = vmatpush.msra.mxu0 %v5720_v42  ;;  %5805 = vmatpush.msra.mxu1 %v5736_v4 }
 0xc98   : > { %v5367_v30 = vpop.f32.mrf.mxu2  ;;  %v5405_v26 = vpop.f32.mrf.mxu3 }
 0xc99   : > { %v12703_v22 = vadd.f32 %v5367_v30, %v12686_v32  ;;  %v12706_v20 = vadd.f32 %v5405_v26, %v12688_v56 }
 0xc9b   : > { %v9435_v28 = vmul.f32 -1.702, %v12703_v22  ;;  %v9436_v37 = vmul.f32 -1.702, %v12706_v20 }
 0xc9d   : > { %v5454_v6 = vmul.f32 1.442695, %v9435_v28  ;;  %v5456_v58 = vmul.f32 1.442695, %v9436_v37 }
 0xc9f   : > { %10231 = vpow2.f32 %v5454_v6 }
 0xca0   : > { %10233 = vpow2.f32 %v5456_v58  ;;  %v5370_v0 = vpop.f32.mrf.mxu2  ;;  %v5408_v34 = vpop.f32.mrf.mxu3 }
 0xca1   : > { %v12735_v14 = vadd.f32 %v5370_v0, %v12686_v32  ;;  %v12738_v36 = vadd.f32 %v5408_v34, %v12688_v56 }
 0xca3   : > { %v9437_v45 = vmul.f32 -1.702, %v12735_v14  ;;  %v9438_v39 = vmul.f32 -1.702, %v12738_v36 }
 0xca5   : > { %v10232_v9 = vpop.eup %10231  ;;  %v5458_v8 = vmul.f32 1.442695, %v9437_v45  ;;  %v5460_v60 = vmul.f32 1.442695, %v9438_v39 }
 0xca6   : > { %v10234_v41 = vpop.eup %10233  ;;  %v5482_v40 = vadd.f32 1.0, %v10232_v9 }
 0xca7   : > { %v5483_v10 = vadd.f32 1.0, %v10234_v41  ;;  %10235 = vpow2.f32 %v5458_v8 }
 0xca8   : > { %10237 = vrcp.f32 %v5482_v40  ;;  %v5373_v2 = vpop.f32.mrf.mxu2  ;;  %v5411_v3 = vpop.f32.mrf.mxu3  ;;  %v5505_v61 = vand.u32 2147483647, %v5482_v40  ;;  %v5507_v49 = vand.u32 2147483648, %v5482_v40  ;;  %vm5501_vm10 = vweird.f32 %v5482_v40 }
 0xca9   : > { %10239 = vrcp.f32 %v5483_v10  ;;  %v12743_v17 = vadd.f32 %v5373_v2, %v12686_v32  ;;  %v12746_v31 = vadd.f32 %v5411_v3, %v12688_v56  ;;  %v5522_v21 = vand.u32 2147483648, %v5483_v10 }
 0xcaa   : > { %10241 = vpow2.f32 %v5460_v60  ;;  %v5520_v53 = vand.u32 2147483647, %v5483_v10  ;;  %v5508_v46 = vor.u32 1.1754944e-38, %v5507_v49  ;;  %vm5516_vm12 = vweird.f32 %v5483_v10 }
 0xcab   : > { %v9439_v57 = vmul.f32 -1.702, %v12743_v17  ;;  %v9440_v23 = vmul.f32 -1.702, %v12746_v31  ;;  %vm5506_vm13 = vcmp.eq.f32.partialorder %v5505_v61, 8.507059e+37  ;;  %v5523_v13 = vor.u32 1.1754944e-38, %v5522_v21 }
 0xcac   : > { %vm5521_vm15 = vcmp.eq.f32.partialorder %v5520_v53, 8.507059e+37 }
 0xcad   : > { %v10236_v51 = vpop.eup %10235  ;;  %v5462_v24 = vmul.f32 1.442695, %v9439_v57  ;;  %v5464_v55 = vmul.f32 1.442695, %v9440_v23 }
 0xcae   : > { %v10238_v35 = vpop.eup %10237  ;;  %v12750_v11 = vadd.f32 1.0, %v10236_v51 }
 0xcaf   : > { %v10240_v33 = vpop.eup %10239  ;;  %v5497_v59 = vmul.f32 %v10238_v35, %v5482_v40  ;;  %vm5502_vm8 = vweird.f32 %v10238_v35 }
 0xcb0   : > { %v10242_v52 = vpop.eup %10241  ;;  %v5512_v63 = vmul.f32 %v10240_v33, %v5483_v10  ;;  %10243 = vrcp.f32 %v12750_v11  ;;  %vm5517_vm9 = vweird.f32 %v10240_v33  ;;  %vm5503_vm11 = vmor %vm5501_vm10, %vm5502_vm8  ;;  %v5537_v6 = vand.u32 2147483648, %v12750_v11 }
 0xcb1   : > { %v5498_v15 = vsub.f32 1.0, %v5497_v59  ;;  %v12753_v50 = vadd.f32 1.0, %v10242_v52  ;;  %10245 = vpow2.f32 %v5462_v24  ;;  %vm5518_vm14 = vmor %vm5516_vm12, %vm5517_vm9  ;;  %v5535_v40 = vand.u32 2147483647, %v12750_v11 }
 0xcb2   : > { %v5513_v1 = vsub.f32 1.0, %v5512_v63  ;;  %vm5531_vm7 = vweird.f32 %v12750_v11  ;;  %v5538_v2 = vor.u32 1.1754944e-38, %v5537_v6 }
 0xcb3   : > { %v5499_v29 = vmul.f32 %v10238_v35, %v5498_v15  ;;  %10247 = vrcp.f32 %v12753_v50  ;;  %v5552_v3 = vand.u32 2147483648, %v12753_v50  ;;  %v5550_v23 = vand.u32 2147483647, %v12753_v50 }
 0xcb4   : > { %v5514_v47 = vmul.f32 %v10240_v33, %v5513_v1  ;;  %10249 = vpow2.f32 %v5464_v55  ;;  %vm5536_vm10 = vcmp.eq.f32.partialorder %v5535_v40, 8.507059e+37 }
 0xcb5   : > { %v5500_v30 = vadd.f32 %v10238_v35, %v5499_v29  ;;  %v5553_v61 = vor.u32 1.1754944e-38, %v5552_v3 }
 0xcb6   : > { %v10244_v26 = vpop.eup %10243  ;;  %v5515_v44 = vadd.f32 %v10240_v33, %v5514_v47 }
 0xcb7   : > { %v5504_v12 = vsel %vm5503_vm11, %v10238_v35, %v5500_v30  ;;  %v5527_v28 = vmul.f32 %v10244_v26, %v12750_v11  ;;  %v10246_v37 = vpop.eup %10245  ;;  %vm5532_vm2 = vweird.f32 %v10244_v26  ;;  %vm5546_vm11 = vweird.f32 %v12753_v50 }
 0xcb8   : > { %v5509_v62 = vsel %vm5506_vm13, %v5508_v46, %v5504_v12  ;;  %v5519_v54 = vsel %vm5518_vm14, %v10240_v33, %v5515_v44  ;;  %v12759_v4 = vadd.f32 1.0, %v10246_v37  ;;  %vm5533_vm8 = vmor %vm5531_vm7, %vm5532_vm2  ;;  %vm5551_vm13 = vcmp.eq.f32.partialorder %v5550_v23, 8.507059e+37 }
 0xcb9   : > { %v5376_v58 = vpop.f32.mrf.mxu2  ;;  %v5414_v5 = vpop.f32.mrf.mxu3  ;;  %v5706_v0 = vmul.f32 %v5509_v62, %v12703_v22  ;;  %v5524_v34 = vsel %vm5521_vm15, %v5523_v13, %v5519_v54  ;;  %v5528_v42 = vsub.f32 1.0, %v5527_v28 }
 0xcba   : > { %v10248_v18 = vpop.eup %10247  ;;  %v5707_v45 = vmul.f32 %v5524_v34, %v12706_v20  ;;  %v12764_v9 = vadd.f32 %v5376_v58, %v12686_v32  ;;  %10251 = vrcp.f32 %v12759_v4  ;;  %v12774_v57 = vadd.f32 %v5414_v5, %v12688_v56 }
 0xcbb   : > { %v5542_v39 = vmul.f32 %v10248_v18, %v12753_v50  ;;  %v10250_v8 = vpop.eup %10249  ;;  %v5529_v41 = vmul.f32 %v10244_v26, %v5528_v42  ;;  %5768 = vmatmul.f32.vlgmr.msra.gmra.mxu0 %v5706_v0  ;;  %vm5547_vm9 = vweird.f32 %v10248_v18  ;;  %v5567_v47 = vand.u32 2147483648, %v12759_v4 }
 0xcbc   : > { %v12769_v60 = vadd.f32 1.0, %v10250_v8  ;;  %v9441_v20 = vmul.f32 -1.702, %v12764_v9  ;;  %5806 = vmatmul.f32.vlgmr.msra.gmra.mxu1 %v5707_v45  ;;  %v9442_v59 = vmul.f32 -1.702, %v12774_v57  ;;  %vm5548_vm12 = vmor %vm5546_vm11, %vm5547_vm9  ;;  %vm5561_vm14 = vweird.f32 %v12759_v4 }
 0xcbd   : > { %v5543_v22 = vsub.f32 1.0, %v5542_v39  ;;  %v5530_v10 = vadd.f32 %v10244_v26, %v5529_v41  ;;  %v5565_v28 = vand.u32 2147483647, %v12759_v4  ;;  %v5568_v62 = vor.u32 1.1754944e-38, %v5567_v47 }
 0xcbe   : > { %10253 = vrcp.f32 %v12769_v60  ;;  %v5466_v11 = vmul.f32 1.442695, %v9441_v20  ;;  %v5468_v29 = vmul.f32 1.442695, %v9442_v59  ;;  %v5582_v5 = vand.u32 2147483648, %v12769_v60 }
 0xcbf   : > { %v5544_v51 = vmul.f32 %v10248_v18, %v5543_v22  ;;  %v5534_v35 = vsel %vm5533_vm8, %v10244_v26, %v5530_v10  ;;  %vm5566_vm8 = vcmp.eq.f32.partialorder %v5565_v28, 8.507059e+37  ;;  %vm5576_vm9 = vweird.f32 %v12769_v60 }
 0xcc0   : > { %v5539_v24 = vsel %vm5536_vm10, %v5538_v2, %v5534_v35  ;;  %v10252_v15 = vpop.eup %10251  ;;  %10255 = vpow2.f32 %v5466_v11  ;;  %v5583_v2 = vor.u32 1.1754944e-38, %v5582_v5 }
 0xcc1   : > { %v5545_v33 = vadd.f32 %v10248_v18, %v5544_v51  ;;  %v5379_v52 = vpop.f32.mrf.mxu2  ;;  %v5417_v63 = vpop.f32.mrf.mxu3  ;;  %v5708_v55 = vmul.f32 %v5539_v24, %v12735_v14  ;;  %v5557_v1 = vmul.f32 %v10252_v15, %v12759_v4  ;;  %10257 = vpow2.f32 %v5468_v29 }
 0xcc2   : > { %v12784_v50 = vadd.f32 %v5379_v52, %v12686_v32  ;;  %v12787_v53 = vadd.f32 %v5417_v63, %v12688_v56  ;;  %vm5562_vm15 = vweird.f32 %v10252_v15 }
 0xcc3   : > { %v5549_v49 = vsel %vm5548_vm12, %v10248_v18, %v5545_v33  ;;  %5771 = vmatmul.f32.gmra.mxu0 %v5708_v55  ;;  %v5558_v26 = vsub.f32 1.0, %v5557_v1  ;;  %vm5563_vm2 = vmor %vm5561_vm14, %vm5562_vm15 }
 0xcc4   : > { %v5554_v21 = vsel %vm5551_vm13, %v5553_v61, %v5549_v49  ;;  %v10254_v30 = vpop.eup %10253  ;;  %v9443_v44 = vmul.f32 -1.702, %v12784_v50  ;;  %v9444_v12 = vmul.f32 -1.702, %v12787_v53 }
 0xcc5   : > { %v5709_v14 = vmul.f32 %v5554_v21, %v12738_v36  ;;  %v5572_v46 = vmul.f32 %v10254_v30, %v12769_v60  ;;  %v5559_v13 = vmul.f32 %v10252_v15, %v5558_v26  ;;  %v5580_v36 = vand.u32 2147483647, %v12769_v60 }
 0xcc6   : > { %v10256_v37 = vpop.eup %10255  ;;  %v5470_v6 = vmul.f32 1.442695, %v9443_v44  ;;  %v5472_v0 = vmul.f32 1.442695, %v9444_v12  ;;  %vm5577_vm7 = vweird.f32 %v10254_v30 }
 0xcc7   : > { %5809 = vmatmul.f32.gmra.mxu1 %v5709_v14  ;;  %v5573_v54 = vsub.f32 1.0, %v5572_v46  ;;  %v5560_v58 = vadd.f32 %v10252_v15, %v5559_v13  ;;  %v12797_v18 = vadd.f32 1.0, %v10256_v37  ;;  %v10258_v8 = vpop.eup %10257  ;;  %vm5578_vm10 = vmor %vm5576_vm9, %vm5577_vm7  ;;  %vm5581_vm11 = vcmp.eq.f32.partialorder %v5580_v36, 8.507059e+37 }
 0xcc8   : > { %10259 = vpow2.f32 %v5470_v6  ;;  %v12806_v20 = vadd.f32 1.0, %v10258_v8 }
 0xcc9   : > { %v5382_v34 = vpop.f32.mrf.mxu2  ;;  %v5420_v42 = vpop.f32.mrf.mxu3  ;;  %v5574_v45 = vmul.f32 %v10254_v30, %v5573_v54  ;;  %v5564_v41 = vsel %vm5563_vm2, %v10252_v15, %v5560_v58  ;;  %10261 = vrcp.f32 %v12797_v18  ;;  %v5595_v61 = vand.u32 2147483647, %v12797_v18 }
 0xcca   : > { %v12802_v39 = vadd.f32 %v5382_v34, %v12686_v32  ;;  %v5569_v40 = vsel %vm5566_vm8, %v5568_v62, %v5564_v41  ;;  %v12809_v4 = vadd.f32 %v5420_v42, %v12688_v56  ;;  %10263 = vpow2.f32 %v5472_v0 }
 0xccb   : > { %v5575_v22 = vadd.f32 %v10254_v30, %v5574_v45  ;;  %v5710_v10 = vmul.f32 %v5569_v40, %v12743_v17  ;;  %10265 = vrcp.f32 %v12806_v20  ;;  %v5597_v49 = vand.u32 2147483648, %v12797_v18 }
 0xccc   : > { %v9445_v3 = vmul.f32 -1.702, %v12802_v39  ;;  %v9446_v24 = vmul.f32 -1.702, %v12809_v4  ;;  %vm5591_vm12 = vweird.f32 %v12797_v18  ;;  %v5610_v14 = vand.u32 2147483647, %v12806_v20 }
 0xccd   : > { %v5579_v51 = vsel %vm5578_vm10, %v10254_v30, %v5575_v22  ;;  %5774 = vmatmul.f32.gmra.mxu0 %v5710_v10  ;;  %vm12832_vm14 = vcmp.eq.f32.partialorder %v5595_v61, 8.507059e+37  ;;  %v5612_v12 = vand.u32 2147483648, %v12806_v20  ;;  %v5598_v37 = vor.u32 1.1754944e-38, %v5597_v49 }
 0xcce   : > { %v5584_v60 = vsel %vm5581_vm11, %v5583_v2, %v5579_v51  ;;  %v5474_v23 = vmul.f32 1.442695, %v9445_v3  ;;  %v10260_v35 = vpop.eup %10259  ;;  %v5476_v63 = vmul.f32 1.442695, %v9446_v24  ;;  %vm5606_vm2 = vweird.f32 %v12806_v20 }
 0xccf   : > { %v5711_v11 = vmul.f32 %v5584_v60, %v12746_v31  ;;  %v10262_v33 = vpop.eup %10261  ;;  %v12816_v59 = vadd.f32 1.0, %v10260_v35  ;;  %vm12845_vm8 = vcmp.eq.f32.partialorder %v5610_v14, 8.507059e+37  ;;  %v5613_v42 = vor.u32 1.1754944e-38, %v5612_v12 }
 0xcd0   : > { %10267 = vpow2.f32 %v5474_v23  ;;  %v5587_v52 = vmul.f32 %v10262_v33, %v12797_v18  ;;  %v10264_v55 = vpop.eup %10263  ;;  %vm5592_vm13 = vweird.f32 %v10262_v33 }
 0xcd1   : > { %v5385_v17 = vpop.f32.mrf.mxu2  ;;  %5812 = vmatmul.f32.gmra.mxu1 %v5711_v11  ;;  %10269 = vrcp.f32 %v12816_v59  ;;  %v10266_v31 = vpop.eup %10265  ;;  %v12825_v29 = vadd.f32 1.0, %v10264_v55  ;;  %vm5593_vm15 = vmor %vm5591_vm12, %vm5592_vm13  ;;  %v5625_v45 = vand.u32 2147483647, %v12816_v59  ;;  %v5627_v2 = vand.u32 2147483648, %v12816_v59 }
 0xcd2   : > { %v12820_v15 = vadd.f32 %v5385_v17, %v12686_v32  ;;  %v5588_v1 = vsub.f32 1.0, %v5587_v52  ;;  %10271 = vpow2.f32 %v5476_v63  ;;  %v5602_v47 = vmul.f32 %v10266_v31, %v12806_v20  ;;  %v5423_v32 = vpop.f32.mrf.mxu3 }
 0xcd3   : > { %10273 = vrcp.f32 %v12825_v29  ;;  %v12840_v54 = vadd.f32 %v5423_v32, %v12688_v56  ;;  %vm5607_vm7 = vweird.f32 %v10266_v31  ;;  %v5640_v51 = vand.u32 2147483647, %v12825_v29 }
 0xcd4   : > { %v9447_v21 = vmul.f32 -1.702, %v12820_v15  ;;  %v5589_v30 = vmul.f32 %v10262_v33, %v5588_v1  ;;  %v5603_v44 = vsub.f32 1.0, %v5602_v47  ;;  %vm5608_vm9 = vmor %vm5606_vm2, %vm5607_vm7  ;;  %vm5621_vm11 = vweird.f32 %v12816_v59 }
 0xcd5   : > { %v9448_v20 = vmul.f32 -1.702, %v12840_v54  ;;  %v5642_v24 = vand.u32 2147483648, %v12825_v29  ;;  %vm5626_vm12 = vcmp.eq.f32.partialorder %v5625_v45, 8.507059e+37  ;;  %v5628_v55 = vor.u32 1.1754944e-38, %v5627_v2 }
 0xcd6   : > { %v10268_v26 = vpop.eup %10267  ;;  %v5478_v13 = vmul.f32 1.442695, %v9447_v21  ;;  %v5590_v28 = vadd.f32 %v10262_v33, %v5589_v30  ;;  %v5604_v6 = vmul.f32 %v10266_v31, %v5603_v44  ;;  %vm12871_vm2 = vcmp.eq.f32.partialorder %v5640_v51, 8.507059e+37 }
 0xcd7   : > { %v12837_v62 = vadd.f32 1.0, %v10268_v26  ;;  %v10270_v36 = vpop.eup %10269  ;;  %v5480_v63 = vmul.f32 1.442695, %v9448_v20  ;;  %v5643_v21 = vor.u32 1.1754944e-38, %v5642_v24 }
 0xcd8   : > { %10275 = vpow2.f32 %v5478_v13  ;;  %v10272_v58 = vpop.eup %10271  ;;  %v5594_v5 = vsel %vm5593_vm15, %v10262_v33, %v5590_v28  ;;  %v5617_v34 = vmul.f32 %v10270_v36, %v12816_v59  ;;  %v5605_v18 = vadd.f32 %v10266_v31, %v5604_v6 }
 0xcd9   : > { %10277 = vrcp.f32 %v12837_v62  ;;  %v5599_v56 = vsel %vm12832_vm14, %v5598_v37, %v5594_v5  ;;  %v10274_v8 = vpop.eup %10273  ;;  %v12855_v22 = vadd.f32 1.0, %v10272_v58  ;;  %vm5622_vm10 = vweird.f32 %v10270_v36 }
 0xcda   : > { %v5712_v41 = vmul.f32 %v5599_v56, %v12764_v9  ;;  %v5618_v40 = vsub.f32 1.0, %v5617_v34  ;;  %v5609_v10 = vsel %vm5608_vm9, %v10266_v31, %v5605_v18  ;;  %v5632_v3 = vmul.f32 %v10274_v8, %v12825_v29  ;;  %vm5623_vm13 = vmor %vm5621_vm11, %vm5622_vm10 }
 0xcdb   : > { %v5614_v60 = vsel %vm12845_vm8, %v5613_v42, %v5609_v10  ;;  %10279 = vrcp.f32 %v12855_v22  ;;  %vm5637_vm14 = vweird.f32 %v10274_v8  ;;  %vm5636_vm15 = vweird.f32 %v12825_v29 }
 0xcdc   : > { %v5619_v23 = vmul.f32 %v10270_v36, %v5618_v40  ;;  %5777 = vmatmul.f32.gmra.mxu0 %v5712_v41  ;;  %v5713_v35 = vmul.f32 %v5614_v60, %v12774_v57  ;;  %v5633_v11 = vsub.f32 1.0, %v5632_v3  ;;  %vm5638_vm7 = vmor %vm5636_vm15, %vm5637_vm14  ;;  %v5655_v14 = vand.u32 2147483647, %v12837_v62  ;;  %v10068_v57 = vld [vmem:[%s14129_s16] ss:$0 sm:$0xff] }
 0xcdd   : > { %v5657_v26 = vand.u32 2147483648, %v12837_v62  ;;  %vm5651_vm9 = vweird.f32 %v12837_v62  ;;  %v5670_v6 = vand.u32 2147483647, %v12855_v22  ;;  %v5672_v58 = vand.u32 2147483648, %v12855_v22 }
 0xcde   : > { %v10276_v9 = vpop.eup %10275  ;;  %v5620_v17 = vadd.f32 %v10270_v36, %v5619_v23  ;;  %v5634_v61 = vmul.f32 %v10274_v8, %v5633_v11  ;;  %5815 = vmatmul.f32.gmra.mxu1 %v5713_v35  ;;  %vm5656_vm11 = vcmp.eq.f32.partialorder %v5655_v14, 8.507059e+37 }
 0xcdf   : > { %v10278_v33 = vpop.eup %10277  ;;  %v12867_v52 = vadd.f32 1.0, %v10276_v9  ;;  %vm5671_vm15 = vcmp.eq.f32.partialorder %v5670_v6, 8.507059e+37 }
 0xce0   : > { %v5647_v49 = vmul.f32 %v10278_v33, %v12837_v62  ;;  %v5624_v31 = vsel %vm5623_vm13, %v10270_v36, %v5620_v17  ;;  %v5635_v1 = vadd.f32 %v10274_v8, %v5634_v61  ;;  %vm5652_vm8 = vweird.f32 %v10278_v33 }
 0xce1   : > { %10281 = vrcp.f32 %v12867_v52  ;;  %v5629_v59 = vsel %vm5626_vm12, %v5628_v55, %v5624_v31  ;;  %v10280_v32 = vpop.eup %10279  ;;  %vm5653_vm10 = vmor %vm5651_vm9, %vm5652_vm8  ;;  %v5658_v36 = vor.u32 1.1754944e-38, %v5657_v26  ;;  %vm5666_vm13 = vweird.f32 %v12855_v22 }
 0xce2   : > { %v5648_v47 = vsub.f32 1.0, %v5647_v49  ;;  %v5714_v30 = vmul.f32 %v5629_v59, %v12784_v50  ;;  %10283 = vpow2.f32 %v5480_v63  ;;  %v5639_v29 = vsel %vm5638_vm7, %v10274_v8, %v5635_v1 }
 0xce3   : > { %v5662_v44 = vmul.f32 %v10280_v32, %v12855_v22  ;;  %v5644_v12 = vsel %vm12871_vm2, %v5643_v21, %v5639_v29  ;;  %vm5667_vm12 = vweird.f32 %v10280_v32  ;;  %v5673_v8 = vor.u32 1.1754944e-38, %v5672_v58 }
 0xce4   : > { %v5649_v46 = vmul.f32 %v10278_v33, %v5648_v47  ;;  %5780 = vmatmul.f32.gmra.mxu0 %v5714_v30  ;;  %v5715_v13 = vmul.f32 %v5644_v12, %v12787_v53  ;;  %vm5668_vm14 = vmor %vm5666_vm13, %vm5667_vm12  ;;  %v5685_v41 = vand.u32 2147483647, %v12867_v52  ;;  %v5687_v40 = vand.u32 2147483648, %v12867_v52 }
 0xce5   : > { %v5663_v50 = vsub.f32 1.0, %v5662_v44  ;;  %vm5681_vm7 = vweird.f32 %v12867_v52 }
 0xce6   : > { %v5650_v28 = vadd.f32 %v10278_v33, %v5649_v46  ;;  %5818 = vmatmul.f32.gmra.mxu1 %v5715_v13  ;;  %vm5686_vm9 = vcmp.eq.f32.partialorder %v5685_v41, 8.507059e+37 }
 0xce7   : > { %v10282_v37 = vpop.eup %10281  ;;  %v5664_v0 = vmul.f32 %v10280_v32, %v5663_v50 }
 0xce8   : > { %v5654_v5 = vsel %vm5653_vm10, %v10278_v33, %v5650_v28  ;;  %v5677_v34 = vmul.f32 %v10282_v37, %v12867_v52  ;;  %v10284_v56 = vpop.eup %10283  ;;  %vm5682_vm2 = vweird.f32 %v10282_v37 }
 0xce9   : > { %v5659_v53 = vsel %vm5656_vm11, %v5658_v36, %v5654_v5  ;;  %v5665_v18 = vadd.f32 %v10280_v32, %v5664_v0  ;;  %v5495_v45 = vadd.f32 1.0, %v10284_v56  ;;  %vm5683_vm8 = vmor %vm5681_vm7, %vm5682_vm2 }
 0xcea   : > { %v5716_v62 = vmul.f32 %v5659_v53, %v12802_v39  ;;  %v5678_v42 = vsub.f32 1.0, %v5677_v34  ;;  %v5688_v39 = vor.u32 1.1754944e-38, %v5687_v40 }
 0xceb   : > { %v5669_v20 = vsel %vm5668_vm14, %v10280_v32, %v5665_v18  ;;  %10285 = vrcp.f32 %v5495_v45  ;;  %v5702_v24 = vand.u32 2147483648, %v5495_v45  ;;  %v5700_v17 = vand.u32 2147483647, %v5495_v45 }
 0xcec   : > { %v5679_v10 = vmul.f32 %v10282_v37, %v5678_v42  ;;  %v5674_v2 = vsel %vm5671_vm15, %v5673_v8, %v5669_v20  ;;  %5783 = vmatmul.f32.gmra.mxu0 %v5716_v62  ;;  %vm5696_vm11 = vweird.f32 %v5495_v45 }
 0xced   : > { %v5717_v22 = vmul.f32 %v5674_v2, %v12809_v4  ;;  %v5703_v52 = vor.u32 1.1754944e-38, %v5702_v24  ;;  %vm5701_vm13 = vcmp.eq.f32.partialorder %v5700_v17, 8.507059e+37 }
 0xcee   : > { %v5680_v3 = vadd.f32 %v10282_v37, %v5679_v10 }
 0xcef   : > { %5821 = vmatmul.f32.gmra.mxu1 %v5717_v22 }
 0xcf0   : > { %v5684_v51 = vsel %vm5683_vm8, %v10282_v37, %v5680_v3 }
 0xcf1   : > { %v5689_v60 = vsel %vm5686_vm9, %v5688_v39, %v5684_v51  ;;  %v10286_v23 = vpop.eup %10285 }
 0xcf2   : > { %v5718_v9 = vmul.f32 %v5689_v60, %v12820_v15  ;;  %v5692_v35 = vmul.f32 %v10286_v23, %v5495_v45  ;;  %vm5697_vm10 = vweird.f32 %v10286_v23 }
 0xcf3   : > { %vm5698_vm12 = vmor %vm5696_vm11, %vm5697_vm10 }
 0xcf4   : > { %v5693_v11 = vsub.f32 1.0, %v5692_v35  ;;  %5786 = vmatmul.f32.gmra.mxu0 %v5718_v9 }
 0xcf6   : > { %v5694_v33 = vmul.f32 %v10286_v23, %v5693_v11 }
 0xcf8   : > { %v5695_v4 = vadd.f32 %v10286_v23, %v5694_v33 }
 0xcfa   : > { %v5699_v63 = vsel %vm5698_vm12, %v10286_v23, %v5695_v4 }
 0xcfb   : > { %v5704_v55 = vsel %vm5701_vm13, %v5703_v52, %v5699_v63 }
 0xcfc   : > { %v5719_v61 = vmul.f32 %v5704_v55, %v12840_v54 }
 0xcfe   : > { %5824 = vmatmul.f32.gmra.mxu1 %v5719_v61 }
 0xd38   : > { %v5769_v49 = vpop.f32.mrf.mxu0 }
 0xd39   : > { %v5807_v31 = vpop.f32.mrf.mxu1 }
 0xd3a   : > { %v5808_v15 = vadd.f32 %v5807_v31, %v5769_v49 }
 0xd3c   : > { %v5828_v59 = vadd.f32 %v5808_v15, %v12435_v43 }
 0xd3e   : > { %v12899_v1 = vadd.f32 %v10068_v57, %v5828_v59 }
 0xd40   : > { %v5850_v21 = vsel %vm3371_vm0, %v12899_v1, 0.0  ;;  %v5772_v47 = vpop.f32.mrf.mxu0 }
 0xd41   : > { %5851 = vadd.xlane.f32.xlu0 %v5850_v21 }
 0xd44   : > { %v5810_v32 = vpop.f32.mrf.mxu1 }
 0xd45   : > { %v5811_v30 = vadd.f32 %v5810_v32, %v5772_v47 }
 0xd47   : > { %v5829_v54 = vadd.f32 %v5811_v30, %v12441_v7 }
 0xd49   : > { %v12904_v14 = vadd.f32 %v10068_v57, %v5829_v54 }
 0xd4a   : > { %v5775_v29 = vpop.f32.mrf.mxu0 }
 0xd4b   : > { %v5853_v26 = vsel %vm3371_vm0, %v12904_v14, 0.0 }
 0xd4c   : > { %5854 = vadd.xlane.f32.xlu1 %v5853_v26 }
 0xd4e   : > { %v5813_v46 = vpop.f32.mrf.mxu1 }
 0xd4f   : > { %v5814_v43 = vadd.f32 %v5813_v46, %v5775_v29 }
 0xd51   : > { %v5830_v44 = vadd.f32 %v5814_v43, %v12446_v19 }
 0xd53   : > { %v12909_v12 = vadd.f32 %v10068_v57, %v5830_v44 }
 0xd55   : > { %v5856_v13 = vsel %vm3371_vm0, %v12909_v12, 0.0 }
 0xd56   : > { %5857 = vadd.xlane.f32.xlu2 %v5856_v13  ;;  %v9465_v13 = vld [vmem:[%s14120_s7 + $0xf0] sm:$0xff] }
 0xd57   : > { %6077 = vmatpush.msra.mxu2 %v9465_v13 }
 0xd59   : > { %v5778_v28 = vpop.f32.mrf.mxu0 }
 0xd5b   : > { %v5816_v50 = vpop.f32.mrf.mxu1 }
 0xd5c   : > { %v5817_v7 = vadd.f32 %v5816_v50, %v5778_v28  ;;  %v9466_v28 = vld [vmem:[%s14120_s7 + $0xf8] sm:$0xff]  ;;  %v9463_v50 = vld [vmem:[%s14120_s7 + $0xe0] sm:$0xff] }
 0xd5d   : > { %6115 = vmatpush.msra.mxu3 %v9466_v28  ;;  %6078 = vmatpush.msra.mxu2 %v9463_v50 }
 0xd5e   : > { %v5831_v37 = vadd.f32 %v5817_v7, %v12453_v25  ;;  %v9464_v7 = vld [vmem:[%s14120_s7 + $0xe8] sm:$0xff] }
 0xd5f   : > { %6116 = vmatpush.msra.mxu3 %v9464_v7 }
 0xd60   : > { %v12914_v36 = vadd.f32 %v10068_v57, %v5831_v37  ;;  %v9461_v37 = vld [vmem:[%s14120_s7 + $0xd0] sm:$0xff] }
 0xd61   : > { %v5781_v6 = vpop.f32.mrf.mxu0  ;;  %6079 = vmatpush.msra.mxu2 %v9461_v37 }
 0xd62   : > { %v5859_v58 = vsel %vm3371_vm0, %v12914_v36, 0.0 }
 0xd63   : > { %v5819_v5 = vpop.f32.mrf.mxu1  ;;  %5860 = vadd.xlane.f32.xlu0 %v5859_v58  ;;  %v9459_v58 = vld [vmem:[%s14120_s7 + $0xc0] sm:$0xff] }
 0xd64   : > { %v5820_v19 = vadd.f32 %v5819_v5, %v5781_v6  ;;  %v9462_v6 = vld [vmem:[%s14120_s7 + $0xd8] sm:$0xff]  ;;  %v9460_v5 = vld [vmem:[%s14120_s7 + $0xc8] sm:$0xff]  ;;  %6080 = vmatpush.msra.mxu2 %v9459_v58 }
 0xd65   : > { %6117 = vmatpush.msra.mxu3 %v9462_v6 }
 0xd66   : > { %v5832_v0 = vadd.f32 %v5820_v19, %v12459_v16 }
 0xd67   : > { %6118 = vmatpush.msra.mxu3 %v9460_v5 }
 0xd68   : > { %v12919_v34 = vadd.f32 %v10068_v57, %v5832_v0 }
 0xd69   : > { %v5784_v56 = vpop.f32.mrf.mxu0 }
 0xd6a   : > { %v5862_v53 = vsel %vm3371_vm0, %v12919_v34, 0.0 }
 0xd6b   : > { %5863 = vadd.xlane.f32.xlu1 %v5862_v53  ;;  %v9458_v53 = vld [vmem:[%s14120_s7 + $0xb8] sm:$0xff] }
 0xd6c   : > { %v5822_v62 = vpop.f32.mrf.mxu1  ;;  %6119 = vmatpush.msra.mxu3 %v9458_v53 }
 0xd6d   : > { %v5823_v25 = vadd.f32 %v5822_v62, %v5784_v56  ;;  %v9457_v56 = vld [vmem:[%s14120_s7 + $0xb0] sm:$0xff] }
 0xd6e   : > { %6081 = vmatpush.msra.mxu2 %v9457_v56 }
 0xd6f   : > { %v5833_v18 = vadd.f32 %v5823_v25, %v12465_v38  ;;  %v9455_v25 = vld [vmem:[%s14120_s7 + $0xa0] sm:$0xff] }
 0xd70   : > { %6082 = vmatpush.msra.mxu2 %v9455_v25 }
 0xd71   : > { %v12924_v42 = vadd.f32 %v10068_v57, %v5833_v18  ;;  %v5787_v8 = vpop.f32.mrf.mxu0  ;;  %v9456_v18 = vld [vmem:[%s14120_s7 + $0xa8] sm:$0xff] }
 0xd72   : > { %6120 = vmatpush.msra.mxu3 %v9456_v18 }
 0xd73   : > { %v5865_v45 = vsel %vm3371_vm0, %v12924_v42, 0.0 }
 0xd74   : > { %5866 = vadd.xlane.f32.xlu2 %v5865_v45  ;;  %v9453_v45 = vld [vmem:[%s14120_s7 + $0x90] sm:$0xff] }
 0xd75   : > { %6083 = vmatpush.msra.mxu2 %v9453_v45 }
 0xd7b   : > { %v5825_v41 = vpop.f32.mrf.mxu1 }
 0xd7c   : > { %v5826_v16 = vadd.f32 %v5825_v41, %v5787_v8  ;;  %v9454_v8 = vld [vmem:[%s14120_s7 + $0x98] sm:$0xff]  ;;  %v9451_v41 = vld [vmem:[%s14120_s7 + $0x80] sm:$0xff] }
 0xd7d   : > { %6121 = vmatpush.msra.mxu3 %v9454_v8  ;;  %6084 = vmatpush.msra.mxu2 %v9451_v41 }
 0xd7e   : > { %v5834_v40 = vadd.f32 %v5826_v16, %v12470_v27  ;;  %v9452_v16 = vld [vmem:[%s14120_s7 + $0x88] sm:$0xff] }
 0xd7f   : > { %6122 = vmatpush.msra.mxu3 %v9452_v16 }
 0xd80   : > { %v12929_v20 = vadd.f32 %v10068_v57, %v5834_v40 }
 0xd82   : > { %v5868_v10 = vsel %vm3390_vm1, %v12929_v20, 0.0 }
 0xd83   : > { %5869 = vadd.xlane.f32.xlu1 %v5868_v10 }
 0xdb4   : > { %v5852_v2 = vpop.xlane.xlu0 %5851 }
 0xdb5   : > { %v5871_v38 = vmul.f32 %v5852_v2, %v11596_v48 }
 0xdb7   : > { %v12935_v22 = vsub.f32 %v12899_v1, %v5871_v38 }
 0xdb9   : > { %v5885_v3 = vmul.f32 %v12935_v22, %v12935_v22 }
 0xdbb   : > { %v5892_v39 = vsel %vm3371_vm0, %v5885_v3, 0.0 }
 0xdbc   : > { %5893 = vadd.xlane.f32.xlu0 %v5892_v39 }
 0xdbf   : > { %v5855_v51 = vpop.xlane.xlu1 %5854 }
 0xdc0   : > { %v5872_v27 = vmul.f32 %v5855_v51, %v11596_v48 }
 0xdc2   : > { %v12942_v60 = vsub.f32 %v12904_v14, %v5872_v27 }
 0xdc4   : > { %v5886_v23 = vmul.f32 %v12942_v60, %v12942_v60 }
 0xdc6   : > { %v5895_v9 = vsel %vm3371_vm0, %v5886_v23, 0.0 }
 0xdc7   : > { %5896 = vadd.xlane.f32.xlu2 %v5895_v9 }
 0xdc9   : > { %v5858_v35 = vpop.xlane.xlu2 %5857 }
 0xdca   : > { %v5873_v11 = vmul.f32 %v5858_v35, %v11596_v48  ;;  %v13035_v35 = vld [vmem:[%s14118_s5 + $0x1] ss:$0 sm:$0xff] }
 0xdcc   : > { %v12949_v24 = vsub.f32 %v12909_v12, %v5873_v11 }
 0xdce   : > { %v5887_v33 = vmul.f32 %v12949_v24, %v12949_v24 }
 0xdd0   : > { %v5898_v17 = vsel %vm3371_vm0, %v5887_v33, 0.0 }
 0xdd1   : > { %5899 = vadd.xlane.f32.xlu0 %v5898_v17 }
 0xdd6   : > { %v5861_v4 = vpop.xlane.xlu0 %5860 }
 0xdd7   : > { %v5874_v52 = vmul.f32 %v5861_v4, %v11596_v48 }
 0xdd9   : > { %v12956_v63 = vsub.f32 %v12914_v36, %v5874_v52  ;;  %v13041_v52 = vld [vmem:[%s14119_s6 + $0x1] ss:$0 sm:$0xff] }
 0xddb   : > { %v5888_v55 = vmul.f32 %v12956_v63, %v12956_v63 }
 0xddd   : > { %v5901_v61 = vsel %vm3371_vm0, %v5888_v55, 0.0 }
 0xdde   : > { %v5864_v49 = vpop.xlane.xlu1 %5863  ;;  %5902 = vadd.xlane.f32.xlu1 %v5901_v61 }
 0xddf   : > { %v5875_v31 = vmul.f32 %v5864_v49, %v11596_v48 }
 0xde1   : > { %v12963_v15 = vsub.f32 %v12919_v34, %v5875_v31 }
 0xde3   : > { %v5889_v57 = vmul.f32 %v12963_v15, %v12963_v15 }
 0xde5   : > { %v5904_v59 = vsel %vm3371_vm0, %v5889_v57, 0.0 }
 0xde6   : > { %5905 = vadd.xlane.f32.xlu2 %v5904_v59 }
 0xde7   : > { %v5867_v21 = vpop.xlane.xlu2 %5866 }
 0xde8   : > { %v5876_v47 = vmul.f32 %v5867_v21, %v11596_v48 }
 0xdea   : > { %v12970_v32 = vsub.f32 %v12924_v42, %v5876_v47 }
 0xdec   : > { %v5890_v30 = vmul.f32 %v12970_v32, %v12970_v32 }
 0xdee   : > { %v5907_v54 = vsel %vm3371_vm0, %v5890_v30, 0.0 }
 0xdef   : > { %5908 = vadd.xlane.f32.xlu0 %v5907_v54 }
 0xdf6   : > { %v5870_v26 = vpop.xlane.xlu1 %5869 }
 0xdf7   : > { %v5877_v29 = vmul.f32 %v5870_v26, %v11596_v48 }
 0xdf9   : > { %v12977_v46 = vsub.f32 %v12929_v20, %v5877_v29 }
 0xdfb   : > { %v5891_v43 = vmul.f32 %v12977_v46, %v12977_v46 }
 0xdfd   : > { %v5910_v44 = vsel %vm3390_vm1, %v5891_v43, 0.0 }
 0xdfe   : > { %5911 = vadd.xlane.f32.xlu1 %v5910_v44 }
 0xe2f   : > { %v5894_v19 = vpop.xlane.xlu0 %5893 }
 0xe30   : > { %v5913_v0 = vmul.f32 %v5894_v19, %v11596_v48 }
 0xe32   : > { %v5920_v62 = vadd.f32 1e-05, %v5913_v0 }
 0xe34   : > { %10287 = vrsqrt.f32 %v5920_v62  ;;  %vm5933_vm15 = vweird.f32 %v5920_v62 }
 0xe3a   : > { %v5897_v40 = vpop.xlane.xlu2 %5896  ;;  %v10288_v10 = vpop.eup %10287 }
 0xe3b   : > { %v5914_v2 = vmul.f32 %v5897_v40, %v11596_v48  ;;  %v5928_v38 = vmul.f32 %v10288_v10, %v5920_v62  ;;  %vm5934_vm14 = vweird.f32 %v10288_v10 }
 0xe3c   : > { %vm5935_vm2 = vmor %vm5933_vm15, %vm5934_vm14 }
 0xe3d   : > { %v5921_v3 = vadd.f32 1e-05, %v5914_v2  ;;  %v5929_v39 = vmul.f32 %v10288_v10, %v5928_v38 }
 0xe3f   : > { %10289 = vrsqrt.f32 %v5921_v3  ;;  %v5930_v51 = vmul.f32 0.5, %v5929_v39  ;;  %vm5943_vm8 = vweird.f32 %v5921_v3 }
 0xe41   : > { %v5931_v27 = vsub.f32 1.5, %v5930_v51 }
 0xe43   : > { %v5932_v23 = vmul.f32 %v10288_v10, %v5931_v27 }
 0xe44   : > { %v5900_v11 = vpop.xlane.xlu0 %5899 }
 0xe45   : > { %v10290_v9 = vpop.eup %10289  ;;  %v5936_v33 = vsel %vm5935_vm2, %v10288_v10, %v5932_v23  ;;  %v5915_v4 = vmul.f32 %v5900_v11, %v11596_v48 }
 0xe46   : > { %v5938_v17 = vmul.f32 %v10290_v9, %v5921_v3  ;;  %v5997_v55 = vmul.f32 %v5936_v33, %v12935_v22  ;;  %vm5944_vm7 = vweird.f32 %v10290_v9 }
 0xe47   : > { %v5922_v49 = vadd.f32 1e-05, %v5915_v4  ;;  %vm5945_vm9 = vmor %vm5943_vm8, %vm5944_vm7 }
 0xe48   : > { %v5939_v61 = vmul.f32 %v10290_v9, %v5938_v17  ;;  %v6007_v31 = vmul.f32 %v13035_v35, %v5997_v55 }
 0xe49   : > { %10291 = vrsqrt.f32 %v5922_v49  ;;  %vm5953_vm11 = vweird.f32 %v5922_v49 }
 0xe4a   : > { %v5940_v57 = vmul.f32 0.5, %v5939_v61  ;;  %v6017_v59 = vadd.f32 %v13041_v52, %v6007_v31 }
 0xe4c   : > { %v5941_v21 = vsub.f32 1.5, %v5940_v57  ;;  %9468 = vmatmul.msk.f32.vlgmr.msra.gmra.mxu2 %vm3371_vm0, %v6017_v59  ;;  %9475 = vmatmul.msk.f32.vlgmr.msra.gmra.mxu3 %vm3371_vm0, %v6017_v59 }
 0xe4e   : > { %v5942_v47 = vmul.f32 %v10290_v9, %v5941_v21 }
 0xe4f   : > { %v10292_v30 = vpop.eup %10291 }
 0xe50   : > { %v5946_v54 = vsel %vm5945_vm9, %v10290_v9, %v5942_v47  ;;  %v5948_v26 = vmul.f32 %v10292_v30, %v5922_v49  ;;  %vm5954_vm10 = vweird.f32 %v10292_v30 }
 0xe51   : > { %v5998_v22 = vmul.f32 %v5946_v54, %v12942_v60  ;;  %v5903_v44 = vpop.xlane.xlu1 %5902  ;;  %vm5955_vm12 = vmor %vm5953_vm11, %vm5954_vm10 }
 0xe52   : > { %v5949_v29 = vmul.f32 %v10292_v30, %v5948_v26  ;;  %v5916_v28 = vmul.f32 %v5903_v44, %v11596_v48 }
 0xe53   : > { %v6008_v43 = vmul.f32 %v13035_v35, %v5998_v22 }
 0xe54   : > { %v5950_v13 = vmul.f32 0.5, %v5949_v29  ;;  %v5923_v37 = vadd.f32 1e-05, %v5916_v28 }
 0xe55   : > { %v6018_v50 = vadd.f32 %v13041_v52, %v6008_v43 }
 0xe56   : > { %v5951_v7 = vsub.f32 1.5, %v5950_v13  ;;  %10293 = vrsqrt.f32 %v5923_v37  ;;  %vm5963_vm14 = vweird.f32 %v5923_v37 }
 0xe57   : > { %9469 = vmatmul.msk.f32.gmra.mxu2 %vm3371_vm0, %v6018_v50  ;;  %9476 = vmatmul.msk.f32.gmra.mxu3 %vm3371_vm0, %v6018_v50 }
 0xe58   : > { %v5952_v6 = vmul.f32 %v10292_v30, %v5951_v7 }
 0xe59   : > { %v5906_v5 = vpop.xlane.xlu2 %5905 }
 0xe5a   : > { %v5956_v60 = vsel %vm5955_vm12, %v10292_v30, %v5952_v6  ;;  %v5917_v19 = vmul.f32 %v5906_v5, %v11596_v48 }
 0xe5b   : > { %v5999_v58 = vmul.f32 %v5956_v60, %v12949_v24 }
 0xe5c   : > { %v10294_v56 = vpop.eup %10293  ;;  %v5924_v53 = vadd.f32 1e-05, %v5917_v19 }
 0xe5d   : > { %v6009_v0 = vmul.f32 %v13035_v35, %v5999_v58  ;;  %v5958_v62 = vmul.f32 %v10294_v56, %v5923_v37  ;;  %vm5964_vm13 = vweird.f32 %v10294_v56 }
 0xe5e   : > { %10295 = vrsqrt.f32 %v5924_v53  ;;  %vm5965_vm15 = vmor %vm5963_vm14, %vm5964_vm13  ;;  %vm5973_vm7 = vweird.f32 %v5924_v53 }
 0xe5f   : > { %v6019_v25 = vadd.f32 %v13041_v52, %v6009_v0  ;;  %v5959_v18 = vmul.f32 %v10294_v56, %v5958_v62 }
 0xe61   : > { %9470 = vmatmul.msk.f32.gmra.mxu2 %vm3371_vm0, %v6019_v25  ;;  %9477 = vmatmul.msk.f32.gmra.mxu3 %vm3371_vm0, %v6019_v25  ;;  %v5960_v45 = vmul.f32 0.5, %v5959_v18 }
 0xe62   : > { %v5909_v8 = vpop.xlane.xlu0 %5908 }
 0xe63   : > { %v5918_v24 = vmul.f32 %v5909_v8, %v11596_v48  ;;  %v5961_v41 = vsub.f32 1.5, %v5960_v45 }
 0xe64   : > { %v10296_v16 = vpop.eup %10295 }
 0xe65   : > { %v5925_v40 = vadd.f32 1e-05, %v5918_v24  ;;  %v5962_v10 = vmul.f32 %v10294_v56, %v5961_v41  ;;  %v5968_v2 = vmul.f32 %v10296_v16, %v5924_v53  ;;  %vm5974_vm2 = vweird.f32 %v10296_v16  ;;  %v9467_v53 = vld [vmem:[%s14121_s8 + $0x2] sm:$0x3] }
 0xe66   : > { %vm5975_vm8 = vmor %vm5973_vm7, %vm5974_vm2  ;;  %v6045_v62 = vperm.slane %v9467_v53, 1  ;;  %v6044_v45 = vperm.slane %v9467_v53, 0 }
 0xe67   : > { %10297 = vrsqrt.f32 %v5925_v40  ;;  %v5966_v38 = vsel %vm5965_vm15, %v10294_v56, %v5962_v10  ;;  %v5969_v3 = vmul.f32 %v10296_v16, %v5968_v2  ;;  %vm5983_vm10 = vweird.f32 %v5925_v40 }
 0xe68   : > { %v6000_v39 = vmul.f32 %v5966_v38, %v12956_v63 }
 0xe69   : > { %v5970_v51 = vmul.f32 0.5, %v5969_v3 }
 0xe6a   : > { %v6010_v27 = vmul.f32 %v13035_v35, %v6000_v39 }
 0xe6b   : > { %v5971_v23 = vsub.f32 1.5, %v5970_v51 }
 0xe6c   : > { %v6020_v11 = vadd.f32 %v13041_v52, %v6010_v27 }
 0xe6d   : > { %v10298_v9 = vpop.eup %10297  ;;  %v5972_v33 = vmul.f32 %v10296_v16, %v5971_v23 }
 0xe6e   : > { %v5978_v17 = vmul.f32 %v10298_v9, %v5925_v40  ;;  %9471 = vmatmul.msk.f32.gmra.mxu2 %vm3371_vm0, %v6020_v11  ;;  %9478 = vmatmul.msk.f32.gmra.mxu3 %vm3371_vm0, %v6020_v11  ;;  %vm5984_vm9 = vweird.f32 %v10298_v9 }
 0xe6f   : > { %v5976_v4 = vsel %vm5975_vm8, %v10296_v16, %v5972_v33  ;;  %vm5985_vm11 = vmor %vm5983_vm10, %vm5984_vm9 }
 0xe70   : > { %v5979_v55 = vmul.f32 %v10298_v9, %v5978_v17  ;;  %v6001_v63 = vmul.f32 %v5976_v4, %v12963_v15 }
 0xe71   : > { %v5912_v61 = vpop.xlane.xlu1 %5911 }
 0xe72   : > { %v5980_v49 = vmul.f32 0.5, %v5979_v55  ;;  %v5919_v31 = vmul.f32 %v5912_v61, %v11596_v48  ;;  %v6011_v57 = vmul.f32 %v13035_v35, %v6001_v63 }
 0xe74   : > { %v5981_v59 = vsub.f32 1.5, %v5980_v49  ;;  %v5926_v21 = vadd.f32 1e-05, %v5919_v31  ;;  %v6021_v47 = vadd.f32 %v13041_v52, %v6011_v57 }
 0xe76   : > { %v5982_v30 = vmul.f32 %v10298_v9, %v5981_v59  ;;  %10299 = vrsqrt.f32 %v5926_v21  ;;  %9472 = vmatmul.msk.f32.gmra.mxu2 %vm3371_vm0, %v6021_v47  ;;  %9479 = vmatmul.msk.f32.gmra.mxu3 %vm3371_vm0, %v6021_v47  ;;  %vm5993_vm13 = vweird.f32 %v5926_v21 }
 0xe78   : > { %v5986_v15 = vsel %vm5985_vm11, %v10298_v9, %v5982_v30 }
 0xe79   : > { %v6002_v54 = vmul.f32 %v5986_v15, %v12970_v32 }
 0xe7b   : > { %v6012_v22 = vmul.f32 %v13035_v35, %v6002_v54 }
 0xe7c   : > { %v10300_v26 = vpop.eup %10299 }
 0xe7d   : > { %v5988_v29 = vmul.f32 %v10300_v26, %v5926_v21  ;;  %v6022_v43 = vadd.f32 %v13041_v52, %v6012_v22  ;;  %vm5994_vm12 = vweird.f32 %v10300_v26 }
 0xe7e   : > { %vm5995_vm14 = vmor %vm5993_vm13, %vm5994_vm12 }
 0xe7f   : > { %v5989_v44 = vmul.f32 %v10300_v26, %v5988_v29  ;;  %9473 = vmatmul.msk.f32.gmra.mxu2 %vm3371_vm0, %v6022_v43  ;;  %9480 = vmatmul.msk.f32.gmra.mxu3 %vm3371_vm0, %v6022_v43 }
 0xe81   : > { %v5990_v13 = vmul.f32 0.5, %v5989_v44 }
 0xe83   : > { %v5991_v28 = vsub.f32 1.5, %v5990_v13 }
 0xe85   : > { %v5992_v50 = vmul.f32 %v10300_v26, %v5991_v28 }
 0xe87   : > { %v5996_v7 = vsel %vm5995_vm14, %v10300_v26, %v5992_v50 }
 0xe88   : > { %v6003_v32 = vmul.f32 %v5996_v7, %v12977_v46 }
 0xe8a   : > { %v6013_v37 = vmul.f32 %v13035_v35, %v6003_v32 }
 0xe8c   : > { %v6023_v6 = vadd.f32 %v13041_v52, %v6013_v37 }
 0xe8e   : > { %9474 = vmatmul.msk.f32.gmra.mxu2 %vm3371_vm0, %v6023_v6  ;;  %9481 = vmatmul.msk.f32.gmra.mxu3 %vm3371_vm0, %v6023_v6 }
 0xecf   : > { %v6086_v60 = vpop.f32.mrf.mxu2  ;;  %v6124_v58 = vpop.f32.mrf.mxu3 }
 0xed0   : > { %v13091_v10 = vadd.f32 %v6086_v60, %v6044_v45  ;;  %v13123_v55 = vadd.f32 %v6124_v58, %v6045_v62 }
 0xed2   : > { %v13135_v47 = vmul.f32 0.25, %v13091_v10 }
 0xeda   : > { %v6089_v5 = vpop.f32.mrf.mxu2  ;;  %v6127_v19 = vpop.f32.mrf.mxu3 }
 0xedb   : > { %v13109_v33 = vadd.f32 %v6089_v5, %v6044_v45  ;;  %v13119_v4 = vadd.f32 %v6127_v19, %v6045_v62 }
 0xedd   : > { %v13140_v30 = vmul.f32 0.25, %v13109_v33 }
 0xee4   : > { %v6092_v0 = vpop.f32.mrf.mxu2  ;;  %v6130_v56 = vpop.f32.mrf.mxu3 }
 0xee5   : > { %v6131_v35 = vadd.f32 %v6130_v56, %v6045_v62  ;;  %v13117_v17 = vadd.f32 %v6092_v0, %v6044_v45 }
 0xee7   : > { %v13145_v15 = vmul.f32 0.25, %v13117_v17 }
 0xef1   : > { %v6095_v46 = vpop.f32.mrf.mxu2  ;;  %v6133_v25 = vpop.f32.mrf.mxu3 }
 0xef2   : > { %v6134_v18 = vadd.f32 %v6133_v25, %v6045_v62  ;;  %v13101_v51 = vadd.f32 %v6095_v46, %v6044_v45 }
 0xef4   : > { %v13085_v52 = vpack.i.bf16 %v6131_v35, %v6134_v18  ;;  %v13150_v54 = vmul.f32 0.25, %v13101_v51 }
 0xef9   : > { %v6098_v8 = vpop.f32.mrf.mxu2  ;;  %v6136_v24 = vpop.f32.mrf.mxu3 }
 0xefa   : > { %v13087_v41 = vadd.f32 %v6098_v8, %v6044_v45  ;;  %v6137_v2 = vadd.f32 %v6136_v24, %v6045_v62 }
 0xefc   : > { %6176 = vrot.lane.b32.xlu1 %v13087_v41, %s10494_s29  ;;  %v13155_v22 = vmul.f32 0.25, %v13087_v41 }
 0xf02   : > { %v6101_v16 = vpop.f32.mrf.mxu2  ;;  %v6139_v40 = vpop.f32.mrf.mxu3 }
 0xf03   : > { %v13093_v38 = vadd.f32 %v6101_v16, %v6044_v45  ;;  %v6140_v3 = vadd.f32 %v6139_v40, %v6045_v62 }
 0xf04   : > { %6168 = vrot.lane.b32.xlu1 %v13091_v10, %s10494_s29 }
 0xf05   : > { %6178 = vrot.lane.b32.xlu0 %v13093_v38, %s10494_s29  ;;  %v13099_v39 = vpack.i.bf16 %v6137_v2, %v6140_v3  ;;  %v13160_v26 = vmul.f32 0.25, %v13093_v38 }
 0xf0d   : > { %6174 = vrot.lane.b32.xlu0 %v13101_v51, %s10494_s29 }
 0xf11   : > { %v6104_v27 = vpop.f32.mrf.mxu2  ;;  %v6142_v23 = vpop.f32.mrf.mxu3 }
 0xf12   : > { %v13105_v9 = vadd.f32 %v6104_v27, %v6044_v45  ;;  %v13107_v11 = vadd.f32 %v6142_v23, %v6045_v62 }
 0xf14   : > { %9504 = vmatpush.msk.msrb.mxu1 %vm4059_vm3, %v13107_v11  ;;  %6180 = vrot.lane.b32.xlu2 %v13105_v9, %s10494_s29  ;;  %v13165_v29 = vmul.f32 0.25, %v13105_v9 }
 0xf15   : > { %6170 = vrot.lane.b32.xlu0 %v13109_v33, %s10494_s29 }
 0xf16   : > { %6366 = vmatpush.msrb.mxu1 %v6140_v3 }
 0xf18   : > { %6367 = vmatpush.msrb.mxu1 %v6137_v2 }
 0xf1a   : > { %6368 = vmatpush.msrb.mxu1 %v6134_v18 }
 0xf1c   : > { %6369 = vmatpush.msrb.mxu1 %v6131_v35  ;;  %6172 = vrot.lane.b32.xlu2 %v13117_v17, %s10494_s29  ;;  %s14178_s29 = smov 48  }
 0xf1e   : > { %6370 = vmatpush.msrb.mxu1 %v13119_v4 }
 0xf20   : > { %6371 = vmatpush.msrb.mxu1 %v13123_v55 }
 0xf6e   : > { %v6181_v63 = vpop.permute.xlu2 %6180  ;;  %v6177_v49 = vpop.permute.xlu1 %6176 }
 0xf6f   : > { %9490 = vmatpush.xpose.msk.msrb.mxu0 %vm3885_vm4, %v6181_v63 }
 0xf76   : > { %v6173_v57 = vpop.permute.xlu2 %6172  ;;  %v6169_v21 = vpop.permute.xlu1 %6168 }
 0xf77   : > { %v6179_v61 = vpop.permute.xlu0 %6178 }
 0xf78   : > { %9491 = vmatpush.xpose.msk.msrb.mxu0 %vm3885_vm4, %v6179_v61 }
 0xf7c   : > { %9492 = vmatpush.xpose.msk.msrb.mxu0 %vm3885_vm4, %v6177_v49 }
 0xf7f   : > { %v6175_v31 = vpop.permute.xlu0 %6174 }
 0xf80   : > { %9493 = vmatpush.xpose.msk.msrb.mxu0 %vm3885_vm4, %v6175_v31 }
 0xf84   : > { %9494 = vmatpush.xpose.msk.msrb.mxu0 %vm3885_vm4, %v6173_v57 }
 0xf87   : > { %v6171_v59 = vpop.permute.xlu0 %6170 }
 0xf88   : > { %9495 = vmatpush.xpose.msk.msrb.mxu0 %vm3885_vm4, %v6171_v59 }
 0xf8c   : > { %9496 = vmatpush.xpose.msk.msrb.mxu0 %vm3885_vm4, %v6169_v21 }
 0xf8f   : > { %9497 = vmatmul.msk.f32.vlgmr.msrb.gmra.mxu0 %vm3885_vm4, %v13135_v47 }
 0xf97   : > { %9498 = vmatmul.msk.f32.gmra.mxu0 %vm3885_vm4, %v13140_v30 }
 0xf9f   : > { %9499 = vmatmul.msk.f32.gmra.mxu0 %vm3885_vm4, %v13145_v15 }
 0xfa7   : > { %9500 = vmatmul.msk.f32.gmra.mxu0 %vm3885_vm4, %v13150_v54 }
 0xfaf   : > { %9501 = vmatmul.msk.f32.gmra.mxu0 %vm3885_vm4, %v13155_v22 }
 0xfb7   : > { %9502 = vmatmul.msk.f32.gmra.mxu0 %vm3885_vm4, %v13160_v26 }
 0xfbf   : > { %9503 = vmatmul.msk.f32.gmra.mxu0 %vm3885_vm4, %v13165_v29 }
0x100c   : > { %v6234_v43 = vpop.f32.mrf.mxu0 }
0x100d   : > { %v6255_v44 = vsel %vm3959_vm5, %v6234_v43, -inf }
0x100e   : > { %6256 = vmax.xlane.f32.xlu2 %v6255_v44 }
0x1014   : > { %v6237_v13 = vpop.f32.mrf.mxu0 }
0x1015   : > { %v6258_v28 = vsel %vm3959_vm5, %v6237_v13, -inf }
0x1016   : > { %6259 = vmax.xlane.f32.xlu0 %v6258_v28 }
0x101c   : > { %v6240_v50 = vpop.f32.mrf.mxu0 }
0x101d   : > { %v6261_v7 = vsel %vm3959_vm5, %v6240_v50, -inf }
0x101e   : > { %6262 = vmax.xlane.f32.xlu1 %v6261_v7 }
0x1024   : > { %v6243_v32 = vpop.f32.mrf.mxu0 }
0x1025   : > { %v6264_v37 = vsel %vm3959_vm5, %v6243_v32, -inf }
0x1026   : > { %6265 = vmax.xlane.f32.xlu2 %v6264_v37 }
0x102c   : > { %v6246_v6 = vpop.f32.mrf.mxu0 }
0x102d   : > { %v6267_v60 = vsel %vm3959_vm5, %v6246_v6, -inf }
0x102e   : > { %6268 = vmax.xlane.f32.xlu0 %v6267_v60 }
0x1034   : > { %v6249_v58 = vpop.f32.mrf.mxu0 }
0x1035   : > { %v6270_v5 = vsel %vm3959_vm5, %v6249_v58, -inf }
0x1036   : > { %6271 = vmax.xlane.f32.xlu2 %v6270_v5 }
0x103c   : > { %v6252_v19 = vpop.f32.mrf.mxu0 }
0x103d   : > { %v6273_v0 = vsel %vm3978_vm6, %v6252_v19, -inf }
0x103e   : > { %6274 = vmax.xlane.f32.xlu1 %v6273_v0 }
0x1081   : > { %v6257_v56 = vpop.xlane.xlu2 %6256 }
0x1082   : > { %v6276_v53 = vsub.f32 %v6234_v43, %v6257_v56 }
0x1084   : > { %v6283_v62 = vmul.f32 1.442695, %v6276_v53 }
0x1086   : > { %10301 = vpow2.f32 %v6283_v62 }
0x1089   : > { %v6260_v46 = vpop.xlane.xlu0 %6259 }
0x108a   : > { %v6277_v25 = vsub.f32 %v6237_v13, %v6260_v46 }
0x108c   : > { %v13176_v35 = vpop.eup %10301  ;;  %v6285_v18 = vmul.f32 1.442695, %v6277_v25  ;;  %v9482_v25 = vld [vmem:[%s14122_s9 + $0x40] sm:$0xff] }
0x108d   : > { %v6297_v45 = vsel %vm3959_vm5, %v13176_v35, 0.0 }
0x108e   : > { %10303 = vpow2.f32 %v6285_v18  ;;  %6298 = vadd.xlane.f32.xlu0 %v6297_v45 }
0x1091   : > { %v6263_v8 = vpop.xlane.xlu1 %6262 }
0x1092   : > { %v6278_v24 = vsub.f32 %v6240_v50, %v6263_v8 }
0x1094   : > { %v13180_v16 = vpop.eup %10303  ;;  %v6287_v40 = vmul.f32 1.442695, %v6278_v24 }
0x1095   : > { %v6300_v2 = vsel %vm3959_vm5, %v13180_v16, 0.0 }
0x1096   : > { %10305 = vpow2.f32 %v6287_v40  ;;  %6301 = vadd.xlane.f32.xlu2 %v6300_v2 }
0x1099   : > { %v6266_v3 = vpop.xlane.xlu2 %6265 }
0x109a   : > { %v6279_v27 = vsub.f32 %v6243_v32, %v6266_v3 }
0x109c   : > { %v13184_v23 = vpop.eup %10305  ;;  %v6289_v63 = vmul.f32 1.442695, %v6279_v27 }
0x109d   : > { %v6303_v61 = vsel %vm3959_vm5, %v13184_v23, 0.0 }
0x109e   : > { %10307 = vpow2.f32 %v6289_v63  ;;  %6304 = vadd.xlane.f32.xlu1 %v6303_v61 }
0x10a1   : > { %v6269_v49 = vpop.xlane.xlu0 %6268 }
0x10a2   : > { %v6280_v31 = vsub.f32 %v6246_v6, %v6269_v49 }
0x10a4   : > { %v13188_v57 = vpop.eup %10307  ;;  %v6291_v59 = vmul.f32 1.442695, %v6280_v31 }
0x10a5   : > { %v6306_v21 = vsel %vm3959_vm5, %v13188_v57, 0.0 }
0x10a6   : > { %10309 = vpow2.f32 %v6291_v59  ;;  %6307 = vadd.xlane.f32.xlu0 %v6306_v21 }
0x10a9   : > { %v6272_v43 = vpop.xlane.xlu2 %6271 }
0x10aa   : > { %v6281_v44 = vsub.f32 %v6249_v58, %v6272_v43 }
0x10ac   : > { %v13192_v13 = vpop.eup %10309  ;;  %v6293_v28 = vmul.f32 1.442695, %v6281_v44 }
0x10ad   : > { %v6309_v50 = vsel %vm3959_vm5, %v13192_v13, 0.0 }
0x10ae   : > { %10311 = vpow2.f32 %v6293_v28  ;;  %6310 = vadd.xlane.f32.xlu2 %v6309_v50 }
0x10b1   : > { %v6275_v7 = vpop.xlane.xlu1 %6274 }
0x10b2   : > { %v6282_v32 = vsub.f32 %v6252_v19, %v6275_v7 }
0x10b4   : > { %v13196_v37 = vpop.eup %10311  ;;  %v6295_v6 = vmul.f32 1.442695, %v6282_v32 }
0x10b5   : > { %v6312_v60 = vsel %vm3959_vm5, %v13196_v37, 0.0 }
0x10b6   : > { %10313 = vpow2.f32 %v6295_v6  ;;  %6313 = vadd.xlane.f32.xlu1 %v6312_v60 }
0x10bc   : > { %v13200_v5 = vpop.eup %10313 }
0x10bd   : > { %v6315_v58 = vsel %vm3978_vm6, %v13200_v5, 0.0 }
0x10be   : > { %6316 = vadd.xlane.f32.xlu0 %v6315_v58 }
0x10c6   : > { %6420 = vrot.lane.b32.xlu2 %v13105_v9, %s14178_s29 }
0x10ce   : > { %6414 = vrot.lane.b32.xlu2 %v13101_v51, %s14178_s29 }
0x10cf   : > { %6418 = vrot.lane.b32.xlu1 %v13093_v38, %s14178_s29 }
0x10d2   : > { %6416 = vrot.lane.b32.xlu0 %v13087_v41, %s14178_s29 }
0x10d6   : > { %6408 = vrot.lane.b32.xlu2 %v13091_v10, %s14178_s29 }
0x10d7   : > { %6410 = vrot.lane.b32.xlu1 %v13109_v33, %s14178_s29 }
0x10da   : > { %6412 = vrot.lane.b32.xlu0 %v13117_v17, %s14178_s29 }
0x10de   : > { %6398 = vrot.lane.b32.xlu2 %v13145_v15, %s14179_s30 }
0x10df   : > { %6396 = vrot.lane.b32.xlu1 %v13140_v30, %s14179_s30 }
0x10e2   : > { %6394 = vrot.lane.b32.xlu0 %v13135_v47, %s14179_s30 }
0x10e6   : > { %7114 = vrot.lane.b32.xlu2 %v13105_v9, %s14180_s0 }
0x10e7   : > { %6796 = vrot.lane.b32.xlu1 %v13105_v9, %s14181_s27 }
0x10ea   : > { %6400 = vrot.lane.b32.xlu0 %v13150_v54, %s14179_s30 }
0x10ee   : > { %7112 = vrot.lane.b32.xlu2 %v13093_v38, %s14180_s0 }
0x10ef   : > { %6794 = vrot.lane.b32.xlu1 %v13093_v38, %s14181_s27 }
0x10f2   : > { %6402 = vrot.lane.b32.xlu0 %v13155_v22, %s14179_s30 }
0x10f6   : > { %6404 = vrot.lane.b32.xlu2 %v13160_v26, %s14179_s30 }
0x10f7   : > { %7110 = vrot.lane.b32.xlu1 %v13087_v41, %s14180_s0 }
0x10fa   : > { %6792 = vrot.lane.b32.xlu0 %v13087_v41, %s14181_s27 }
0x10fe   : > { %6788 = vrot.lane.b32.xlu2 %v13117_v17, %s14181_s27 }
0x10ff   : > { %7108 = vrot.lane.b32.xlu1 %v13101_v51, %s14180_s0 }
0x1101   : > { %v6299_v9 = vpop.xlane.xlu0 %6298 }
0x1102   : > { %10315 = vrcp.f32 %v6299_v9  ;;  %6790 = vrot.lane.b32.xlu0 %v13101_v51, %s14181_s27 }
0x1106   : > { %6786 = vrot.lane.b32.xlu2 %v13109_v33, %s14181_s27 }
0x1107   : > { %6406 = vrot.lane.b32.xlu1 %v13165_v29, %s14179_s30 }
0x1108   : > { %v10316_v38 = vpop.eup %10315 }
0x1109   : > { %v6325_v41 = vmul.f32 %v10316_v38, %v13176_v35  ;;  %v6302_v19 = vpop.xlane.xlu2 %6301 }
0x110a   : > { %10317 = vrcp.f32 %v6302_v19  ;;  %7106 = vrot.lane.b32.xlu0 %v13117_v17, %s14180_s0 }
0x110b   : > { %9505 = vmatmul.msk.f32.vlgmr.msrb.gmra.mxu1 %vm3959_vm5, %v6325_v41 }
0x110e   : > { %7102 = vrot.lane.b32.xlu2 %v13091_v10, %s14180_s0 }
0x110f   : > { %6784 = vrot.lane.b32.xlu1 %v13091_v10, %s14181_s27 }
0x1110   : > { %v10318_v51 = vpop.eup %10317 }
0x1111   : > { %v6305_v0 = vpop.xlane.xlu1 %6304  ;;  %v6326_v56 = vmul.f32 %v10318_v51, %v13180_v16 }
0x1112   : > { %10319 = vrcp.f32 %v6305_v0  ;;  %7104 = vrot.lane.b32.xlu0 %v13109_v33, %s14180_s0 }
0x1113   : > { %9506 = vmatmul.msk.f32.gmra.mxu1 %vm3959_vm5, %v6326_v56 }
0x1116   : > { %6772 = vrot.lane.b32.xlu2 %v13140_v30, %s14182_s28 }
0x1117   : > { %7088 = vrot.lane.b32.xlu1 %v13135_v47, %s14183_s3 }
0x1118   : > { %v10320_v17 = vpop.eup %10319 }
0x1119   : > { %v6308_v53 = vpop.xlane.xlu0 %6307  ;;  %v6327_v10 = vmul.f32 %v10320_v17, %v13184_v23 }
0x111a   : > { %10321 = vrcp.f32 %v6308_v53  ;;  %6770 = vrot.lane.b32.xlu0 %v13135_v47, %s14182_s28  ;;  %v9483_v47 = vld [vmem:[%s14122_s9 + $0x48] sm:$0xff] }
0x111b   : > { %9507 = vmatmul.msk.f32.gmra.mxu1 %vm3959_vm5, %v6327_v10 }
0x111c   : > { %6746 = vmatpush.msra.mxu1 %v9483_v47 }
0x111e   : > { %6778 = vrot.lane.b32.xlu2 %v13155_v22, %s14182_s28  ;;  %6747 = vmatpush.msra.mxu1 %v9482_v25 }
0x111f   : > { %6776 = vrot.lane.b32.xlu1 %v13150_v54, %s14182_s28 }
0x1120   : > { %v10322_v33 = vpop.eup %10321 }
0x1121   : > { %v6311_v62 = vpop.xlane.xlu2 %6310  ;;  %v6328_v46 = vmul.f32 %v10322_v33, %v13188_v57 }
0x1122   : > { %10323 = vrcp.f32 %v6311_v62  ;;  %6774 = vrot.lane.b32.xlu0 %v13145_v15, %s14182_s28 }
0x1123   : > { %9508 = vmatmul.msk.f32.gmra.mxu1 %vm3959_vm5, %v6328_v46 }
0x1126   : > { %6782 = vrot.lane.b32.xlu2 %v13165_v29, %s14182_s28 }
0x1128   : > { %v10324_v35 = vpop.eup %10323 }
0x1129   : > { %v6421_v18 = vpop.permute.xlu2 %6420  ;;  %v6314_v45 = vpop.xlane.xlu1 %6313  ;;  %v6329_v8 = vmul.f32 %v10324_v35, %v13192_v13 }
0x112a   : > { %10325 = vrcp.f32 %v6314_v45  ;;  %9512 = vmatpush.xpose.msk.msrb.mxu2 %vm3885_vm4, %v6421_v18  ;;  %6780 = vrot.lane.b32.xlu0 %v13160_v26, %s14182_s28 }
0x112b   : > { %9509 = vmatmul.msk.f32.gmra.mxu1 %vm3959_vm5, %v6329_v8 }
0x1130   : > { %v10326_v24 = vpop.eup %10325 }
0x1131   : > { %v6415_v16 = vpop.permute.xlu2 %6414  ;;  %v6317_v40 = vpop.xlane.xlu0 %6316  ;;  %v6330_v2 = vmul.f32 %v10326_v24, %v13196_v37 }
0x1132   : > { %10327 = vrcp.f32 %v6317_v40 }
0x1133   : > { %9510 = vmatmul.msk.f32.gmra.mxu1 %vm3959_vm5, %v6330_v2 }
0x1138   : > { %v10328_v3 = vpop.eup %10327 }
0x1139   : > { %v6409_v27 = vpop.permute.xlu2 %6408  ;;  %v6331_v23 = vmul.f32 %v10328_v3, %v13200_v5 }
0x113b   : > { %9511 = vmatmul.msk.f32.gmra.mxu1 %vm3959_vm5, %v6331_v23 }
0x1141   : > { %v6399_v63 = vpop.permute.xlu2 %6398  ;;  %v6419_v61 = vpop.permute.xlu1 %6418 }
0x1142   : > { %9513 = vmatpush.xpose.msk.msrb.mxu2 %vm3885_vm4, %v6419_v61 }
0x1144   : > { %v6417_v49 = vpop.permute.xlu0 %6416 }
0x1146   : > { %9514 = vmatpush.xpose.msk.msrb.mxu2 %vm3885_vm4, %v6417_v49 }
0x1149   : > { %v7115_v31 = vpop.permute.xlu2 %7114  ;;  %v6411_v57 = vpop.permute.xlu1 %6410 }
0x114a   : > { %9515 = vmatpush.xpose.msk.msrb.mxu2 %vm3885_vm4, %v6415_v16  ;;  %9577 = vmatpush.xpose.msk.msrb.mxu1 %vm3885_vm4, %v7115_v31 }
0x114c   : > { %v6413_v59 = vpop.permute.xlu0 %6412 }
0x114e   : > { %9516 = vmatpush.xpose.msk.msrb.mxu2 %vm3885_vm4, %v6413_v59 }
0x1151   : > { %v7113_v21 = vpop.permute.xlu2 %7112  ;;  %v6397_v43 = vpop.permute.xlu1 %6396 }
0x1152   : > { %9517 = vmatpush.xpose.msk.msrb.mxu2 %vm3885_vm4, %v6411_v57  ;;  %9578 = vmatpush.xpose.msk.msrb.mxu1 %vm3885_vm4, %v7113_v21 }
0x1154   : > { %v6395_v44 = vpop.permute.xlu0 %6394 }
0x1156   : > { %9518 = vmatpush.xpose.msk.msrb.mxu2 %vm3885_vm4, %v6409_v27 }
0x1159   : > { %9519 = vmatmul.msk.f32.vlgmr.msrb.gmra.mxu2 %vm3885_vm4, %v6395_v44  ;;  %v6797_v13 = vpop.permute.xlu1 %6796  ;;  %v6405_v32 = vpop.permute.xlu2 %6404 }
0x115a   : > { %9548 = vmatpush.xpose.msk.msra.mxu2 %vm3885_vm4, %v6797_v13  ;;  %v13354_v13 = vpack.i.bf16 %v13123_v55, %v13119_v4 }
0x115c   : > { %v6401_v28 = vpop.permute.xlu0 %6400 }
0x1161   : > { %9520 = vmatmul.msk.f32.gmra.mxu2 %vm3885_vm4, %v6397_v43  ;;  %v6795_v50 = vpop.permute.xlu1 %6794  ;;  %v6789_v5 = vpop.permute.xlu2 %6788 }
0x1162   : > { %9549 = vmatpush.xpose.msk.msra.mxu2 %vm3885_vm4, %v6795_v50 }
0x1164   : > { %v6403_v7 = vpop.permute.xlu0 %6402 }
0x1169   : > { %9521 = vmatmul.msk.f32.gmra.mxu2 %vm3885_vm4, %v6399_v63  ;;  %v7111_v37 = vpop.permute.xlu1 %7110  ;;  %v6787_v41 = vpop.permute.xlu2 %6786 }
0x116a   : > { %9579 = vmatpush.xpose.msk.msrb.mxu1 %vm3885_vm4, %v7111_v37 }
0x116c   : > { %v6793_v6 = vpop.permute.xlu0 %6792 }
0x116d   : > { %9550 = vmatpush.xpose.msk.msra.mxu2 %vm3885_vm4, %v6793_v6 }
0x1171   : > { %9522 = vmatmul.msk.f32.gmra.mxu2 %vm3885_vm4, %v6401_v28  ;;  %v7109_v60 = vpop.permute.xlu1 %7108  ;;  %v7103_v56 = vpop.permute.xlu2 %7102 }
0x1172   : > { %9580 = vmatpush.xpose.msk.msrb.mxu1 %vm3885_vm4, %v7109_v60 }
0x1174   : > { %v6791_v58 = vpop.permute.xlu0 %6790 }
0x1175   : > { %9551 = vmatpush.xpose.msk.msra.mxu2 %vm3885_vm4, %v6791_v58 }
0x1179   : > { %9523 = vmatmul.msk.f32.gmra.mxu2 %vm3885_vm4, %v6403_v7  ;;  %v6407_v9 = vpop.permute.xlu1 %6406  ;;  %v6773_v10 = vpop.permute.xlu2 %6772 }
0x117a   : > { %9552 = vmatpush.xpose.msk.msra.mxu2 %vm3885_vm4, %v6789_v5 }
0x117c   : > { %v7107_v38 = vpop.permute.xlu0 %7106 }
0x117d   : > { %9581 = vmatpush.xpose.msk.msrb.mxu1 %vm3885_vm4, %v7107_v38 }
0x117e   : > { %9553 = vmatpush.xpose.msk.msra.mxu2 %vm3885_vm4, %v6787_v41 }
0x1181   : > { %9524 = vmatmul.msk.f32.gmra.mxu2 %vm3885_vm4, %v6405_v32  ;;  %v6785_v19 = vpop.permute.xlu1 %6784  ;;  %v6779_v18 = vpop.permute.xlu2 %6778 }
0x1182   : > { %9554 = vmatpush.xpose.msk.msra.mxu2 %vm3885_vm4, %v6785_v19 }
0x1184   : > { %v7105_v51 = vpop.permute.xlu0 %7104 }
0x1185   : > { %9582 = vmatpush.xpose.msk.msrb.mxu1 %vm3885_vm4, %v7105_v51 }
0x1188   : > { %v6373_v0 = vpop.f32.mrf.mxu1 }
0x1189   : > { %9525 = vmatmul.msk.f32.gmra.mxu2 %vm3885_vm4, %v6407_v9  ;;  %9541 = vmatmul.msk.f32.vlgmr.msra.gmra.mxu1 %vm3885_vm4, %v6373_v0  ;;  %v7089_v62 = vpop.permute.xlu1 %7088  ;;  %v6783_v16 = vpop.permute.xlu2 %6782 }
0x118a   : > { %9583 = vmatpush.xpose.msk.msrb.mxu1 %vm3885_vm4, %v7103_v56 }
0x118c   : > { %v6771_v17 = vpop.permute.xlu0 %6770 }
0x1190   : > { %v6376_v53 = vpop.f32.mrf.mxu1 }
0x1191   : > { %9542 = vmatmul.msk.f32.gmra.mxu1 %vm3885_vm4, %v6376_v53  ;;  %9555 = vmatmul.msk.f32.vlgmr.msra.gmra.mxu2 %vm3885_vm4, %v6771_v17  ;;  %v6777_v25 = vpop.permute.xlu1 %6776 }
0x1194   : > { %v6775_v46 = vpop.permute.xlu0 %6774 }
0x1198   : > { %v6379_v33 = vpop.f32.mrf.mxu1 }
0x1199   : > { %9543 = vmatmul.msk.f32.gmra.mxu1 %vm3885_vm4, %v6379_v33  ;;  %9556 = vmatmul.msk.f32.gmra.mxu2 %vm3885_vm4, %v6773_v10 }
0x119c   : > { %v6781_v8 = vpop.permute.xlu0 %6780 }
0x11a0   : > { %v6382_v47 = vpop.f32.mrf.mxu1 }
0x11a1   : > { %9544 = vmatmul.msk.f32.gmra.mxu1 %vm3885_vm4, %v6382_v47  ;;  %9557 = vmatmul.msk.f32.gmra.mxu2 %vm3885_vm4, %v6775_v46 }
0x11a8   : > { %v6385_v35 = vpop.f32.mrf.mxu1 }
0x11a9   : > { %9545 = vmatmul.msk.f32.gmra.mxu1 %vm3885_vm4, %v6385_v35  ;;  %9558 = vmatmul.msk.f32.gmra.mxu2 %vm3885_vm4, %v6777_v25 }
0x11b0   : > { %v6388_v45 = vpop.f32.mrf.mxu1 }
0x11b1   : > { %9546 = vmatmul.msk.f32.gmra.mxu1 %vm3885_vm4, %v6388_v45  ;;  %9559 = vmatmul.msk.f32.gmra.mxu2 %vm3885_vm4, %v6779_v18 }
0x11b8   : > { %v6391_v24 = vpop.f32.mrf.mxu1 }
0x11b9   : > { %9547 = vmatmul.msk.f32.gmra.mxu1 %vm3885_vm4, %v6391_v24  ;;  %9560 = vmatmul.msk.f32.gmra.mxu2 %vm3885_vm4, %v6781_v8 }
0x11c1   : > { %9561 = vmatmul.msk.f32.gmra.mxu2 %vm3885_vm4, %v6783_v16  ;;  %9584 = vmatmul.msk.f32.vlgmr.msrb.gmra.mxu1 %vm3885_vm4, %v7089_v62 }
0x11dc   : > { %v6467_v40 = vpop.f32.mrf.mxu2 }
0x11dd   : > { %v6488_v2 = vsel %vm3959_vm5, %v6467_v40, -inf }
0x11de   : > { %6489 = vmax.xlane.f32.xlu1 %v6488_v2 }
0x11e4   : > { %v6470_v3 = vpop.f32.mrf.mxu2 }
0x11e5   : > { %v6491_v27 = vsel %vm3959_vm5, %v6470_v3, -inf }
0x11e6   : > { %6492 = vmax.xlane.f32.xlu0 %v6491_v27 }
0x11ec   : > { %v6473_v23 = vpop.f32.mrf.mxu2 }
0x11ed   : > { %v6494_v63 = vsel %vm3959_vm5, %v6473_v23, -inf }
0x11ee   : > { %6495 = vmax.xlane.f32.xlu2 %v6494_v63 }
0x11f4   : > { %v6476_v61 = vpop.f32.mrf.mxu2 }
0x11f5   : > { %v6497_v49 = vsel %vm3959_vm5, %v6476_v61, -inf }
0x11f6   : > { %6498 = vmax.xlane.f32.xlu1 %v6497_v49 }
0x11fc   : > { %v6479_v31 = vpop.f32.mrf.mxu2 }
0x11fd   : > { %v6500_v57 = vsel %vm3959_vm5, %v6479_v31, -inf }
0x11fe   : > { %6501 = vmax.xlane.f32.xlu0 %v6500_v57 }
0x1204   : > { %v6482_v59 = vpop.f32.mrf.mxu2 }
0x1205   : > { %v6503_v21 = vsel %vm3959_vm5, %v6482_v59, -inf }
0x1206   : > { %6504 = vmax.xlane.f32.xlu1 %v6503_v21  ;;  %v13380_v8 = vpop.f32.mrf.mxu1 }
0x120c   : > { %v6485_v43 = vpop.f32.mrf.mxu2 }
0x120d   : > { %v6506_v44 = vsel %vm3978_vm6, %v6485_v43, -inf }
0x120e   : > { %6507 = vmax.xlane.f32.xlu2 %v6506_v44  ;;  %v13389_v63 = vpop.f32.mrf.mxu1 }
0x1212   : > { %6583 = vrot.lane.b32.xlu0 %v13107_v11, %s14179_s30 }
0x1214   : > { %v13362_v4 = vpop.f32.mrf.mxu2 }
0x1215   : > { %v6864_v19 = vsel %vm3959_vm5, %v13362_v4, -inf }
0x121a   : > { %10022 = vrot.lane.b32.xlu0 %v13085_v52, %s14179_s30 }
0x121f   : > { %10017 = vrot.lane.b32.xlu1 %v13099_v39, %s14179_s30 }
0x1227   : > { %10027 = vrot.lane.b32.xlu1 %v13354_v13, %s14179_s30 }
0x1251   : > { %v6490_v28 = vpop.xlane.xlu1 %6489 }
0x1252   : > { %v6509_v50 = vsub.f32 %v6467_v40, %v6490_v28 }
0x1254   : > { %v6516_v7 = vmul.f32 1.442695, %v6509_v50 }
0x1256   : > { %10329 = vpow2.f32 %v6516_v7 }
0x1259   : > { %v6493_v32 = vpop.xlane.xlu0 %6492 }
0x125a   : > { %v6510_v37 = vsub.f32 %v6470_v3, %v6493_v32 }
0x125c   : > { %v13358_v6 = vpop.eup %10329  ;;  %v6518_v60 = vmul.f32 1.442695, %v6510_v37 }
0x125d   : > { %v6530_v5 = vsel %vm3959_vm5, %v13358_v6, 0.0 }
0x125e   : > { %10331 = vpow2.f32 %v6518_v60  ;;  %6531 = vadd.xlane.f32.xlu2 %v6530_v5 }
0x1261   : > { %v6496_v58 = vpop.xlane.xlu2 %6495 }
0x1262   : > { %v6511_v55 = vsub.f32 %v6473_v23, %v6496_v58 }
0x1264   : > { %v13364_v9 = vpop.eup %10331  ;;  %v6520_v38 = vmul.f32 1.442695, %v6511_v55 }
0x1265   : > { %v6533_v41 = vsel %vm3959_vm5, %v13364_v9, 0.0 }
0x1266   : > { %10333 = vpow2.f32 %v6520_v38  ;;  %6534 = vadd.xlane.f32.xlu0 %v6533_v41  ;;  %6865 = vmax.xlane.f32.xlu2 %v6864_v19 }
0x1269   : > { %v6499_v51 = vpop.xlane.xlu1 %6498 }
0x126a   : > { %v6512_v0 = vsub.f32 %v6476_v61, %v6499_v51 }
0x126c   : > { %v13370_v56 = vpop.eup %10333  ;;  %v6522_v17 = vmul.f32 1.442695, %v6512_v0 }
0x126d   : > { %v6536_v53 = vsel %vm3959_vm5, %v13370_v56, 0.0 }
0x126e   : > { %10335 = vpow2.f32 %v6522_v17  ;;  %6537 = vadd.xlane.f32.xlu2 %v6536_v53 }
0x1271   : > { %v6502_v10 = vpop.xlane.xlu0 %6501 }
0x1272   : > { %v6513_v33 = vsub.f32 %v6479_v31, %v6502_v10  ;;  %v13397_v31 = vpop.f32.mrf.mxu1 }
0x1274   : > { %v13374_v62 = vpop.eup %10335  ;;  %v6524_v46 = vmul.f32 1.442695, %v6513_v33 }
0x1275   : > { %v6539_v47 = vsel %vm3959_vm5, %v13374_v62, 0.0 }
0x1276   : > { %10337 = vpow2.f32 %v6524_v46  ;;  %6540 = vadd.xlane.f32.xlu1 %v6539_v47 }
0x1279   : > { %v6505_v25 = vpop.xlane.xlu1 %6504 }
0x127a   : > { %v6514_v35 = vsub.f32 %v6482_v59, %v6505_v25  ;;  %v13401_v32 = vpop.f32.mrf.mxu1 }
0x127c   : > { %v13378_v18 = vpop.eup %10337  ;;  %v6526_v45 = vmul.f32 1.442695, %v6514_v35 }
0x127d   : > { %v6542_v24 = vsel %vm3959_vm5, %v13378_v18, 0.0 }
0x127e   : > { %10339 = vpow2.f32 %v6526_v45  ;;  %6543 = vadd.xlane.f32.xlu2 %v6542_v24 }
0x1281   : > { %v6508_v16 = vpop.xlane.xlu2 %6507 }
0x1282   : > { %v6515_v40 = vsub.f32 %v6485_v43, %v6508_v16  ;;  %v13407_v60 = vpop.f32.mrf.mxu1 }
0x1284   : > { %v13384_v2 = vpop.eup %10339  ;;  %v6528_v3 = vmul.f32 1.442695, %v6515_v40  ;;  %v6584_v27 = vpop.permute.xlu0 %6583 }
0x1285   : > { %9526 = vmatpush.msk.msrb.mxu3 %vm4059_vm3, %v6584_v27  ;;  %v6545_v23 = vsel %vm3959_vm5, %v13384_v2, 0.0 }
0x1286   : > { %10341 = vpow2.f32 %v6528_v3  ;;  %6546 = vadd.xlane.f32.xlu2 %v6545_v23 }
0x128a   : > { %v13411_v5 = vpop.f32.mrf.mxu1 }
0x128c   : > { %v13391_v61 = vpop.eup %10341  ;;  %v10023_v21 = vpop.permute.xlu0 %10022 }
0x128d   : > { %v6548_v49 = vsel %vm3978_vm6, %v13391_v61, 0.0  ;;  %v10024_v44 = vunpack.i.l.bf16 %v10023_v21  ;;  %v10025_v28 = vunpack.i.h.bf16 %v10023_v21 }
0x128e   : > { %6549 = vadd.xlane.f32.xlu0 %v6548_v49 }
0x128f   : > { %7271 = vrot.lane.b32.xlu1 %v13107_v11, %s14183_s3 }
0x1291   : > { %v10018_v57 = vpop.permute.xlu1 %10017 }
0x1292   : > { %v10019_v59 = vunpack.i.l.bf16 %v10018_v57  ;;  %v10020_v43 = vunpack.i.h.bf16 %v10018_v57  ;;  %v13415_v58 = vpop.f32.mrf.mxu1 }
0x1294   : > { %6624 = vmatpush.msrb.mxu3 %v10019_v59 }
0x1296   : > { %6625 = vmatpush.msrb.mxu3 %v10020_v43 }
0x1297   : > { %10037 = vrot.lane.b32.xlu1 %v13099_v39, %s14182_s28 }
0x1298   : > { %6626 = vmatpush.msrb.mxu3 %v10024_v44 }
0x1299   : > { %v10028_v50 = vpop.permute.xlu1 %10027 }
0x129a   : > { %v10029_v7 = vunpack.i.l.bf16 %v10028_v50  ;;  %6627 = vmatpush.msrb.mxu3 %v10025_v28  ;;  %v10030_v37 = vunpack.i.h.bf16 %v10028_v50 }
0x129c   : > { %6628 = vmatpush.msrb.mxu3 %v10029_v7 }
0x129e   : > { %7090 = vrot.lane.b32.xlu2 %v13140_v30, %s14183_s3  ;;  %6629 = vmatpush.msrb.mxu3 %v10030_v37  ;;  %v13421_v30 = vpop.f32.mrf.mxu1 }
0x12a2   : > { %10032 = vrot.lane.b32.xlu0 %v13099_v39, %s14183_s3  ;;  %v7182_v39 = vsel %vm3959_vm5, %v13421_v30, -inf }
0x12aa   : > { %6953 = vrot.lane.b32.xlu0 %v13107_v11, %s14182_s28 }
0x12b2   : > { %10042 = vrot.lane.b32.xlu0 %v13085_v52, %s14183_s3 }
0x12ba   : > { %10047 = vrot.lane.b32.xlu0 %v13085_v52, %s14182_s28 }
0x12c2   : > { %7094 = vrot.lane.b32.xlu0 %v13150_v54, %s14183_s3 }
0x12c7   : > { %7183 = vmax.xlane.f32.xlu2 %v7182_v39 }
0x12ca   : > { %10057 = vrot.lane.b32.xlu0 %v13354_v13, %s14182_s28 }
0x12d1   : > { %v6532_v11 = vpop.xlane.xlu2 %6531 }
0x12d2   : > { %10343 = vrcp.f32 %v6532_v11  ;;  %7096 = vrot.lane.b32.xlu0 %v13155_v22, %s14183_s3  ;;  %v13436_v22 = vpop.f32.mrf.mxu2 }
0x12d8   : > { %v10344_v55 = vpop.eup %10343 }
0x12d9   : > { %v6558_v52 = vmul.f32 %v10344_v55, %v13358_v6  ;;  %v6535_v38 = vpop.xlane.xlu0 %6534  ;;  %v6866_v41 = vpop.xlane.xlu2 %6865 }
0x12da   : > { %10345 = vrcp.f32 %v6535_v38  ;;  %v6885_v54 = vsub.f32 %v13362_v4, %v6866_v41  ;;  %7098 = vrot.lane.b32.xlu0 %v13160_v26, %s14183_s3 }
0x12db   : > { %9527 = vmatmul.msk.f32.vlgmr.msrb.gmra.mxu3 %vm3959_vm5, %v6558_v52 }
0x12dc   : > { %v6892_v19 = vmul.f32 1.442695, %v6885_v54 }
0x12de   : > { %10347 = vpow2.f32 %v6892_v19 }
0x12df   : > { %7092 = vrot.lane.b32.xlu2 %v13145_v15, %s14183_s3  ;;  %v13445_v15 = vpop.f32.mrf.mxu2 }
0x12e0   : > { %v10346_v51 = vpop.eup %10345 }
0x12e1   : > { %v6538_v0 = vpop.xlane.xlu2 %6537  ;;  %v6559_v6 = vmul.f32 %v10346_v51, %v13364_v9 }
0x12e2   : > { %10349 = vrcp.f32 %v6538_v0 }
0x12e3   : > { %9528 = vmatmul.msk.f32.gmra.mxu3 %vm3959_vm5, %v6559_v6  ;;  %v9485_v6 = vld [vmem:[%s14122_s9 + $0x58] sm:$0xff] }
0x12e4   : > { %v13440_v4 = vpop.eup %10347  ;;  %6687 = vmatpush.msra.mxu0 %v9485_v6 }
0x12e5   : > { %v6906_v26 = vsel %vm3959_vm5, %v13440_v4, 0.0 }
0x12e6   : > { %6907 = vadd.xlane.f32.xlu1 %v6906_v26  ;;  %v9484_v26 = vld [vmem:[%s14122_s9 + $0x50] sm:$0xff] }
0x12e7   : > { %v13450_v47 = vpop.f32.mrf.mxu2  ;;  %6688 = vmatpush.msra.mxu0 %v9484_v26 }
0x12e8   : > { %v10350_v17 = vpop.eup %10349  ;;  %v6873_v37 = vsel %vm3959_vm5, %v13450_v47, -inf }
0x12e9   : > { %v6541_v53 = vpop.xlane.xlu1 %6540  ;;  %v6560_v10 = vmul.f32 %v10350_v17, %v13370_v56 }
0x12ea   : > { %10351 = vrcp.f32 %v6541_v53 }
0x12eb   : > { %9529 = vmatmul.msk.f32.gmra.mxu3 %vm3959_vm5, %v6560_v10 }
0x12ef   : > { %v13454_v56 = vpop.f32.mrf.mxu2 }
0x12f0   : > { %v10352_v33 = vpop.eup %10351 }
0x12f1   : > { %v6544_v9 = vpop.xlane.xlu2 %6543  ;;  %v6561_v46 = vmul.f32 %v10352_v33, %v13374_v62 }
0x12f2   : > { %10353 = vrcp.f32 %v6544_v9 }
0x12f3   : > { %9530 = vmatmul.msk.f32.gmra.mxu3 %vm3959_vm5, %v6561_v46 }
0x12f7   : > { %v13464_v23 = vpop.f32.mrf.mxu2 }
0x12f8   : > { %v10354_v25 = vpop.eup %10353 }
0x12f9   : > { %v6547_v35 = vpop.xlane.xlu2 %6546  ;;  %v6562_v45 = vmul.f32 %v10354_v25, %v13378_v18  ;;  %v6870_v18 = vsel %vm3959_vm5, %v13445_v15, -inf }
0x12fa   : > { %10355 = vrcp.f32 %v6547_v35 }
0x12fb   : > { %9531 = vmatmul.msk.f32.gmra.mxu3 %vm3959_vm5, %v6562_v45 }
0x12ff   : > { %7100 = vrot.lane.b32.xlu1 %v13165_v29, %s14183_s3 }
0x1300   : > { %v10356_v24 = vpop.eup %10355 }
0x1301   : > { %v6550_v16 = vpop.xlane.xlu0 %6549  ;;  %v7091_v62 = vpop.permute.xlu2 %7090  ;;  %v6563_v40 = vmul.f32 %v10356_v24, %v13384_v2  ;;  %v6879_v2 = vsel %vm3959_vm5, %v13464_v23, -inf }
0x1302   : > { %10357 = vrcp.f32 %v6550_v16  ;;  %v7272_v3 = vpop.permute.xlu1 %7271  ;;  %9585 = vmatmul.msk.f32.gmra.mxu1 %vm3885_vm4, %v7091_v62 }
0x1303   : > { %9591 = vmatpush.msk.msrb.mxu2 %vm4059_vm3, %v7272_v3  ;;  %9532 = vmatmul.msk.f32.gmra.mxu3 %vm3959_vm5, %v6563_v40 }
0x1304   : > { %6871 = vmax.xlane.f32.xlu0 %v6870_v18 }
0x1308   : > { %v10358_v27 = vpop.eup %10357 }
0x1309   : > { %v6564_v29 = vmul.f32 %v10358_v27, %v13391_v61 }
0x130a   : > { %v10038_v21 = vpop.permute.xlu1 %10037 }
0x130b   : > { %9533 = vmatmul.msk.f32.gmra.mxu3 %vm3959_vm5, %v6564_v29  ;;  %v10039_v44 = vunpack.i.l.bf16 %v10038_v21  ;;  %v10040_v28 = vunpack.i.h.bf16 %v10038_v21  ;;  %v6867_v29 = vsel %vm3959_vm5, %v13436_v22, -inf }
0x130c   : > { %6880 = vmax.xlane.f32.xlu0 %v6879_v2 }
0x1314   : > { %v10033_v49 = vpop.permute.xlu0 %10032 }
0x1315   : > { %v10034_v57 = vunpack.i.l.bf16 %v10033_v49  ;;  %v10035_v59 = vunpack.i.h.bf16 %v10033_v49 }
0x1317   : > { %7312 = vmatpush.msrb.mxu2 %v10034_v57 }
0x1319   : > { %7313 = vmatpush.msrb.mxu2 %v10035_v59 }
0x131c   : > { %v6954_v43 = vpop.permute.xlu0 %6953 }
0x131d   : > { %9562 = vmatpush.msk.msra.mxu3 %vm4059_vm3, %v6954_v43  ;;  %v6861_v43 = vpop.f32.mrf.mxu2 }
0x131f   : > { %6994 = vmatpush.msra.mxu3 %v10039_v44  ;;  %v6882_v44 = vsel %vm3978_vm6, %v6861_v43, -inf }
0x1321   : > { %6995 = vmatpush.msra.mxu3 %v10040_v28 }
0x1324   : > { %v10043_v61 = vpop.permute.xlu0 %10042 }
0x1325   : > { %v10044_v50 = vunpack.i.l.bf16 %v10043_v61  ;;  %v10045_v7 = vunpack.i.h.bf16 %v10043_v61 }
0x1327   : > { %7314 = vmatpush.msrb.mxu2 %v10044_v50 }
0x1329   : > { %6874 = vmax.xlane.f32.xlu1 %v6873_v37  ;;  %7315 = vmatpush.msrb.mxu2 %v10045_v7 }
0x132c   : > { %v10048_v39 = vpop.permute.xlu0 %10047 }
0x132d   : > { %v10049_v11 = vunpack.i.l.bf16 %v10048_v39  ;;  %v10050_v55 = vunpack.i.h.bf16 %v10048_v39 }
0x132f   : > { %6996 = vmatpush.msra.mxu3 %v10049_v11 }
0x1331   : > { %6997 = vmatpush.msra.mxu3 %v10050_v55 }
0x1334   : > { %v7095_v52 = vpop.permute.xlu0 %7094 }
0x133a   : > { %v7184_v38 = vpop.xlane.xlu2 %7183 }
0x133b   : > { %v7203_v41 = vsub.f32 %v13421_v30, %v7184_v38  ;;  %v9487_v38 = vld [vmem:[%s14122_s9 + $0x68] sm:$0xff] }
0x133c   : > { %v10058_v54 = vpop.permute.xlu0 %10057  ;;  %7057 = vmatpush.msrb.mxu0 %v9487_v38  ;;  %v9489_v38 = vld [vmem:[%s14122_s9 + $0x78] sm:$0xff] }
0x133d   : > { %v7210_v19 = vmul.f32 1.442695, %v7203_v41  ;;  %v10059_v51 = vunpack.i.l.bf16 %v10058_v54  ;;  %v10060_v0 = vunpack.i.h.bf16 %v10058_v54  ;;  %v9486_v54 = vld [vmem:[%s14122_s9 + $0x60] sm:$0xff] }
0x133e   : > { %7058 = vmatpush.msrb.mxu0 %v9486_v54 }
0x133f   : > { %10359 = vpow2.f32 %v7210_v19  ;;  %6998 = vmatpush.msra.mxu3 %v10059_v51 }
0x1341   : > { %6999 = vmatpush.msra.mxu3 %v10060_v0 }
0x1342   : > { %v7093_v17 = vpop.permute.xlu2 %7092 }
0x1343   : > { %9586 = vmatmul.msk.f32.gmra.mxu1 %vm3885_vm4, %v7093_v17  ;;  %7375 = vmatpush.msrb.mxu3 %v9489_v38 }
0x1344   : > { %v7097_v10 = vpop.permute.xlu0 %7096 }
0x1345   : > { %v13481_v30 = vpop.eup %10359 }
0x1346   : > { %v7224_v53 = vsel %vm3959_vm5, %v13481_v30, 0.0 }
0x1347   : > { %7225 = vadd.xlane.f32.xlu2 %v7224_v53 }
0x134b   : > { %9587 = vmatmul.msk.f32.gmra.mxu1 %vm3885_vm4, %v7095_v52 }
0x134c   : > { %v7099_v9 = vpop.permute.xlu0 %7098 }
0x1353   : > { %9588 = vmatmul.msk.f32.gmra.mxu1 %vm3885_vm4, %v7097_v10 }
0x1359   : > { %v6908_v33 = vpop.xlane.xlu1 %6907 }
0x135a   : > { %10361 = vrcp.f32 %v6908_v33 }
0x135b   : > { %9589 = vmatmul.msk.f32.gmra.mxu1 %vm3885_vm4, %v7099_v9 }
0x135e   : > { %v6631_v46 = vpop.f32.mrf.mxu3 }
0x135f   : > { %10052 = vrot.lane.b32.xlu2 %v13354_v13, %s14183_s3  ;;  %9534 = vmatmul.msk.f32.vlgmr.msra.gmra.mxu0 %vm3885_vm4, %v6631_v46 }
0x1360   : > { %v10362_v25 = vpop.eup %10361 }
0x1361   : > { %v6934_v35 = vmul.f32 %v10362_v25, %v13440_v4 }
0x1363   : > { %9563 = vmatmul.msk.f32.vlgmr.msra.gmra.mxu3 %vm3959_vm5, %v6934_v35 }
0x1366   : > { %v6634_v45 = vpop.f32.mrf.mxu3 }
0x1367   : > { %9535 = vmatmul.msk.f32.gmra.mxu0 %vm3885_vm4, %v6634_v45 }
0x136e   : > { %v6637_v24 = vpop.f32.mrf.mxu3 }
0x136f   : > { %9536 = vmatmul.msk.f32.gmra.mxu0 %vm3885_vm4, %v6637_v24 }
0x1371   : > { %v7101_v16 = vpop.permute.xlu1 %7100 }
0x1372   : > { %9590 = vmatmul.msk.f32.gmra.mxu1 %vm3885_vm4, %v7101_v16 }
0x1376   : > { %v6640_v62 = vpop.f32.mrf.mxu3 }
0x1377   : > { %v6872_v40 = vpop.xlane.xlu0 %6871  ;;  %9537 = vmatmul.msk.f32.gmra.mxu0 %vm3885_vm4, %v6640_v62 }
0x1378   : > { %v6887_v57 = vsub.f32 %v13445_v15, %v6872_v40 }
0x137a   : > { %v6896_v21 = vmul.f32 1.442695, %v6887_v57 }
0x137e   : > { %v6643_v13 = vpop.f32.mrf.mxu3 }
0x137f   : > { %v6881_v3 = vpop.xlane.xlu0 %6880  ;;  %9538 = vmatmul.msk.f32.gmra.mxu0 %vm3885_vm4, %v6643_v13  ;;  %v13515_v15 = vpop.f32.mrf.mxu1 }
0x1380   : > { %v6890_v4 = vsub.f32 %v13464_v23, %v6881_v3  ;;  %v6876_v23 = vsel %vm3959_vm5, %v13454_v56, -inf }
0x1382   : > { %v6902_v18 = vmul.f32 1.442695, %v6890_v4  ;;  %v7185_v4 = vsel %vm3959_vm5, %v13515_v15, -inf }
0x1384   : > { %10363 = vpow2.f32 %v6902_v18 }
0x1385   : > { %10365 = vpow2.f32 %v6896_v21 }
0x1386   : > { %v6646_v27 = vpop.f32.mrf.mxu3 }
0x1387   : > { %9539 = vmatmul.msk.f32.gmra.mxu0 %vm3885_vm4, %v6646_v27 }
0x1388   : > { %6868 = vmax.xlane.f32.xlu2 %v6867_v29 }
0x138a   : > { %v13502_v2 = vpop.eup %10363 }
0x138b   : > { %v6921_v49 = vsel %vm3959_vm5, %v13502_v2, 0.0  ;;  %v13511_v28 = vpop.eup %10365 }
0x138c   : > { %6922 = vadd.xlane.f32.xlu1 %v6921_v49  ;;  %v6912_v61 = vsel %vm3959_vm5, %v13511_v28, 0.0 }
0x138e   : > { %v6649_v59 = vpop.f32.mrf.mxu3 }
0x138f   : > { %9540 = vmatmul.msk.f32.gmra.mxu0 %vm3885_vm4, %v6649_v59 }
0x1390   : > { %6877 = vmax.xlane.f32.xlu2 %v6876_v23 }
0x1398   : > { %6883 = vmax.xlane.f32.xlu2 %v6882_v44 }
0x139c   : > { %v6875_v17 = vpop.xlane.xlu1 %6874 }
0x139d   : > { %v6888_v10 = vsub.f32 %v13450_v47, %v6875_v17 }
0x139f   : > { %v6898_v9 = vmul.f32 1.442695, %v6888_v10 }
0x13a0   : > { %6913 = vadd.xlane.f32.xlu2 %v6912_v61 }
0x13ba   : > { %v7226_v50 = vpop.xlane.xlu2 %7225 }
0x13bb   : > { %10367 = vrcp.f32 %v7226_v50 }
0x13c0   : > { %v7167_v7 = vpop.f32.mrf.mxu1 }
0x13c1   : > { %v7188_v37 = vsel %vm3959_vm5, %v7167_v7, -inf  ;;  %v10368_v11 = vpop.eup %10367 }
0x13c2   : > { %7189 = vmax.xlane.f32.xlu1 %v7188_v37  ;;  %v10053_v39 = vpop.permute.xlu2 %10052  ;;  %v7252_v41 = vmul.f32 %v10368_v11, %v13481_v30 }
0x13c3   : > { %v10054_v55 = vunpack.i.l.bf16 %v10053_v39  ;;  %v10055_v52 = vunpack.i.h.bf16 %v10053_v39 }
0x13c5   : > { %7316 = vmatpush.msrb.mxu2 %v10054_v55 }
0x13c7   : > { %7317 = vmatpush.msrb.mxu2 %v10055_v52 }
0x13c8   : > { %v13525_v19 = vpop.f32.mrf.mxu1  ;;  %9592 = vmatmul.msk.f32.vlgmr.msrb.gmra.mxu2 %vm3959_vm5, %v7252_v41 }
0x13c9   : > { %v7191_v29 = vsel %vm3959_vm5, %v13525_v19, -inf }
0x13d0   : > { %v13528_v51 = vpop.f32.mrf.mxu1 }
0x13d1   : > { %v7194_v27 = vsel %vm3959_vm5, %v13528_v51, -inf }
0x13d8   : > { %v7176_v0 = vpop.f32.mrf.mxu1 }
0x13d9   : > { %v7197_v6 = vsel %vm3959_vm5, %v7176_v0, -inf }
0x13da   : > { %7198 = vmax.xlane.f32.xlu1 %v7197_v6 }
0x13e6   : > { %v7001_v26 = vpop.f32.mrf.mxu3 }
0x13e7   : > { %9570 = vmatmul.msk.f32.vlgmr.msrb.gmra.mxu0 %vm3885_vm4, %v7001_v26 }
0x13ef   : > { %v7179_v49 = vpop.f32.mrf.mxu1 }
0x13f0   : > { %v7200_v57 = vsel %vm3978_vm6, %v7179_v49, -inf }
0x13fb   : > { %v6869_v30 = vpop.xlane.xlu2 %6868 }
0x13fc   : > { %v6886_v53 = vsub.f32 %v13436_v22, %v6869_v30 }
0x13fe   : > { %v6894_v33 = vmul.f32 1.442695, %v6886_v53 }
0x13ff   : > { %v6923_v59 = vpop.xlane.xlu1 %6922 }
0x1400   : > { %10369 = vpow2.f32 %v6894_v33  ;;  %v9488_v33 = vld [vmem:[%s14122_s9 + $0x70] sm:$0xff] }
0x1401   : > { %10371 = vpow2.f32 %v6898_v9  ;;  %7376 = vmatpush.msrb.mxu3 %v9488_v33 }
0x1403   : > { %v6878_v46 = vpop.xlane.xlu2 %6877 }
0x1404   : > { %v6889_v25 = vsub.f32 %v13454_v56, %v6878_v46 }
0x1406   : > { %v10370_v35 = vpop.eup %10369  ;;  %v6900_v45 = vmul.f32 1.442695, %v6889_v25 }
0x1407   : > { %v6909_v24 = vsel %vm3959_vm5, %v10370_v35, 0.0  ;;  %v10372_v62 = vpop.eup %10371 }
0x1408   : > { %10373 = vpow2.f32 %v6900_v45  ;;  %6910 = vadd.xlane.f32.xlu0 %v6909_v24  ;;  %v6915_v3 = vsel %vm3959_vm5, %v10372_v62, 0.0 }
0x140b   : > { %v6884_v16 = vpop.xlane.xlu2 %6883 }
0x140c   : > { %v6891_v40 = vsub.f32 %v6861_v43, %v6884_v16 }
0x140e   : > { %v13536_v13 = vpop.eup %10373  ;;  %v6904_v22 = vmul.f32 1.442695, %v6891_v40 }
0x140f   : > { %v6918_v47 = vsel %vm3959_vm5, %v13536_v13, 0.0 }
0x1410   : > { %10375 = vpow2.f32 %v6904_v22  ;;  %6919 = vadd.xlane.f32.xlu2 %v6918_v47  ;;  %6916 = vadd.xlane.f32.xlu0 %v6915_v3 }
0x1413   : > { %v6914_v52 = vpop.xlane.xlu2 %6913 }
0x1416   : > { %v13541_v56 = vpop.eup %10375 }
0x1417   : > { %v6924_v18 = vsel %vm3978_vm6, %v13541_v56, 0.0 }
0x1418   : > { %7186 = vmax.xlane.f32.xlu2 %v7185_v4  ;;  %6925 = vadd.xlane.f32.xlu0 %v6924_v18 }
0x1420   : > { %7195 = vmax.xlane.f32.xlu2 %v7194_v27  ;;  %7192 = vmax.xlane.f32.xlu0 %v7191_v29 }
0x1428   : > { %7201 = vmax.xlane.f32.xlu0 %v7200_v57 }
0x1435   : > { %v7190_v23 = vpop.xlane.xlu1 %7189 }
0x1436   : > { %v7205_v21 = vsub.f32 %v7167_v7, %v7190_v23 }
0x1438   : > { %v7214_v43 = vmul.f32 1.442695, %v7205_v21 }
0x143a   : > { %10377 = vpow2.f32 %v7214_v43 }
0x1440   : > { %v13552_v44 = vpop.eup %10377 }
0x1441   : > { %v7230_v61 = vsel %vm3959_vm5, %v13552_v44, 0.0 }
0x1442   : > { %7231 = vadd.xlane.f32.xlu1 %v7230_v61  ;;  %v6690_v61 = vpop.f32.mrf.mxu0 }
0x144b   : > { %v7319_v43 = vpop.f32.mrf.mxu2 }
0x144d   : > { %v7199_v50 = vpop.xlane.xlu1 %7198 }
0x144e   : > { %v7208_v37 = vsub.f32 %v7176_v0, %v7199_v50  ;;  %v13584_v50 = vpop.f32.mrf.mxu0 }
0x1450   : > { %v7220_v39 = vmul.f32 1.442695, %v7208_v37 }
0x1452   : > { %10379 = vpow2.f32 %v7220_v39 }
0x1456   : > { %v13586_v37 = vpop.f32.mrf.mxu0 }
0x1458   : > { %v13556_v11 = vpop.eup %10379 }
0x1459   : > { %v7239_v55 = vsel %vm3959_vm5, %v13556_v11, 0.0 }
0x145a   : > { %7240 = vadd.xlane.f32.xlu1 %v7239_v55 }
0x145e   : > { %v13589_v55 = vpop.f32.mrf.mxu0 }
0x147b   : > { %v6911_v7 = vpop.xlane.xlu0 %6910 }
0x147c   : > { %10381 = vrcp.f32 %v6911_v7 }
0x147d   : > { %10383 = vrcp.f32 %v6914_v52 }
0x1482   : > { %v10382_v41 = vpop.eup %10381 }
0x1483   : > { %v6920_v54 = vpop.xlane.xlu2 %6919  ;;  %v6917_v0 = vpop.xlane.xlu0 %6916  ;;  %v6935_v6 = vmul.f32 %v10382_v41, %v10370_v35 }
0x1484   : > { %v10384_v26 = vpop.eup %10383  ;;  %10385 = vrcp.f32 %v6917_v0  ;;  %v13593_v0 = vpop.f32.mrf.mxu0 }
0x1485   : > { %9564 = vmatmul.msk.f32.gmra.mxu3 %vm3959_vm5, %v6935_v6  ;;  %v6936_v53 = vmul.f32 %v10384_v26, %v13511_v28 }
0x148a   : > { %v10386_v46 = vpop.eup %10385 }
0x148b   : > { %v7187_v17 = vpop.xlane.xlu2 %7186  ;;  %v6926_v30 = vpop.xlane.xlu0 %6925  ;;  %v6937_v45 = vmul.f32 %v10386_v46, %v10372_v62 }
0x148c   : > { %v7204_v10 = vsub.f32 %v13515_v15, %v7187_v17 }
0x148d   : > { %9565 = vmatmul.msk.f32.gmra.mxu3 %vm3959_vm5, %v6936_v53 }
0x148e   : > { %v7212_v9 = vmul.f32 1.442695, %v7204_v10  ;;  %v13599_v10 = vpop.f32.mrf.mxu0 }
0x1490   : > { %10387 = vpow2.f32 %v7212_v9 }
0x1491   : > { %10389 = vrcp.f32 %v6920_v54 }
0x1493   : > { %v7196_v25 = vpop.xlane.xlu2 %7195  ;;  %v7193_v35 = vpop.xlane.xlu0 %7192 }
0x1494   : > { %v7207_v24 = vsub.f32 %v13528_v51, %v7196_v25  ;;  %v7206_v28 = vsub.f32 %v13525_v19, %v7193_v35 }
0x1495   : > { %9566 = vmatmul.msk.f32.gmra.mxu3 %vm3959_vm5, %v6937_v45 }
0x1496   : > { %v10388_v15 = vpop.eup %10387  ;;  %v7218_v16 = vmul.f32 1.442695, %v7207_v24  ;;  %v7216_v40 = vmul.f32 1.442695, %v7206_v28  ;;  %v13603_v35 = vpop.f32.mrf.mxu0 }
0x1497   : > { %v7227_v22 = vsel %vm3959_vm5, %v10388_v15, 0.0  ;;  %v10390_v47 = vpop.eup %10389 }
0x1498   : > { %10391 = vpow2.f32 %v7218_v16  ;;  %7228 = vadd.xlane.f32.xlu2 %v7227_v22  ;;  %v6938_v4 = vmul.f32 %v10390_v47, %v13536_v13 }
0x1499   : > { %10393 = vpow2.f32 %v7216_v40  ;;  %v6750_v40 = vadd.f32 %v13380_v8, %v6690_v61 }
0x149a   : > { %10395 = vrcp.f32 %v6923_v59 }
0x149b   : > { %v7202_v3 = vpop.xlane.xlu0 %7201 }
0x149c   : > { %v7209_v62 = vsub.f32 %v7179_v49, %v7202_v3 }
0x149d   : > { %9567 = vmatmul.msk.f32.gmra.mxu3 %vm3959_vm5, %v6938_v4 }
0x149e   : > { %v10392_v51 = vpop.eup %10391  ;;  %v7222_v19 = vmul.f32 1.442695, %v7209_v62  ;;  %v7060_v16 = vpop.f32.mrf.mxu0  ;;  %v13613_v62 = vld [vmem:[%s14123_s10 + $0x1] ss:$0 sm:$0xff] }
0x149f   : > { %v10394_v18 = vpop.eup %10393  ;;  %v7236_v27 = vsel %vm3959_vm5, %v10392_v51, 0.0  ;;  %v7081_v22 = vadd.f32 %v7060_v16, %v6750_v40  ;;  %v9614_v40 = vld [vmem:[%s14126_s13 + $0xa8] sm:$0xff] }
0x14a0   : > { %v10396_v29 = vpop.eup %10395  ;;  %10397 = vpow2.f32 %v7222_v19  ;;  %7237 = vadd.xlane.f32.xlu2 %v7236_v27  ;;  %v7233_v57 = vsel %vm3959_vm5, %v10394_v18, 0.0 }
0x14a1   : > { %7234 = vadd.xlane.f32.xlu0 %v7233_v57  ;;  %10399 = vrcp.f32 %v6926_v30  ;;  %v6939_v59 = vmul.f32 %v10396_v29, %v13502_v2 }
0x14a5   : > { %9568 = vmatmul.msk.f32.gmra.mxu3 %vm3959_vm5, %v6939_v59 }
0x14a6   : > { %v10398_v13 = vpop.eup %10397 }
0x14a7   : > { %v7242_v49 = vsel %vm3978_vm6, %v10398_v13, 0.0  ;;  %v10400_v23 = vpop.eup %10399 }
0x14a8   : > { %v6940_v21 = vmul.f32 %v10400_v23, %v13541_v56 }
0x14a9   : > { %7243 = vadd.xlane.f32.xlu0 %v7242_v49 }
0x14ad   : > { %9569 = vmatmul.msk.f32.gmra.mxu3 %vm3959_vm5, %v6940_v21 }
0x14b5   : > { %9599 = vmatmul.msk.f32.vlgmr.msrb.gmra.mxu3 %vm3885_vm4, %v7319_v43  ;;  %v7232_v52 = vpop.xlane.xlu1 %7231 }
0x14cd   : > { %v7241_v9 = vpop.xlane.xlu1 %7240 }
0x1508   : > { %v7004_v2 = vpop.f32.mrf.mxu3 }
0x1509   : > { %9571 = vmatmul.msk.f32.gmra.mxu0 %vm3885_vm4, %v7004_v2 }
0x150b   : > { %v7229_v39 = vpop.xlane.xlu2 %7228 }
0x150c   : > { %10401 = vrcp.f32 %v7229_v39  ;;  %v6753_v39 = vadd.f32 %v13389_v63, %v13584_v50  ;;  %v9623_v63 = vld [vmem:[%s14126_s13 + $0xf0] sm:$0xff]  ;;  %v9624_v50 = vld [vmem:[%s14126_s13 + $0xf8] sm:$0xff] }
0x150d   : > { %10403 = vrcp.f32 %v7232_v52  ;;  %7656 = vmatpush.msra.mxu0 %v9623_v63  ;;  %7694 = vmatpush.msra.mxu1 %v9624_v50  ;;  %v13722_v63 = vld [vmem:[%s14124_s11 + $0x1] ss:$0 sm:$0xff] }
0x1510   : > { %v7007_v7 = vpop.f32.mrf.mxu3 }
0x1511   : > { %9572 = vmatmul.msk.f32.gmra.mxu0 %vm3885_vm4, %v7007_v7 }
0x1512   : > { %v10402_v56 = vpop.eup %10401 }
0x1513   : > { %v7253_v38 = vmul.f32 %v10402_v56, %v10388_v15  ;;  %v10404_v54 = vpop.eup %10403  ;;  %v7238_v17 = vpop.xlane.xlu2 %7237 }
0x1514   : > { %v7235_v41 = vpop.xlane.xlu0 %7234  ;;  %v7254_v26 = vmul.f32 %v10404_v54, %v13552_v44 }
0x1515   : > { %9593 = vmatmul.msk.f32.gmra.mxu2 %vm3959_vm5, %v7253_v38  ;;  %10405 = vrcp.f32 %v7235_v41  ;;  %v6756_v41 = vadd.f32 %v13397_v31, %v13586_v37  ;;  %v9621_v37 = vld [vmem:[%s14126_s13 + $0xe0] sm:$0xff] }
0x1516   : > { %10407 = vrcp.f32 %v7238_v17  ;;  %7657 = vmatpush.msra.mxu0 %v9621_v37 }
0x1517   : > { %10409 = vrcp.f32 %v7241_v9  ;;  %v9620_v9 = vld [vmem:[%s14126_s13 + $0xd8] sm:$0xff] }
0x1518   : > { %v7010_v6 = vpop.f32.mrf.mxu3 }
0x1519   : > { %9573 = vmatmul.msk.f32.gmra.mxu0 %vm3885_vm4, %v7010_v6 }
0x151b   : > { %v10406_v30 = vpop.eup %10405 }
0x151c   : > { %v7255_v33 = vmul.f32 %v10406_v30, %v10394_v18  ;;  %v10408_v46 = vpop.eup %10407  ;;  %v7244_v45 = vpop.xlane.xlu0 %7243  ;;  %v9622_v30 = vld [vmem:[%s14126_s13 + $0xe8] sm:$0xff] }
0x151d   : > { %9594 = vmatmul.msk.f32.gmra.mxu2 %vm3959_vm5, %v7254_v26  ;;  %v7256_v44 = vmul.f32 %v10408_v46, %v10392_v51  ;;  %v10410_v24 = vpop.eup %10409  ;;  %10411 = vrcp.f32 %v7244_v45  ;;  %7695 = vmatpush.msra.mxu1 %v9622_v30  ;;  %v6759_v46 = vadd.f32 %v13401_v32, %v13589_v55  ;;  %v9615_v45 = vld [vmem:[%s14126_s13 + $0xb0] sm:$0xff]  ;;  %v9616_v32 = vld [vmem:[%s14126_s13 + $0xb8] sm:$0xff] }
0x151e   : > { %v7257_v15 = vmul.f32 %v10410_v24, %v13556_v11 }
0x151f   : > { %7696 = vmatpush.msra.mxu1 %v9620_v9 }
0x1520   : > { %v7013_v53 = vpop.f32.mrf.mxu3 }
0x1521   : > { %9574 = vmatmul.msk.f32.gmra.mxu0 %vm3885_vm4, %v7013_v53 }
0x1523   : > { %v10412_v47 = vpop.eup %10411 }
0x1524   : > { %v7258_v19 = vmul.f32 %v10412_v47, %v10398_v13  ;;  %v9611_v47 = vld [vmem:[%s14126_s13 + $0x90] sm:$0xff] }
0x1525   : > { %9595 = vmatmul.msk.f32.gmra.mxu2 %vm3959_vm5, %v7255_v33  ;;  %v9619_v33 = vld [vmem:[%s14126_s13 + $0xd0] sm:$0xff] }
0x1526   : > { %7658 = vmatpush.msra.mxu0 %v9619_v33 }
0x1528   : > { %v7016_v25 = vpop.f32.mrf.mxu3 }
0x1529   : > { %9575 = vmatmul.msk.f32.gmra.mxu0 %vm3885_vm4, %v7016_v25 }
0x152d   : > { %9596 = vmatmul.msk.f32.gmra.mxu2 %vm3959_vm5, %v7256_v44  ;;  %v9618_v44 = vld [vmem:[%s14126_s13 + $0xc8] sm:$0xff] }
0x152e   : > { %7697 = vmatpush.msra.mxu1 %v9618_v44 }
0x1530   : > { %v7019_v28 = vpop.f32.mrf.mxu3  ;;  %7698 = vmatpush.msra.mxu1 %v9616_v32 }
0x1531   : > { %9576 = vmatmul.msk.f32.gmra.mxu0 %vm3885_vm4, %v7019_v28  ;;  %v9613_v28 = vld [vmem:[%s14126_s13 + $0xa0] sm:$0xff] }
0x1532   : > { %7699 = vmatpush.msra.mxu1 %v9614_v40 }
0x1535   : > { %9597 = vmatmul.msk.f32.gmra.mxu2 %vm3959_vm5, %v7257_v15 }
0x1538   : > { %v7378_v3 = vpop.f32.mrf.mxu3 }
0x1539   : > { %v7399_v4 = vadd.f32 %v7378_v3, %v7081_v22 }
0x153b   : > { %v7406_v51 = vadd.f32 %v7399_v4, %v12899_v1  ;;  %v9612_v4 = vld [vmem:[%s14126_s13 + $0x98] sm:$0xff] }
0x153c   : > { %7700 = vmatpush.msra.mxu1 %v9612_v4  ;;  %v9685_v4 = vld [vmem:[%s14128_s15 + $0x1f8] sm:$0xff] }
0x153d   : > { %v13617_v18 = vadd.f32 %v13613_v62, %v7406_v51  ;;  %9598 = vmatmul.msk.f32.gmra.mxu2 %vm3959_vm5, %v7258_v19  ;;  %8083 = vmatpush.msra.mxu3 %v9685_v4 }
0x153f   : > { %v7429_v8 = vsel %vm3371_vm0, %v13617_v18, 0.0 }
0x1540   : > { %7430 = vadd.xlane.f32.xlu2 %v7429_v8  ;;  %v9609_v8 = vld [vmem:[%s14126_s13 + $0x80] sm:$0xff] }
0x1586   : > { %v7063_v61 = vpop.f32.mrf.mxu0 }
0x1587   : > { %v7082_v52 = vadd.f32 %v7063_v61, %v6753_v39 }
0x158e   : > { %v7066_v2 = vpop.f32.mrf.mxu0 }
0x158f   : > { %v7083_v26 = vadd.f32 %v7066_v2, %v6756_v41 }
0x1596   : > { %v7069_v6 = vpop.f32.mrf.mxu0 }
0x1597   : > { %v7084_v55 = vadd.f32 %v7069_v6, %v6759_v46 }
0x1598   : > { %v7322_v11 = vpop.f32.mrf.mxu2 }
0x1599   : > { %9600 = vmatmul.msk.f32.gmra.mxu3 %vm3885_vm4, %v7322_v11  ;;  %v9610_v11 = vld [vmem:[%s14126_s13 + $0x88] sm:$0xff] }
0x159a   : > { %7701 = vmatpush.msra.mxu1 %v9610_v11 }
0x159e   : > { %v7072_v15 = vpop.f32.mrf.mxu0 }
0x15a0   : > { %v7325_v27 = vpop.f32.mrf.mxu2 }
0x15a1   : > { %9601 = vmatmul.msk.f32.gmra.mxu3 %vm3885_vm4, %v7325_v27  ;;  %v6762_v27 = vadd.f32 %v13407_v60, %v13593_v0  ;;  %v6765_v60 = vadd.f32 %v13411_v5, %v13599_v10 }
0x15a8   : > { %v7328_v29 = vpop.f32.mrf.mxu2 }
0x15a9   : > { %9602 = vmatmul.msk.f32.gmra.mxu3 %vm3885_vm4, %v7328_v29 }
0x15b0   : > { %v7331_v1 = vpop.f32.mrf.mxu2 }
0x15b1   : > { %9603 = vmatmul.msk.f32.gmra.mxu3 %vm3885_vm4, %v7331_v1 }
0x15b3   : > { %v7431_v57 = vpop.xlane.xlu2 %7430 }
0x15b4   : > { %v7450_v59 = vmul.f32 %v7431_v57, %v11596_v48 }
0x15b6   : > { %v13628_v13 = vsub.f32 %v13617_v18, %v7450_v59 }
0x15b8   : > { %v7334_v49 = vpop.f32.mrf.mxu2  ;;  %v7464_v23 = vmul.f32 %v13628_v13, %v13628_v13 }
0x15b9   : > { %9604 = vmatmul.msk.f32.gmra.mxu3 %vm3885_vm4, %v7334_v49 }
0x15ba   : > { %v7471_v21 = vsel %vm3371_vm0, %v7464_v23, 0.0  ;;  %v7075_v23 = vpop.f32.mrf.mxu0 }
0x15bb   : > { %7472 = vadd.xlane.f32.xlu1 %v7471_v21  ;;  %v7086_v2 = vadd.f32 %v7075_v23, %v6765_v60  ;;  %v9665_v23 = vld [vmem:[%s14128_s15 + $0x158] sm:$0xff]  ;;  %v9664_v60 = vld [vmem:[%s14128_s15 + $0x150] sm:$0xff] }
0x15c0   : > { %v7337_v43 = vpop.f32.mrf.mxu2 }
0x15c1   : > { %9605 = vmatmul.msk.f32.gmra.mxu3 %vm3885_vm4, %v7337_v43 }
0x15c2   : > { %v7078_v6 = vpop.f32.mrf.mxu0 }
0x161c   : > { %v7381_v7 = vpop.f32.mrf.mxu3 }
0x161d   : > { %v7400_v56 = vadd.f32 %v7381_v7, %v7082_v52 }
0x161f   : > { %v7407_v38 = vadd.f32 %v7400_v56, %v12904_v14 }
0x1621   : > { %v13641_v54 = vadd.f32 %v13613_v62, %v7407_v38 }
0x1623   : > { %v7432_v17 = vsel %vm3371_vm0, %v13641_v54, 0.0 }
0x1624   : > { %v7384_v14 = vpop.f32.mrf.mxu3  ;;  %7433 = vadd.xlane.f32.xlu0 %v7432_v17 }
0x1625   : > { %v7401_v31 = vadd.f32 %v7384_v14, %v7083_v26 }
0x1627   : > { %v7408_v53 = vadd.f32 %v7401_v31, %v12909_v12  ;;  %v9617_v12 = vld [vmem:[%s14126_s13 + $0xc0] sm:$0xff] }
0x1628   : > { %7659 = vmatpush.msra.mxu0 %v9617_v12 }
0x1629   : > { %v13667_v25 = vadd.f32 %v13613_v62, %v7408_v53 }
0x162a   : > { %7660 = vmatpush.msra.mxu0 %v9615_v45 }
0x162b   : > { %v7435_v24 = vsel %vm3371_vm0, %v13667_v25, 0.0 }
0x162c   : > { %v7387_v16 = vpop.f32.mrf.mxu3  ;;  %7436 = vadd.xlane.f32.xlu2 %v7435_v24  ;;  %7661 = vmatpush.msra.mxu0 %v9613_v28 }
0x162d   : > { %v7402_v22 = vadd.f32 %v7387_v16, %v7084_v55 }
0x162e   : > { %v7473_v3 = vpop.xlane.xlu1 %7472  ;;  %7662 = vmatpush.msra.mxu0 %v9611_v47 }
0x162f   : > { %v7409_v51 = vadd.f32 %v7402_v22, %v12914_v36  ;;  %v7492_v19 = vmul.f32 %v7473_v3, %v11596_v48  ;;  %v7085_v36 = vadd.f32 %v7072_v15, %v6762_v27  ;;  %v9669_v3 = vld [vmem:[%s14128_s15 + $0x178] sm:$0xff] }
0x1630   : > { %7663 = vmatpush.msra.mxu0 %v9609_v8  ;;  %8051 = vmatpush.msra.mxu2 %v9669_v3  ;;  %v9684_v8 = vld [vmem:[%s14128_s15 + $0x1f0] sm:$0xff] }
0x1631   : > { %v7499_v29 = vadd.f32 1e-05, %v7492_v19  ;;  %v13706_v1 = vadd.f32 %v13613_v62, %v7409_v51  ;;  %v9668_v19 = vld [vmem:[%s14128_s15 + $0x170] sm:$0xff]  ;;  %8084 = vmatpush.msra.mxu3 %v9684_v8 }
0x1632   : > { %8052 = vmatpush.msra.mxu2 %v9668_v19 }
0x1633   : > { %10413 = vrsqrt.f32 %v7499_v29  ;;  %v7438_v57 = vsel %vm3371_vm0, %v13706_v1, 0.0  ;;  %vm7512_vm4 = vweird.f32 %v7499_v29 }
0x1634   : > { %v7390_v59 = vpop.f32.mrf.mxu3  ;;  %7439 = vadd.xlane.f32.xlu1 %v7438_v57  ;;  %v9666_v57 = vld [vmem:[%s14128_s15 + $0x160] sm:$0xff] }
0x1635   : > { %v7403_v49 = vadd.f32 %v7390_v59, %v7085_v36  ;;  %v9682_v59 = vld [vmem:[%s14128_s15 + $0x1e0] sm:$0xff] }
0x1637   : > { %v7410_v21 = vadd.f32 %v7403_v49, %v12919_v34  ;;  %v6768_v34 = vadd.f32 %v13415_v58, %v13603_v35  ;;  %v13728_v58 = vld [vmem:[%s14125_s12 + $0x1] ss:$0 sm:$0xff] }
0x1639   : > { %v10414_v43 = vpop.eup %10413  ;;  %v7422_v0 = vadd.f32 %v13613_v62, %v7410_v21  ;;  %v7087_v17 = vadd.f32 %v7078_v6, %v6768_v34  ;;  %v9681_v21 = vld [vmem:[%s14128_s15 + $0x1d8] sm:$0xff]  ;;  %v9625_v6 = vld [vmem:[%s14127_s14 + $0x2] sm:$0x3] }
0x163a   : > { %v7507_v61 = vmul.f32 %v10414_v43, %v7499_v29  ;;  %vm7513_vm3 = vweird.f32 %v10414_v43  ;;  %v9667_v29 = vld [vmem:[%s14128_s15 + $0x168] sm:$0xff]  ;;  %v9677_v34 = vld [vmem:[%s14128_s15 + $0x1b8] sm:$0xff] }
0x163b   : > { %v7441_v39 = vsel %vm3371_vm0, %v7422_v0, 0.0  ;;  %vm7514_vm5 = vmor %vm7512_vm4, %vm7513_vm3  ;;  %8053 = vmatpush.msra.mxu2 %v9667_v29 }
0x163c   : > { %v7508_v52 = vmul.f32 %v10414_v43, %v7507_v61  ;;  %v7393_v7 = vpop.f32.mrf.mxu3  ;;  %7442 = vadd.xlane.f32.xlu0 %v7441_v39  ;;  %v9663_v39 = vld [vmem:[%s14128_s15 + $0x148] sm:$0xff] }
0x163d   : > { %v7404_v56 = vadd.f32 %v7393_v7, %v7086_v2  ;;  %8054 = vmatpush.msra.mxu2 %v9666_v57 }
0x163e   : > { %v7509_v38 = vmul.f32 0.5, %v7508_v52  ;;  %v9679_v52 = vld [vmem:[%s14128_s15 + $0x1c8] sm:$0xff] }
0x163f   : > { %v7411_v41 = vadd.f32 %v7404_v56, %v12924_v42  ;;  %8055 = vmatpush.msra.mxu2 %v9665_v23  ;;  %v9662_v56 = vld [vmem:[%s14128_s15 + $0x140] sm:$0xff] }
0x1640   : > { %v7510_v26 = vsub.f32 1.5, %v7509_v38  ;;  %v9678_v38 = vld [vmem:[%s14128_s15 + $0x1c0] sm:$0xff] }
0x1641   : > { %v7423_v5 = vadd.f32 %v13613_v62, %v7411_v41  ;;  %8056 = vmatpush.msra.mxu2 %v9664_v60 }
0x1642   : > { %v7511_v10 = vmul.f32 %v10414_v43, %v7510_v26  ;;  %v9661_v26 = vld [vmem:[%s14128_s15 + $0x138] sm:$0xff] }
0x1643   : > { %v7444_v50 = vsel %vm3371_vm0, %v7423_v5, 0.0  ;;  %8057 = vmatpush.msra.mxu2 %v9663_v39 }
0x1644   : > { %v7515_v42 = vsel %vm7514_vm5, %v10414_v43, %v7511_v10  ;;  %v7396_v14 = vpop.f32.mrf.mxu3  ;;  %7445 = vadd.xlane.f32.xlu2 %v7444_v50  ;;  %v13837_v10 = vperm.slane %v9625_v6, 0  ;;  %v9660_v50 = vld [vmem:[%s14128_s15 + $0x130] sm:$0xff] }
0x1645   : > { %v7576_v35 = vmul.f32 %v7515_v42, %v13628_v13  ;;  %v7405_v31 = vadd.f32 %v7396_v14, %v7087_v17  ;;  %8058 = vmatpush.msra.mxu2 %v9662_v56  ;;  %v13839_v17 = vperm.slane %v9625_v6, 1  ;;  %v9676_v42 = vld [vmem:[%s14128_s15 + $0x1b0] sm:$0xff] }
0x1647   : > { %v7586_v37 = vmul.f32 %v13722_v63, %v7576_v35  ;;  %v7412_v30 = vadd.f32 %v7405_v31, %v12929_v20  ;;  %8059 = vmatpush.msra.mxu2 %v9661_v26  ;;  %v9659_v35 = vld [vmem:[%s14128_s15 + $0x128] sm:$0xff] }
0x1648   : > { %v9675_v31 = vld [vmem:[%s14128_s15 + $0x1a8] sm:$0xff] }
0x1649   : > { %v7596_v53 = vadd.f32 %v13728_v58, %v7586_v37  ;;  %v13735_v33 = vadd.f32 %v13613_v62, %v7412_v30  ;;  %8060 = vmatpush.msra.mxu2 %v9660_v50 }
0x164b   : > { %9626 = vmatmul.msk.f32.vlgmr.msra.gmra.mxu0 %vm3371_vm0, %v7596_v53  ;;  %9633 = vmatmul.msk.f32.vlgmr.msra.gmra.mxu1 %vm3371_vm0, %v7596_v53  ;;  %v7447_v9 = vsel %vm3390_vm1, %v13735_v33, 0.0 }
0x164c   : > { %7448 = vadd.xlane.f32.xlu1 %v7447_v9  ;;  %8061 = vmatpush.msra.mxu2 %v9659_v35  ;;  %v9658_v9 = vld [vmem:[%s14128_s15 + $0x120] sm:$0xff] }
0x164e   : > { %8062 = vmatpush.msra.mxu2 %v9658_v9 }
0x1697   : > { %v7434_v46 = vpop.xlane.xlu0 %7433 }
0x1698   : > { %v7451_v13 = vmul.f32 %v7434_v46, %v11596_v48  ;;  %v9674_v46 = vld [vmem:[%s14128_s15 + $0x1a0] sm:$0xff] }
0x169a   : > { %v13743_v12 = vsub.f32 %v13641_v54, %v7451_v13  ;;  %v9657_v13 = vld [vmem:[%s14128_s15 + $0x118] sm:$0xff] }
0x169b   : > { %8063 = vmatpush.msra.mxu2 %v9657_v13 }
0x169c   : > { %v7465_v20 = vmul.f32 %v13743_v12, %v13743_v12 }
0x169e   : > { %v7474_v62 = vsel %vm3371_vm0, %v7465_v20, 0.0  ;;  %v9673_v20 = vld [vmem:[%s14128_s15 + $0x198] sm:$0xff] }
0x169f   : > { %v7437_v44 = vpop.xlane.xlu2 %7436  ;;  %7475 = vadd.xlane.f32.xlu0 %v7474_v62 }
0x16a0   : > { %v7452_v45 = vmul.f32 %v7437_v44, %v11596_v48 }
0x16a2   : > { %v13750_v32 = vsub.f32 %v13667_v25, %v7452_v45  ;;  %v9656_v45 = vld [vmem:[%s14128_s15 + $0x110] sm:$0xff] }
0x16a3   : > { %8064 = vmatpush.msra.mxu2 %v9656_v45 }
0x16a4   : > { %v7466_v55 = vmul.f32 %v13750_v32, %v13750_v32 }
0x16a6   : > { %v7477_v24 = vsel %vm3371_vm0, %v7466_v55, 0.0  ;;  %v9672_v55 = vld [vmem:[%s14128_s15 + $0x190] sm:$0xff] }
0x16a7   : > { %v7440_v28 = vpop.xlane.xlu1 %7439  ;;  %7478 = vadd.xlane.f32.xlu2 %v7477_v24 }
0x16a8   : > { %v7453_v54 = vmul.f32 %v7440_v28, %v11596_v48 }
0x16aa   : > { %v13757_v15 = vsub.f32 %v13706_v1, %v7453_v54  ;;  %v9683_v1 = vld [vmem:[%s14128_s15 + $0x1e8] sm:$0xff] }
0x16ab   : > { %8085 = vmatpush.msra.mxu3 %v9683_v1  ;;  %v9655_v54 = vld [vmem:[%s14128_s15 + $0x108] sm:$0xff] }
0x16ac   : > { %v7467_v16 = vmul.f32 %v13757_v15, %v13757_v15  ;;  %8065 = vmatpush.msra.mxu2 %v9655_v54 }
0x16ad   : > { %8086 = vmatpush.msra.mxu3 %v9682_v59 }
0x16ae   : > { %v7480_v40 = vsel %vm3371_vm0, %v7467_v16, 0.0  ;;  %v9671_v16 = vld [vmem:[%s14128_s15 + $0x188] sm:$0xff] }
0x16af   : > { %v7443_v22 = vpop.xlane.xlu0 %7442  ;;  %7481 = vadd.xlane.f32.xlu1 %v7480_v40  ;;  %8087 = vmatpush.msra.mxu3 %v9681_v21  ;;  %v9654_v40 = vld [vmem:[%s14128_s15 + $0x100] sm:$0xff] }
0x16b0   : > { %v7454_v25 = vmul.f32 %v7443_v22, %v11596_v48  ;;  %v9670_v22 = vld [vmem:[%s14128_s15 + $0x180] sm:$0xff]  ;;  %8066 = vmatpush.msra.mxu2 %v9654_v40 }
0x16b2   : > { %v13763_v47 = vsub.f32 %v7422_v0, %v7454_v25  ;;  %v9680_v0 = vld [vmem:[%s14128_s15 + $0x1d0] sm:$0xff] }
0x16b3   : > { %8088 = vmatpush.msra.mxu3 %v9680_v0 }
0x16b4   : > { %v7468_v51 = vmul.f32 %v13763_v47, %v13763_v47 }
0x16b5   : > { %8089 = vmatpush.msra.mxu3 %v9679_v52 }
0x16b6   : > { %v7483_v11 = vsel %vm3371_vm0, %v7468_v51, 0.0 }
0x16b7   : > { %7484 = vadd.xlane.f32.xlu0 %v7483_v11  ;;  %v7446_v27 = vpop.xlane.xlu2 %7445  ;;  %8090 = vmatpush.msra.mxu3 %v9678_v38 }
0x16b8   : > { %v7455_v36 = vmul.f32 %v7446_v27, %v11596_v48 }
0x16b9   : > { %8091 = vmatpush.msra.mxu3 %v9677_v34 }
0x16ba   : > { %v13793_v49 = vsub.f32 %v7423_v5, %v7455_v36 }
0x16bb   : > { %8092 = vmatpush.msra.mxu3 %v9676_v42 }
0x16bc   : > { %v7469_v43 = vmul.f32 %v13793_v49, %v13793_v49 }
0x16bd   : > { %8093 = vmatpush.msra.mxu3 %v9675_v31 }
0x16be   : > { %v7486_v61 = vsel %vm3371_vm0, %v7469_v43, 0.0 }
0x16bf   : > { %7487 = vadd.xlane.f32.xlu2 %v7486_v61  ;;  %v7449_v2 = vpop.xlane.xlu1 %7448  ;;  %8094 = vmatpush.msra.mxu3 %v9674_v46 }
0x16c0   : > { %v7456_v7 = vmul.f32 %v7449_v2, %v11596_v48 }
0x16c1   : > { %8095 = vmatpush.msra.mxu3 %v9673_v20 }
0x16c2   : > { %v13824_v41 = vsub.f32 %v13735_v33, %v7456_v7 }
0x16c3   : > { %8096 = vmatpush.msra.mxu3 %v9672_v55 }
0x16c4   : > { %v7470_v5 = vmul.f32 %v13824_v41, %v13824_v41 }
0x16c5   : > { %8097 = vmatpush.msra.mxu3 %v9671_v16 }
0x16c6   : > { %v7489_v14 = vsel %vm3390_vm1, %v7470_v5, 0.0 }
0x16c7   : > { %7490 = vadd.xlane.f32.xlu1 %v7489_v14  ;;  %8098 = vmatpush.msra.mxu3 %v9670_v22 }
0x16c8   : > { %v7665_v37 = vpop.f32.mrf.mxu0  ;;  %v7703_v30 = vpop.f32.mrf.mxu1 }
0x16c9   : > { %v7666_v53 = vadd.f32 %v7665_v37, %v13837_v10  ;;  %v13856_v33 = vadd.f32 %v7703_v30, %v13839_v17 }
0x16cb   : > { %v9640_v62 = vmul.f32 -1.702, %v7666_v53  ;;  %v9641_v44 = vmul.f32 -1.702, %v13856_v33 }
0x16cd   : > { %v7752_v24 = vmul.f32 1.442695, %v9640_v62  ;;  %v7754_v28 = vmul.f32 1.442695, %v9641_v44 }
0x16cf   : > { %10415 = vpow2.f32 %v7752_v24 }
0x16d0   : > { %10417 = vpow2.f32 %v7754_v28 }
0x16d5   : > { %v10416_v25 = vpop.eup %10415 }
0x16d6   : > { %v10418_v3 = vpop.eup %10417  ;;  %v7780_v4 = vadd.f32 1.0, %v10416_v25 }
0x16d7   : > { %v7781_v51 = vadd.f32 1.0, %v10418_v3 }
0x16d8   : > { %10419 = vrcp.f32 %v7780_v4  ;;  %v7805_v1 = vand.u32 2147483648, %v7780_v4  ;;  %v7803_v59 = vand.u32 2147483647, %v7780_v4  ;;  %vm7799_vm15 = vweird.f32 %v7780_v4 }
0x16d9   : > { %10421 = vrcp.f32 %v7781_v51  ;;  %v7820_v23 = vand.u32 2147483648, %v7781_v51  ;;  %v7818_v43 = vand.u32 2147483647, %v7781_v51  ;;  %vm7814_vm7 = vweird.f32 %v7781_v51 }
0x16da   : > { %v7806_v0 = vor.u32 1.1754944e-38, %v7805_v1  ;;  %vm7804_vm8 = vcmp.eq.f32.partialorder %v7803_v59, 8.507059e+37 }
0x16db   : > { %v7821_v39 = vor.u32 1.1754944e-38, %v7820_v23  ;;  %vm7819_vm10 = vcmp.eq.f32.partialorder %v7818_v43, 8.507059e+37 }
0x16de   : > { %v10420_v19 = vpop.eup %10419 }
0x16df   : > { %v10422_v8 = vpop.eup %10421  ;;  %v7795_v11 = vmul.f32 %v10420_v19, %v7780_v4  ;;  %vm7800_vm1 = vweird.f32 %v10420_v19 }
0x16e0   : > { %v7810_v27 = vmul.f32 %v10422_v8, %v7781_v51  ;;  %vm7815_vm6 = vweird.f32 %v10422_v8  ;;  %vm7801_vm2 = vmor %vm7799_vm15, %vm7800_vm1 }
0x16e1   : > { %v7796_v29 = vsub.f32 1.0, %v7795_v11  ;;  %vm7816_vm9 = vmor %vm7814_vm7, %vm7815_vm6 }
0x16e2   : > { %v7811_v36 = vsub.f32 1.0, %v7810_v27 }
0x16e3   : > { %v7797_v57 = vmul.f32 %v10420_v19, %v7796_v29 }
0x16e4   : > { %v7812_v21 = vmul.f32 %v10422_v8, %v7811_v36 }
0x16e5   : > { %v7798_v60 = vadd.f32 %v10420_v19, %v7797_v57 }
0x16e6   : > { %v7813_v61 = vadd.f32 %v10422_v8, %v7812_v21 }
0x16e7   : > { %v7802_v2 = vsel %vm7801_vm2, %v10420_v19, %v7798_v60 }
0x16e8   : > { %v7807_v52 = vsel %vm7804_vm8, %v7806_v0, %v7802_v2  ;;  %v7817_v7 = vsel %vm7816_vm9, %v10422_v8, %v7813_v61 }
0x16e9   : > { %v8004_v56 = vmul.f32 %v7807_v52, %v7666_v53  ;;  %v7822_v38 = vsel %vm7819_vm10, %v7821_v39, %v7817_v7 }
0x16ea   : > { %v8005_v6 = vmul.f32 %v7822_v38, %v13856_v33 }
0x16eb   : > { %8067 = vmatmul.f32.vlgmr.msra.gmra.mxu2 %v8004_v56 }
0x16ec   : > { %8099 = vmatmul.f32.vlgmr.msra.gmra.mxu3 %v8005_v6 }
0x1712   : > { %v7476_v26 = vpop.xlane.xlu0 %7475 }
0x1713   : > { %v7493_v34 = vmul.f32 %v7476_v26, %v11596_v48 }
0x1715   : > { %v7500_v5 = vadd.f32 1e-05, %v7493_v34 }
0x1717   : > { %10423 = vrsqrt.f32 %v7500_v5  ;;  %vm7522_vm12 = vweird.f32 %v7500_v5 }
0x171a   : > { %v7479_v50 = vpop.xlane.xlu2 %7478 }
0x171b   : > { %v7494_v42 = vmul.f32 %v7479_v50, %v11596_v48 }
0x171d   : > { %v10424_v14 = vpop.eup %10423  ;;  %v7501_v35 = vadd.f32 1e-05, %v7494_v42 }
0x171e   : > { %v7517_v31 = vmul.f32 %v10424_v14, %v7500_v5  ;;  %vm7523_vm11 = vweird.f32 %v10424_v14 }
0x171f   : > { %10425 = vrsqrt.f32 %v7501_v35  ;;  %vm7524_vm13 = vmor %vm7522_vm12, %vm7523_vm11  ;;  %vm7532_vm3 = vweird.f32 %v7501_v35 }
0x1720   : > { %v7518_v37 = vmul.f32 %v10424_v14, %v7517_v31 }
0x1722   : > { %v7519_v30 = vmul.f32 0.5, %v7518_v37  ;;  %v7482_v53 = vpop.xlane.xlu1 %7481 }
0x1723   : > { %v7495_v9 = vmul.f32 %v7482_v53, %v11596_v48 }
0x1724   : > { %v7520_v33 = vsub.f32 1.5, %v7519_v30 }
0x1725   : > { %v10426_v46 = vpop.eup %10425  ;;  %v7502_v13 = vadd.f32 1e-05, %v7495_v9 }
0x1726   : > { %v7521_v20 = vmul.f32 %v10424_v14, %v7520_v33  ;;  %v7527_v62 = vmul.f32 %v10426_v46, %v7501_v35  ;;  %vm7533_vm14 = vweird.f32 %v10426_v46 }
0x1727   : > { %10427 = vrsqrt.f32 %v7502_v13  ;;  %vm7534_vm4 = vmor %vm7532_vm3, %vm7533_vm14  ;;  %vm7542_vm1 = vweird.f32 %v7502_v13  ;;  %vm8124_vm14 = vcmask 516096  }
0x1728   : > { %v7525_v44 = vsel %vm7524_vm13, %v10424_v14, %v7521_v20  ;;  %v7528_v45 = vmul.f32 %v10426_v46, %v7527_v62 }
0x1729   : > { %v7577_v55 = vmul.f32 %v7525_v44, %v13743_v12 }
0x172a   : > { %v7529_v24 = vmul.f32 0.5, %v7528_v45  ;;  %v7485_v28 = vpop.xlane.xlu0 %7484 }
0x172b   : > { %v7496_v54 = vmul.f32 %v7485_v28, %v11596_v48  ;;  %v7587_v16 = vmul.f32 %v13722_v63, %v7577_v55 }
0x172c   : > { %v7530_v40 = vsub.f32 1.5, %v7529_v24 }
0x172d   : > { %v10428_v22 = vpop.eup %10427  ;;  %v7503_v25 = vadd.f32 1e-05, %v7496_v54  ;;  %v7597_v3 = vadd.f32 %v13728_v58, %v7587_v16 }
0x172e   : > { %v7531_v4 = vmul.f32 %v10426_v46, %v7530_v40  ;;  %v7537_v51 = vmul.f32 %v10428_v22, %v7502_v13  ;;  %vm7543_vm5 = vweird.f32 %v10428_v22  ;;  %v10074_v40 = vld [vmem:[%s14129_s16 + $0x1] ss:$0 sm:$0xff] }
0x172f   : > { %10429 = vrsqrt.f32 %v7503_v25  ;;  %9627 = vmatmul.msk.f32.gmra.mxu0 %vm3371_vm0, %v7597_v3  ;;  %9634 = vmatmul.msk.f32.gmra.mxu1 %vm3371_vm0, %v7597_v3  ;;  %vm7544_vm6 = vmor %vm7542_vm1, %vm7543_vm5  ;;  %vm7552_vm2 = vweird.f32 %v7503_v25 }
0x1730   : > { %v7535_v12 = vsel %vm7534_vm4, %v10426_v46, %v7531_v4  ;;  %v7538_v19 = vmul.f32 %v10428_v22, %v7537_v51 }
0x1731   : > { %v7578_v8 = vmul.f32 %v7535_v12, %v13750_v32 }
0x1732   : > { %v7539_v11 = vmul.f32 0.5, %v7538_v19  ;;  %v7488_v27 = vpop.xlane.xlu2 %7487 }
0x1733   : > { %v7497_v29 = vmul.f32 %v7488_v27, %v11596_v48  ;;  %v7588_v1 = vmul.f32 %v13722_v63, %v7578_v8 }
0x1734   : > { %v7540_v36 = vsub.f32 1.5, %v7539_v11 }
0x1735   : > { %v10430_v57 = vpop.eup %10429  ;;  %v7504_v59 = vadd.f32 1e-05, %v7497_v29  ;;  %v7598_v23 = vadd.f32 %v13728_v58, %v7588_v1 }
0x1736   : > { %v7541_v21 = vmul.f32 %v10428_v22, %v7540_v36  ;;  %v7547_v43 = vmul.f32 %v10430_v57, %v7503_v25  ;;  %vm7553_vm15 = vweird.f32 %v10430_v57 }
0x1737   : > { %10431 = vrsqrt.f32 %v7504_v59  ;;  %9628 = vmatmul.msk.f32.gmra.mxu0 %vm3371_vm0, %v7598_v23  ;;  %9635 = vmatmul.msk.f32.gmra.mxu1 %vm3371_vm0, %v7598_v23  ;;  %vm7554_vm7 = vmor %vm7552_vm2, %vm7553_vm15  ;;  %vm7562_vm9 = vweird.f32 %v7504_v59 }
0x1738   : > { %v7545_v32 = vsel %vm7544_vm6, %v10428_v22, %v7541_v21  ;;  %v7548_v60 = vmul.f32 %v10430_v57, %v7547_v43 }
0x1739   : > { %v7579_v0 = vmul.f32 %v7545_v32, %v13757_v15 }
0x173a   : > { %v7549_v61 = vmul.f32 0.5, %v7548_v60  ;;  %v7491_v2 = vpop.xlane.xlu1 %7490 }
0x173b   : > { %v7498_v39 = vmul.f32 %v7491_v2, %v11596_v48  ;;  %v7589_v52 = vmul.f32 %v13722_v63, %v7579_v0 }
0x173c   : > { %v7550_v7 = vsub.f32 1.5, %v7549_v61 }
0x173d   : > { %v10432_v56 = vpop.eup %10431  ;;  %v7505_v38 = vadd.f32 1e-05, %v7498_v39  ;;  %v7599_v6 = vadd.f32 %v13728_v58, %v7589_v52 }
0x173e   : > { %v7551_v26 = vmul.f32 %v10430_v57, %v7550_v7  ;;  %v7557_v34 = vmul.f32 %v10432_v56, %v7504_v59  ;;  %vm7563_vm8 = vweird.f32 %v10432_v56 }
0x173f   : > { %10433 = vrsqrt.f32 %v7505_v38  ;;  %9629 = vmatmul.msk.f32.gmra.mxu0 %vm3371_vm0, %v7599_v6  ;;  %9636 = vmatmul.msk.f32.gmra.mxu1 %vm3371_vm0, %v7599_v6  ;;  %vm7564_vm10 = vmor %vm7562_vm9, %vm7563_vm8  ;;  %vm7572_vm12 = vweird.f32 %v7505_v38 }
0x1740   : > { %v7555_v15 = vsel %vm7554_vm7, %v10430_v57, %v7551_v26  ;;  %v7558_v5 = vmul.f32 %v10432_v56, %v7557_v34 }
0x1741   : > { %v7580_v50 = vmul.f32 %v7555_v15, %v13763_v47 }
0x1742   : > { %v7559_v42 = vmul.f32 0.5, %v7558_v5 }
0x1743   : > { %v7590_v14 = vmul.f32 %v13722_v63, %v7580_v50 }
0x1744   : > { %v7560_v35 = vsub.f32 1.5, %v7559_v42 }
0x1745   : > { %v10434_v31 = vpop.eup %10433  ;;  %v7600_v37 = vadd.f32 %v13728_v58, %v7590_v14 }
0x1746   : > { %v7561_v30 = vmul.f32 %v10432_v56, %v7560_v35  ;;  %v7567_v53 = vmul.f32 %v10434_v31, %v7505_v38  ;;  %vm7573_vm11 = vweird.f32 %v10434_v31 }
0x1747   : > { %9630 = vmatmul.msk.f32.gmra.mxu0 %vm3371_vm0, %v7600_v37  ;;  %9637 = vmatmul.msk.f32.gmra.mxu1 %vm3371_vm0, %v7600_v37  ;;  %vm7574_vm13 = vmor %vm7572_vm12, %vm7573_vm11 }
0x1748   : > { %v7565_v9 = vsel %vm7564_vm10, %v10432_v56, %v7561_v30  ;;  %v7568_v33 = vmul.f32 %v10434_v31, %v7567_v53 }
0x1749   : > { %v7581_v47 = vmul.f32 %v7565_v9, %v13793_v49 }
0x174a   : > { %v7569_v46 = vmul.f32 0.5, %v7568_v33 }
0x174b   : > { %v7591_v13 = vmul.f32 %v13722_v63, %v7581_v47 }
0x174c   : > { %v7570_v20 = vsub.f32 1.5, %v7569_v46 }
0x174d   : > { %v7601_v62 = vadd.f32 %v13728_v58, %v7591_v13 }
0x174e   : > { %v7571_v44 = vmul.f32 %v10434_v31, %v7570_v20 }
0x174f   : > { %9631 = vmatmul.msk.f32.gmra.mxu0 %vm3371_vm0, %v7601_v62  ;;  %9638 = vmatmul.msk.f32.gmra.mxu1 %vm3371_vm0, %v7601_v62 }
0x1750   : > { %v7575_v45 = vsel %vm7574_vm13, %v10434_v31, %v7571_v44 }
0x1751   : > { %v7582_v55 = vmul.f32 %v7575_v45, %v13824_v41 }
0x1753   : > { %v7592_v24 = vmul.f32 %v13722_v63, %v7582_v55 }
0x1755   : > { %v7602_v49 = vadd.f32 %v13728_v58, %v7592_v24 }
0x1757   : > { %9632 = vmatmul.msk.f32.gmra.mxu0 %vm3371_vm0, %v7602_v49  ;;  %9639 = vmatmul.msk.f32.gmra.mxu1 %vm3371_vm0, %v7602_v49 }
0x176e   : > { %v8068_v28 = vpop.f32.mrf.mxu2 }
0x176f   : > { %v8100_v54 = vpop.f32.mrf.mxu3 }
0x1770   : > { %v8101_v16 = vadd.f32 %v8100_v54, %v8068_v28 }
0x1772   : > { %v8115_v22 = vadd.f32 %v8101_v16, %v13617_v18 }
0x1774   : > { %v13930_v25 = vadd.f32 %v10074_v40, %v8115_v22 }
0x1776   : > { %v8125_v63 = vsel %vm8124_vm14, %v13930_v25, 0.0 }
0x1777   : > { %8126 = vadd.xlane.f32.xlu0 %v8125_v63 }
0x17ac   : > { %v7668_v58 = vpop.f32.mrf.mxu0  ;;  %v7706_v41 = vpop.f32.mrf.mxu1 }
0x17ad   : > { %v13935_v3 = vadd.f32 %v7668_v58, %v13837_v10  ;;  %v13938_v4 = vadd.f32 %v7706_v41, %v13839_v17 }
0x17af   : > { %v9642_v51 = vmul.f32 -1.702, %v13935_v3  ;;  %v9643_v12 = vmul.f32 -1.702, %v13938_v4 }
0x17b1   : > { %v7756_v18 = vmul.f32 1.442695, %v9642_v51  ;;  %v7758_v19 = vmul.f32 1.442695, %v9643_v12 }
0x17b3   : > { %10435 = vpow2.f32 %v7756_v18 }
0x17b4   : > { %10437 = vpow2.f32 %v7758_v19  ;;  %v7671_v8 = vpop.f32.mrf.mxu0  ;;  %v7709_v11 = vpop.f32.mrf.mxu1 }
0x17b5   : > { %v13943_v27 = vadd.f32 %v7671_v8, %v13837_v10  ;;  %v13946_v29 = vadd.f32 %v7709_v11, %v13839_v17 }
0x17b7   : > { %v9644_v1 = vmul.f32 -1.702, %v13943_v27  ;;  %v9645_v36 = vmul.f32 -1.702, %v13946_v29 }
0x17b9   : > { %v10436_v57 = vpop.eup %10435  ;;  %v7760_v59 = vmul.f32 1.442695, %v9644_v1  ;;  %v7762_v43 = vmul.f32 1.442695, %v9645_v36 }
0x17ba   : > { %v10438_v23 = vpop.eup %10437  ;;  %v7782_v21 = vadd.f32 1.0, %v10436_v57 }
0x17bb   : > { %v7783_v32 = vadd.f32 1.0, %v10438_v23  ;;  %10439 = vpow2.f32 %v7760_v59 }
0x17bc   : > { %10441 = vrcp.f32 %v7782_v21  ;;  %v7674_v60 = vpop.f32.mrf.mxu0  ;;  %v7712_v0 = vpop.f32.mrf.mxu1  ;;  %v7833_v5 = vand.u32 2147483647, %v7782_v21  ;;  %v7835_v31 = vand.u32 2147483648, %v7782_v21  ;;  %vm7829_vm4 = vweird.f32 %v7782_v21 }
0x17bd   : > { %10443 = vrcp.f32 %v7783_v32  ;;  %v13951_v61 = vadd.f32 %v7674_v60, %v13837_v10  ;;  %v13954_v2 = vadd.f32 %v7712_v0, %v13839_v17  ;;  %v7850_v46 = vand.u32 2147483648, %v7783_v32 }
0x17be   : > { %10445 = vpow2.f32 %v7762_v43  ;;  %v7848_v20 = vand.u32 2147483647, %v7783_v32  ;;  %vm7834_vm6 = vcmp.eq.f32.partialorder %v7833_v5, 8.507059e+37  ;;  %v7836_v24 = vor.u32 1.1754944e-38, %v7835_v31 }
0x17bf   : > { %v9646_v39 = vmul.f32 -1.702, %v13951_v61  ;;  %v9647_v7 = vmul.f32 -1.702, %v13954_v2  ;;  %vm7844_vm15 = vweird.f32 %v7783_v32  ;;  %v7851_v54 = vor.u32 1.1754944e-38, %v7850_v46 }
0x17c0   : > { %vm7849_vm7 = vcmp.eq.f32.partialorder %v7848_v20, 8.507059e+37 }
0x17c1   : > { %v10440_v52 = vpop.eup %10439  ;;  %v7764_v6 = vmul.f32 1.442695, %v9646_v39  ;;  %v7766_v30 = vmul.f32 1.442695, %v9647_v7 }
0x17c2   : > { %v10442_v56 = vpop.eup %10441  ;;  %v13958_v38 = vadd.f32 1.0, %v10440_v52 }
0x17c3   : > { %v10444_v26 = vpop.eup %10443  ;;  %v7825_v34 = vmul.f32 %v10442_v56, %v7782_v21  ;;  %vm7830_vm3 = vweird.f32 %v10442_v56 }
0x17c4   : > { %v10446_v15 = vpop.eup %10445  ;;  %v7840_v50 = vmul.f32 %v10444_v26, %v7783_v32  ;;  %10447 = vrcp.f32 %v13958_v38  ;;  %v7677_v42 = vpop.f32.mrf.mxu0  ;;  %vm7845_vm5 = vweird.f32 %v10444_v26  ;;  %vm7831_vm1 = vmor %vm7829_vm4, %vm7830_vm3  ;;  %v7865_v1 = vand.u32 2147483648, %v13958_v38 }
0x17c5   : > { %v7715_v14 = vpop.f32.mrf.mxu1  ;;  %v7826_v35 = vsub.f32 1.0, %v7825_v34  ;;  %v13961_v37 = vadd.f32 1.0, %v10446_v15  ;;  %10449 = vpow2.f32 %v7764_v6  ;;  %v13964_v9 = vadd.f32 %v7677_v42, %v13837_v10  ;;  %vm7846_vm2 = vmor %vm7844_vm15, %vm7845_vm5 }
0x17c6   : > { %v7841_v53 = vsub.f32 1.0, %v7840_v50  ;;  %v13967_v33 = vadd.f32 %v7715_v14, %v13839_v17  ;;  %v7863_v21 = vand.u32 2147483647, %v13958_v38  ;;  %vm7859_vm9 = vweird.f32 %v13958_v38 }
0x17c7   : > { %v7827_v47 = vmul.f32 %v10442_v56, %v7826_v35  ;;  %10451 = vrcp.f32 %v13961_v37  ;;  %v9648_v44 = vmul.f32 -1.702, %v13964_v9  ;;  %v7878_v60 = vand.u32 2147483647, %v13961_v37 }
0x17c8   : > { %v7842_v13 = vmul.f32 %v10444_v26, %v7841_v53  ;;  %10453 = vpow2.f32 %v7766_v30  ;;  %v9649_v45 = vmul.f32 -1.702, %v13967_v33  ;;  %v7880_v0 = vand.u32 2147483648, %v13961_v37 }
0x17c9   : > { %v7828_v62 = vadd.f32 %v10442_v56, %v7827_v47  ;;  %v7768_v40 = vmul.f32 1.442695, %v9648_v44  ;;  %v7866_v52 = vor.u32 1.1754944e-38, %v7865_v1  ;;  %vm7864_vm12 = vcmp.eq.f32.partialorder %v7863_v21, 8.507059e+37 }
0x17ca   : > { %v10448_v55 = vpop.eup %10447  ;;  %v7843_v49 = vadd.f32 %v10444_v26, %v7842_v13  ;;  %v7770_v41 = vmul.f32 1.442695, %v9649_v45  ;;  %vm7874_vm13 = vweird.f32 %v13961_v37  ;;  %vm7879_vm4 = vcmp.eq.f32.partialorder %v7878_v60, 8.507059e+37 }
0x17cb   : > { %v7832_v28 = vsel %vm7831_vm1, %v10442_v56, %v7828_v62  ;;  %v7855_v16 = vmul.f32 %v10448_v55, %v13958_v38  ;;  %v10450_v22 = vpop.eup %10449  ;;  %10455 = vpow2.f32 %v7768_v40  ;;  %vm7860_vm8 = vweird.f32 %v10448_v55 }
0x17cc   : > { %v7837_v63 = vsel %vm7834_vm6, %v7836_v24, %v7832_v28  ;;  %v7847_v58 = vsel %vm7846_vm2, %v10444_v26, %v7843_v49  ;;  %v13974_v8 = vadd.f32 1.0, %v10450_v22  ;;  %v7680_v57 = vpop.f32.mrf.mxu0  ;;  %vm7861_vm10 = vmor %vm7859_vm9, %vm7860_vm8  ;;  %v7881_v42 = vor.u32 1.1754944e-38, %v7880_v0 }
0x17cd   : > { %v10452_v51 = vpop.eup %10451  ;;  %v8006_v12 = vmul.f32 %v7837_v63, %v13935_v3  ;;  %v7852_v18 = vsel %vm7849_vm7, %v7851_v54, %v7847_v58  ;;  %v7856_v19 = vsub.f32 1.0, %v7855_v16  ;;  %v7718_v3 = vpop.f32.mrf.mxu1  ;;  %v13987_v39 = vadd.f32 %v7680_v57, %v13837_v10 }
0x17ce   : > { %v8007_v11 = vmul.f32 %v7852_v18, %v13938_v4  ;;  %v7870_v36 = vmul.f32 %v10452_v51, %v13961_v37  ;;  %v10454_v59 = vpop.eup %10453  ;;  %10457 = vrcp.f32 %v13974_v8  ;;  %vm7875_vm11 = vweird.f32 %v10452_v51 }
0x17cf   : > { %v7857_v23 = vmul.f32 %v10448_v55, %v7856_v19  ;;  %8070 = vmatmul.f32.gmra.mxu2 %v8006_v12  ;;  %v13982_v32 = vadd.f32 1.0, %v10454_v59  ;;  %10459 = vpow2.f32 %v7770_v41  ;;  %v9650_v38 = vmul.f32 -1.702, %v13987_v39  ;;  %vm7876_vm3 = vmor %vm7874_vm13, %vm7875_vm11 }
0x17d0   : > { %v7871_v43 = vsub.f32 1.0, %v7870_v36  ;;  %8102 = vmatmul.f32.gmra.mxu3 %v8007_v11  ;;  %v13992_v6 = vadd.f32 %v7718_v3, %v13839_v17  ;;  %v7893_v53 = vand.u32 2147483647, %v13974_v8  ;;  %v7895_v13 = vand.u32 2147483648, %v13974_v8 }
0x17d1   : > { %v7858_v4 = vadd.f32 %v10448_v55, %v7857_v23  ;;  %10461 = vrcp.f32 %v13982_v32  ;;  %v10456_v26 = vpop.eup %10455  ;;  %v7772_v47 = vmul.f32 1.442695, %v9650_v38  ;;  %vm7889_vm5 = vweird.f32 %v13974_v8 }
0x17d2   : > { %v7872_v7 = vmul.f32 %v10452_v51, %v7871_v43  ;;  %v13996_v14 = vadd.f32 1.0, %v10456_v26  ;;  %v9651_v37 = vmul.f32 -1.702, %v13992_v6  ;;  %v7910_v54 = vand.u32 2147483648, %v13982_v32 }
0x17d3   : > { %v7862_v56 = vsel %vm7861_vm10, %v10448_v55, %v7858_v4  ;;  %v7908_v55 = vand.u32 2147483647, %v13982_v32  ;;  %vm14011_vm6 = vcmp.eq.f32.partialorder %v7893_v53, 8.507059e+37  ;;  %v7896_v16 = vor.u32 1.1754944e-38, %v7895_v13 }
0x17d4   : > { %v7867_v34 = vsel %vm7864_vm12, %v7866_v52, %v7862_v56  ;;  %v7873_v15 = vadd.f32 %v10452_v51, %v7872_v7  ;;  %v10458_v5 = vpop.eup %10457  ;;  %10463 = vrcp.f32 %v13996_v14  ;;  %v7683_v24 = vpop.f32.mrf.mxu0  ;;  %v7774_v22 = vmul.f32 1.442695, %v9651_v37 }
0x17d5   : > { %v8008_v50 = vmul.f32 %v7867_v34, %v13943_v27  ;;  %v10460_v35 = vpop.eup %10459  ;;  %v7885_v30 = vmul.f32 %v10458_v5, %v13974_v8  ;;  %10465 = vpow2.f32 %v7772_v47  ;;  %v7721_v49 = vpop.f32.mrf.mxu1  ;;  %vm7890_vm1 = vweird.f32 %v10458_v5 }
0x17d6   : > { %v7877_v31 = vsel %vm7876_vm3, %v10452_v51, %v7873_v15  ;;  %v14004_v44 = vadd.f32 1.0, %v10460_v35  ;;  %vm7904_vm15 = vweird.f32 %v13982_v32  ;;  %v14017_v58 = vadd.f32 %v7683_v24, %v13837_v10  ;;  %vm7891_vm2 = vmor %vm7889_vm5, %vm7890_vm1 }
0x17d7   : > { %v7882_v46 = vsel %vm7879_vm4, %v7881_v42, %v7877_v31  ;;  %8072 = vmatmul.f32.gmra.mxu2 %v8008_v50  ;;  %v10462_v27 = vpop.eup %10461  ;;  %v7886_v62 = vsub.f32 1.0, %v7885_v30  ;;  %v14020_v41 = vadd.f32 %v7721_v49, %v13839_v17  ;;  %vm14024_vm8 = vcmp.eq.f32.partialorder %v7908_v55, 8.507059e+37 }
0x17d8   : > { %v8009_v20 = vmul.f32 %v7882_v46, %v13946_v29  ;;  %v7900_v45 = vmul.f32 %v10462_v27, %v13982_v32  ;;  %10467 = vrcp.f32 %v14004_v44  ;;  %vm7905_vm7 = vweird.f32 %v10462_v27 }
0x17d9   : > { %v7887_v28 = vmul.f32 %v10458_v5, %v7886_v62  ;;  %10469 = vpow2.f32 %v7774_v22  ;;  %v7911_v11 = vor.u32 1.1754944e-38, %v7910_v54  ;;  %v9652_v10 = vmul.f32 -1.702, %v14017_v58  ;;  %vm7906_vm9 = vmor %vm7904_vm15, %vm7905_vm7 }
0x17da   : > { %8104 = vmatmul.f32.gmra.mxu3 %v8009_v20  ;;  %v7901_v40 = vsub.f32 1.0, %v7900_v45  ;;  %v10464_v51 = vpop.eup %10463  ;;  %v7925_v8 = vand.u32 2147483648, %v13996_v14  ;;  %v9653_v59 = vmul.f32 -1.702, %v14020_v41  ;;  %v7923_v0 = vand.u32 2147483647, %v13996_v14 }
0x17db   : > { %v7888_v63 = vadd.f32 %v10458_v5, %v7887_v28  ;;  %v7915_v1 = vmul.f32 %v10464_v51, %v13996_v14  ;;  %v10466_v36 = vpop.eup %10465  ;;  %v7776_v4 = vmul.f32 1.442695, %v9652_v10  ;;  %vm7920_vm10 = vweird.f32 %v10464_v51 }
0x17dc   : > { %v7902_v12 = vmul.f32 %v10462_v27, %v7901_v40  ;;  %v14037_v43 = vadd.f32 1.0, %v10466_v36  ;;  %v7778_v7 = vmul.f32 1.442695, %v9653_v59  ;;  %vm7919_vm11 = vweird.f32 %v13996_v14 }
0x17dd   : > { %v7892_v19 = vsel %vm7891_vm2, %v10458_v5, %v7888_v63  ;;  %v7916_v3 = vsub.f32 1.0, %v7915_v1  ;;  %v7926_v26 = vor.u32 1.1754944e-38, %v7925_v8  ;;  %v7940_v5 = vand.u32 2147483648, %v14004_v44  ;;  %vm7921_vm12 = vmor %vm7919_vm11, %vm7920_vm10 }
0x17de   : > { %v7897_v17 = vsel %vm14011_vm6, %v7896_v16, %v7892_v19  ;;  %v7903_v57 = vadd.f32 %v10462_v27, %v7902_v12  ;;  %v10468_v23 = vpop.eup %10467  ;;  %10471 = vrcp.f32 %v14037_v43  ;;  %v7938_v35 = vand.u32 2147483647, %v14004_v44 }
0x17df   : > { %v8010_v21 = vmul.f32 %v7897_v17, %v13951_v61  ;;  %v7930_v52 = vmul.f32 %v10468_v23, %v14004_v44  ;;  %v7917_v38 = vmul.f32 %v10464_v51, %v7916_v3  ;;  %v10470_v61 = vpop.eup %10469  ;;  %10473 = vpow2.f32 %v7776_v4 }
0x17e0   : > { %v7907_v60 = vsel %vm7906_vm9, %v10462_v27, %v7903_v57  ;;  %v14047_v50 = vadd.f32 1.0, %v10470_v61  ;;  %vm7935_vm13 = vweird.f32 %v10468_v23  ;;  %10475 = vpow2.f32 %v7778_v7 }
0x17e1   : > { %v7912_v56 = vsel %vm14024_vm8, %v7911_v11, %v7907_v60  ;;  %8074 = vmatmul.f32.gmra.mxu2 %v8010_v21  ;;  %v7931_v34 = vsub.f32 1.0, %v7930_v52  ;;  %v7918_v15 = vadd.f32 %v10464_v51, %v7917_v38  ;;  %vm7924_vm3 = vcmp.eq.f32.partialorder %v7923_v0, 8.507059e+37 }
0x17e2   : > { %v8011_v32 = vmul.f32 %v7912_v56, %v13954_v2  ;;  %10477 = vrcp.f32 %v14047_v50  ;;  %vm7934_vm4 = vweird.f32 %v14004_v44  ;;  %v7941_v47 = vor.u32 1.1754944e-38, %v7940_v5 }
0x17e3   : > { %v7932_v42 = vmul.f32 %v10468_v23, %v7931_v34  ;;  %v7922_v31 = vsel %vm7921_vm12, %v10464_v51, %v7918_v15  ;;  %vm7936_vm5 = vmor %vm7934_vm4, %vm7935_vm13  ;;  %vm7939_vm1 = vcmp.eq.f32.partialorder %v7938_v35, 8.507059e+37  ;;  %v7953_v44 = vand.u32 2147483647, %v14037_v43 }
0x17e4   : > { %8106 = vmatmul.f32.gmra.mxu3 %v8011_v32  ;;  %v7927_v2 = vsel %vm7924_vm3, %v7926_v26, %v7922_v31  ;;  %v10472_v30 = vpop.eup %10471  ;;  %vm7949_vm15 = vweird.f32 %v14037_v43  ;;  %v7970_v63 = vand.u32 2147483648, %v14047_v50  ;;  %v7968_v19 = vand.u32 2147483647, %v14047_v50 }
0x17e5   : > { %v7933_v14 = vadd.f32 %v10468_v23, %v7932_v42  ;;  %v8012_v53 = vmul.f32 %v7927_v2, %v13964_v9  ;;  %v7945_v13 = vmul.f32 %v10472_v30, %v14037_v43  ;;  %v10474_v37 = vpop.eup %10473  ;;  %v7955_v9 = vand.u32 2147483648, %v14037_v43 }
0x17e6   : > { %v10476_v62 = vpop.eup %10475  ;;  %v7792_v24 = vadd.f32 1.0, %v10474_v37  ;;  %vm7950_vm6 = vweird.f32 %v10472_v30  ;;  %vm7954_vm7 = vcmp.eq.f32.partialorder %v7953_v44, 8.507059e+37  ;;  %vm7964_vm9 = vweird.f32 %v14047_v50  ;;  %v8151_v37 = vld [vmem:[%s14132_s19 + $0x10] sm:$0xff] }
0x17e7   : > { %v7937_v46 = vsel %vm7936_vm5, %v10468_v23, %v7933_v14  ;;  %v7946_v55 = vsub.f32 1.0, %v7945_v13  ;;  %v7793_v28 = vadd.f32 1.0, %v10476_v62  ;;  %vm7951_vm2 = vmor %vm7949_vm15, %vm7950_vm6  ;;  %v7956_v22 = vor.u32 1.1754944e-38, %v7955_v9 }
0x17e8   : > { %v7942_v27 = vsel %vm7939_vm1, %v7941_v47, %v7937_v46  ;;  %v10478_v49 = vpop.eup %10477  ;;  %10479 = vrcp.f32 %v7792_v24  ;;  %v7971_v8 = vor.u32 1.1754944e-38, %v7970_v63  ;;  %vm7969_vm11 = vcmp.eq.f32.partialorder %v7968_v19, 8.507059e+37  ;;  %v8155_v47 = vld [vmem:[%s14132_s19 + $0x30] sm:$0xff]  ;;  %v8152_v46 = vld [vmem:[%s14132_s19 + $0x18] sm:$0xff] }
0x17e9   : > { %8076 = vmatmul.f32.gmra.mxu2 %v8012_v53  ;;  %v8013_v45 = vmul.f32 %v7942_v27, %v13967_v33  ;;  %v7947_v29 = vmul.f32 %v10472_v30, %v7946_v55  ;;  %v7960_v16 = vmul.f32 %v10478_v49, %v14047_v50  ;;  %10481 = vrcp.f32 %v7793_v28  ;;  %v8156_v53 = vld [vmem:[%s14132_s19 + $0x38] sm:$0xff]  ;;  %v8150_v27 = vld [vmem:[%s14132_s19 + $0x8] sm:$0xff]  ;;  %v8149_v55 = vld [vmem:[%s14132_s19] sm:$0xff] }
0x17ea   : > { %v8127_v20 = vpop.xlane.xlu0 %8126  ;;  %vm7965_vm8 = vweird.f32 %v10478_v49  ;;  %v7985_v60 = vand.u32 2147483648, %v7792_v24  ;;  %v7983_v52 = vand.u32 2147483647, %v7792_v24  ;;  %v8000_v7 = vand.u32 2147483648, %v7793_v28  ;;  %8168 = vmatpush.msrb.mxu0 %v8156_v53 }
0x17eb   : > { %v8128_v54 = vmul.f32 %v8127_v20, %v11596_v48  ;;  %v7948_v40 = vadd.f32 %v10472_v30, %v7947_v29  ;;  %v7961_v33 = vsub.f32 1.0, %v7960_v16  ;;  %vm7966_vm10 = vmor %vm7964_vm9, %vm7965_vm8  ;;  %v7998_v38 = vand.u32 2147483647, %v7793_v28 }
0x17ec   : > { %8108 = vmatmul.f32.gmra.mxu3 %v8013_v45  ;;  %v7986_v32 = vor.u32 1.1754944e-38, %v7985_v60  ;;  %vm7994_vm4 = vweird.f32 %v7793_v28  ;;  %vm7984_vm5 = vcmp.eq.f32.partialorder %v7983_v52, 8.507059e+37  ;;  %8169 = vmatpush.msrb.mxu0 %v8155_v47  ;;  %vm8180_vm8 = vcmask 253952  }
0x17ed   : > { %v14062_v51 = vsub.f32 %v13930_v25, %v8128_v54  ;;  %v7952_v12 = vsel %vm7951_vm2, %v10472_v30, %v7948_v40  ;;  %v7962_v18 = vmul.f32 %v10478_v49, %v7961_v33  ;;  %vm7999_vm6 = vcmp.eq.f32.partialorder %v7998_v38, 8.507059e+37 }
0x17ee   : > { %v7957_v11 = vsel %vm7954_vm7, %v7956_v22, %v7952_v12  ;;  %v10480_v10 = vpop.eup %10479  ;;  %v8122_v22 = vld [vmem:[%s14130_s17] sm:$0x1] }
0x17ef   : > { %v8130_v1 = vmul.f32 %v14062_v51, %v14062_v51  ;;  %v8014_v36 = vmul.f32 %v7957_v11, %v13987_v39  ;;  %v7963_v17 = vadd.f32 %v10478_v49, %v7962_v18  ;;  %v10482_v57 = vpop.eup %10481  ;;  %v7975_v25 = vmul.f32 %v10480_v10, %v7792_v24  ;;  %v8123_v18 = vld [vmem:[%s14131_s18] sm:$0x1] }
0x17f0   : > { %v7990_v21 = vmul.f32 %v10482_v57, %v7793_v28  ;;  %vm7980_vm12 = vweird.f32 %v10480_v10  ;;  %vm7995_vm13 = vweird.f32 %v10482_v57 }
0x17f1   : > { %v8131_v59 = vsel %vm8124_vm14, %v8130_v1, 0.0  ;;  %v7967_v23 = vsel %vm7966_vm10, %v10478_v49, %v7963_v17  ;;  %8078 = vmatmul.f32.gmra.mxu2 %v8014_v36  ;;  %v7976_v43 = vsub.f32 1.0, %v7975_v25  ;;  %vm7979_vm14 = vweird.f32 %v7792_v24  ;;  %vm7996_vm1 = vmor %vm7994_vm4, %vm7995_vm13 }
0x17f2   : > { %8132 = vadd.xlane.f32.xlu2 %v8131_v59  ;;  %v7972_v3 = vsel %vm7969_vm11, %v7971_v8, %v7967_v23  ;;  %v7991_v39 = vsub.f32 1.0, %v7990_v21  ;;  %vm7981_vm3 = vmor %vm7979_vm14, %vm7980_vm12 }
0x17f3   : > { %v8015_v4 = vmul.f32 %v7972_v3, %v13992_v6  ;;  %v7977_v0 = vmul.f32 %v10480_v10, %v7976_v43  ;;  %v8001_v6 = vor.u32 1.1754944e-38, %v8000_v7 }
0x17f4   : > { %v7992_v56 = vmul.f32 %v10482_v57, %v7991_v39 }
0x17f5   : > { %8110 = vmatmul.f32.gmra.mxu3 %v8015_v4  ;;  %v7978_v61 = vadd.f32 %v10480_v10, %v7977_v0 }
0x17f6   : > { %v7993_v26 = vadd.f32 %v10482_v57, %v7992_v56 }
0x17f7   : > { %v7982_v34 = vsel %vm7981_vm3, %v10480_v10, %v7978_v61 }
0x17f8   : > { %v7987_v15 = vsel %vm7984_vm5, %v7986_v32, %v7982_v34  ;;  %v7997_v5 = vsel %vm7996_vm1, %v10482_v57, %v7993_v26 }
0x17f9   : > { %v8016_v50 = vmul.f32 %v7987_v15, %v14017_v58  ;;  %v8002_v42 = vsel %vm7999_vm6, %v8001_v6, %v7997_v5  ;;  %v8154_v58 = vld [vmem:[%s14132_s19 + $0x28] sm:$0xff] }
0x17fa   : > { %v8017_v35 = vmul.f32 %v8002_v42, %v14020_v41  ;;  %8170 = vmatpush.msrb.mxu0 %v8154_v58  ;;  %v8153_v41 = vld [vmem:[%s14132_s19 + $0x20] sm:$0xff] }
0x17fb   : > { %8080 = vmatmul.f32.gmra.mxu2 %v8016_v50 }
0x17fc   : > { %8171 = vmatpush.msrb.mxu0 %v8153_v41 }
0x17fd   : > { %8112 = vmatmul.f32.gmra.mxu3 %v8017_v35 }
0x17fe   : > { %8172 = vmatpush.msrb.mxu0 %v8152_v46 }
0x1800   : > { %8173 = vmatpush.msrb.mxu0 %v8151_v37 }
0x1802   : > { %8174 = vmatpush.msrb.mxu0 %v8150_v27 }
0x1804   : > { %8175 = vmatpush.msrb.mxu0 %v8149_v55 }
0x1852   : > { %v8071_v31 = vpop.f32.mrf.mxu2 }
0x1853   : > { %v8103_v2 = vpop.f32.mrf.mxu3 }
0x185a   : > { %v8073_v14 = vpop.f32.mrf.mxu2 }
0x185d   : > { %v8105_v30 = vpop.f32.mrf.mxu3 }
0x1864   : > { %v8075_v13 = vpop.f32.mrf.mxu2 }
0x1865   : > { %v8133_v62 = vpop.xlane.xlu2 %8132 }
0x1866   : > { %v8134_v45 = vmul.f32 %v8133_v62, %v11596_v48 }
0x1867   : > { %v8107_v20 = vpop.f32.mrf.mxu3 }
0x1868   : > { %v8135_v24 = vadd.f32 1e-05, %v8134_v45 }
0x186a   : > { %10483 = vrsqrt.f32 %v8135_v24  ;;  %vm8142_vm2 = vweird.f32 %v8135_v24 }
0x186c   : > { %v8077_v49 = vpop.f32.mrf.mxu2 }
0x186f   : > { %v8109_v44 = vpop.f32.mrf.mxu3 }
0x1870   : > { %v10484_v9 = vpop.eup %10483 }
0x1871   : > { %v8137_v28 = vmul.f32 %v10484_v9, %v8135_v24  ;;  %vm8143_vm15 = vweird.f32 %v10484_v9 }
0x1872   : > { %vm8144_vm7 = vmor %vm8142_vm2, %vm8143_vm15 }
0x1873   : > { %v8138_v54 = vmul.f32 %v10484_v9, %v8137_v28 }
0x1874   : > { %v8079_v16 = vpop.f32.mrf.mxu2 }
0x1875   : > { %v8139_v29 = vmul.f32 0.5, %v8138_v54 }
0x1877   : > { %v8140_v40 = vsub.f32 1.5, %v8139_v29 }
0x1878   : > { %v8111_v48 = vpop.f32.mrf.mxu3 }
0x1879   : > { %v8141_v33 = vmul.f32 %v10484_v9, %v8140_v40 }
0x187b   : > { %v8145_v63 = vsel %vm8144_vm7, %v10484_v9, %v8141_v33 }
0x187c   : > { %v8146_v12 = vmul.f32 %v8145_v63, %v14062_v51 }
0x187e   : > { %v8147_v19 = vmul.f32 %v8146_v12, %v8122_v22  ;;  %v8081_v1 = vpop.f32.mrf.mxu2 }
0x1880   : > { %v8148_v11 = vadd.f32 %v8147_v19, %v8123_v18  ;;  %v8113_v10 = vpop.f32.mrf.mxu3 }
0x1882   : > { %9687 = vmatmul.msk.f32.vlgmr.msrb.gmra.mxu0 %vm3371_vm0, %v8148_v11 }
0x18ff   : > { %v8177_v36 = vpop.f32.mrf.mxu0 }
0x1900   : > { %8181 = vst.msk [vmem:[%s625_s25] sm:$0x1] %vm8180_vm8, %v8177_v36 }
0x1901 PF: > { %s30_s1 = sadd.s32 1, %s10491_s1  }
0x1902   : > { %p27_p4 = scmp.ge.s32.totalorder %s30_s1, 6  }
0x1904   :  { %29 = sbr.rel (!%p27_p4) target bundleno = 6 (0x6), region = 142 }

</bundles_post_ra>
